<compile_context>
chip_gen: v6e
topology: v6e:2x2x1
jax: 0.10.0
libtpu: 0.0.40
codegen_flags: <defaults>
</compile_context>

<pallas_src>
import jax
import jax.numpy as jnp
from jax.experimental import pallas as pl
from jax.experimental.pallas import tpu as pltpu

# TODO(synk): in the source `label_data` is empty so fc11 = Linear(1024, 0) is
# degenerate; we use 10 output classes so the demo is runnable.
NUM_CLASSES = 10
NPAD = 128            # lane-dense padded logit width (sliced back to NUM_CLASSES)
NB = 8                # images per grid step (batch block)
CH = NB * 64          # lanes of one pooled phase plane: (image, 8x8 spatial)


# ----------------------------- fused kernel -----------------------------

def _fused_model2_kernel(cols1_ref, w1_ref, b1_ref, w2_ref, b2_ref,
                         wfc_ref, bfc_ref, out_ref, feat_ref):
    # --- conv1: one channel-major MXU matmul over the 9 taps (bf16 in, f32 acc).
    # cols1 lane order: ((phiR*8 + phiC)*NB + img)*64 + a*8 + b   with conv1 output
    # pixel (Y, X) = (8a + phiR, 8b + phiC) of image `img`.
    c1 = jnp.dot(w1_ref[...], cols1_ref[0],
                 preferred_element_type=jnp.float32)                 # (16, NB*4096)

    # --- pool1 (conv1 bias + ReLU deferred past the max; both commute with it).
    # P[m][n][cin, img*64 + a*8 + b] = pool1 of image `img` at pixel (4a+m, 4b+n).
    b1 = b1_ref[...]                                                  # (16, 1)

    def c1_chunk(phi_r, phi_c):
        phi = phi_r * 8 + phi_c
        return c1[:, phi * CH:(phi + 1) * CH]                         # (16, CH)

    P = [[jnp.maximum(
            jnp.maximum(jnp.maximum(c1_chunk(2 * m, 2 * n), c1_chunk(2 * m, 2 * n + 1)),
                        jnp.maximum(c1_chunk(2 * m + 1, 2 * n), c1_chunk(2 * m + 1, 2 * n + 1)))
            + b1, 0.0)
          for n in range(4)] for m in range(4)]

    # --- conv2 taps = lane-shifted pool1 phase planes.  Only 9 of the 25 distinct
    # (plane, shift) combinations actually shift; the border masks implement the
    # conv2 zero padding (and also neutralise cross-image wrap of the shift).
    lane = jax.lax.broadcasted_iota(jnp.int32, (16, CH), 1)
    y3_ok = (lane % 64) >= 8          # conv2/pool2 output row  y3 > 0
    x3_ok = (lane % 8) != 0           # conv2/pool2 output col  x3 > 0
    cache = {}

    def tap_plane(m, n, da, db):
        key = (m, n, da, db)
        if key not in cache:
            p = P[m][n]
            if da == 0 and db == 0:
                cache[key] = p
            else:
                sh = (-da) * 8 + (-db)                                # da, db in {-1, 0}
                shifted = jnp.concatenate(
                    [jnp.zeros((16, sh), jnp.float32), p[:, :CH - sh]], axis=1)
                msk = y3_ok if da else None
                if db:
                    msk = x3_ok if msk is None else jnp.logical_and(msk, x3_ok)
                cache[key] = jnp.where(msk, shifted, 0.0)
        return cache[key]

    # --- conv2 + ReLU + pool2: one MXU dot per pool2 phase (r, s); pool2 is an
    # elementwise max of the four phase results (bias/ReLU applied after the max).
    w2 = w2_ref[...]                                                  # (16, 144)
    p2 = None
    for r in range(2):
        for s in range(2):
            taps = []
            for kh in range(3):
                t = 2 * r + kh - 1
                m, da = t % 4, (-1 if t < 0 else 0)
                for kw in range(3):
                    u = 2 * s + kw - 1
                    n, db = u % 4, (-1 if u < 0 else 0)
                    taps.append(tap_plane(m, n, da, db))
            cols2 = jnp.concatenate(taps, axis=0)                     # (144, CH)
            g = jnp.dot(w2, cols2, preferred_element_type=jnp.float32)  # (16, CH)
            p2 = g if p2 is None else jnp.maximum(p2, g)
    p2 = jnp.maximum(p2 + b2_ref[...], 0.0)                           # (16, CH)

    # --- NCHW flatten into a lane-dense (NB, 1024) feature slab (plain row stores).
    # feat[img, cin*64 + y3*8 + x3] = pool2[img, cin, y3, x3]
    for b in range(NB):
        for c in range(16):
            feat_ref[b:b + 1, c * 64:(c + 1) * 64] = p2[c:c + 1, b * 64:(b + 1) * 64]

    # --- fc: one (NB, 1024) x (1024, 128) MXU matmul, lane-dense output.
    out_ref[...] = (jnp.dot(feat_ref[...], wfc_ref[...],
                            preferred_element_type=jnp.float32) + bfc_ref[...])


# ----------------------------- wrappers -----------------------------

def pack_params(w1, b1, w2, b2, wfc, bfc):
    """One-time repack of PyTorch-layout parameters into kernel layouts."""
    w1cm = jnp.asarray(w1).reshape(16, 9).astype(jnp.bfloat16)        # [cout, kh*3+kw]
    w2cm = jnp.transpose(jnp.asarray(w2), (0, 2, 3, 1)).reshape(16, 144)  # [cout, (kh*3+kw)*16+cin]
    n = wfc.shape[0]
    wfcp = jnp.pad(jnp.asarray(wfc).T, ((0, 0), (0, NPAD - n))).astype(jnp.float32)
    bfcp = jnp.pad(jnp.asarray(bfc).reshape(1, n), ((0, 0), (0, NPAD - n))).astype(jnp.float32)
    return (w1cm,
            jnp.asarray(b1).reshape(16, 1).astype(jnp.float32),
            w2cm.astype(jnp.float32),
            jnp.asarray(b2).reshape(16, 1).astype(jnp.float32),
            wfcp, bfcp)


@jax.jit
def model2_forward(x, packed):
    """x: (B, 128, 128) single-channel images (the torch forward adds the channel dim)."""
    w1cm, b1c, w2cm, b2c, wfcp, bfcp = packed
    B, H, W = x.shape
    assert H == 128 and W == 128, "fc11 expects 1024 = 16*8*8 features -> 128x128 inputs"
    Bp = ((B + NB - 1) // NB) * NB
    nG = Bp // NB

    xf = x.astype(jnp.float32)
    if Bp != B:
        xf = jnp.pad(xf, ((0, Bp - B), (0, 0), (0, 0)))
    xpad = jnp.pad(xf, ((0, 0), (1, 1), (1, 1)))                      # (Bp, 130, 130)

    # conv1 im2col, pre-ordered so in-kernel pooling / conv2 tap gathers are
    # contiguous, vreg-aligned lane slices.  Streamed to the kernel as bf16.
    # TODO(synk): this reorder is still an XLA transpose over ~the input bytes; it
    # could be moved in-kernel (from per-parity planes) to save one HBM round trip.
    taps = jnp.stack([xpad[:, kh:kh + 128:2, kw:kw + 128:2]
                      for kh in range(3) for kw in range(3)], axis=1)  # (Bp, 9, 64, 64)
    t = taps.reshape(nG, NB, 9, 8, 8, 8, 8)           # (g, img, tap, a, phiR, b, phiC)
    t = t.transpose(0, 2, 4, 6, 1, 3, 5)              # (g, tap, phiR, phiC, img, a, b)
    cols1 = t.reshape(nG, 9, NB * 4096).astype(jnp.bfloat16)

    out = pl.pallas_call(
        _fused_model2_kernel,
        out_shape=jax.ShapeDtypeStruct((Bp, NPAD), jnp.float32),
        grid=(nG,),
        in_specs=[
            pl.BlockSpec((1, 9, NB * 4096), lambda g: (g, 0, 0)),
            pl.BlockSpec((16, 9), lambda g: (0, 0)),
            pl.BlockSpec((16, 1), lambda g: (0, 0)),
            pl.BlockSpec((16, 144), lambda g: (0, 0)),
            pl.BlockSpec((16, 1), lambda g: (0, 0)),
            pl.BlockSpec((1024, NPAD), lambda g: (0, 0)),
            pl.BlockSpec((1, NPAD), lambda g: (0, 0)),
        ],
        out_specs=pl.BlockSpec((NB, NPAD), lambda g: (g, 0)),
        scratch_shapes=[pltpu.VMEM((NB, 1024), jnp.float32)],
        compiler_params=pltpu.CompilerParams(
            dimension_semantics=("parallel",),
            vmem_limit_bytes=32 * 1024 * 1024),
    )(cols1, w1cm, b1c, w2cm, b2c, wfcp, bfcp)
    return out[:B, :NUM_CLASSES]


def model2_reference(x, w1, b1, w2, b2, wfc, bfc):
    """Pure-JAX reference with PyTorch semantics (for self-check)."""
    dn = ("NCHW", "OIHW", "NCHW")
    hp = jax.lax.Precision.HIGHEST
    y = x[:, None, :, :].astype(jnp.float32)
    y = jax.lax.conv_general_dilated(y, w1, (2, 2), ((1, 1), (1, 1)),
                                     dimension_numbers=dn, precision=hp)
    y = jax.nn.relu(y + b1[None, :, None, None])
    y = jax.lax.reduce_window(y, -jnp.inf, jax.lax.max, (1, 1, 2, 2), (1, 1, 2, 2), "VALID")
    y = jax.lax.conv_general_dilated(y, w2, (2, 2), ((1, 1), (1, 1)),
                                     dimension_numbers=dn, precision=hp)
    y = jax.nn.relu(y + b2[None, :, None, None])
    y = jax.lax.reduce_window(y, -jnp.inf, jax.lax.max, (1, 1, 2, 2), (1, 1, 2, 2), "VALID")
    flat = y.reshape(y.shape[0], -1)                                  # NCHW flatten
    return jnp.dot(flat, wfc.T, precision=hp) + bfc


# ----------------------------- demo -----------------------------

if __name__ == "__main__":
    key = jax.random.PRNGKey(0)
    keys = jax.random.split(key, 7)

    B, H, W = 16, 128, 128
    x = jax.random.normal(keys[0], (B, H, W), jnp.float32)
    # The kernel streams the image taps as bf16; pre-round x / conv1 weights so the
    # bf16 cast is exact and the check against the f32 reference stays tight.
    x = x.astype(jnp.bfloat16).astype(jnp.float32)

    w1 = (jax.random.normal(keys[1], (16, 1, 3, 3), jnp.float32) * 0.2)
    w1 = w1.astype(jnp.bfloat16).astype(jnp.float32)
    b1 = jax.random.normal(keys[2], (16,), jnp.float32) * 0.1
    w2 = jax.random.normal(keys[3], (16, 16, 3, 3), jnp.float32) * 0.1
    b2 = jax.random.normal(keys[4], (16,), jnp.float32) * 0.1
    wfc = jax.random.normal(keys[5], (NUM_CLASSES, 1024), jnp.float32) * 0.03
    bfc = jax.random.normal(keys[6], (NUM_CLASSES,), jnp.float32) * 0.03

    packed = pack_params(w1, b1, w2, b2, wfc, bfc)   # pre-pack once (outside forward)

    out = jax.block_until_ready(model2_forward(x, packed))
    assert out.shape == (B, NUM_CLASSES), out.shape

    ref = jax.block_until_ready(model2_reference(x, w1, b1, w2, b2, wfc, bfc))
    if not jnp.allclose(out, ref, rtol=2e-2, atol=2e-2):
        raise AssertionError(
            f"mismatch vs reference, max abs err = {float(jnp.max(jnp.abs(out - ref)))}")
    print("KERNEL_OK")
</pallas_src>

<mosaic_0001>
module attributes {stable_mosaic.version = 11 : i64} {
  func.func @_fused_model2_kernel(%arg0: i32, %arg1: memref<1x9x32768xbf16, #tpu.memory_space<vmem>>, %arg2: memref<16x9xbf16, #tpu.memory_space<vmem>>, %arg3: memref<16x1xf32, #tpu.memory_space<vmem>>, %arg4: memref<16x144xf32, #tpu.memory_space<vmem>>, %arg5: memref<16x1xf32, #tpu.memory_space<vmem>>, %arg6: memref<1024x128xf32, #tpu.memory_space<vmem>>, %arg7: memref<1x128xf32, #tpu.memory_space<vmem>>, %arg8: memref<8x128xf32, #tpu.memory_space<vmem>>, %arg9: memref<8x1024xf32, #tpu.memory_space<vmem>>) attributes {dimension_semantics = [#tpu.dimension_semantics<parallel>], iteration_bounds = array<i64: 2>, scalar_prefetch = 0 : i64, scratch_operands = 1 : i64, tpu.core_type = #tpu.core_type<tc>, window_params = [{transform_indices = @transform_0, window_bounds = array<i64: 1, 9, 32768>}, {pipeline_mode = #tpu.pipeline_mode<synchronous>, transform_indices = @transform_1, window_bounds = array<i64: 16, 9>}, {pipeline_mode = #tpu.pipeline_mode<synchronous>, transform_indices = @transform_2, window_bounds = array<i64: 16, 1>}, {pipeline_mode = #tpu.pipeline_mode<synchronous>, transform_indices = @transform_3, window_bounds = array<i64: 16, 144>}, {pipeline_mode = #tpu.pipeline_mode<synchronous>, transform_indices = @transform_4, window_bounds = array<i64: 16, 1>}, {pipeline_mode = #tpu.pipeline_mode<synchronous>, transform_indices = @transform_5, window_bounds = array<i64: 1024, 128>}, {pipeline_mode = #tpu.pipeline_mode<synchronous>, transform_indices = @transform_6, window_bounds = array<i64: 1, 128>}, {transform_indices = @transform_7, window_bounds = array<i64: 8, 128>}]} {
    %c0 = arith.constant 0 : index
    %c0_0 = arith.constant 0 : index
    %0 = vector.load %arg2[%c0, %c0_0] : memref<16x9xbf16, #tpu.memory_space<vmem>>, vector<16x9xbf16>
    %c0_1 = arith.constant 0 : index
    %c0_2 = arith.constant 0 : index
    %c0_3 = arith.constant 0 : index
    %1 = vector.load %arg1[%c0_1, %c0_2, %c0_3] : memref<1x9x32768xbf16, #tpu.memory_space<vmem>>, vector<1x9x32768xbf16>
    %2 = vector.shape_cast %1 : vector<1x9x32768xbf16> to vector<9x32768xbf16>
    %cst = arith.constant dense<0.000000e+00> : vector<16x32768xf32>
    %3 = tpu.matmul %0, %2, %cst {dimension_numbers = #tpu.dot_dimension_numbers<[1], [0], [0], [1], [0, 0, 1, 1], [], []>} : vector<16x9xbf16>, vector<9x32768xbf16>, vector<16x32768xf32> -> vector<16x32768xf32>
    %c0_4 = arith.constant 0 : index
    %c0_5 = arith.constant 0 : index
    %4 = vector.load %arg3[%c0_4, %c0_5] : memref<16x1xf32, #tpu.memory_space<vmem>>, vector<16x1xf32>
    %5 = vector.extract_strided_slice %3 {offsets = [0, 0], sizes = [16, 512], strides = [1, 1]} : vector<16x32768xf32> to vector<16x512xf32>
    %6 = vector.extract_strided_slice %3 {offsets = [0, 512], sizes = [16, 512], strides = [1, 1]} : vector<16x32768xf32> to vector<16x512xf32>
    %7 = arith.maximumf %5, %6 : vector<16x512xf32>
    %8 = vector.extract_strided_slice %3 {offsets = [0, 4096], sizes = [16, 512], strides = [1, 1]} : vector<16x32768xf32> to vector<16x512xf32>
    %9 = vector.extract_strided_slice %3 {offsets = [0, 4608], sizes = [16, 512], strides = [1, 1]} : vector<16x32768xf32> to vector<16x512xf32>
    %10 = arith.maximumf %8, %9 : vector<16x512xf32>
    %11 = arith.maximumf %7, %10 : vector<16x512xf32>
    %12 = vector.broadcast %4 : vector<16x1xf32> to vector<16x512xf32>
    %13 = arith.addf %11, %12 : vector<16x512xf32>
    %cst_6 = arith.constant 0.000000e+00 : f32
    %14 = vector.broadcast %cst_6 : f32 to vector<16x512xf32>
    %15 = arith.maximumf %13, %14 : vector<16x512xf32>
    %16 = vector.extract_strided_slice %3 {offsets = [0, 1024], sizes = [16, 512], strides = [1, 1]} : vector<16x32768xf32> to vector<16x512xf32>
    %17 = vector.extract_strided_slice %3 {offsets = [0, 1536], sizes = [16, 512], strides = [1, 1]} : vector<16x32768xf32> to vector<16x512xf32>
    %18 = arith.maximumf %16, %17 : vector<16x512xf32>
    %19 = vector.extract_strided_slice %3 {offsets = [0, 5120], sizes = [16, 512], strides = [1, 1]} : vector<16x32768xf32> to vector<16x512xf32>
    %20 = vector.extract_strided_slice %3 {offsets = [0, 5632], sizes = [16, 512], strides = [1, 1]} : vector<16x32768xf32> to vector<16x512xf32>
    %21 = arith.maximumf %19, %20 : vector<16x512xf32>
    %22 = arith.maximumf %18, %21 : vector<16x512xf32>
    %23 = vector.broadcast %4 : vector<16x1xf32> to vector<16x512xf32>
    %24 = arith.addf %22, %23 : vector<16x512xf32>
    %cst_7 = arith.constant 0.000000e+00 : f32
    %25 = vector.broadcast %cst_7 : f32 to vector<16x512xf32>
    %26 = arith.maximumf %24, %25 : vector<16x512xf32>
    %27 = vector.extract_strided_slice %3 {offsets = [0, 2048], sizes = [16, 512], strides = [1, 1]} : vector<16x32768xf32> to vector<16x512xf32>
    %28 = vector.extract_strided_slice %3 {offsets = [0, 2560], sizes = [16, 512], strides = [1, 1]} : vector<16x32768xf32> to vector<16x512xf32>
    %29 = arith.maximumf %27, %28 : vector<16x512xf32>
    %30 = vector.extract_strided_slice %3 {offsets = [0, 6144], sizes = [16, 512], strides = [1, 1]} : vector<16x32768xf32> to vector<16x512xf32>
    %31 = vector.extract_strided_slice %3 {offsets = [0, 6656], sizes = [16, 512], strides = [1, 1]} : vector<16x32768xf32> to vector<16x512xf32>
    %32 = arith.maximumf %30, %31 : vector<16x512xf32>
    %33 = arith.maximumf %29, %32 : vector<16x512xf32>
    %34 = vector.broadcast %4 : vector<16x1xf32> to vector<16x512xf32>
    %35 = arith.addf %33, %34 : vector<16x512xf32>
    %cst_8 = arith.constant 0.000000e+00 : f32
    %36 = vector.broadcast %cst_8 : f32 to vector<16x512xf32>
    %37 = arith.maximumf %35, %36 : vector<16x512xf32>
    %38 = vector.extract_strided_slice %3 {offsets = [0, 3072], sizes = [16, 512], strides = [1, 1]} : vector<16x32768xf32> to vector<16x512xf32>
    %39 = vector.extract_strided_slice %3 {offsets = [0, 3584], sizes = [16, 512], strides = [1, 1]} : vector<16x32768xf32> to vector<16x512xf32>
    %40 = arith.maximumf %38, %39 : vector<16x512xf32>
    %41 = vector.extract_strided_slice %3 {offsets = [0, 7168], sizes = [16, 512], strides = [1, 1]} : vector<16x32768xf32> to vector<16x512xf32>
    %42 = vector.extract_strided_slice %3 {offsets = [0, 7680], sizes = [16, 512], strides = [1, 1]} : vector<16x32768xf32> to vector<16x512xf32>
    %43 = arith.maximumf %41, %42 : vector<16x512xf32>
    %44 = arith.maximumf %40, %43 : vector<16x512xf32>
    %45 = vector.broadcast %4 : vector<16x1xf32> to vector<16x512xf32>
    %46 = arith.addf %44, %45 : vector<16x512xf32>
    %cst_9 = arith.constant 0.000000e+00 : f32
    %47 = vector.broadcast %cst_9 : f32 to vector<16x512xf32>
    %48 = arith.maximumf %46, %47 : vector<16x512xf32>
    %49 = vector.extract_strided_slice %3 {offsets = [0, 8192], sizes = [16, 512], strides = [1, 1]} : vector<16x32768xf32> to vector<16x512xf32>
    %50 = vector.extract_strided_slice %3 {offsets = [0, 8704], sizes = [16, 512], strides = [1, 1]} : vector<16x32768xf32> to vector<16x512xf32>
    %51 = arith.maximumf %49, %50 : vector<16x512xf32>
    %52 = vector.extract_strided_slice %3 {offsets = [0, 12288], sizes = [16, 512], strides = [1, 1]} : vector<16x32768xf32> to vector<16x512xf32>
    %53 = vector.extract_strided_slice %3 {offsets = [0, 12800], sizes = [16, 512], strides = [1, 1]} : vector<16x32768xf32> to vector<16x512xf32>
    %54 = arith.maximumf %52, %53 : vector<16x512xf32>
    %55 = arith.maximumf %51, %54 : vector<16x512xf32>
    %56 = vector.broadcast %4 : vector<16x1xf32> to vector<16x512xf32>
    %57 = arith.addf %55, %56 : vector<16x512xf32>
    %cst_10 = arith.constant 0.000000e+00 : f32
    %58 = vector.broadcast %cst_10 : f32 to vector<16x512xf32>
    %59 = arith.maximumf %57, %58 : vector<16x512xf32>
    %60 = vector.extract_strided_slice %3 {offsets = [0, 9216], sizes = [16, 512], strides = [1, 1]} : vector<16x32768xf32> to vector<16x512xf32>
    %61 = vector.extract_strided_slice %3 {offsets = [0, 9728], sizes = [16, 512], strides = [1, 1]} : vector<16x32768xf32> to vector<16x512xf32>
    %62 = arith.maximumf %60, %61 : vector<16x512xf32>
    %63 = vector.extract_strided_slice %3 {offsets = [0, 13312], sizes = [16, 512], strides = [1, 1]} : vector<16x32768xf32> to vector<16x512xf32>
    %64 = vector.extract_strided_slice %3 {offsets = [0, 13824], sizes = [16, 512], strides = [1, 1]} : vector<16x32768xf32> to vector<16x512xf32>
    %65 = arith.maximumf %63, %64 : vector<16x512xf32>
    %66 = arith.maximumf %62, %65 : vector<16x512xf32>
    %67 = vector.broadcast %4 : vector<16x1xf32> to vector<16x512xf32>
    %68 = arith.addf %66, %67 : vector<16x512xf32>
    %cst_11 = arith.constant 0.000000e+00 : f32
    %69 = vector.broadcast %cst_11 : f32 to vector<16x512xf32>
    %70 = arith.maximumf %68, %69 : vector<16x512xf32>
    %71 = vector.extract_strided_slice %3 {offsets = [0, 10240], sizes = [16, 512], strides = [1, 1]} : vector<16x32768xf32> to vector<16x512xf32>
    %72 = vector.extract_strided_slice %3 {offsets = [0, 10752], sizes = [16, 512], strides = [1, 1]} : vector<16x32768xf32> to vector<16x512xf32>
    %73 = arith.maximumf %71, %72 : vector<16x512xf32>
    %74 = vector.extract_strided_slice %3 {offsets = [0, 14336], sizes = [16, 512], strides = [1, 1]} : vector<16x32768xf32> to vector<16x512xf32>
    %75 = vector.extract_strided_slice %3 {offsets = [0, 14848], sizes = [16, 512], strides = [1, 1]} : vector<16x32768xf32> to vector<16x512xf32>
    %76 = arith.maximumf %74, %75 : vector<16x512xf32>
    %77 = arith.maximumf %73, %76 : vector<16x512xf32>
    %78 = vector.broadcast %4 : vector<16x1xf32> to vector<16x512xf32>
    %79 = arith.addf %77, %78 : vector<16x512xf32>
    %cst_12 = arith.constant 0.000000e+00 : f32
    %80 = vector.broadcast %cst_12 : f32 to vector<16x512xf32>
    %81 = arith.maximumf %79, %80 : vector<16x512xf32>
    %82 = vector.extract_strided_slice %3 {offsets = [0, 11264], sizes = [16, 512], strides = [1, 1]} : vector<16x32768xf32> to vector<16x512xf32>
    %83 = vector.extract_strided_slice %3 {offsets = [0, 11776], sizes = [16, 512], strides = [1, 1]} : vector<16x32768xf32> to vector<16x512xf32>
    %84 = arith.maximumf %82, %83 : vector<16x512xf32>
    %85 = vector.extract_strided_slice %3 {offsets = [0, 15360], sizes = [16, 512], strides = [1, 1]} : vector<16x32768xf32> to vector<16x512xf32>
    %86 = vector.extract_strided_slice %3 {offsets = [0, 15872], sizes = [16, 512], strides = [1, 1]} : vector<16x32768xf32> to vector<16x512xf32>
    %87 = arith.maximumf %85, %86 : vector<16x512xf32>
    %88 = arith.maximumf %84, %87 : vector<16x512xf32>
    %89 = vector.broadcast %4 : vector<16x1xf32> to vector<16x512xf32>
    %90 = arith.addf %88, %89 : vector<16x512xf32>
    %cst_13 = arith.constant 0.000000e+00 : f32
    %91 = vector.broadcast %cst_13 : f32 to vector<16x512xf32>
    %92 = arith.maximumf %90, %91 : vector<16x512xf32>
    %93 = vector.extract_strided_slice %3 {offsets = [0, 16384], sizes = [16, 512], strides = [1, 1]} : vector<16x32768xf32> to vector<16x512xf32>
    %94 = vector.extract_strided_slice %3 {offsets = [0, 16896], sizes = [16, 512], strides = [1, 1]} : vector<16x32768xf32> to vector<16x512xf32>
    %95 = arith.maximumf %93, %94 : vector<16x512xf32>
    %96 = vector.extract_strided_slice %3 {offsets = [0, 20480], sizes = [16, 512], strides = [1, 1]} : vector<16x32768xf32> to vector<16x512xf32>
    %97 = vector.extract_strided_slice %3 {offsets = [0, 20992], sizes = [16, 512], strides = [1, 1]} : vector<16x32768xf32> to vector<16x512xf32>
    %98 = arith.maximumf %96, %97 : vector<16x512xf32>
    %99 = arith.maximumf %95, %98 : vector<16x512xf32>
    %100 = vector.broadcast %4 : vector<16x1xf32> to vector<16x512xf32>
    %101 = arith.addf %99, %100 : vector<16x512xf32>
    %cst_14 = arith.constant 0.000000e+00 : f32
    %102 = vector.broadcast %cst_14 : f32 to vector<16x512xf32>
    %103 = arith.maximumf %101, %102 : vector<16x512xf32>
    %104 = vector.extract_strided_slice %3 {offsets = [0, 17408], sizes = [16, 512], strides = [1, 1]} : vector<16x32768xf32> to vector<16x512xf32>
    %105 = vector.extract_strided_slice %3 {offsets = [0, 17920], sizes = [16, 512], strides = [1, 1]} : vector<16x32768xf32> to vector<16x512xf32>
    %106 = arith.maximumf %104, %105 : vector<16x512xf32>
    %107 = vector.extract_strided_slice %3 {offsets = [0, 21504], sizes = [16, 512], strides = [1, 1]} : vector<16x32768xf32> to vector<16x512xf32>
    %108 = vector.extract_strided_slice %3 {offsets = [0, 22016], sizes = [16, 512], strides = [1, 1]} : vector<16x32768xf32> to vector<16x512xf32>
    %109 = arith.maximumf %107, %108 : vector<16x512xf32>
    %110 = arith.maximumf %106, %109 : vector<16x512xf32>
    %111 = vector.broadcast %4 : vector<16x1xf32> to vector<16x512xf32>
    %112 = arith.addf %110, %111 : vector<16x512xf32>
    %cst_15 = arith.constant 0.000000e+00 : f32
    %113 = vector.broadcast %cst_15 : f32 to vector<16x512xf32>
    %114 = arith.maximumf %112, %113 : vector<16x512xf32>
    %115 = vector.extract_strided_slice %3 {offsets = [0, 18432], sizes = [16, 512], strides = [1, 1]} : vector<16x32768xf32> to vector<16x512xf32>
    %116 = vector.extract_strided_slice %3 {offsets = [0, 18944], sizes = [16, 512], strides = [1, 1]} : vector<16x32768xf32> to vector<16x512xf32>
    %117 = arith.maximumf %115, %116 : vector<16x512xf32>
    %118 = vector.extract_strided_slice %3 {offsets = [0, 22528], sizes = [16, 512], strides = [1, 1]} : vector<16x32768xf32> to vector<16x512xf32>
    %119 = vector.extract_strided_slice %3 {offsets = [0, 23040], sizes = [16, 512], strides = [1, 1]} : vector<16x32768xf32> to vector<16x512xf32>
    %120 = arith.maximumf %118, %119 : vector<16x512xf32>
    %121 = arith.maximumf %117, %120 : vector<16x512xf32>
    %122 = vector.broadcast %4 : vector<16x1xf32> to vector<16x512xf32>
    %123 = arith.addf %121, %122 : vector<16x512xf32>
    %cst_16 = arith.constant 0.000000e+00 : f32
    %124 = vector.broadcast %cst_16 : f32 to vector<16x512xf32>
    %125 = arith.maximumf %123, %124 : vector<16x512xf32>
    %126 = vector.extract_strided_slice %3 {offsets = [0, 19456], sizes = [16, 512], strides = [1, 1]} : vector<16x32768xf32> to vector<16x512xf32>
    %127 = vector.extract_strided_slice %3 {offsets = [0, 19968], sizes = [16, 512], strides = [1, 1]} : vector<16x32768xf32> to vector<16x512xf32>
    %128 = arith.maximumf %126, %127 : vector<16x512xf32>
    %129 = vector.extract_strided_slice %3 {offsets = [0, 23552], sizes = [16, 512], strides = [1, 1]} : vector<16x32768xf32> to vector<16x512xf32>
    %130 = vector.extract_strided_slice %3 {offsets = [0, 24064], sizes = [16, 512], strides = [1, 1]} : vector<16x32768xf32> to vector<16x512xf32>
    %131 = arith.maximumf %129, %130 : vector<16x512xf32>
    %132 = arith.maximumf %128, %131 : vector<16x512xf32>
    %133 = vector.broadcast %4 : vector<16x1xf32> to vector<16x512xf32>
    %134 = arith.addf %132, %133 : vector<16x512xf32>
    %cst_17 = arith.constant 0.000000e+00 : f32
    %135 = vector.broadcast %cst_17 : f32 to vector<16x512xf32>
    %136 = arith.maximumf %134, %135 : vector<16x512xf32>
    %137 = vector.extract_strided_slice %3 {offsets = [0, 24576], sizes = [16, 512], strides = [1, 1]} : vector<16x32768xf32> to vector<16x512xf32>
    %138 = vector.extract_strided_slice %3 {offsets = [0, 25088], sizes = [16, 512], strides = [1, 1]} : vector<16x32768xf32> to vector<16x512xf32>
    %139 = arith.maximumf %137, %138 : vector<16x512xf32>
    %140 = vector.extract_strided_slice %3 {offsets = [0, 28672], sizes = [16, 512], strides = [1, 1]} : vector<16x32768xf32> to vector<16x512xf32>
    %141 = vector.extract_strided_slice %3 {offsets = [0, 29184], sizes = [16, 512], strides = [1, 1]} : vector<16x32768xf32> to vector<16x512xf32>
    %142 = arith.maximumf %140, %141 : vector<16x512xf32>
    %143 = arith.maximumf %139, %142 : vector<16x512xf32>
    %144 = vector.broadcast %4 : vector<16x1xf32> to vector<16x512xf32>
    %145 = arith.addf %143, %144 : vector<16x512xf32>
    %cst_18 = arith.constant 0.000000e+00 : f32
    %146 = vector.broadcast %cst_18 : f32 to vector<16x512xf32>
    %147 = arith.maximumf %145, %146 : vector<16x512xf32>
    %148 = vector.extract_strided_slice %3 {offsets = [0, 25600], sizes = [16, 512], strides = [1, 1]} : vector<16x32768xf32> to vector<16x512xf32>
    %149 = vector.extract_strided_slice %3 {offsets = [0, 26112], sizes = [16, 512], strides = [1, 1]} : vector<16x32768xf32> to vector<16x512xf32>
    %150 = arith.maximumf %148, %149 : vector<16x512xf32>
    %151 = vector.extract_strided_slice %3 {offsets = [0, 29696], sizes = [16, 512], strides = [1, 1]} : vector<16x32768xf32> to vector<16x512xf32>
    %152 = vector.extract_strided_slice %3 {offsets = [0, 30208], sizes = [16, 512], strides = [1, 1]} : vector<16x32768xf32> to vector<16x512xf32>
    %153 = arith.maximumf %151, %152 : vector<16x512xf32>
    %154 = arith.maximumf %150, %153 : vector<16x512xf32>
    %155 = vector.broadcast %4 : vector<16x1xf32> to vector<16x512xf32>
    %156 = arith.addf %154, %155 : vector<16x512xf32>
    %cst_19 = arith.constant 0.000000e+00 : f32
    %157 = vector.broadcast %cst_19 : f32 to vector<16x512xf32>
    %158 = arith.maximumf %156, %157 : vector<16x512xf32>
    %159 = vector.extract_strided_slice %3 {offsets = [0, 26624], sizes = [16, 512], strides = [1, 1]} : vector<16x32768xf32> to vector<16x512xf32>
    %160 = vector.extract_strided_slice %3 {offsets = [0, 27136], sizes = [16, 512], strides = [1, 1]} : vector<16x32768xf32> to vector<16x512xf32>
    %161 = arith.maximumf %159, %160 : vector<16x512xf32>
    %162 = vector.extract_strided_slice %3 {offsets = [0, 30720], sizes = [16, 512], strides = [1, 1]} : vector<16x32768xf32> to vector<16x512xf32>
    %163 = vector.extract_strided_slice %3 {offsets = [0, 31232], sizes = [16, 512], strides = [1, 1]} : vector<16x32768xf32> to vector<16x512xf32>
    %164 = arith.maximumf %162, %163 : vector<16x512xf32>
    %165 = arith.maximumf %161, %164 : vector<16x512xf32>
    %166 = vector.broadcast %4 : vector<16x1xf32> to vector<16x512xf32>
    %167 = arith.addf %165, %166 : vector<16x512xf32>
    %cst_20 = arith.constant 0.000000e+00 : f32
    %168 = vector.broadcast %cst_20 : f32 to vector<16x512xf32>
    %169 = arith.maximumf %167, %168 : vector<16x512xf32>
    %170 = vector.extract_strided_slice %3 {offsets = [0, 27648], sizes = [16, 512], strides = [1, 1]} : vector<16x32768xf32> to vector<16x512xf32>
    %171 = vector.extract_strided_slice %3 {offsets = [0, 28160], sizes = [16, 512], strides = [1, 1]} : vector<16x32768xf32> to vector<16x512xf32>
    %172 = arith.maximumf %170, %171 : vector<16x512xf32>
    %173 = vector.extract_strided_slice %3 {offsets = [0, 31744], sizes = [16, 512], strides = [1, 1]} : vector<16x32768xf32> to vector<16x512xf32>
    %174 = vector.extract_strided_slice %3 {offsets = [0, 32256], sizes = [16, 512], strides = [1, 1]} : vector<16x32768xf32> to vector<16x512xf32>
    %175 = arith.maximumf %173, %174 : vector<16x512xf32>
    %176 = arith.maximumf %172, %175 : vector<16x512xf32>
    %177 = vector.broadcast %4 : vector<16x1xf32> to vector<16x512xf32>
    %178 = arith.addf %176, %177 : vector<16x512xf32>
    %cst_21 = arith.constant 0.000000e+00 : f32
    %179 = vector.broadcast %cst_21 : f32 to vector<16x512xf32>
    %180 = arith.maximumf %178, %179 : vector<16x512xf32>
    %181 = tpu.iota {dimensions = array<i32: 1>} : vector<16x512xi32>
    %c64_i32 = arith.constant 64 : i32
    %c0_i32 = arith.constant 0 : i32
    %182 = arith.cmpi eq, %c64_i32, %c0_i32 : i32
    %c1_i32 = arith.constant 1 : i32
    %183 = arith.select %182, %c1_i32, %c64_i32 : i32
    %184 = vector.broadcast %183 : i32 to vector<16x512xi32>
    %185 = arith.remsi %181, %184 : vector<16x512xi32>
    %c0_i32_22 = arith.constant 0 : i32
    %186 = vector.broadcast %c0_i32_22 : i32 to vector<16x512xi32>
    %187 = arith.cmpi ne, %185, %186 : vector<16x512xi32>
    %c0_i32_23 = arith.constant 0 : i32
    %188 = vector.broadcast %c0_i32_23 : i32 to vector<16x512xi32>
    %189 = arith.cmpi slt, %185, %188 : vector<16x512xi32>
    %c0_i32_24 = arith.constant 0 : i32
    %190 = arith.cmpi slt, %183, %c0_i32_24 : i32
    %191 = vector.broadcast %190 : i1 to vector<16x512xi1>
    %192 = vector.broadcast %191 : vector<16x512xi1> to vector<16x512xi1>
    %193 = arith.xori %189, %192 : vector<16x512xi1>
    %194 = arith.andi %193, %187 : vector<16x512xi1>
    %195 = vector.broadcast %183 : i32 to vector<16x512xi32>
    %196 = arith.addi %185, %195 : vector<16x512xi32>
    %197 = arith.select %194, %196, %185 : vector<16x512xi1>, vector<16x512xi32>
    %c8_i32 = arith.constant 8 : i32
    %198 = vector.broadcast %c8_i32 : i32 to vector<16x512xi32>
    %199 = arith.cmpi sge, %197, %198 : vector<16x512xi32>
    %c8_i32_25 = arith.constant 8 : i32
    %c0_i32_26 = arith.constant 0 : i32
    %200 = arith.cmpi eq, %c8_i32_25, %c0_i32_26 : i32
    %c1_i32_27 = arith.constant 1 : i32
    %201 = arith.select %200, %c1_i32_27, %c8_i32_25 : i32
    %202 = vector.broadcast %201 : i32 to vector<16x512xi32>
    %203 = arith.remsi %181, %202 : vector<16x512xi32>
    %c0_i32_28 = arith.constant 0 : i32
    %204 = vector.broadcast %c0_i32_28 : i32 to vector<16x512xi32>
    %205 = arith.cmpi ne, %203, %204 : vector<16x512xi32>
    %c0_i32_29 = arith.constant 0 : i32
    %206 = vector.broadcast %c0_i32_29 : i32 to vector<16x512xi32>
    %207 = arith.cmpi slt, %203, %206 : vector<16x512xi32>
    %c0_i32_30 = arith.constant 0 : i32
    %208 = arith.cmpi slt, %201, %c0_i32_30 : i32
    %209 = vector.broadcast %208 : i1 to vector<16x512xi1>
    %210 = vector.broadcast %209 : vector<16x512xi1> to vector<16x512xi1>
    %211 = arith.xori %207, %210 : vector<16x512xi1>
    %212 = arith.andi %211, %205 : vector<16x512xi1>
    %213 = vector.broadcast %201 : i32 to vector<16x512xi32>
    %214 = arith.addi %203, %213 : vector<16x512xi32>
    %215 = arith.select %212, %214, %203 : vector<16x512xi1>, vector<16x512xi32>
    %c0_i32_31 = arith.constant 0 : i32
    %216 = vector.broadcast %c0_i32_31 : i32 to vector<16x512xi32>
    %217 = arith.cmpi ne, %215, %216 : vector<16x512xi32>
    %c0_32 = arith.constant 0 : index
    %c0_33 = arith.constant 0 : index
    %218 = vector.load %arg4[%c0_32, %c0_33] : memref<16x144xf32, #tpu.memory_space<vmem>>, vector<16x144xf32>
    %cst_34 = arith.constant 0.000000e+00 : f32
    %219 = vector.broadcast %cst_34 : f32 to vector<16x9xf32>
    %220 = vector.extract_strided_slice %180 {offsets = [0, 0], sizes = [16, 503], strides = [1, 1]} : vector<16x512xf32> to vector<16x503xf32>
    %221 = tpu.concatenate %219, %220 in 1 : vector<16x9xf32>, vector<16x503xf32> -> vector<16x512xf32>
    %222 = arith.andi %199, %217 : vector<16x512xi1>
    %cst_35 = arith.constant 0.000000e+00 : f32
    %223 = vector.broadcast %cst_35 : f32 to vector<16x512xf32>
    %224 = arith.select %222, %221, %223 : vector<16x512xi1>, vector<16x512xf32>
    %cst_36 = arith.constant 0.000000e+00 : f32
    %225 = vector.broadcast %cst_36 : f32 to vector<16x8xf32>
    %226 = vector.extract_strided_slice %147 {offsets = [0, 0], sizes = [16, 504], strides = [1, 1]} : vector<16x512xf32> to vector<16x504xf32>
    %227 = tpu.concatenate %225, %226 in 1 : vector<16x8xf32>, vector<16x504xf32> -> vector<16x512xf32>
    %cst_37 = arith.constant 0.000000e+00 : f32
    %228 = vector.broadcast %cst_37 : f32 to vector<16x512xf32>
    %229 = arith.select %199, %227, %228 : vector<16x512xi1>, vector<16x512xf32>
    %cst_38 = arith.constant 0.000000e+00 : f32
    %230 = vector.broadcast %cst_38 : f32 to vector<16x8xf32>
    %231 = vector.extract_strided_slice %158 {offsets = [0, 0], sizes = [16, 504], strides = [1, 1]} : vector<16x512xf32> to vector<16x504xf32>
    %232 = tpu.concatenate %230, %231 in 1 : vector<16x8xf32>, vector<16x504xf32> -> vector<16x512xf32>
    %cst_39 = arith.constant 0.000000e+00 : f32
    %233 = vector.broadcast %cst_39 : f32 to vector<16x512xf32>
    %234 = arith.select %199, %232, %233 : vector<16x512xi1>, vector<16x512xf32>
    %cst_40 = arith.constant 0.000000e+00 : f32
    %235 = vector.broadcast %cst_40 : f32 to vector<16x1xf32>
    %236 = vector.extract_strided_slice %48 {offsets = [0, 0], sizes = [16, 511], strides = [1, 1]} : vector<16x512xf32> to vector<16x511xf32>
    %237 = tpu.concatenate %235, %236 in 1 : vector<16x1xf32>, vector<16x511xf32> -> vector<16x512xf32>
    %cst_41 = arith.constant 0.000000e+00 : f32
    %238 = vector.broadcast %cst_41 : f32 to vector<16x512xf32>
    %239 = arith.select %217, %237, %238 : vector<16x512xi1>, vector<16x512xf32>
    %cst_42 = arith.constant 0.000000e+00 : f32
    %240 = vector.broadcast %cst_42 : f32 to vector<16x1xf32>
    %241 = vector.extract_strided_slice %92 {offsets = [0, 0], sizes = [16, 511], strides = [1, 1]} : vector<16x512xf32> to vector<16x511xf32>
    %242 = tpu.concatenate %240, %241 in 1 : vector<16x1xf32>, vector<16x511xf32> -> vector<16x512xf32>
    %cst_43 = arith.constant 0.000000e+00 : f32
    %243 = vector.broadcast %cst_43 : f32 to vector<16x512xf32>
    %244 = arith.select %217, %242, %243 : vector<16x512xi1>, vector<16x512xf32>
    %245 = tpu.concatenate %224, %229, %234, %239, %15, %26, %244, %59, %70 in 0 : vector<16x512xf32>, vector<16x512xf32>, vector<16x512xf32>, vector<16x512xf32>, vector<16x512xf32>, vector<16x512xf32>, vector<16x512xf32>, vector<16x512xf32>, vector<16x512xf32> -> vector<144x512xf32>
    %cst_44 = arith.constant dense<0.000000e+00> : vector<16x512xf32>
    %246 = tpu.matmul %218, %245, %cst_44 {dimension_numbers = #tpu.dot_dimension_numbers<[1], [0], [0], [1], [0, 0, 1, 1], [], []>} : vector<16x144xf32>, vector<144x512xf32>, vector<16x512xf32> -> vector<16x512xf32>
    %cst_45 = arith.constant 0.000000e+00 : f32
    %247 = vector.broadcast %cst_45 : f32 to vector<16x8xf32>
    %248 = vector.extract_strided_slice %169 {offsets = [0, 0], sizes = [16, 504], strides = [1, 1]} : vector<16x512xf32> to vector<16x504xf32>
    %249 = tpu.concatenate %247, %248 in 1 : vector<16x8xf32>, vector<16x504xf32> -> vector<16x512xf32>
    %cst_46 = arith.constant 0.000000e+00 : f32
    %250 = vector.broadcast %cst_46 : f32 to vector<16x512xf32>
    %251 = arith.select %199, %249, %250 : vector<16x512xi1>, vector<16x512xf32>
    %cst_47 = arith.constant 0.000000e+00 : f32
    %252 = vector.broadcast %cst_47 : f32 to vector<16x8xf32>
    %253 = vector.extract_strided_slice %180 {offsets = [0, 0], sizes = [16, 504], strides = [1, 1]} : vector<16x512xf32> to vector<16x504xf32>
    %254 = tpu.concatenate %252, %253 in 1 : vector<16x8xf32>, vector<16x504xf32> -> vector<16x512xf32>
    %cst_48 = arith.constant 0.000000e+00 : f32
    %255 = vector.broadcast %cst_48 : f32 to vector<16x512xf32>
    %256 = arith.select %199, %254, %255 : vector<16x512xi1>, vector<16x512xf32>
    %257 = tpu.concatenate %234, %251, %256, %26, %37, %48, %70, %81, %92 in 0 : vector<16x512xf32>, vector<16x512xf32>, vector<16x512xf32>, vector<16x512xf32>, vector<16x512xf32>, vector<16x512xf32>, vector<16x512xf32>, vector<16x512xf32>, vector<16x512xf32> -> vector<144x512xf32>
    %cst_49 = arith.constant dense<0.000000e+00> : vector<16x512xf32>
    %258 = tpu.matmul %218, %257, %cst_49 {dimension_numbers = #tpu.dot_dimension_numbers<[1], [0], [0], [1], [0, 0, 1, 1], [], []>} : vector<16x144xf32>, vector<144x512xf32>, vector<16x512xf32> -> vector<16x512xf32>
    %259 = arith.maximumf %246, %258 : vector<16x512xf32>
    %cst_50 = arith.constant 0.000000e+00 : f32
    %260 = vector.broadcast %cst_50 : f32 to vector<16x1xf32>
    %261 = vector.extract_strided_slice %136 {offsets = [0, 0], sizes = [16, 511], strides = [1, 1]} : vector<16x512xf32> to vector<16x511xf32>
    %262 = tpu.concatenate %260, %261 in 1 : vector<16x1xf32>, vector<16x511xf32> -> vector<16x512xf32>
    %cst_51 = arith.constant 0.000000e+00 : f32
    %263 = vector.broadcast %cst_51 : f32 to vector<16x512xf32>
    %264 = arith.select %217, %262, %263 : vector<16x512xi1>, vector<16x512xf32>
    %cst_52 = arith.constant 0.000000e+00 : f32
    %265 = vector.broadcast %cst_52 : f32 to vector<16x1xf32>
    %266 = vector.extract_strided_slice %180 {offsets = [0, 0], sizes = [16, 511], strides = [1, 1]} : vector<16x512xf32> to vector<16x511xf32>
    %267 = tpu.concatenate %265, %266 in 1 : vector<16x1xf32>, vector<16x511xf32> -> vector<16x512xf32>
    %cst_53 = arith.constant 0.000000e+00 : f32
    %268 = vector.broadcast %cst_53 : f32 to vector<16x512xf32>
    %269 = arith.select %217, %267, %268 : vector<16x512xi1>, vector<16x512xf32>
    %270 = tpu.concatenate %244, %59, %70, %264, %103, %114, %269, %147, %158 in 0 : vector<16x512xf32>, vector<16x512xf32>, vector<16x512xf32>, vector<16x512xf32>, vector<16x512xf32>, vector<16x512xf32>, vector<16x512xf32>, vector<16x512xf32>, vector<16x512xf32> -> vector<144x512xf32>
    %cst_54 = arith.constant dense<0.000000e+00> : vector<16x512xf32>
    %271 = tpu.matmul %218, %270, %cst_54 {dimension_numbers = #tpu.dot_dimension_numbers<[1], [0], [0], [1], [0, 0, 1, 1], [], []>} : vector<16x144xf32>, vector<144x512xf32>, vector<16x512xf32> -> vector<16x512xf32>
    %272 = arith.maximumf %259, %271 : vector<16x512xf32>
    %273 = tpu.concatenate %70, %81, %92, %114, %125, %136, %158, %169, %180 in 0 : vector<16x512xf32>, vector<16x512xf32>, vector<16x512xf32>, vector<16x512xf32>, vector<16x512xf32>, vector<16x512xf32>, vector<16x512xf32>, vector<16x512xf32>, vector<16x512xf32> -> vector<144x512xf32>
    %cst_55 = arith.constant dense<0.000000e+00> : vector<16x512xf32>
    %274 = tpu.matmul %218, %273, %cst_55 {dimension_numbers = #tpu.dot_dimension_numbers<[1], [0], [0], [1], [0, 0, 1, 1], [], []>} : vector<16x144xf32>, vector<144x512xf32>, vector<16x512xf32> -> vector<16x512xf32>
    %275 = arith.maximumf %272, %274 : vector<16x512xf32>
    %c0_56 = arith.constant 0 : index
    %c0_57 = arith.constant 0 : index
    %276 = vector.load %arg5[%c0_56, %c0_57] : memref<16x1xf32, #tpu.memory_space<vmem>>, vector<16x1xf32>
    %277 = vector.broadcast %276 : vector<16x1xf32> to vector<16x512xf32>
    %278 = arith.addf %275, %277 : vector<16x512xf32>
    %cst_58 = arith.constant 0.000000e+00 : f32
    %279 = vector.broadcast %cst_58 : f32 to vector<16x512xf32>
    %280 = arith.maximumf %278, %279 : vector<16x512xf32>
    %281 = vector.extract_strided_slice %280 {offsets = [0, 0], sizes = [1, 64], strides = [1, 1]} : vector<16x512xf32> to vector<1x64xf32>
    %c0_59 = arith.constant 0 : index
    %c0_60 = arith.constant 0 : index
    %282 = vector.load %arg9[%c0_59, %c0_60] : memref<8x1024xf32, #tpu.memory_space<vmem>>, vector<1x64xf32>
    tpu.vector_store %arg9[%c0_59, %c0_60], %281 {strides = array<i32>} : memref<8x1024xf32, #tpu.memory_space<vmem>>, vector<1x64xf32>,
    %283 = vector.extract_strided_slice %280 {offsets = [1, 0], sizes = [1, 64], strides = [1, 1]} : vector<16x512xf32> to vector<1x64xf32>
    %c0_61 = arith.constant 0 : index
    %c64 = arith.constant 64 : index
    %284 = vector.load %arg9[%c0_61, %c64] : memref<8x1024xf32, #tpu.memory_space<vmem>>, vector<1x64xf32>
    tpu.vector_store %arg9[%c0_61, %c64], %283 {strides = array<i32>} : memref<8x1024xf32, #tpu.memory_space<vmem>>, vector<1x64xf32>,
    %285 = vector.extract_strided_slice %280 {offsets = [2, 0], sizes = [1, 64], strides = [1, 1]} : vector<16x512xf32> to vector<1x64xf32>
    %c0_62 = arith.constant 0 : index
    %c128 = arith.constant 128 : index
    %286 = vector.load %arg9[%c0_62, %c128] : memref<8x1024xf32, #tpu.memory_space<vmem>>, vector<1x64xf32>
    tpu.vector_store %arg9[%c0_62, %c128], %285 {strides = array<i32>} : memref<8x1024xf32, #tpu.memory_space<vmem>>, vector<1x64xf32>,
    %287 = vector.extract_strided_slice %280 {offsets = [3, 0], sizes = [1, 64], strides = [1, 1]} : vector<16x512xf32> to vector<1x64xf32>
    %c0_63 = arith.constant 0 : index
    %c192 = arith.constant 192 : index
    %288 = vector.load %arg9[%c0_63, %c192] : memref<8x1024xf32, #tpu.memory_space<vmem>>, vector<1x64xf32>
    tpu.vector_store %arg9[%c0_63, %c192], %287 {strides = array<i32>} : memref<8x1024xf32, #tpu.memory_space<vmem>>, vector<1x64xf32>,
    %289 = vector.extract_strided_slice %280 {offsets = [4, 0], sizes = [1, 64], strides = [1, 1]} : vector<16x512xf32> to vector<1x64xf32>
    %c0_64 = arith.constant 0 : index
    %c256 = arith.constant 256 : index
    %290 = vector.load %arg9[%c0_64, %c256] : memref<8x1024xf32, #tpu.memory_space<vmem>>, vector<1x64xf32>
    tpu.vector_store %arg9[%c0_64, %c256], %289 {strides = array<i32>} : memref<8x1024xf32, #tpu.memory_space<vmem>>, vector<1x64xf32>,
    %291 = vector.extract_strided_slice %280 {offsets = [5, 0], sizes = [1, 64], strides = [1, 1]} : vector<16x512xf32> to vector<1x64xf32>
    %c0_65 = arith.constant 0 : index
    %c320 = arith.constant 320 : index
    %292 = vector.load %arg9[%c0_65, %c320] : memref<8x1024xf32, #tpu.memory_space<vmem>>, vector<1x64xf32>
    tpu.vector_store %arg9[%c0_65, %c320], %291 {strides = array<i32>} : memref<8x1024xf32, #tpu.memory_space<vmem>>, vector<1x64xf32>,
    %293 = vector.extract_strided_slice %280 {offsets = [6, 0], sizes = [1, 64], strides = [1, 1]} : vector<16x512xf32> to vector<1x64xf32>
    %c0_66 = arith.constant 0 : index
    %c384 = arith.constant 384 : index
    %294 = vector.load %arg9[%c0_66, %c384] : memref<8x1024xf32, #tpu.memory_space<vmem>>, vector<1x64xf32>
    tpu.vector_store %arg9[%c0_66, %c384], %293 {strides = array<i32>} : memref<8x1024xf32, #tpu.memory_space<vmem>>, vector<1x64xf32>,
    %295 = vector.extract_strided_slice %280 {offsets = [7, 0], sizes = [1, 64], strides = [1, 1]} : vector<16x512xf32> to vector<1x64xf32>
    %c0_67 = arith.constant 0 : index
    %c448 = arith.constant 448 : index
    %296 = vector.load %arg9[%c0_67, %c448] : memref<8x1024xf32, #tpu.memory_space<vmem>>, vector<1x64xf32>
    tpu.vector_store %arg9[%c0_67, %c448], %295 {strides = array<i32>} : memref<8x1024xf32, #tpu.memory_space<vmem>>, vector<1x64xf32>,
    %297 = vector.extract_strided_slice %280 {offsets = [8, 0], sizes = [1, 64], strides = [1, 1]} : vector<16x512xf32> to vector<1x64xf32>
    %c0_68 = arith.constant 0 : index
    %c512 = arith.constant 512 : index
    %298 = vector.load %arg9[%c0_68, %c512] : memref<8x1024xf32, #tpu.memory_space<vmem>>, vector<1x64xf32>
    tpu.vector_store %arg9[%c0_68, %c512], %297 {strides = array<i32>} : memref<8x1024xf32, #tpu.memory_space<vmem>>, vector<1x64xf32>,
    %299 = vector.extract_strided_slice %280 {offsets = [9, 0], sizes = [1, 64], strides = [1, 1]} : vector<16x512xf32> to vector<1x64xf32>
    %c0_69 = arith.constant 0 : index
    %c576 = arith.constant 576 : index
    %300 = vector.load %arg9[%c0_69, %c576] : memref<8x1024xf32, #tpu.memory_space<vmem>>, vector<1x64xf32>
    tpu.vector_store %arg9[%c0_69, %c576], %299 {strides = array<i32>} : memref<8x1024xf32, #tpu.memory_space<vmem>>, vector<1x64xf32>,
    %301 = vector.extract_strided_slice %280 {offsets = [10, 0], sizes = [1, 64], strides = [1, 1]} : vector<16x512xf32> to vector<1x64xf32>
    %c0_70 = arith.constant 0 : index
    %c640 = arith.constant 640 : index
    %302 = vector.load %arg9[%c0_70, %c640] : memref<8x1024xf32, #tpu.memory_space<vmem>>, vector<1x64xf32>
    tpu.vector_store %arg9[%c0_70, %c640], %301 {strides = array<i32>} : memref<8x1024xf32, #tpu.memory_space<vmem>>, vector<1x64xf32>,
    %303 = vector.extract_strided_slice %280 {offsets = [11, 0], sizes = [1, 64], strides = [1, 1]} : vector<16x512xf32> to vector<1x64xf32>
    %c0_71 = arith.constant 0 : index
    %c704 = arith.constant 704 : index
    %304 = vector.load %arg9[%c0_71, %c704] : memref<8x1024xf32, #tpu.memory_space<vmem>>, vector<1x64xf32>
    tpu.vector_store %arg9[%c0_71, %c704], %303 {strides = array<i32>} : memref<8x1024xf32, #tpu.memory_space<vmem>>, vector<1x64xf32>,
    %305 = vector.extract_strided_slice %280 {offsets = [12, 0], sizes = [1, 64], strides = [1, 1]} : vector<16x512xf32> to vector<1x64xf32>
    %c0_72 = arith.constant 0 : index
    %c768 = arith.constant 768 : index
    %306 = vector.load %arg9[%c0_72, %c768] : memref<8x1024xf32, #tpu.memory_space<vmem>>, vector<1x64xf32>
    tpu.vector_store %arg9[%c0_72, %c768], %305 {strides = array<i32>} : memref<8x1024xf32, #tpu.memory_space<vmem>>, vector<1x64xf32>,
    %307 = vector.extract_strided_slice %280 {offsets = [13, 0], sizes = [1, 64], strides = [1, 1]} : vector<16x512xf32> to vector<1x64xf32>
    %c0_73 = arith.constant 0 : index
    %c832 = arith.constant 832 : index
    %308 = vector.load %arg9[%c0_73, %c832] : memref<8x1024xf32, #tpu.memory_space<vmem>>, vector<1x64xf32>
    tpu.vector_store %arg9[%c0_73, %c832], %307 {strides = array<i32>} : memref<8x1024xf32, #tpu.memory_space<vmem>>, vector<1x64xf32>,
    %309 = vector.extract_strided_slice %280 {offsets = [14, 0], sizes = [1, 64], strides = [1, 1]} : vector<16x512xf32> to vector<1x64xf32>
    %c0_74 = arith.constant 0 : index
    %c896 = arith.constant 896 : index
    %310 = vector.load %arg9[%c0_74, %c896] : memref<8x1024xf32, #tpu.memory_space<vmem>>, vector<1x64xf32>
    tpu.vector_store %arg9[%c0_74, %c896], %309 {strides = array<i32>} : memref<8x1024xf32, #tpu.memory_space<vmem>>, vector<1x64xf32>,
    %311 = vector.extract_strided_slice %280 {offsets = [15, 0], sizes = [1, 64], strides = [1, 1]} : vector<16x512xf32> to vector<1x64xf32>
    %c0_75 = arith.constant 0 : index
    %c960 = arith.constant 960 : index
    %312 = vector.load %arg9[%c0_75, %c960] : memref<8x1024xf32, #tpu.memory_space<vmem>>, vector<1x64xf32>
    tpu.vector_store %arg9[%c0_75, %c960], %311 {strides = array<i32>} : memref<8x1024xf32, #tpu.memory_space<vmem>>, vector<1x64xf32>,
    %313 = vector.extract_strided_slice %280 {offsets = [0, 64], sizes = [1, 64], strides = [1, 1]} : vector<16x512xf32> to vector<1x64xf32>
    %c1 = arith.constant 1 : index
    %c0_76 = arith.constant 0 : index
    %314 = vector.load %arg9[%c1, %c0_76] : memref<8x1024xf32, #tpu.memory_space<vmem>>, vector<1x64xf32>
    tpu.vector_store %arg9[%c1, %c0_76], %313 {strides = array<i32>} : memref<8x1024xf32, #tpu.memory_space<vmem>>, vector<1x64xf32>,
    %315 = vector.extract_strided_slice %280 {offsets = [1, 64], sizes = [1, 64], strides = [1, 1]} : vector<16x512xf32> to vector<1x64xf32>
    %c1_77 = arith.constant 1 : index
    %c64_78 = arith.constant 64 : index
    %316 = vector.load %arg9[%c1_77, %c64_78] : memref<8x1024xf32, #tpu.memory_space<vmem>>, vector<1x64xf32>
    tpu.vector_store %arg9[%c1_77, %c64_78], %315 {strides = array<i32>} : memref<8x1024xf32, #tpu.memory_space<vmem>>, vector<1x64xf32>,
    %317 = vector.extract_strided_slice %280 {offsets = [2, 64], sizes = [1, 64], strides = [1, 1]} : vector<16x512xf32> to vector<1x64xf32>
    %c1_79 = arith.constant 1 : index
    %c128_80 = arith.constant 128 : index
    %318 = vector.load %arg9[%c1_79, %c128_80] : memref<8x1024xf32, #tpu.memory_space<vmem>>, vector<1x64xf32>
    tpu.vector_store %arg9[%c1_79, %c128_80], %317 {strides = array<i32>} : memref<8x1024xf32, #tpu.memory_space<vmem>>, vector<1x64xf32>,
    %319 = vector.extract_strided_slice %280 {offsets = [3, 64], sizes = [1, 64], strides = [1, 1]} : vector<16x512xf32> to vector<1x64xf32>
    %c1_81 = arith.constant 1 : index
    %c192_82 = arith.constant 192 : index
    %320 = vector.load %arg9[%c1_81, %c192_82] : memref<8x1024xf32, #tpu.memory_space<vmem>>, vector<1x64xf32>
    tpu.vector_store %arg9[%c1_81, %c192_82], %319 {strides = array<i32>} : memref<8x1024xf32, #tpu.memory_space<vmem>>, vector<1x64xf32>,
    %321 = vector.extract_strided_slice %280 {offsets = [4, 64], sizes = [1, 64], strides = [1, 1]} : vector<16x512xf32> to vector<1x64xf32>
    %c1_83 = arith.constant 1 : index
    %c256_84 = arith.constant 256 : index
    %322 = vector.load %arg9[%c1_83, %c256_84] : memref<8x1024xf32, #tpu.memory_space<vmem>>, vector<1x64xf32>
    tpu.vector_store %arg9[%c1_83, %c256_84], %321 {strides = array<i32>} : memref<8x1024xf32, #tpu.memory_space<vmem>>, vector<1x64xf32>,
    %323 = vector.extract_strided_slice %280 {offsets = [5, 64], sizes = [1, 64], strides = [1, 1]} : vector<16x512xf32> to vector<1x64xf32>
    %c1_85 = arith.constant 1 : index
    %c320_86 = arith.constant 320 : index
    %324 = vector.load %arg9[%c1_85, %c320_86] : memref<8x1024xf32, #tpu.memory_space<vmem>>, vector<1x64xf32>
    tpu.vector_store %arg9[%c1_85, %c320_86], %323 {strides = array<i32>} : memref<8x1024xf32, #tpu.memory_space<vmem>>, vector<1x64xf32>,
    %325 = vector.extract_strided_slice %280 {offsets = [6, 64], sizes = [1, 64], strides = [1, 1]} : vector<16x512xf32> to vector<1x64xf32>
    %c1_87 = arith.constant 1 : index
    %c384_88 = arith.constant 384 : index
    %326 = vector.load %arg9[%c1_87, %c384_88] : memref<8x1024xf32, #tpu.memory_space<vmem>>, vector<1x64xf32>
    tpu.vector_store %arg9[%c1_87, %c384_88], %325 {strides = array<i32>} : memref<8x1024xf32, #tpu.memory_space<vmem>>, vector<1x64xf32>,
    %327 = vector.extract_strided_slice %280 {offsets = [7, 64], sizes = [1, 64], strides = [1, 1]} : vector<16x512xf32> to vector<1x64xf32>
    %c1_89 = arith.constant 1 : index
    %c448_90 = arith.constant 448 : index
    %328 = vector.load %arg9[%c1_89, %c448_90] : memref<8x1024xf32, #tpu.memory_space<vmem>>, vector<1x64xf32>
    tpu.vector_store %arg9[%c1_89, %c448_90], %327 {strides = array<i32>} : memref<8x1024xf32, #tpu.memory_space<vmem>>, vector<1x64xf32>,
    %329 = vector.extract_strided_slice %280 {offsets = [8, 64], sizes = [1, 64], strides = [1, 1]} : vector<16x512xf32> to vector<1x64xf32>
    %c1_91 = arith.constant 1 : index
    %c512_92 = arith.constant 512 : index
    %330 = vector.load %arg9[%c1_91, %c512_92] : memref<8x1024xf32, #tpu.memory_space<vmem>>, vector<1x64xf32>
    tpu.vector_store %arg9[%c1_91, %c512_92], %329 {strides = array<i32>} : memref<8x1024xf32, #tpu.memory_space<vmem>>, vector<1x64xf32>,
    %331 = vector.extract_strided_slice %280 {offsets = [9, 64], sizes = [1, 64], strides = [1, 1]} : vector<16x512xf32> to vector<1x64xf32>
    %c1_93 = arith.constant 1 : index
    %c576_94 = arith.constant 576 : index
    %332 = vector.load %arg9[%c1_93, %c576_94] : memref<8x1024xf32, #tpu.memory_space<vmem>>, vector<1x64xf32>
    tpu.vector_store %arg9[%c1_93, %c576_94], %331 {strides = array<i32>} : memref<8x1024xf32, #tpu.memory_space<vmem>>, vector<1x64xf32>,
    %333 = vector.extract_strided_slice %280 {offsets = [10, 64], sizes = [1, 64], strides = [1, 1]} : vector<16x512xf32> to vector<1x64xf32>
    %c1_95 = arith.constant 1 : index
    %c640_96 = arith.constant 640 : index
    %334 = vector.load %arg9[%c1_95, %c640_96] : memref<8x1024xf32, #tpu.memory_space<vmem>>, vector<1x64xf32>
    tpu.vector_store %arg9[%c1_95, %c640_96], %333 {strides = array<i32>} : memref<8x1024xf32, #tpu.memory_space<vmem>>, vector<1x64xf32>,
    %335 = vector.extract_strided_slice %280 {offsets = [11, 64], sizes = [1, 64], strides = [1, 1]} : vector<16x512xf32> to vector<1x64xf32>
    %c1_97 = arith.constant 1 : index
    %c704_98 = arith.constant 704 : index
    %336 = vector.load %arg9[%c1_97, %c704_98] : memref<8x1024xf32, #tpu.memory_space<vmem>>, vector<1x64xf32>
    tpu.vector_store %arg9[%c1_97, %c704_98], %335 {strides = array<i32>} : memref<8x1024xf32, #tpu.memory_space<vmem>>, vector<1x64xf32>,
    %337 = vector.extract_strided_slice %280 {offsets = [12, 64], sizes = [1, 64], strides = [1, 1]} : vector<16x512xf32> to vector<1x64xf32>
    %c1_99 = arith.constant 1 : index
    %c768_100 = arith.constant 768 : index
    %338 = vector.load %arg9[%c1_99, %c768_100] : memref<8x1024xf32, #tpu.memory_space<vmem>>, vector<1x64xf32>
    tpu.vector_store %arg9[%c1_99, %c768_100], %337 {strides = array<i32>} : memref<8x1024xf32, #tpu.memory_space<vmem>>, vector<1x64xf32>,
    %339 = vector.extract_strided_slice %280 {offsets = [13, 64], sizes = [1, 64], strides = [1, 1]} : vector<16x512xf32> to vector<1x64xf32>
    %c1_101 = arith.constant 1 : index
    %c832_102 = arith.constant 832 : index
    %340 = vector.load %arg9[%c1_101, %c832_102] : memref<8x1024xf32, #tpu.memory_space<vmem>>, vector<1x64xf32>
    tpu.vector_store %arg9[%c1_101, %c832_102], %339 {strides = array<i32>} : memref<8x1024xf32, #tpu.memory_space<vmem>>, vector<1x64xf32>,
    %341 = vector.extract_strided_slice %280 {offsets = [14, 64], sizes = [1, 64], strides = [1, 1]} : vector<16x512xf32> to vector<1x64xf32>
    %c1_103 = arith.constant 1 : index
    %c896_104 = arith.constant 896 : index
    %342 = vector.load %arg9[%c1_103, %c896_104] : memref<8x1024xf32, #tpu.memory_space<vmem>>, vector<1x64xf32>
    tpu.vector_store %arg9[%c1_103, %c896_104], %341 {strides = array<i32>} : memref<8x1024xf32, #tpu.memory_space<vmem>>, vector<1x64xf32>,
    %343 = vector.extract_strided_slice %280 {offsets = [15, 64], sizes = [1, 64], strides = [1, 1]} : vector<16x512xf32> to vector<1x64xf32>
    %c1_105 = arith.constant 1 : index
    %c960_106 = arith.constant 960 : index
    %344 = vector.load %arg9[%c1_105, %c960_106] : memref<8x1024xf32, #tpu.memory_space<vmem>>, vector<1x64xf32>
    tpu.vector_store %arg9[%c1_105, %c960_106], %343 {strides = array<i32>} : memref<8x1024xf32, #tpu.memory_space<vmem>>, vector<1x64xf32>,
    %345 = vector.extract_strided_slice %280 {offsets = [0, 128], sizes = [1, 64], strides = [1, 1]} : vector<16x512xf32> to vector<1x64xf32>
    %c2 = arith.constant 2 : index
    %c0_107 = arith.constant 0 : index
    %346 = vector.load %arg9[%c2, %c0_107] : memref<8x1024xf32, #tpu.memory_space<vmem>>, vector<1x64xf32>
    tpu.vector_store %arg9[%c2, %c0_107], %345 {strides = array<i32>} : memref<8x1024xf32, #tpu.memory_space<vmem>>, vector<1x64xf32>,
    %347 = vector.extract_strided_slice %280 {offsets = [1, 128], sizes = [1, 64], strides = [1, 1]} : vector<16x512xf32> to vector<1x64xf32>
    %c2_108 = arith.constant 2 : index
    %c64_109 = arith.constant 64 : index
    %348 = vector.load %arg9[%c2_108, %c64_109] : memref<8x1024xf32, #tpu.memory_space<vmem>>, vector<1x64xf32>
    tpu.vector_store %arg9[%c2_108, %c64_109], %347 {strides = array<i32>} : memref<8x1024xf32, #tpu.memory_space<vmem>>, vector<1x64xf32>,
    %349 = vector.extract_strided_slice %280 {offsets = [2, 128], sizes = [1, 64], strides = [1, 1]} : vector<16x512xf32> to vector<1x64xf32>
    %c2_110 = arith.constant 2 : index
    %c128_111 = arith.constant 128 : index
    %350 = vector.load %arg9[%c2_110, %c128_111] : memref<8x1024xf32, #tpu.memory_space<vmem>>, vector<1x64xf32>
    tpu.vector_store %arg9[%c2_110, %c128_111], %349 {strides = array<i32>} : memref<8x1024xf32, #tpu.memory_space<vmem>>, vector<1x64xf32>,
    %351 = vector.extract_strided_slice %280 {offsets = [3, 128], sizes = [1, 64], strides = [1, 1]} : vector<16x512xf32> to vector<1x64xf32>
    %c2_112 = arith.constant 2 : index
    %c192_113 = arith.constant 192 : index
    %352 = vector.load %arg9[%c2_112, %c192_113] : memref<8x1024xf32, #tpu.memory_space<vmem>>, vector<1x64xf32>
    tpu.vector_store %arg9[%c2_112, %c192_113], %351 {strides = array<i32>} : memref<8x1024xf32, #tpu.memory_space<vmem>>, vector<1x64xf32>,
    %353 = vector.extract_strided_slice %280 {offsets = [4, 128], sizes = [1, 64], strides = [1, 1]} : vector<16x512xf32> to vector<1x64xf32>
    %c2_114 = arith.constant 2 : index
    %c256_115 = arith.constant 256 : index
    %354 = vector.load %arg9[%c2_114, %c256_115] : memref<8x1024xf32, #tpu.memory_space<vmem>>, vector<1x64xf32>
    tpu.vector_store %arg9[%c2_114, %c256_115], %353 {strides = array<i32>} : memref<8x1024xf32, #tpu.memory_space<vmem>>, vector<1x64xf32>,
    %355 = vector.extract_strided_slice %280 {offsets = [5, 128], sizes = [1, 64], strides = [1, 1]} : vector<16x512xf32> to vector<1x64xf32>
    %c2_116 = arith.constant 2 : index
    %c320_117 = arith.constant 320 : index
    %356 = vector.load %arg9[%c2_116, %c320_117] : memref<8x1024xf32, #tpu.memory_space<vmem>>, vector<1x64xf32>
    tpu.vector_store %arg9[%c2_116, %c320_117], %355 {strides = array<i32>} : memref<8x1024xf32, #tpu.memory_space<vmem>>, vector<1x64xf32>,
    %357 = vector.extract_strided_slice %280 {offsets = [6, 128], sizes = [1, 64], strides = [1, 1]} : vector<16x512xf32> to vector<1x64xf32>
    %c2_118 = arith.constant 2 : index
    %c384_119 = arith.constant 384 : index
    %358 = vector.load %arg9[%c2_118, %c384_119] : memref<8x1024xf32, #tpu.memory_space<vmem>>, vector<1x64xf32>
    tpu.vector_store %arg9[%c2_118, %c384_119], %357 {strides = array<i32>} : memref<8x1024xf32, #tpu.memory_space<vmem>>, vector<1x64xf32>,
    %359 = vector.extract_strided_slice %280 {offsets = [7, 128], sizes = [1, 64], strides = [1, 1]} : vector<16x512xf32> to vector<1x64xf32>
    %c2_120 = arith.constant 2 : index
    %c448_121 = arith.constant 448 : index
    %360 = vector.load %arg9[%c2_120, %c448_121] : memref<8x1024xf32, #tpu.memory_space<vmem>>, vector<1x64xf32>
    tpu.vector_store %arg9[%c2_120, %c448_121], %359 {strides = array<i32>} : memref<8x1024xf32, #tpu.memory_space<vmem>>, vector<1x64xf32>,
    %361 = vector.extract_strided_slice %280 {offsets = [8, 128], sizes = [1, 64], strides = [1, 1]} : vector<16x512xf32> to vector<1x64xf32>
    %c2_122 = arith.constant 2 : index
    %c512_123 = arith.constant 512 : index
    %362 = vector.load %arg9[%c2_122, %c512_123] : memref<8x1024xf32, #tpu.memory_space<vmem>>, vector<1x64xf32>
    tpu.vector_store %arg9[%c2_122, %c512_123], %361 {strides = array<i32>} : memref<8x1024xf32, #tpu.memory_space<vmem>>, vector<1x64xf32>,
    %363 = vector.extract_strided_slice %280 {offsets = [9, 128], sizes = [1, 64], strides = [1, 1]} : vector<16x512xf32> to vector<1x64xf32>
    %c2_124 = arith.constant 2 : index
    %c576_125 = arith.constant 576 : index
    %364 = vector.load %arg9[%c2_124, %c576_125] : memref<8x1024xf32, #tpu.memory_space<vmem>>, vector<1x64xf32>
    tpu.vector_store %arg9[%c2_124, %c576_125], %363 {strides = array<i32>} : memref<8x1024xf32, #tpu.memory_space<vmem>>, vector<1x64xf32>,
    %365 = vector.extract_strided_slice %280 {offsets = [10, 128], sizes = [1, 64], strides = [1, 1]} : vector<16x512xf32> to vector<1x64xf32>
    %c2_126 = arith.constant 2 : index
    %c640_127 = arith.constant 640 : index
    %366 = vector.load %arg9[%c2_126, %c640_127] : memref<8x1024xf32, #tpu.memory_space<vmem>>, vector<1x64xf32>
    tpu.vector_store %arg9[%c2_126, %c640_127], %365 {strides = array<i32>} : memref<8x1024xf32, #tpu.memory_space<vmem>>, vector<1x64xf32>,
    %367 = vector.extract_strided_slice %280 {offsets = [11, 128], sizes = [1, 64], strides = [1, 1]} : vector<16x512xf32> to vector<1x64xf32>
    %c2_128 = arith.constant 2 : index
    %c704_129 = arith.constant 704 : index
    %368 = vector.load %arg9[%c2_128, %c704_129] : memref<8x1024xf32, #tpu.memory_space<vmem>>, vector<1x64xf32>
    tpu.vector_store %arg9[%c2_128, %c704_129], %367 {strides = array<i32>} : memref<8x1024xf32, #tpu.memory_space<vmem>>, vector<1x64xf32>,
    %369 = vector.extract_strided_slice %280 {offsets = [12, 128], sizes = [1, 64], strides = [1, 1]} : vector<16x512xf32> to vector<1x64xf32>
    %c2_130 = arith.constant 2 : index
    %c768_131 = arith.constant 768 : index
    %370 = vector.load %arg9[%c2_130, %c768_131] : memref<8x1024xf32, #tpu.memory_space<vmem>>, vector<1x64xf32>
    tpu.vector_store %arg9[%c2_130, %c768_131], %369 {strides = array<i32>} : memref<8x1024xf32, #tpu.memory_space<vmem>>, vector<1x64xf32>,
    %371 = vector.extract_strided_slice %280 {offsets = [13, 128], sizes = [1, 64], strides = [1, 1]} : vector<16x512xf32> to vector<1x64xf32>
    %c2_132 = arith.constant 2 : index
    %c832_133 = arith.constant 832 : index
    %372 = vector.load %arg9[%c2_132, %c832_133] : memref<8x1024xf32, #tpu.memory_space<vmem>>, vector<1x64xf32>
    tpu.vector_store %arg9[%c2_132, %c832_133], %371 {strides = array<i32>} : memref<8x1024xf32, #tpu.memory_space<vmem>>, vector<1x64xf32>,
    %373 = vector.extract_strided_slice %280 {offsets = [14, 128], sizes = [1, 64], strides = [1, 1]} : vector<16x512xf32> to vector<1x64xf32>
    %c2_134 = arith.constant 2 : index
    %c896_135 = arith.constant 896 : index
    %374 = vector.load %arg9[%c2_134, %c896_135] : memref<8x1024xf32, #tpu.memory_space<vmem>>, vector<1x64xf32>
    tpu.vector_store %arg9[%c2_134, %c896_135], %373 {strides = array<i32>} : memref<8x1024xf32, #tpu.memory_space<vmem>>, vector<1x64xf32>,
    %375 = vector.extract_strided_slice %280 {offsets = [15, 128], sizes = [1, 64], strides = [1, 1]} : vector<16x512xf32> to vector<1x64xf32>
    %c2_136 = arith.constant 2 : index
    %c960_137 = arith.constant 960 : index
    %376 = vector.load %arg9[%c2_136, %c960_137] : memref<8x1024xf32, #tpu.memory_space<vmem>>, vector<1x64xf32>
    tpu.vector_store %arg9[%c2_136, %c960_137], %375 {strides = array<i32>} : memref<8x1024xf32, #tpu.memory_space<vmem>>, vector<1x64xf32>,
    %377 = vector.extract_strided_slice %280 {offsets = [0, 192], sizes = [1, 64], strides = [1, 1]} : vector<16x512xf32> to vector<1x64xf32>
    %c3 = arith.constant 3 : index
    %c0_138 = arith.constant 0 : index
    %378 = vector.load %arg9[%c3, %c0_138] : memref<8x1024xf32, #tpu.memory_space<vmem>>, vector<1x64xf32>
    tpu.vector_store %arg9[%c3, %c0_138], %377 {strides = array<i32>} : memref<8x1024xf32, #tpu.memory_space<vmem>>, vector<1x64xf32>,
    %379 = vector.extract_strided_slice %280 {offsets = [1, 192], sizes = [1, 64], strides = [1, 1]} : vector<16x512xf32> to vector<1x64xf32>
    %c3_139 = arith.constant 3 : index
    %c64_140 = arith.constant 64 : index
    %380 = vector.load %arg9[%c3_139, %c64_140] : memref<8x1024xf32, #tpu.memory_space<vmem>>, vector<1x64xf32>
    tpu.vector_store %arg9[%c3_139, %c64_140], %379 {strides = array<i32>} : memref<8x1024xf32, #tpu.memory_space<vmem>>, vector<1x64xf32>,
    %381 = vector.extract_strided_slice %280 {offsets = [2, 192], sizes = [1, 64], strides = [1, 1]} : vector<16x512xf32> to vector<1x64xf32>
    %c3_141 = arith.constant 3 : index
    %c128_142 = arith.constant 128 : index
    %382 = vector.load %arg9[%c3_141, %c128_142] : memref<8x1024xf32, #tpu.memory_space<vmem>>, vector<1x64xf32>
    tpu.vector_store %arg9[%c3_141, %c128_142], %381 {strides = array<i32>} : memref<8x1024xf32, #tpu.memory_space<vmem>>, vector<1x64xf32>,
    %383 = vector.extract_strided_slice %280 {offsets = [3, 192], sizes = [1, 64], strides = [1, 1]} : vector<16x512xf32> to vector<1x64xf32>
    %c3_143 = arith.constant 3 : index
    %c192_144 = arith.constant 192 : index
    %384 = vector.load %arg9[%c3_143, %c192_144] : memref<8x1024xf32, #tpu.memory_space<vmem>>, vector<1x64xf32>
    tpu.vector_store %arg9[%c3_143, %c192_144], %383 {strides = array<i32>} : memref<8x1024xf32, #tpu.memory_space<vmem>>, vector<1x64xf32>,
    %385 = vector.extract_strided_slice %280 {offsets = [4, 192], sizes = [1, 64], strides = [1, 1]} : vector<16x512xf32> to vector<1x64xf32>
    %c3_145 = arith.constant 3 : index
    %c256_146 = arith.constant 256 : index
    %386 = vector.load %arg9[%c3_145, %c256_146] : memref<8x1024xf32, #tpu.memory_space<vmem>>, vector<1x64xf32>
    tpu.vector_store %arg9[%c3_145, %c256_146], %385 {strides = array<i32>} : memref<8x1024xf32, #tpu.memory_space<vmem>>, vector<1x64xf32>,
    %387 = vector.extract_strided_slice %280 {offsets = [5, 192], sizes = [1, 64], strides = [1, 1]} : vector<16x512xf32> to vector<1x64xf32>
    %c3_147 = arith.constant 3 : index
    %c320_148 = arith.constant 320 : index
    %388 = vector.load %arg9[%c3_147, %c320_148] : memref<8x1024xf32, #tpu.memory_space<vmem>>, vector<1x64xf32>
    tpu.vector_store %arg9[%c3_147, %c320_148], %387 {strides = array<i32>} : memref<8x1024xf32, #tpu.memory_space<vmem>>, vector<1x64xf32>,
    %389 = vector.extract_strided_slice %280 {offsets = [6, 192], sizes = [1, 64], strides = [1, 1]} : vector<16x512xf32> to vector<1x64xf32>
    %c3_149 = arith.constant 3 : index
    %c384_150 = arith.constant 384 : index
    %390 = vector.load %arg9[%c3_149, %c384_150] : memref<8x1024xf32, #tpu.memory_space<vmem>>, vector<1x64xf32>
    tpu.vector_store %arg9[%c3_149, %c384_150], %389 {strides = array<i32>} : memref<8x1024xf32, #tpu.memory_space<vmem>>, vector<1x64xf32>,
    %391 = vector.extract_strided_slice %280 {offsets = [7, 192], sizes = [1, 64], strides = [1, 1]} : vector<16x512xf32> to vector<1x64xf32>
    %c3_151 = arith.constant 3 : index
    %c448_152 = arith.constant 448 : index
    %392 = vector.load %arg9[%c3_151, %c448_152] : memref<8x1024xf32, #tpu.memory_space<vmem>>, vector<1x64xf32>
    tpu.vector_store %arg9[%c3_151, %c448_152], %391 {strides = array<i32>} : memref<8x1024xf32, #tpu.memory_space<vmem>>, vector<1x64xf32>,
    %393 = vector.extract_strided_slice %280 {offsets = [8, 192], sizes = [1, 64], strides = [1, 1]} : vector<16x512xf32> to vector<1x64xf32>
    %c3_153 = arith.constant 3 : index
    %c512_154 = arith.constant 512 : index
    %394 = vector.load %arg9[%c3_153, %c512_154] : memref<8x1024xf32, #tpu.memory_space<vmem>>, vector<1x64xf32>
    tpu.vector_store %arg9[%c3_153, %c512_154], %393 {strides = array<i32>} : memref<8x1024xf32, #tpu.memory_space<vmem>>, vector<1x64xf32>,
    %395 = vector.extract_strided_slice %280 {offsets = [9, 192], sizes = [1, 64], strides = [1, 1]} : vector<16x512xf32> to vector<1x64xf32>
    %c3_155 = arith.constant 3 : index
    %c576_156 = arith.constant 576 : index
    %396 = vector.load %arg9[%c3_155, %c576_156] : memref<8x1024xf32, #tpu.memory_space<vmem>>, vector<1x64xf32>
    tpu.vector_store %arg9[%c3_155, %c576_156], %395 {strides = array<i32>} : memref<8x1024xf32, #tpu.memory_space<vmem>>, vector<1x64xf32>,
    %397 = vector.extract_strided_slice %280 {offsets = [10, 192], sizes = [1, 64], strides = [1, 1]} : vector<16x512xf32> to vector<1x64xf32>
    %c3_157 = arith.constant 3 : index
    %c640_158 = arith.constant 640 : index
    %398 = vector.load %arg9[%c3_157, %c640_158] : memref<8x1024xf32, #tpu.memory_space<vmem>>, vector<1x64xf32>
    tpu.vector_store %arg9[%c3_157, %c640_158], %397 {strides = array<i32>} : memref<8x1024xf32, #tpu.memory_space<vmem>>, vector<1x64xf32>,
    %399 = vector.extract_strided_slice %280 {offsets = [11, 192], sizes = [1, 64], strides = [1, 1]} : vector<16x512xf32> to vector<1x64xf32>
    %c3_159 = arith.constant 3 : index
    %c704_160 = arith.constant 704 : index
    %400 = vector.load %arg9[%c3_159, %c704_160] : memref<8x1024xf32, #tpu.memory_space<vmem>>, vector<1x64xf32>
    tpu.vector_store %arg9[%c3_159, %c704_160], %399 {strides = array<i32>} : memref<8x1024xf32, #tpu.memory_space<vmem>>, vector<1x64xf32>,
    %401 = vector.extract_strided_slice %280 {offsets = [12, 192], sizes = [1, 64], strides = [1, 1]} : vector<16x512xf32> to vector<1x64xf32>
    %c3_161 = arith.constant 3 : index
    %c768_162 = arith.constant 768 : index
    %402 = vector.load %arg9[%c3_161, %c768_162] : memref<8x1024xf32, #tpu.memory_space<vmem>>, vector<1x64xf32>
    tpu.vector_store %arg9[%c3_161, %c768_162], %401 {strides = array<i32>} : memref<8x1024xf32, #tpu.memory_space<vmem>>, vector<1x64xf32>,
    %403 = vector.extract_strided_slice %280 {offsets = [13, 192], sizes = [1, 64], strides = [1, 1]} : vector<16x512xf32> to vector<1x64xf32>
    %c3_163 = arith.constant 3 : index
    %c832_164 = arith.constant 832 : index
    %404 = vector.load %arg9[%c3_163, %c832_164] : memref<8x1024xf32, #tpu.memory_space<vmem>>, vector<1x64xf32>
    tpu.vector_store %arg9[%c3_163, %c832_164], %403 {strides = array<i32>} : memref<8x1024xf32, #tpu.memory_space<vmem>>, vector<1x64xf32>,
    %405 = vector.extract_strided_slice %280 {offsets = [14, 192], sizes = [1, 64], strides = [1, 1]} : vector<16x512xf32> to vector<1x64xf32>
    %c3_165 = arith.constant 3 : index
    %c896_166 = arith.constant 896 : index
    %406 = vector.load %arg9[%c3_165, %c896_166] : memref<8x1024xf32, #tpu.memory_space<vmem>>, vector<1x64xf32>
    tpu.vector_store %arg9[%c3_165, %c896_166], %405 {strides = array<i32>} : memref<8x1024xf32, #tpu.memory_space<vmem>>, vector<1x64xf32>,
    %407 = vector.extract_strided_slice %280 {offsets = [15, 192], sizes = [1, 64], strides = [1, 1]} : vector<16x512xf32> to vector<1x64xf32>
    %c3_167 = arith.constant 3 : index
    %c960_168 = arith.constant 960 : index
    %408 = vector.load %arg9[%c3_167, %c960_168] : memref<8x1024xf32, #tpu.memory_space<vmem>>, vector<1x64xf32>
    tpu.vector_store %arg9[%c3_167, %c960_168], %407 {strides = array<i32>} : memref<8x1024xf32, #tpu.memory_space<vmem>>, vector<1x64xf32>,
    %409 = vector.extract_strided_slice %280 {offsets = [0, 256], sizes = [1, 64], strides = [1, 1]} : vector<16x512xf32> to vector<1x64xf32>
    %c4 = arith.constant 4 : index
    %c0_169 = arith.constant 0 : index
    %410 = vector.load %arg9[%c4, %c0_169] : memref<8x1024xf32, #tpu.memory_space<vmem>>, vector<1x64xf32>
    tpu.vector_store %arg9[%c4, %c0_169], %409 {strides = array<i32>} : memref<8x1024xf32, #tpu.memory_space<vmem>>, vector<1x64xf32>,
    %411 = vector.extract_strided_slice %280 {offsets = [1, 256], sizes = [1, 64], strides = [1, 1]} : vector<16x512xf32> to vector<1x64xf32>
    %c4_170 = arith.constant 4 : index
    %c64_171 = arith.constant 64 : index
    %412 = vector.load %arg9[%c4_170, %c64_171] : memref<8x1024xf32, #tpu.memory_space<vmem>>, vector<1x64xf32>
    tpu.vector_store %arg9[%c4_170, %c64_171], %411 {strides = array<i32>} : memref<8x1024xf32, #tpu.memory_space<vmem>>, vector<1x64xf32>,
    %413 = vector.extract_strided_slice %280 {offsets = [2, 256], sizes = [1, 64], strides = [1, 1]} : vector<16x512xf32> to vector<1x64xf32>
    %c4_172 = arith.constant 4 : index
    %c128_173 = arith.constant 128 : index
    %414 = vector.load %arg9[%c4_172, %c128_173] : memref<8x1024xf32, #tpu.memory_space<vmem>>, vector<1x64xf32>
    tpu.vector_store %arg9[%c4_172, %c128_173], %413 {strides = array<i32>} : memref<8x1024xf32, #tpu.memory_space<vmem>>, vector<1x64xf32>,
    %415 = vector.extract_strided_slice %280 {offsets = [3, 256], sizes = [1, 64], strides = [1, 1]} : vector<16x512xf32> to vector<1x64xf32>
    %c4_174 = arith.constant 4 : index
    %c192_175 = arith.constant 192 : index
    %416 = vector.load %arg9[%c4_174, %c192_175] : memref<8x1024xf32, #tpu.memory_space<vmem>>, vector<1x64xf32>
    tpu.vector_store %arg9[%c4_174, %c192_175], %415 {strides = array<i32>} : memref<8x1024xf32, #tpu.memory_space<vmem>>, vector<1x64xf32>,
    %417 = vector.extract_strided_slice %280 {offsets = [4, 256], sizes = [1, 64], strides = [1, 1]} : vector<16x512xf32> to vector<1x64xf32>
    %c4_176 = arith.constant 4 : index
    %c256_177 = arith.constant 256 : index
    %418 = vector.load %arg9[%c4_176, %c256_177] : memref<8x1024xf32, #tpu.memory_space<vmem>>, vector<1x64xf32>
    tpu.vector_store %arg9[%c4_176, %c256_177], %417 {strides = array<i32>} : memref<8x1024xf32, #tpu.memory_space<vmem>>, vector<1x64xf32>,
    %419 = vector.extract_strided_slice %280 {offsets = [5, 256], sizes = [1, 64], strides = [1, 1]} : vector<16x512xf32> to vector<1x64xf32>
    %c4_178 = arith.constant 4 : index
    %c320_179 = arith.constant 320 : index
    %420 = vector.load %arg9[%c4_178, %c320_179] : memref<8x1024xf32, #tpu.memory_space<vmem>>, vector<1x64xf32>
    tpu.vector_store %arg9[%c4_178, %c320_179], %419 {strides = array<i32>} : memref<8x1024xf32, #tpu.memory_space<vmem>>, vector<1x64xf32>,
    %421 = vector.extract_strided_slice %280 {offsets = [6, 256], sizes = [1, 64], strides = [1, 1]} : vector<16x512xf32> to vector<1x64xf32>
    %c4_180 = arith.constant 4 : index
    %c384_181 = arith.constant 384 : index
    %422 = vector.load %arg9[%c4_180, %c384_181] : memref<8x1024xf32, #tpu.memory_space<vmem>>, vector<1x64xf32>
    tpu.vector_store %arg9[%c4_180, %c384_181], %421 {strides = array<i32>} : memref<8x1024xf32, #tpu.memory_space<vmem>>, vector<1x64xf32>,
    %423 = vector.extract_strided_slice %280 {offsets = [7, 256], sizes = [1, 64], strides = [1, 1]} : vector<16x512xf32> to vector<1x64xf32>
    %c4_182 = arith.constant 4 : index
    %c448_183 = arith.constant 448 : index
    %424 = vector.load %arg9[%c4_182, %c448_183] : memref<8x1024xf32, #tpu.memory_space<vmem>>, vector<1x64xf32>
    tpu.vector_store %arg9[%c4_182, %c448_183], %423 {strides = array<i32>} : memref<8x1024xf32, #tpu.memory_space<vmem>>, vector<1x64xf32>,
    %425 = vector.extract_strided_slice %280 {offsets = [8, 256], sizes = [1, 64], strides = [1, 1]} : vector<16x512xf32> to vector<1x64xf32>
    %c4_184 = arith.constant 4 : index
    %c512_185 = arith.constant 512 : index
    %426 = vector.load %arg9[%c4_184, %c512_185] : memref<8x1024xf32, #tpu.memory_space<vmem>>, vector<1x64xf32>
    tpu.vector_store %arg9[%c4_184, %c512_185], %425 {strides = array<i32>} : memref<8x1024xf32, #tpu.memory_space<vmem>>, vector<1x64xf32>,
    %427 = vector.extract_strided_slice %280 {offsets = [9, 256], sizes = [1, 64], strides = [1, 1]} : vector<16x512xf32> to vector<1x64xf32>
    %c4_186 = arith.constant 4 : index
    %c576_187 = arith.constant 576 : index
    %428 = vector.load %arg9[%c4_186, %c576_187] : memref<8x1024xf32, #tpu.memory_space<vmem>>, vector<1x64xf32>
    tpu.vector_store %arg9[%c4_186, %c576_187], %427 {strides = array<i32>} : memref<8x1024xf32, #tpu.memory_space<vmem>>, vector<1x64xf32>,
    %429 = vector.extract_strided_slice %280 {offsets = [10, 256], sizes = [1, 64], strides = [1, 1]} : vector<16x512xf32> to vector<1x64xf32>
    %c4_188 = arith.constant 4 : index
    %c640_189 = arith.constant 640 : index
    %430 = vector.load %arg9[%c4_188, %c640_189] : memref<8x1024xf32, #tpu.memory_space<vmem>>, vector<1x64xf32>
    tpu.vector_store %arg9[%c4_188, %c640_189], %429 {strides = array<i32>} : memref<8x1024xf32, #tpu.memory_space<vmem>>, vector<1x64xf32>,
    %431 = vector.extract_strided_slice %280 {offsets = [11, 256], sizes = [1, 64], strides = [1, 1]} : vector<16x512xf32> to vector<1x64xf32>
    %c4_190 = arith.constant 4 : index
    %c704_191 = arith.constant 704 : index
    %432 = vector.load %arg9[%c4_190, %c704_191] : memref<8x1024xf32, #tpu.memory_space<vmem>>, vector<1x64xf32>
    tpu.vector_store %arg9[%c4_190, %c704_191], %431 {strides = array<i32>} : memref<8x1024xf32, #tpu.memory_space<vmem>>, vector<1x64xf32>,
    %433 = vector.extract_strided_slice %280 {offsets = [12, 256], sizes = [1, 64], strides = [1, 1]} : vector<16x512xf32> to vector<1x64xf32>
    %c4_192 = arith.constant 4 : index
    %c768_193 = arith.constant 768 : index
    %434 = vector.load %arg9[%c4_192, %c768_193] : memref<8x1024xf32, #tpu.memory_space<vmem>>, vector<1x64xf32>
    tpu.vector_store %arg9[%c4_192, %c768_193], %433 {strides = array<i32>} : memref<8x1024xf32, #tpu.memory_space<vmem>>, vector<1x64xf32>,
    %435 = vector.extract_strided_slice %280 {offsets = [13, 256], sizes = [1, 64], strides = [1, 1]} : vector<16x512xf32> to vector<1x64xf32>
    %c4_194 = arith.constant 4 : index
    %c832_195 = arith.constant 832 : index
    %436 = vector.load %arg9[%c4_194, %c832_195] : memref<8x1024xf32, #tpu.memory_space<vmem>>, vector<1x64xf32>
    tpu.vector_store %arg9[%c4_194, %c832_195], %435 {strides = array<i32>} : memref<8x1024xf32, #tpu.memory_space<vmem>>, vector<1x64xf32>,
    %437 = vector.extract_strided_slice %280 {offsets = [14, 256], sizes = [1, 64], strides = [1, 1]} : vector<16x512xf32> to vector<1x64xf32>
    %c4_196 = arith.constant 4 : index
    %c896_197 = arith.constant 896 : index
    %438 = vector.load %arg9[%c4_196, %c896_197] : memref<8x1024xf32, #tpu.memory_space<vmem>>, vector<1x64xf32>
    tpu.vector_store %arg9[%c4_196, %c896_197], %437 {strides = array<i32>} : memref<8x1024xf32, #tpu.memory_space<vmem>>, vector<1x64xf32>,
    %439 = vector.extract_strided_slice %280 {offsets = [15, 256], sizes = [1, 64], strides = [1, 1]} : vector<16x512xf32> to vector<1x64xf32>
    %c4_198 = arith.constant 4 : index
    %c960_199 = arith.constant 960 : index
    %440 = vector.load %arg9[%c4_198, %c960_199] : memref<8x1024xf32, #tpu.memory_space<vmem>>, vector<1x64xf32>
    tpu.vector_store %arg9[%c4_198, %c960_199], %439 {strides = array<i32>} : memref<8x1024xf32, #tpu.memory_space<vmem>>, vector<1x64xf32>,
    %441 = vector.extract_strided_slice %280 {offsets = [0, 320], sizes = [1, 64], strides = [1, 1]} : vector<16x512xf32> to vector<1x64xf32>
    %c5 = arith.constant 5 : index
    %c0_200 = arith.constant 0 : index
    %442 = vector.load %arg9[%c5, %c0_200] : memref<8x1024xf32, #tpu.memory_space<vmem>>, vector<1x64xf32>
    tpu.vector_store %arg9[%c5, %c0_200], %441 {strides = array<i32>} : memref<8x1024xf32, #tpu.memory_space<vmem>>, vector<1x64xf32>,
    %443 = vector.extract_strided_slice %280 {offsets = [1, 320], sizes = [1, 64], strides = [1, 1]} : vector<16x512xf32> to vector<1x64xf32>
    %c5_201 = arith.constant 5 : index
    %c64_202 = arith.constant 64 : index
    %444 = vector.load %arg9[%c5_201, %c64_202] : memref<8x1024xf32, #tpu.memory_space<vmem>>, vector<1x64xf32>
    tpu.vector_store %arg9[%c5_201, %c64_202], %443 {strides = array<i32>} : memref<8x1024xf32, #tpu.memory_space<vmem>>, vector<1x64xf32>,
    %445 = vector.extract_strided_slice %280 {offsets = [2, 320], sizes = [1, 64], strides = [1, 1]} : vector<16x512xf32> to vector<1x64xf32>
    %c5_203 = arith.constant 5 : index
    %c128_204 = arith.constant 128 : index
    %446 = vector.load %arg9[%c5_203, %c128_204] : memref<8x1024xf32, #tpu.memory_space<vmem>>, vector<1x64xf32>
    tpu.vector_store %arg9[%c5_203, %c128_204], %445 {strides = array<i32>} : memref<8x1024xf32, #tpu.memory_space<vmem>>, vector<1x64xf32>,
    %447 = vector.extract_strided_slice %280 {offsets = [3, 320], sizes = [1, 64], strides = [1, 1]} : vector<16x512xf32> to vector<1x64xf32>
    %c5_205 = arith.constant 5 : index
    %c192_206 = arith.constant 192 : index
    %448 = vector.load %arg9[%c5_205, %c192_206] : memref<8x1024xf32, #tpu.memory_space<vmem>>, vector<1x64xf32>
    tpu.vector_store %arg9[%c5_205, %c192_206], %447 {strides = array<i32>} : memref<8x1024xf32, #tpu.memory_space<vmem>>, vector<1x64xf32>,
    %449 = vector.extract_strided_slice %280 {offsets = [4, 320], sizes = [1, 64], strides = [1, 1]} : vector<16x512xf32> to vector<1x64xf32>
    %c5_207 = arith.constant 5 : index
    %c256_208 = arith.constant 256 : index
    %450 = vector.load %arg9[%c5_207, %c256_208] : memref<8x1024xf32, #tpu.memory_space<vmem>>, vector<1x64xf32>
    tpu.vector_store %arg9[%c5_207, %c256_208], %449 {strides = array<i32>} : memref<8x1024xf32, #tpu.memory_space<vmem>>, vector<1x64xf32>,
    %451 = vector.extract_strided_slice %280 {offsets = [5, 320], sizes = [1, 64], strides = [1, 1]} : vector<16x512xf32> to vector<1x64xf32>
    %c5_209 = arith.constant 5 : index
    %c320_210 = arith.constant 320 : index
    %452 = vector.load %arg9[%c5_209, %c320_210] : memref<8x1024xf32, #tpu.memory_space<vmem>>, vector<1x64xf32>
    tpu.vector_store %arg9[%c5_209, %c320_210], %451 {strides = array<i32>} : memref<8x1024xf32, #tpu.memory_space<vmem>>, vector<1x64xf32>,
    %453 = vector.extract_strided_slice %280 {offsets = [6, 320], sizes = [1, 64], strides = [1, 1]} : vector<16x512xf32> to vector<1x64xf32>
    %c5_211 = arith.constant 5 : index
    %c384_212 = arith.constant 384 : index
    %454 = vector.load %arg9[%c5_211, %c384_212] : memref<8x1024xf32, #tpu.memory_space<vmem>>, vector<1x64xf32>
    tpu.vector_store %arg9[%c5_211, %c384_212], %453 {strides = array<i32>} : memref<8x1024xf32, #tpu.memory_space<vmem>>, vector<1x64xf32>,
    %455 = vector.extract_strided_slice %280 {offsets = [7, 320], sizes = [1, 64], strides = [1, 1]} : vector<16x512xf32> to vector<1x64xf32>
    %c5_213 = arith.constant 5 : index
    %c448_214 = arith.constant 448 : index
    %456 = vector.load %arg9[%c5_213, %c448_214] : memref<8x1024xf32, #tpu.memory_space<vmem>>, vector<1x64xf32>
    tpu.vector_store %arg9[%c5_213, %c448_214], %455 {strides = array<i32>} : memref<8x1024xf32, #tpu.memory_space<vmem>>, vector<1x64xf32>,
    %457 = vector.extract_strided_slice %280 {offsets = [8, 320], sizes = [1, 64], strides = [1, 1]} : vector<16x512xf32> to vector<1x64xf32>
    %c5_215 = arith.constant 5 : index
    %c512_216 = arith.constant 512 : index
    %458 = vector.load %arg9[%c5_215, %c512_216] : memref<8x1024xf32, #tpu.memory_space<vmem>>, vector<1x64xf32>
    tpu.vector_store %arg9[%c5_215, %c512_216], %457 {strides = array<i32>} : memref<8x1024xf32, #tpu.memory_space<vmem>>, vector<1x64xf32>,
    %459 = vector.extract_strided_slice %280 {offsets = [9, 320], sizes = [1, 64], strides = [1, 1]} : vector<16x512xf32> to vector<1x64xf32>
    %c5_217 = arith.constant 5 : index
    %c576_218 = arith.constant 576 : index
    %460 = vector.load %arg9[%c5_217, %c576_218] : memref<8x1024xf32, #tpu.memory_space<vmem>>, vector<1x64xf32>
    tpu.vector_store %arg9[%c5_217, %c576_218], %459 {strides = array<i32>} : memref<8x1024xf32, #tpu.memory_space<vmem>>, vector<1x64xf32>,
    %461 = vector.extract_strided_slice %280 {offsets = [10, 320], sizes = [1, 64], strides = [1, 1]} : vector<16x512xf32> to vector<1x64xf32>
    %c5_219 = arith.constant 5 : index
    %c640_220 = arith.constant 640 : index
    %462 = vector.load %arg9[%c5_219, %c640_220] : memref<8x1024xf32, #tpu.memory_space<vmem>>, vector<1x64xf32>
    tpu.vector_store %arg9[%c5_219, %c640_220], %461 {strides = array<i32>} : memref<8x1024xf32, #tpu.memory_space<vmem>>, vector<1x64xf32>,
    %463 = vector.extract_strided_slice %280 {offsets = [11, 320], sizes = [1, 64], strides = [1, 1]} : vector<16x512xf32> to vector<1x64xf32>
    %c5_221 = arith.constant 5 : index
    %c704_222 = arith.constant 704 : index
    %464 = vector.load %arg9[%c5_221, %c704_222] : memref<8x1024xf32, #tpu.memory_space<vmem>>, vector<1x64xf32>
    tpu.vector_store %arg9[%c5_221, %c704_222], %463 {strides = array<i32>} : memref<8x1024xf32, #tpu.memory_space<vmem>>, vector<1x64xf32>,
    %465 = vector.extract_strided_slice %280 {offsets = [12, 320], sizes = [1, 64], strides = [1, 1]} : vector<16x512xf32> to vector<1x64xf32>
    %c5_223 = arith.constant 5 : index
    %c768_224 = arith.constant 768 : index
    %466 = vector.load %arg9[%c5_223, %c768_224] : memref<8x1024xf32, #tpu.memory_space<vmem>>, vector<1x64xf32>
    tpu.vector_store %arg9[%c5_223, %c768_224], %465 {strides = array<i32>} : memref<8x1024xf32, #tpu.memory_space<vmem>>, vector<1x64xf32>,
    %467 = vector.extract_strided_slice %280 {offsets = [13, 320], sizes = [1, 64], strides = [1, 1]} : vector<16x512xf32> to vector<1x64xf32>
    %c5_225 = arith.constant 5 : index
    %c832_226 = arith.constant 832 : index
    %468 = vector.load %arg9[%c5_225, %c832_226] : memref<8x1024xf32, #tpu.memory_space<vmem>>, vector<1x64xf32>
    tpu.vector_store %arg9[%c5_225, %c832_226], %467 {strides = array<i32>} : memref<8x1024xf32, #tpu.memory_space<vmem>>, vector<1x64xf32>,
    %469 = vector.extract_strided_slice %280 {offsets = [14, 320], sizes = [1, 64], strides = [1, 1]} : vector<16x512xf32> to vector<1x64xf32>
    %c5_227 = arith.constant 5 : index
    %c896_228 = arith.constant 896 : index
    %470 = vector.load %arg9[%c5_227, %c896_228] : memref<8x1024xf32, #tpu.memory_space<vmem>>, vector<1x64xf32>
    tpu.vector_store %arg9[%c5_227, %c896_228], %469 {strides = array<i32>} : memref<8x1024xf32, #tpu.memory_space<vmem>>, vector<1x64xf32>,
    %471 = vector.extract_strided_slice %280 {offsets = [15, 320], sizes = [1, 64], strides = [1, 1]} : vector<16x512xf32> to vector<1x64xf32>
    %c5_229 = arith.constant 5 : index
    %c960_230 = arith.constant 960 : index
    %472 = vector.load %arg9[%c5_229, %c960_230] : memref<8x1024xf32, #tpu.memory_space<vmem>>, vector<1x64xf32>
    tpu.vector_store %arg9[%c5_229, %c960_230], %471 {strides = array<i32>} : memref<8x1024xf32, #tpu.memory_space<vmem>>, vector<1x64xf32>,
    %473 = vector.extract_strided_slice %280 {offsets = [0, 384], sizes = [1, 64], strides = [1, 1]} : vector<16x512xf32> to vector<1x64xf32>
    %c6 = arith.constant 6 : index
    %c0_231 = arith.constant 0 : index
    %474 = vector.load %arg9[%c6, %c0_231] : memref<8x1024xf32, #tpu.memory_space<vmem>>, vector<1x64xf32>
    tpu.vector_store %arg9[%c6, %c0_231], %473 {strides = array<i32>} : memref<8x1024xf32, #tpu.memory_space<vmem>>, vector<1x64xf32>,
    %475 = vector.extract_strided_slice %280 {offsets = [1, 384], sizes = [1, 64], strides = [1, 1]} : vector<16x512xf32> to vector<1x64xf32>
    %c6_232 = arith.constant 6 : index
    %c64_233 = arith.constant 64 : index
    %476 = vector.load %arg9[%c6_232, %c64_233] : memref<8x1024xf32, #tpu.memory_space<vmem>>, vector<1x64xf32>
    tpu.vector_store %arg9[%c6_232, %c64_233], %475 {strides = array<i32>} : memref<8x1024xf32, #tpu.memory_space<vmem>>, vector<1x64xf32>,
    %477 = vector.extract_strided_slice %280 {offsets = [2, 384], sizes = [1, 64], strides = [1, 1]} : vector<16x512xf32> to vector<1x64xf32>
    %c6_234 = arith.constant 6 : index
    %c128_235 = arith.constant 128 : index
    %478 = vector.load %arg9[%c6_234, %c128_235] : memref<8x1024xf32, #tpu.memory_space<vmem>>, vector<1x64xf32>
    tpu.vector_store %arg9[%c6_234, %c128_235], %477 {strides = array<i32>} : memref<8x1024xf32, #tpu.memory_space<vmem>>, vector<1x64xf32>,
    %479 = vector.extract_strided_slice %280 {offsets = [3, 384], sizes = [1, 64], strides = [1, 1]} : vector<16x512xf32> to vector<1x64xf32>
    %c6_236 = arith.constant 6 : index
    %c192_237 = arith.constant 192 : index
    %480 = vector.load %arg9[%c6_236, %c192_237] : memref<8x1024xf32, #tpu.memory_space<vmem>>, vector<1x64xf32>
    tpu.vector_store %arg9[%c6_236, %c192_237], %479 {strides = array<i32>} : memref<8x1024xf32, #tpu.memory_space<vmem>>, vector<1x64xf32>,
    %481 = vector.extract_strided_slice %280 {offsets = [4, 384], sizes = [1, 64], strides = [1, 1]} : vector<16x512xf32> to vector<1x64xf32>
    %c6_238 = arith.constant 6 : index
    %c256_239 = arith.constant 256 : index
    %482 = vector.load %arg9[%c6_238, %c256_239] : memref<8x1024xf32, #tpu.memory_space<vmem>>, vector<1x64xf32>
    tpu.vector_store %arg9[%c6_238, %c256_239], %481 {strides = array<i32>} : memref<8x1024xf32, #tpu.memory_space<vmem>>, vector<1x64xf32>,
    %483 = vector.extract_strided_slice %280 {offsets = [5, 384], sizes = [1, 64], strides = [1, 1]} : vector<16x512xf32> to vector<1x64xf32>
    %c6_240 = arith.constant 6 : index
    %c320_241 = arith.constant 320 : index
    %484 = vector.load %arg9[%c6_240, %c320_241] : memref<8x1024xf32, #tpu.memory_space<vmem>>, vector<1x64xf32>
    tpu.vector_store %arg9[%c6_240, %c320_241], %483 {strides = array<i32>} : memref<8x1024xf32, #tpu.memory_space<vmem>>, vector<1x64xf32>,
    %485 = vector.extract_strided_slice %280 {offsets = [6, 384], sizes = [1, 64], strides = [1, 1]} : vector<16x512xf32> to vector<1x64xf32>
    %c6_242 = arith.constant 6 : index
    %c384_243 = arith.constant 384 : index
    %486 = vector.load %arg9[%c6_242, %c384_243] : memref<8x1024xf32, #tpu.memory_space<vmem>>, vector<1x64xf32>
    tpu.vector_store %arg9[%c6_242, %c384_243], %485 {strides = array<i32>} : memref<8x1024xf32, #tpu.memory_space<vmem>>, vector<1x64xf32>,
    %487 = vector.extract_strided_slice %280 {offsets = [7, 384], sizes = [1, 64], strides = [1, 1]} : vector<16x512xf32> to vector<1x64xf32>
    %c6_244 = arith.constant 6 : index
    %c448_245 = arith.constant 448 : index
    %488 = vector.load %arg9[%c6_244, %c448_245] : memref<8x1024xf32, #tpu.memory_space<vmem>>, vector<1x64xf32>
    tpu.vector_store %arg9[%c6_244, %c448_245], %487 {strides = array<i32>} : memref<8x1024xf32, #tpu.memory_space<vmem>>, vector<1x64xf32>,
    %489 = vector.extract_strided_slice %280 {offsets = [8, 384], sizes = [1, 64], strides = [1, 1]} : vector<16x512xf32> to vector<1x64xf32>
    %c6_246 = arith.constant 6 : index
    %c512_247 = arith.constant 512 : index
    %490 = vector.load %arg9[%c6_246, %c512_247] : memref<8x1024xf32, #tpu.memory_space<vmem>>, vector<1x64xf32>
    tpu.vector_store %arg9[%c6_246, %c512_247], %489 {strides = array<i32>} : memref<8x1024xf32, #tpu.memory_space<vmem>>, vector<1x64xf32>,
    %491 = vector.extract_strided_slice %280 {offsets = [9, 384], sizes = [1, 64], strides = [1, 1]} : vector<16x512xf32> to vector<1x64xf32>
    %c6_248 = arith.constant 6 : index
    %c576_249 = arith.constant 576 : index
    %492 = vector.load %arg9[%c6_248, %c576_249] : memref<8x1024xf32, #tpu.memory_space<vmem>>, vector<1x64xf32>
    tpu.vector_store %arg9[%c6_248, %c576_249], %491 {strides = array<i32>} : memref<8x1024xf32, #tpu.memory_space<vmem>>, vector<1x64xf32>,
    %493 = vector.extract_strided_slice %280 {offsets = [10, 384], sizes = [1, 64], strides = [1, 1]} : vector<16x512xf32> to vector<1x64xf32>
    %c6_250 = arith.constant 6 : index
    %c640_251 = arith.constant 640 : index
    %494 = vector.load %arg9[%c6_250, %c640_251] : memref<8x1024xf32, #tpu.memory_space<vmem>>, vector<1x64xf32>
    tpu.vector_store %arg9[%c6_250, %c640_251], %493 {strides = array<i32>} : memref<8x1024xf32, #tpu.memory_space<vmem>>, vector<1x64xf32>,
    %495 = vector.extract_strided_slice %280 {offsets = [11, 384], sizes = [1, 64], strides = [1, 1]} : vector<16x512xf32> to vector<1x64xf32>
    %c6_252 = arith.constant 6 : index
    %c704_253 = arith.constant 704 : index
    %496 = vector.load %arg9[%c6_252, %c704_253] : memref<8x1024xf32, #tpu.memory_space<vmem>>, vector<1x64xf32>
    tpu.vector_store %arg9[%c6_252, %c704_253], %495 {strides = array<i32>} : memref<8x1024xf32, #tpu.memory_space<vmem>>, vector<1x64xf32>,
    %497 = vector.extract_strided_slice %280 {offsets = [12, 384], sizes = [1, 64], strides = [1, 1]} : vector<16x512xf32> to vector<1x64xf32>
    %c6_254 = arith.constant 6 : index
    %c768_255 = arith.constant 768 : index
    %498 = vector.load %arg9[%c6_254, %c768_255] : memref<8x1024xf32, #tpu.memory_space<vmem>>, vector<1x64xf32>
    tpu.vector_store %arg9[%c6_254, %c768_255], %497 {strides = array<i32>} : memref<8x1024xf32, #tpu.memory_space<vmem>>, vector<1x64xf32>,
    %499 = vector.extract_strided_slice %280 {offsets = [13, 384], sizes = [1, 64], strides = [1, 1]} : vector<16x512xf32> to vector<1x64xf32>
    %c6_256 = arith.constant 6 : index
    %c832_257 = arith.constant 832 : index
    %500 = vector.load %arg9[%c6_256, %c832_257] : memref<8x1024xf32, #tpu.memory_space<vmem>>, vector<1x64xf32>
    tpu.vector_store %arg9[%c6_256, %c832_257], %499 {strides = array<i32>} : memref<8x1024xf32, #tpu.memory_space<vmem>>, vector<1x64xf32>,
    %501 = vector.extract_strided_slice %280 {offsets = [14, 384], sizes = [1, 64], strides = [1, 1]} : vector<16x512xf32> to vector<1x64xf32>
    %c6_258 = arith.constant 6 : index
    %c896_259 = arith.constant 896 : index
    %502 = vector.load %arg9[%c6_258, %c896_259] : memref<8x1024xf32, #tpu.memory_space<vmem>>, vector<1x64xf32>
    tpu.vector_store %arg9[%c6_258, %c896_259], %501 {strides = array<i32>} : memref<8x1024xf32, #tpu.memory_space<vmem>>, vector<1x64xf32>,
    %503 = vector.extract_strided_slice %280 {offsets = [15, 384], sizes = [1, 64], strides = [1, 1]} : vector<16x512xf32> to vector<1x64xf32>
    %c6_260 = arith.constant 6 : index
    %c960_261 = arith.constant 960 : index
    %504 = vector.load %arg9[%c6_260, %c960_261] : memref<8x1024xf32, #tpu.memory_space<vmem>>, vector<1x64xf32>
    tpu.vector_store %arg9[%c6_260, %c960_261], %503 {strides = array<i32>} : memref<8x1024xf32, #tpu.memory_space<vmem>>, vector<1x64xf32>,
    %505 = vector.extract_strided_slice %280 {offsets = [0, 448], sizes = [1, 64], strides = [1, 1]} : vector<16x512xf32> to vector<1x64xf32>
    %c7 = arith.constant 7 : index
    %c0_262 = arith.constant 0 : index
    %506 = vector.load %arg9[%c7, %c0_262] : memref<8x1024xf32, #tpu.memory_space<vmem>>, vector<1x64xf32>
    tpu.vector_store %arg9[%c7, %c0_262], %505 {strides = array<i32>} : memref<8x1024xf32, #tpu.memory_space<vmem>>, vector<1x64xf32>,
    %507 = vector.extract_strided_slice %280 {offsets = [1, 448], sizes = [1, 64], strides = [1, 1]} : vector<16x512xf32> to vector<1x64xf32>
    %c7_263 = arith.constant 7 : index
    %c64_264 = arith.constant 64 : index
    %508 = vector.load %arg9[%c7_263, %c64_264] : memref<8x1024xf32, #tpu.memory_space<vmem>>, vector<1x64xf32>
    tpu.vector_store %arg9[%c7_263, %c64_264], %507 {strides = array<i32>} : memref<8x1024xf32, #tpu.memory_space<vmem>>, vector<1x64xf32>,
    %509 = vector.extract_strided_slice %280 {offsets = [2, 448], sizes = [1, 64], strides = [1, 1]} : vector<16x512xf32> to vector<1x64xf32>
    %c7_265 = arith.constant 7 : index
    %c128_266 = arith.constant 128 : index
    %510 = vector.load %arg9[%c7_265, %c128_266] : memref<8x1024xf32, #tpu.memory_space<vmem>>, vector<1x64xf32>
    tpu.vector_store %arg9[%c7_265, %c128_266], %509 {strides = array<i32>} : memref<8x1024xf32, #tpu.memory_space<vmem>>, vector<1x64xf32>,
    %511 = vector.extract_strided_slice %280 {offsets = [3, 448], sizes = [1, 64], strides = [1, 1]} : vector<16x512xf32> to vector<1x64xf32>
    %c7_267 = arith.constant 7 : index
    %c192_268 = arith.constant 192 : index
    %512 = vector.load %arg9[%c7_267, %c192_268] : memref<8x1024xf32, #tpu.memory_space<vmem>>, vector<1x64xf32>
    tpu.vector_store %arg9[%c7_267, %c192_268], %511 {strides = array<i32>} : memref<8x1024xf32, #tpu.memory_space<vmem>>, vector<1x64xf32>,
    %513 = vector.extract_strided_slice %280 {offsets = [4, 448], sizes = [1, 64], strides = [1, 1]} : vector<16x512xf32> to vector<1x64xf32>
    %c7_269 = arith.constant 7 : index
    %c256_270 = arith.constant 256 : index
    %514 = vector.load %arg9[%c7_269, %c256_270] : memref<8x1024xf32, #tpu.memory_space<vmem>>, vector<1x64xf32>
    tpu.vector_store %arg9[%c7_269, %c256_270], %513 {strides = array<i32>} : memref<8x1024xf32, #tpu.memory_space<vmem>>, vector<1x64xf32>,
    %515 = vector.extract_strided_slice %280 {offsets = [5, 448], sizes = [1, 64], strides = [1, 1]} : vector<16x512xf32> to vector<1x64xf32>
    %c7_271 = arith.constant 7 : index
    %c320_272 = arith.constant 320 : index
    %516 = vector.load %arg9[%c7_271, %c320_272] : memref<8x1024xf32, #tpu.memory_space<vmem>>, vector<1x64xf32>
    tpu.vector_store %arg9[%c7_271, %c320_272], %515 {strides = array<i32>} : memref<8x1024xf32, #tpu.memory_space<vmem>>, vector<1x64xf32>,
    %517 = vector.extract_strided_slice %280 {offsets = [6, 448], sizes = [1, 64], strides = [1, 1]} : vector<16x512xf32> to vector<1x64xf32>
    %c7_273 = arith.constant 7 : index
    %c384_274 = arith.constant 384 : index
    %518 = vector.load %arg9[%c7_273, %c384_274] : memref<8x1024xf32, #tpu.memory_space<vmem>>, vector<1x64xf32>
    tpu.vector_store %arg9[%c7_273, %c384_274], %517 {strides = array<i32>} : memref<8x1024xf32, #tpu.memory_space<vmem>>, vector<1x64xf32>,
    %519 = vector.extract_strided_slice %280 {offsets = [7, 448], sizes = [1, 64], strides = [1, 1]} : vector<16x512xf32> to vector<1x64xf32>
    %c7_275 = arith.constant 7 : index
    %c448_276 = arith.constant 448 : index
    %520 = vector.load %arg9[%c7_275, %c448_276] : memref<8x1024xf32, #tpu.memory_space<vmem>>, vector<1x64xf32>
    tpu.vector_store %arg9[%c7_275, %c448_276], %519 {strides = array<i32>} : memref<8x1024xf32, #tpu.memory_space<vmem>>, vector<1x64xf32>,
    %521 = vector.extract_strided_slice %280 {offsets = [8, 448], sizes = [1, 64], strides = [1, 1]} : vector<16x512xf32> to vector<1x64xf32>
    %c7_277 = arith.constant 7 : index
    %c512_278 = arith.constant 512 : index
    %522 = vector.load %arg9[%c7_277, %c512_278] : memref<8x1024xf32, #tpu.memory_space<vmem>>, vector<1x64xf32>
    tpu.vector_store %arg9[%c7_277, %c512_278], %521 {strides = array<i32>} : memref<8x1024xf32, #tpu.memory_space<vmem>>, vector<1x64xf32>,
    %523 = vector.extract_strided_slice %280 {offsets = [9, 448], sizes = [1, 64], strides = [1, 1]} : vector<16x512xf32> to vector<1x64xf32>
    %c7_279 = arith.constant 7 : index
    %c576_280 = arith.constant 576 : index
    %524 = vector.load %arg9[%c7_279, %c576_280] : memref<8x1024xf32, #tpu.memory_space<vmem>>, vector<1x64xf32>
    tpu.vector_store %arg9[%c7_279, %c576_280], %523 {strides = array<i32>} : memref<8x1024xf32, #tpu.memory_space<vmem>>, vector<1x64xf32>,
    %525 = vector.extract_strided_slice %280 {offsets = [10, 448], sizes = [1, 64], strides = [1, 1]} : vector<16x512xf32> to vector<1x64xf32>
    %c7_281 = arith.constant 7 : index
    %c640_282 = arith.constant 640 : index
    %526 = vector.load %arg9[%c7_281, %c640_282] : memref<8x1024xf32, #tpu.memory_space<vmem>>, vector<1x64xf32>
    tpu.vector_store %arg9[%c7_281, %c640_282], %525 {strides = array<i32>} : memref<8x1024xf32, #tpu.memory_space<vmem>>, vector<1x64xf32>,
    %527 = vector.extract_strided_slice %280 {offsets = [11, 448], sizes = [1, 64], strides = [1, 1]} : vector<16x512xf32> to vector<1x64xf32>
    %c7_283 = arith.constant 7 : index
    %c704_284 = arith.constant 704 : index
    %528 = vector.load %arg9[%c7_283, %c704_284] : memref<8x1024xf32, #tpu.memory_space<vmem>>, vector<1x64xf32>
    tpu.vector_store %arg9[%c7_283, %c704_284], %527 {strides = array<i32>} : memref<8x1024xf32, #tpu.memory_space<vmem>>, vector<1x64xf32>,
    %529 = vector.extract_strided_slice %280 {offsets = [12, 448], sizes = [1, 64], strides = [1, 1]} : vector<16x512xf32> to vector<1x64xf32>
    %c7_285 = arith.constant 7 : index
    %c768_286 = arith.constant 768 : index
    %530 = vector.load %arg9[%c7_285, %c768_286] : memref<8x1024xf32, #tpu.memory_space<vmem>>, vector<1x64xf32>
    tpu.vector_store %arg9[%c7_285, %c768_286], %529 {strides = array<i32>} : memref<8x1024xf32, #tpu.memory_space<vmem>>, vector<1x64xf32>,
    %531 = vector.extract_strided_slice %280 {offsets = [13, 448], sizes = [1, 64], strides = [1, 1]} : vector<16x512xf32> to vector<1x64xf32>
    %c7_287 = arith.constant 7 : index
    %c832_288 = arith.constant 832 : index
    %532 = vector.load %arg9[%c7_287, %c832_288] : memref<8x1024xf32, #tpu.memory_space<vmem>>, vector<1x64xf32>
    tpu.vector_store %arg9[%c7_287, %c832_288], %531 {strides = array<i32>} : memref<8x1024xf32, #tpu.memory_space<vmem>>, vector<1x64xf32>,
    %533 = vector.extract_strided_slice %280 {offsets = [14, 448], sizes = [1, 64], strides = [1, 1]} : vector<16x512xf32> to vector<1x64xf32>
    %c7_289 = arith.constant 7 : index
    %c896_290 = arith.constant 896 : index
    %534 = vector.load %arg9[%c7_289, %c896_290] : memref<8x1024xf32, #tpu.memory_space<vmem>>, vector<1x64xf32>
    tpu.vector_store %arg9[%c7_289, %c896_290], %533 {strides = array<i32>} : memref<8x1024xf32, #tpu.memory_space<vmem>>, vector<1x64xf32>,
    %535 = vector.extract_strided_slice %280 {offsets = [15, 448], sizes = [1, 64], strides = [1, 1]} : vector<16x512xf32> to vector<1x64xf32>
    %c7_291 = arith.constant 7 : index
    %c960_292 = arith.constant 960 : index
    %536 = vector.load %arg9[%c7_291, %c960_292] : memref<8x1024xf32, #tpu.memory_space<vmem>>, vector<1x64xf32>
    tpu.vector_store %arg9[%c7_291, %c960_292], %535 {strides = array<i32>} : memref<8x1024xf32, #tpu.memory_space<vmem>>, vector<1x64xf32>,
    %c0_293 = arith.constant 0 : index
    %c0_294 = arith.constant 0 : index
    %537 = vector.load %arg9[%c0_293, %c0_294] : memref<8x1024xf32, #tpu.memory_space<vmem>>, vector<8x1024xf32>
    %c0_295 = arith.constant 0 : index
    %c0_296 = arith.constant 0 : index
    %538 = vector.load %arg6[%c0_295, %c0_296] : memref<1024x128xf32, #tpu.memory_space<vmem>>, vector<1024x128xf32>
    %cst_297 = arith.constant dense<0.000000e+00> : vector<8x128xf32>
    %539 = tpu.matmul %537, %538, %cst_297 {dimension_numbers = #tpu.dot_dimension_numbers<[1], [0], [0], [1], [0, 0, 1, 1], [], []>} : vector<8x1024xf32>, vector<1024x128xf32>, vector<8x128xf32> -> vector<8x128xf32>
    %c0_298 = arith.constant 0 : index
    %c0_299 = arith.constant 0 : index
    %540 = vector.load %arg7[%c0_298, %c0_299] : memref<1x128xf32, #tpu.memory_space<vmem>>, vector<1x128xf32>
    %541 = vector.broadcast %540 : vector<1x128xf32> to vector<8x128xf32>
    %542 = arith.addf %539, %541 : vector<8x128xf32>
    %c0_300 = arith.constant 0 : index
    %c0_301 = arith.constant 0 : index
    %543 = vector.load %arg8[%c0_300, %c0_301] : memref<8x128xf32, #tpu.memory_space<vmem>>, vector<8x128xf32>
    tpu.vector_store %arg8[%c0_300, %c0_301], %542 {strides = array<i32>} : memref<8x128xf32, #tpu.memory_space<vmem>>, vector<8x128xf32>,
    return
  }
  func.func @transform_0(%arg0: i32) -> (i32, i32, i32) {
    %c0_i32 = arith.constant 0 : i32
    %c0_i32_0 = arith.constant 0 : i32
    %c0_i32_1 = arith.constant 0 : i32
    return %arg0, %c0_i32, %c0_i32_0 : i32, i32, i32
  }
  func.func @transform_1(%arg0: i32) -> (i32, i32) {
    %c0_i32 = arith.constant 0 : i32
    %c0_i32_0 = arith.constant 0 : i32
    %c0_i32_1 = arith.constant 0 : i32
    return %c0_i32, %c0_i32_0 : i32, i32
  }
  func.func @transform_2(%arg0: i32) -> (i32, i32) {
    %c0_i32 = arith.constant 0 : i32
    %c0_i32_0 = arith.constant 0 : i32
    %c0_i32_1 = arith.constant 0 : i32
    return %c0_i32, %c0_i32_0 : i32, i32
  }
  func.func @transform_3(%arg0: i32) -> (i32, i32) {
    %c0_i32 = arith.constant 0 : i32
    %c0_i32_0 = arith.constant 0 : i32
    %c0_i32_1 = arith.constant 0 : i32
    return %c0_i32, %c0_i32_0 : i32, i32
  }
  func.func @transform_4(%arg0: i32) -> (i32, i32) {
    %c0_i32 = arith.constant 0 : i32
    %c0_i32_0 = arith.constant 0 : i32
    %c0_i32_1 = arith.constant 0 : i32
    return %c0_i32, %c0_i32_0 : i32, i32
  }
  func.func @transform_5(%arg0: i32) -> (i32, i32) {
    %c0_i32 = arith.constant 0 : i32
    %c0_i32_0 = arith.constant 0 : i32
    %c0_i32_1 = arith.constant 0 : i32
    return %c0_i32, %c0_i32_0 : i32, i32
  }
  func.func @transform_6(%arg0: i32) -> (i32, i32) {
    %c0_i32 = arith.constant 0 : i32
    %c0_i32_0 = arith.constant 0 : i32
    %c0_i32_1 = arith.constant 0 : i32
    return %c0_i32, %c0_i32_0 : i32, i32
  }
  func.func @transform_7(%arg0: i32) -> (i32, i32) {
    %c0_i32 = arith.constant 0 : i32
    %c0_i32_0 = arith.constant 0 : i32
    return %arg0, %c0_i32 : i32, i32
  }
}

</mosaic_0001>

<bundles_post_ra>
// kernel: model2_forward.1
= control target key start
LH: loop header
LB: loop body
LE: loop exit
PB: predicated region body
PF: predicated region fallthrough
CT: control target
= control target key end

     0   :  { %12 = vsyncpa [#allocation4], 0  ;;  %s16336_s0 = inlined_call_operand.vmem [shape: bf16[2,9,32768], index: 0, kind: input, shape index: {}]   ;;  %s16337_s1 = inlined_call_operand.vmem [shape: bf16[16,9], index: 1, kind: input, shape index: {}]   ;;  %s16338_s2 = inlined_call_operand.vmem [shape: f32[16,1], index: 2, kind: input, shape index: {}]   ;;  %s16339_s3 = inlined_call_operand.vmem [shape: f32[16,144], index: 3, kind: input, shape index: {}]   ;;  %s16340_s4 = inlined_call_operand.vmem [shape: f32[16,1], index: 4, kind: input, shape index: {}]   ;;  %s16341_s5 = inlined_call_operand.vmem [shape: f32[1024,128], index: 5, kind: input, shape index: {}]   ;;  %s16342_s6 = inlined_call_operand.vmem [shape: f32[1,128], index: 6, kind: input, shape index: {}]   ;;  %s16343_s7 = inlined_call_operand.hbm [shape: f32[16,128], index: 7, kind: output, shape index: {}]  }
   0x1   :  { %14 = vsyncpa [#allocation4 + $0x1], 0  ;;  %s11449_s24 = smov 0   ;;  %s11451_s25 = smov 0  }
   0x2   :  { %s11453_s26 = smov 0   ;;  %s11455_s27 = smov 0  }
   0x3 LB: > { %s11470_s28 = sadd.s32 4294967295, %s11400_s27   ;;  %s10646_s29 = sadd.s32 4294967294, %s11400_s27   ;;  %s11400_s27 = sphi %s11455_s27, %s17398_s27   ;;  %s11396_s26 = sphi %s11453_s26, %s17397_s26   ;;  %s11392_s25 = sphi %s11451_s25, %s17396_s25   ;;  %s11388_s24 = sphi %s11449_s24, %s17395_s24  }
   0x4   : > { %s11474_s30 = sadd.s32 1, %s11400_s27   ;;  %s179_s8 = sadd.s32 1, %s11396_s26 }
   0x5   : > { %s176_s9 = ssub.s32 %s11400_s27, %s11474_s30  ;;  %p189_p0 = scmp.ne.s32.totalorder %s11396_s26, %s11392_s25 }
   0x6   : > { %p177_p1 = scmp.eq.s32.totalorder %s176_s9, 0  ;;  %p190_p2 = scmp.eq.s32.totalorder %s11470_s28, 1 }
   0x7   : > { %p195_p3 = scmp.ne.s32.totalorder %s11392_s25, %s11388_s24  ;;  %p196_p4 = scmp.eq.s32.totalorder %s10646_s29, 1 }
   0x8   : > { %s11485_s10 = scalar_select %p177_p1, %s11396_s26, %s179_s8  }
   0x9   : > { %p11487_p5 = por %p190_p2, %p189_p0  ;;  %p11491_p6 = por %p196_p4, %p195_p3 }
   0xa   : > { %p10649_p7 = scmp.ge.s32.totalorder %s11400_s27, 1  ;;  %p240_p8 = scmp.lt.s32.totalorder %s11400_s27, 3 }
   0xc   : > { %p241_p9 = pnand %p10649_p7, %p240_p8 }
   0xe   : > { %244 = sbr.rel (%p241_p9) target bundleno = 1654 (0x676), region = 48 }
  0x13   : > { %p272_p10 = scmp.lt.s32.totalorder %s11470_s28, 1  ;;  %vm1569_vm0 = vcmask 1043456   ;;  %v16344_v0 = vmov 0   ;;  %vm1570_vm1 = vcmask 1044480   ;;  %v11403_v1 = vmov 65535   ;;  %v11530_v29 = vld [vmem:[%s16337_s1] sm:$0xff]  }
  0x14   : > { %2373 = vmatprep.mubr.bf16.mxu0 %v16344_v0  ;;  %2416 = vmatprep.mubr.bf16.mxu1 %v16344_v0  ;;  %v1571_v2 = vsel %vm1569_vm0, 4294967295, %v11403_v1  ;;  %vm1565_vm2 = vcmask 72704   ;;  %vm8783_vm4 = vcmask 7168   ;;  %s11406_s18 = smov 9   ;;  %vm8856_vm8 = vcmask 130048   ;;  %s11407_s19 = smov 64  }
  0x15   : > { %s273_s13 = scalar_select %p272_p10, %s11470_s28, 1  ;;  %11333 = vset.pattern.permute.xlu0 %v16344_v0  ;;  %11334 = vset.pattern.permute.xlu1 %v16344_v0  ;;  %v11510_v5 = vsel %vm1570_vm1, %v1571_v2, 0  ;;  %vm8686_vm10 = vcmask 64512  }
  0x16   : > { %s269_s20 = sand.u32 1, %s11392_s25   ;;  %s11144_s23 = sshll.u32 %s11470_s28, 7 }
  0x17   : > { %s11147_s14 = sshll.u32 %s273_s13, 11  ;;  %s10650_s22 = sshll.u32 %s269_s20, 3 }
  0x18   : > { %s11506_s17 = scalar_lea.vmem %s16336_s0, %s11147_s14  ;;  %s11404_s14 = smov 1  }
  0x19   : > { %v280_v3 = vld [vmem:[%s11506_s17] sm:$0xff]  ;;  %v281_v6 = vld [vmem:[%s11506_s17 + $0x8] sm:$0xff]  ;;  %v282_v10 = vld [vmem:[%s11506_s17 + $0x10] sm:$0xff]  ;;  %s271_s29 = scalar_lea.vmem [#allocation3], %s10650_s22  ;;  %s10574_s15 = scalar_lea.sflag [#allocation4], %s269_s20 }
  0x1a   : > { %v408_v4 = vld [vmem:[%s11506_s17 + $0x400] sm:$0x11]  ;;  %v409_v8 = vld [vmem:[%s11506_s17 + $0x408] sm:$0x11]  ;;  %v410_v11 = vld [vmem:[%s11506_s17 + $0x410] sm:$0x11] }
  0x1b   : > { %v10655_v7 = vcombine.high %v280_v3, %v408_v4  ;;  %v10654_v9 = vcombine.low %v280_v3, %v408_v4  ;;  %v10657_v12 = vcombine.high %v281_v6, %v409_v8  ;;  %v10656_v13 = vcombine.low %v281_v6, %v409_v8  ;;  %v283_v16 = vld [vmem:[%s11506_s17 + $0x18] sm:$0xff]  ;;  %v284_v18 = vld [vmem:[%s11506_s17 + $0x20] sm:$0xff]  ;;  %v285_v24 = vld [vmem:[%s11506_s17 + $0x28] sm:$0xff]  ;;  %s10587_s8 = sshll.u32 %s271_s29, 4  ;;  %s10588_s8 = int_to_ptr.vmem [resolvable:$true] %s10587_s8 }
  0x1c   : > { %v10658_v14 = vcombine.low %v282_v10, %v410_v11  ;;  %v10659_v15 = vcombine.high %v282_v10, %v410_v11  ;;  %v411_v17 = vld [vmem:[%s11506_s17 + $0x418] sm:$0x11]  ;;  %v412_v23 = vld [vmem:[%s11506_s17 + $0x420] sm:$0x11]  ;;  %v413_v25 = vld [vmem:[%s11506_s17 + $0x428] sm:$0x11] }
  0x1d   : > { %v1577_v19 = vand.u32 %v10655_v7, %v11510_v5  ;;  %v1574_v20 = vand.u32 %v10654_v9, %v11510_v5  ;;  %v10660_v21 = vcombine.low %v283_v16, %v411_v17  ;;  %v10661_v22 = vcombine.high %v283_v16, %v411_v17  ;;  %v286_v37 = vld [vmem:[%s11506_s17 + $0x30] sm:$0xff]  ;;  %v287_v40 = vld [vmem:[%s11506_s17 + $0x38] sm:$0xff]  ;;  %v288_v49 = vld [vmem:[%s11506_s17 + $0x40] sm:$0xff]  ;;  %s11340_s16 = scalar_lea.vmem %s10588_s8, 128 }
  0x1e   : > { %v1583_v26 = vand.u32 %v10657_v12, %v11510_v5  ;;  %v1580_v27 = vand.u32 %v10656_v13, %v11510_v5  ;;  %v1589_v28 = vand.u32 %v10659_v15, %v11510_v5  ;;  %v10663_v31 = vcombine.high %v284_v18, %v412_v23  ;;  %v414_v38 = vld [vmem:[%s11506_s17 + $0x430] sm:$0x11]  ;;  %v415_v41 = vld [vmem:[%s11506_s17 + $0x438] sm:$0x11]  ;;  %v416_v50 = vld [vmem:[%s11506_s17 + $0x440] sm:$0x11]  ;;  %p11341_p11 = scmp.ne.s32.totalorder %s10588_s8, %s11340_s16 }
  0x1f   : > { %2355 = vmatprep.subr.bf16.mxu0 %v1577_v19  ;;  %v1595_v30 = vand.u32 %v10661_v22, %v11510_v5  ;;  %v1586_v32 = vand.u32 %v10658_v14, %v11510_v5  ;;  %v10665_v33 = vcombine.high %v285_v24, %v413_v25  ;;  %v1592_v34 = vand.u32 %v10660_v21, %v11510_v5  ;;  %v289_v52 = vld [vmem:[%s11506_s17 + $0x48] sm:$0xff]  ;;  %v290_v61 = vld [vmem:[%s11506_s17 + $0x50] sm:$0xff]  ;;  %v291_v1 = vld [vmem:[%s11506_s17 + $0x58] sm:$0xff] }
  0x20   : > { %2398 = vmatprep.subr.bf16.mxu1 %v1583_v26  ;;  %2356 = vmatpush1.bf16.msra.mxu0 %v1574_v20  ;;  %v1601_v35 = vand.u32 %v10663_v31, %v11510_v5  ;;  %v10662_v39 = vcombine.low %v284_v18, %v412_v23  ;;  %v10664_v42 = vcombine.low %v285_v24, %v413_v25  ;;  %v417_v53 = vld [vmem:[%s11506_s17 + $0x448] sm:$0x11]  ;;  %v418_v62 = vld [vmem:[%s11506_s17 + $0x450] sm:$0x11]  ;;  %v419_v2 = vld [vmem:[%s11506_s17 + $0x458] sm:$0x11]  ;;  %p11342_p12 = pnand %p11341_p11, %p11487_p5 }
  0x21   : > { %2399 = vmatpush1.bf16.msra.mxu1 %v1580_v27  ;;  %2441 = vmatprep.subr.bf16.mxu0 %v1589_v28  ;;  %v1607_v36 = vand.u32 %v10665_v33, %v11510_v5  ;;  %v10667_v43 = vcombine.high %v286_v37, %v414_v38  ;;  %v10669_v44 = vcombine.high %v287_v40, %v415_v41  ;;  %v7846_v4 = vld [vmem:[%s16338_s2 + $0x8] sm:$0xff]  ;;  %v292_v12 = vld [vmem:[%s11506_s17 + $0x60] sm:$0xff]  ;;  %v294_v25 = vld [vmem:[%s11506_s17 + $0x70] sm:$0xff] }
  0x22   : > { %2484 = vmatprep.subr.bf16.mxu1 %v1595_v30  ;;  %v1598_v45 = vand.u32 %v10662_v39, %v11510_v5  ;;  %v1604_v46 = vand.u32 %v10664_v42, %v11510_v5  ;;  %v10666_v51 = vcombine.low %v286_v37, %v414_v38  ;;  %v10668_v54 = vcombine.low %v287_v40, %v415_v41  ;;  %v420_v13 = vld [vmem:[%s11506_s17 + $0x460] sm:$0x11]  ;;  %v293_v15 = vld [vmem:[%s11506_s17 + $0x68] sm:$0xff]  ;;  %v422_v26 = vld [vmem:[%s11506_s17 + $0x470] sm:$0x11]  ;;  %p11343_p13 = pneg %p11342_p12 }
  0x23   : > { %10910 = vmatmul.mubr.msk.bf16.vlgmr.msra.gmra.mxu0 %vm1565_vm2, %v11530_v29  ;;  %v1613_v47 = vand.u32 %v10667_v43, %v11510_v5  ;;  %v1619_v48 = vand.u32 %v10669_v44, %v11510_v5  ;;  %v10671_v55 = vcombine.high %v288_v49, %v416_v50  ;;  %v10673_v56 = vcombine.high %v289_v52, %v417_v53  ;;  %v421_v16 = vld [vmem:[%s11506_s17 + $0x468] sm:$0x11]  ;;  %v7845_v18 = vld [vmem:[%s16338_s2] sm:$0xff]  ;;  %v295_v28 = vld [vmem:[%s11506_s17 + $0x78] sm:$0xff] }
  0x24   : > { %10911 = vmatmul.mubr.msk.bf16.vlgmr.msra.gmra.mxu1 %vm1565_vm2, %v11530_v29  ;;  %2442 = vmatpush1.bf16.msra.mxu0 %v1586_v32  ;;  %v1610_v57 = vand.u32 %v10666_v51, %v11510_v5  ;;  %v1616_v58 = vand.u32 %v10668_v54, %v11510_v5  ;;  %v10670_v63 = vcombine.low %v288_v49, %v416_v50  ;;  %v423_v30 = vld [vmem:[%s11506_s17 + $0x478] sm:$0x11]  ;;  %v296_v38 = vld [vmem:[%s11506_s17 + $0x80] sm:$0xff]  ;;  %v297_v41 = vld [vmem:[%s11506_s17 + $0x88] sm:$0xff] }
  0x25   : > { %2485 = vmatpush1.bf16.msra.mxu1 %v1592_v34  ;;  %2459 = vmatprep.mubr.bf16.mxu0 %v16344_v0  ;;  %v1625_v59 = vand.u32 %v10671_v55, %v11510_v5  ;;  %v1631_v60 = vand.u32 %v10673_v56, %v11510_v5  ;;  %v10672_v3 = vcombine.low %v289_v52, %v417_v53  ;;  %v424_v39 = vld [vmem:[%s11506_s17 + $0x480] sm:$0x11]  ;;  %v425_v42 = vld [vmem:[%s11506_s17 + $0x488] sm:$0x11]  ;;  %v298_v50 = vld [vmem:[%s11506_s17 + $0x90] sm:$0xff] }
  0x26   : > { %2502 = vmatprep.mubr.bf16.mxu1 %v16344_v0  ;;  %2527 = vmatprep.subr.bf16.mxu0 %v1601_v35  ;;  %v10675_v6 = vcombine.high %v290_v61, %v418_v62  ;;  %v10677_v7 = vcombine.high %v291_v1, %v419_v2  ;;  %v1622_v8 = vand.u32 %v10670_v63, %v11510_v5  ;;  %v426_v51 = vld [vmem:[%s11506_s17 + $0x490] sm:$0x11]  ;;  %v299_v53 = vld [vmem:[%s11506_s17 + $0x98] sm:$0xff]  ;;  %v428_v63 = vld [vmem:[%s11506_s17 + $0x4a0] sm:$0x11] }
  0x27   : > { %2570 = vmatprep.subr.bf16.mxu1 %v1607_v36  ;;  %7878 = vperm.xlu0 %11333, %v7846_v4   ;;  %v1628_v9 = vand.u32 %v10672_v3, %v11510_v5  ;;  %v10674_v14 = vcombine.low %v290_v61, %v418_v62  ;;  %v10676_v17 = vcombine.low %v291_v1, %v419_v2  ;;  %v427_v54 = vld [vmem:[%s11506_s17 + $0x498] sm:$0x11]  ;;  %v300_v62 = vld [vmem:[%s11506_s17 + $0xa0] sm:$0xff]  ;;  %v301_v2 = vld [vmem:[%s11506_s17 + $0xa8] sm:$0xff] }
  0x28   : > { %v1637_v10 = vand.u32 %v10675_v6, %v11510_v5  ;;  %v1643_v11 = vand.u32 %v10677_v7, %v11510_v5  ;;  %v10679_v19 = vcombine.high %v292_v12, %v420_v13  ;;  %v10681_v20 = vcombine.high %v293_v15, %v421_v16  ;;  %v429_v3 = vld [vmem:[%s11506_s17 + $0x4a8] sm:$0x11] }
  0x29   : > { %v1634_v21 = vand.u32 %v10674_v14, %v11510_v5  ;;  %v1640_v22 = vand.u32 %v10676_v17, %v11510_v5  ;;  %v10678_v27 = vcombine.low %v292_v12, %v420_v13  ;;  %v10680_v31 = vcombine.low %v293_v15, %v421_v16  ;;  %v302_v12 = vld [vmem:[%s11506_s17 + $0xb0] sm:$0xff]  ;;  %v303_v15 = vld [vmem:[%s11506_s17 + $0xb8] sm:$0xff] }
  0x2a   : > { %v1649_v23 = vand.u32 %v10679_v19, %v11510_v5  ;;  %v1655_v24 = vand.u32 %v10681_v20, %v11510_v5  ;;  %v10683_v32 = vcombine.high %v294_v25, %v422_v26  ;;  %v10685_v33 = vcombine.high %v295_v28, %v423_v30  ;;  %v430_v13 = vld [vmem:[%s11506_s17 + $0x4b0] sm:$0x11]  ;;  %v431_v16 = vld [vmem:[%s11506_s17 + $0x4b8] sm:$0x11] }
  0x2b   : > { %10912 = vmatmul.mubr.msk.bf16.vlgmr.msra.gmra.mxu0 %vm1565_vm2, %v11530_v29  ;;  %7873 = vperm.xlu0 %11333, %v7845_v18   ;;  %v1646_v34 = vand.u32 %v10678_v27, %v11510_v5  ;;  %v1652_v35 = vand.u32 %v10680_v31, %v11510_v5  ;;  %v10682_v40 = vcombine.low %v294_v25, %v422_v26  ;;  %v432_v25 = vld [vmem:[%s11506_s17 + $0x4c0] sm:$0x11]  ;;  %v305_v27 = vld [vmem:[%s11506_s17 + $0xc8] sm:$0xff] }
  0x2c   : > { %10913 = vmatmul.mubr.msk.bf16.vlgmr.msra.gmra.mxu1 %vm1565_vm2, %v11530_v29  ;;  %2528 = vmatpush1.bf16.msra.mxu0 %v1598_v45  ;;  %v1661_v36 = vand.u32 %v10683_v32, %v11510_v5  ;;  %v1667_v37 = vand.u32 %v10685_v33, %v11510_v5  ;;  %v10684_v43 = vcombine.low %v295_v28, %v423_v30  ;;  %v433_v28 = vld [vmem:[%s11506_s17 + $0x4c8] sm:$0x11] }
  0x2d   : > { %2571 = vmatpush1.bf16.msra.mxu1 %v1604_v46  ;;  %2545 = vmatprep.mubr.bf16.mxu0 %v16344_v0  ;;  %v10687_v44 = vcombine.high %v296_v38, %v424_v39  ;;  %v10689_v45 = vcombine.high %v297_v41, %v425_v42  ;;  %v1658_v46 = vand.u32 %v10682_v40, %v11510_v5  ;;  %v307_v40 = vld [vmem:[%s11506_s17 + $0xd8] sm:$0xff] }
  0x2e   : > { %2588 = vmatprep.mubr.bf16.mxu1 %v16344_v0  ;;  %2613 = vmatprep.subr.bf16.mxu0 %v1613_v47  ;;  %v1664_v47 = vand.u32 %v10684_v43, %v11510_v5  ;;  %v10686_v52 = vcombine.low %v296_v38, %v424_v39  ;;  %v10688_v55 = vcombine.low %v297_v41, %v425_v42  ;;  %v434_v38 = vld [vmem:[%s11506_s17 + $0x4d0] sm:$0x11]  ;;  %v435_v41 = vld [vmem:[%s11506_s17 + $0x4d8] sm:$0x11] }
  0x2f   : > { %2656 = vmatprep.subr.bf16.mxu1 %v1619_v48  ;;  %v1673_v48 = vand.u32 %v10687_v44, %v11510_v5  ;;  %v1679_v49 = vand.u32 %v10689_v45, %v11510_v5  ;;  %v10691_v56 = vcombine.high %v298_v50, %v426_v51  ;;  %v10690_v1 = vcombine.low %v298_v50, %v426_v51  ;;  %v436_v50 = vld [vmem:[%s11506_s17 + $0x4e0] sm:$0x11] }
  0x30   : > { %v10692_v4 = vcombine.low %v299_v53, %v427_v54  ;;  %v10695_v6 = vcombine.high %v300_v62, %v428_v63  ;;  %v10697_v7 = vcombine.high %v301_v2, %v429_v3  ;;  %v10694_v14 = vcombine.low %v300_v62, %v428_v63  ;;  %v438_v62 = vld [vmem:[%s11506_s17 + $0x4f0] sm:$0x11] }
  0x31   : > { %v10696_v17 = vcombine.low %v301_v2, %v429_v3  ;;  %v10699_v18 = vcombine.high %v302_v12, %v430_v13  ;;  %v10701_v19 = vcombine.high %v303_v15, %v431_v16  ;;  %v10698_v26 = vcombine.low %v302_v12, %v430_v13  ;;  %v439_v2 = vld [vmem:[%s11506_s17 + $0x4f8] sm:$0x11]  ;;  %v440_v12 = vld [vmem:[%s11506_s17 + $0x500] sm:$0x11] }
  0x32   : > { %v1694_v20 = vand.u32 %v10694_v14, %v11510_v5  ;;  %v10700_v30 = vcombine.low %v303_v15, %v431_v16  ;;  %v10705_v32 = vcombine.high %v305_v27, %v433_v28  ;;  %v10704_v42 = vcombine.low %v305_v27, %v433_v28  ;;  %v313_v14 = vld [vmem:[%s11506_s17 + $0x108] sm:$0xff]  ;;  %v443_v27 = vld [vmem:[%s11506_s17 + $0x518] sm:$0x11] }
  0x33   : > { %10914 = vmatmul.mubr.msk.bf16.vlgmr.msra.gmra.mxu0 %vm1565_vm2, %v11530_v29  ;;  %v1706_v33 = vand.u32 %v10698_v26, %v11510_v5  ;;  %v10709_v44 = vcombine.high %v307_v40, %v435_v41  ;;  %v441_v15 = vld [vmem:[%s11506_s17 + $0x508] sm:$0x11]  ;;  %v315_v26 = vld [vmem:[%s11506_s17 + $0x118] sm:$0xff] }
  0x34   : > { %10915 = vmatmul.mubr.msk.bf16.vlgmr.msra.gmra.mxu1 %vm1565_vm2, %v11530_v29  ;;  %2614 = vmatpush1.bf16.msra.mxu0 %v1610_v57  ;;  %v10693_v57 = vcombine.high %v299_v53, %v427_v54  ;;  %v437_v53 = vld [vmem:[%s11506_s17 + $0x4e8] sm:$0x11]  ;;  %v10708_v54 = vcombine.low %v307_v40, %v435_v41  ;;  %v10720_v28 = vcombine.low %v313_v14, %v441_v15 }
  0x35   : > { %2657 = vmatpush1.bf16.msra.mxu1 %v1616_v58  ;;  %2631 = vmatprep.mubr.bf16.mxu0 %v16344_v0  ;;  %v1670_v58 = vand.u32 %v10686_v52, %v11510_v5  ;;  %v309_v52 = vld [vmem:[%s11506_s17 + $0xe8] sm:$0xff]  ;;  %v10724_v41 = vcombine.low %v315_v26, %v443_v27 }
  0x36   : > { %2674 = vmatprep.mubr.bf16.mxu1 %v16344_v0  ;;  %2699 = vmatprep.subr.bf16.mxu0 %v1625_v59  ;;  %v1676_v59 = vand.u32 %v10688_v55, %v11510_v5  ;;  %v1691_v61 = vand.u32 %v10693_v57, %v11510_v5  ;;  %v10712_v3 = vcombine.low %v309_v52, %v437_v53  ;;  %v445_v40 = vld [vmem:[%s11506_s17 + $0x528] sm:$0x11] }
  0x37   : > { %2742 = vmatprep.subr.bf16.mxu1 %v1631_v60  ;;  %v1685_v60 = vand.u32 %v10691_v56, %v11510_v5  ;;  %v10713_v56 = vcombine.high %v309_v52, %v437_v53  ;;  %v447_v52 = vld [vmem:[%s11506_s17 + $0x538] sm:$0x11] }
  0x3b   : > { %10916 = vmatmul.mubr.msk.bf16.vlgmr.msra.gmra.mxu0 %vm1565_vm2, %v11530_v29 }
  0x3c   : > { %10917 = vmatmul.mubr.msk.bf16.vlgmr.msra.gmra.mxu1 %vm1565_vm2, %v11530_v29  ;;  %2700 = vmatpush1.bf16.msra.mxu0 %v1622_v8  ;;  %v1682_v8 = vand.u32 %v10690_v1, %v11510_v5  ;;  %v311_v1 = vld [vmem:[%s11506_s17 + $0xf8] sm:$0xff] }
  0x3d   : > { %2743 = vmatpush1.bf16.msra.mxu1 %v1628_v9  ;;  %2717 = vmatprep.mubr.bf16.mxu0 %v16344_v0  ;;  %v1688_v9 = vand.u32 %v10692_v4, %v11510_v5  ;;  %v10716_v16 = vcombine.low %v311_v1, %v439_v2 }
  0x3e   : > { %2760 = vmatprep.mubr.bf16.mxu1 %v16344_v0  ;;  %2785 = vmatprep.subr.bf16.mxu0 %v1637_v10  ;;  %v1697_v10 = vand.u32 %v10695_v6, %v11510_v5  ;;  %v10717_v6 = vcombine.high %v311_v1, %v439_v2  ;;  %v449_v1 = vld [vmem:[%s11506_s17 + $0x548] sm:$0x11] }
  0x3f   : > { %2828 = vmatprep.subr.bf16.mxu1 %v1643_v11  ;;  %v1703_v11 = vand.u32 %v10697_v7, %v11510_v5 }
  0x43   : > { %10918 = vmatmul.mubr.msk.bf16.vlgmr.msra.gmra.mxu0 %vm1565_vm2, %v11530_v29 }
  0x44   : > { %10919 = vmatmul.mubr.msk.bf16.vlgmr.msra.gmra.mxu1 %vm1565_vm2, %v11530_v29  ;;  %2786 = vmatpush1.bf16.msra.mxu0 %v1634_v21  ;;  %v1700_v21 = vand.u32 %v10696_v17, %v11510_v5 }
  0x45   : > { %2829 = vmatpush1.bf16.msra.mxu1 %v1640_v22  ;;  %2803 = vmatprep.mubr.bf16.mxu0 %v16344_v0  ;;  %v1709_v22 = vand.u32 %v10699_v18, %v11510_v5  ;;  %v10721_v18 = vcombine.high %v313_v14, %v441_v15  ;;  %v451_v14 = vld [vmem:[%s11506_s17 + $0x558] sm:$0x11] }
  0x46   : > { %2846 = vmatprep.mubr.bf16.mxu1 %v16344_v0  ;;  %2871 = vmatprep.subr.bf16.mxu0 %v1649_v23  ;;  %v1715_v23 = vand.u32 %v10701_v19, %v11510_v5 }
  0x47   : > { %2914 = vmatprep.subr.bf16.mxu1 %v1655_v24  ;;  %v304_v24 = vld [vmem:[%s11506_s17 + $0xc0] sm:$0xff] }
  0x48   : > { %v10703_v31 = vcombine.high %v304_v24, %v432_v25  ;;  %v10702_v39 = vcombine.low %v304_v24, %v432_v25  ;;  %v442_v24 = vld [vmem:[%s11506_s17 + $0x510] sm:$0x11] }
  0x4a   : > { %v1718_v45 = vand.u32 %v10702_v39, %v11510_v5  ;;  %v317_v39 = vld [vmem:[%s11506_s17 + $0x128] sm:$0xff] }
  0x4b   : > { %10920 = vmatmul.mubr.msk.bf16.vlgmr.msra.gmra.mxu0 %vm1565_vm2, %v11530_v29  ;;  %v10728_v53 = vcombine.low %v317_v39, %v445_v40 }
  0x4c   : > { %10921 = vmatmul.mubr.msk.bf16.vlgmr.msra.gmra.mxu1 %vm1565_vm2, %v11530_v29  ;;  %2872 = vmatpush1.bf16.msra.mxu0 %v1646_v34  ;;  %v1712_v34 = vand.u32 %v10700_v30, %v11510_v5 }
  0x4d   : > { %2915 = vmatpush1.bf16.msra.mxu1 %v1652_v35  ;;  %2889 = vmatprep.mubr.bf16.mxu0 %v16344_v0  ;;  %v1721_v35 = vand.u32 %v10703_v31, %v11510_v5  ;;  %v10725_v31 = vcombine.high %v315_v26, %v443_v27  ;;  %v453_v26 = vld [vmem:[%s11506_s17 + $0x568] sm:$0x11] }
  0x4e   : > { %2932 = vmatprep.mubr.bf16.mxu1 %v16344_v0  ;;  %2957 = vmatprep.subr.bf16.mxu0 %v1661_v36  ;;  %v1727_v36 = vand.u32 %v10705_v32, %v11510_v5 }
  0x4f   : > { %3000 = vmatprep.subr.bf16.mxu1 %v1667_v37  ;;  %v306_v37 = vld [vmem:[%s11506_s17 + $0xd0] sm:$0xff] }
  0x50   : > { %v10707_v43 = vcombine.high %v306_v37, %v434_v38  ;;  %v10706_v51 = vcombine.low %v306_v37, %v434_v38  ;;  %v444_v37 = vld [vmem:[%s11506_s17 + $0x520] sm:$0x11] }
  0x52   : > { %v1730_v57 = vand.u32 %v10706_v51, %v11510_v5  ;;  %v319_v51 = vld [vmem:[%s11506_s17 + $0x138] sm:$0xff] }
  0x53   : > { %10922 = vmatmul.mubr.msk.bf16.vlgmr.msra.gmra.mxu0 %vm1565_vm2, %v11530_v29  ;;  %v10732_v2 = vcombine.low %v319_v51, %v447_v52 }
  0x54   : > { %10923 = vmatmul.mubr.msk.bf16.vlgmr.msra.gmra.mxu1 %vm1565_vm2, %v11530_v29  ;;  %2958 = vmatpush1.bf16.msra.mxu0 %v1658_v46  ;;  %v1724_v46 = vand.u32 %v10704_v42, %v11510_v5 }
  0x55   : > { %3001 = vmatpush1.bf16.msra.mxu1 %v1664_v47  ;;  %2975 = vmatprep.mubr.bf16.mxu0 %v16344_v0  ;;  %v1733_v47 = vand.u32 %v10707_v43, %v11510_v5  ;;  %v10729_v43 = vcombine.high %v317_v39, %v445_v40  ;;  %v455_v39 = vld [vmem:[%s11506_s17 + $0x578] sm:$0x11] }
  0x56   : > { %3018 = vmatprep.mubr.bf16.mxu1 %v16344_v0  ;;  %3043 = vmatprep.subr.bf16.mxu0 %v1673_v48  ;;  %v1739_v48 = vand.u32 %v10709_v44, %v11510_v5 }
  0x57   : > { %3086 = vmatprep.subr.bf16.mxu1 %v1679_v49  ;;  %v308_v49 = vld [vmem:[%s11506_s17 + $0xe0] sm:$0xff] }
  0x58   : > { %v10711_v55 = vcombine.high %v308_v49, %v436_v50  ;;  %v10710_v63 = vcombine.low %v308_v49, %v436_v50  ;;  %v446_v49 = vld [vmem:[%s11506_s17 + $0x530] sm:$0x11] }
  0x5a   : > { %v1742_v7 = vand.u32 %v10710_v63, %v11510_v5  ;;  %v321_v63 = vld [vmem:[%s11506_s17 + $0x148] sm:$0xff] }
  0x5b   : > { %10924 = vmatmul.mubr.msk.bf16.vlgmr.msra.gmra.mxu0 %vm1565_vm2, %v11530_v29  ;;  %v10736_v15 = vcombine.low %v321_v63, %v449_v1 }
  0x5c   : > { %10925 = vmatmul.mubr.msk.bf16.vlgmr.msra.gmra.mxu1 %vm1565_vm2, %v11530_v29  ;;  %3044 = vmatpush1.bf16.msra.mxu0 %v1670_v58  ;;  %v1736_v58 = vand.u32 %v10708_v54, %v11510_v5 }
  0x5d   : > { %3087 = vmatpush1.bf16.msra.mxu1 %v1676_v59  ;;  %3061 = vmatprep.mubr.bf16.mxu0 %v16344_v0  ;;  %v1745_v59 = vand.u32 %v10711_v55, %v11510_v5  ;;  %v10733_v55 = vcombine.high %v319_v51, %v447_v52  ;;  %v457_v51 = vld [vmem:[%s11506_s17 + $0x588] sm:$0x11] }
  0x5e   : > { %3104 = vmatprep.mubr.bf16.mxu1 %v16344_v0  ;;  %3129 = vmatprep.subr.bf16.mxu0 %v1685_v60  ;;  %v1751_v60 = vand.u32 %v10713_v56, %v11510_v5 }
  0x5f   : > { %3172 = vmatprep.subr.bf16.mxu1 %v1691_v61  ;;  %v310_v61 = vld [vmem:[%s11506_s17 + $0xf0] sm:$0xff] }
  0x60   : > { %v10715_v4 = vcombine.high %v310_v61, %v438_v62  ;;  %v10714_v13 = vcombine.low %v310_v61, %v438_v62  ;;  %v448_v61 = vld [vmem:[%s11506_s17 + $0x540] sm:$0x11] }
  0x62   : > { %v1754_v19 = vand.u32 %v10714_v13, %v11510_v5  ;;  %v323_v13 = vld [vmem:[%s11506_s17 + $0x158] sm:$0xff] }
  0x63   : > { %10926 = vmatmul.mubr.msk.bf16.vlgmr.msra.gmra.mxu0 %vm1565_vm2, %v11530_v29  ;;  %v10740_v27 = vcombine.low %v323_v13, %v451_v14 }
  0x64   : > { %10927 = vmatmul.mubr.msk.bf16.vlgmr.msra.gmra.mxu1 %vm1565_vm2, %v11530_v29  ;;  %3130 = vmatpush1.bf16.msra.mxu0 %v1682_v8  ;;  %v1748_v8 = vand.u32 %v10712_v3, %v11510_v5 }
  0x65   : > { %3173 = vmatpush1.bf16.msra.mxu1 %v1688_v9  ;;  %3147 = vmatprep.mubr.bf16.mxu0 %v16344_v0  ;;  %v1757_v9 = vand.u32 %v10715_v4, %v11510_v5  ;;  %v10737_v4 = vcombine.high %v321_v63, %v449_v1  ;;  %v459_v63 = vld [vmem:[%s11506_s17 + $0x598] sm:$0x11] }
  0x66   : > { %3190 = vmatprep.mubr.bf16.mxu1 %v16344_v0  ;;  %3215 = vmatprep.subr.bf16.mxu0 %v1697_v10  ;;  %v1763_v10 = vand.u32 %v10717_v6, %v11510_v5 }
  0x67   : > { %3258 = vmatprep.subr.bf16.mxu1 %v1703_v11  ;;  %v312_v11 = vld [vmem:[%s11506_s17 + $0x100] sm:$0xff] }
  0x68   : > { %v10719_v17 = vcombine.high %v312_v11, %v440_v12  ;;  %v10718_v25 = vcombine.low %v312_v11, %v440_v12  ;;  %v450_v11 = vld [vmem:[%s11506_s17 + $0x550] sm:$0x11] }
  0x6a   : > { %v1766_v32 = vand.u32 %v10718_v25, %v11510_v5  ;;  %v325_v25 = vld [vmem:[%s11506_s17 + $0x168] sm:$0xff] }
  0x6b   : > { %10928 = vmatmul.mubr.msk.bf16.vlgmr.msra.gmra.mxu0 %vm1565_vm2, %v11530_v29  ;;  %v10744_v40 = vcombine.low %v325_v25, %v453_v26 }
  0x6c   : > { %10929 = vmatmul.mubr.msk.bf16.vlgmr.msra.gmra.mxu1 %vm1565_vm2, %v11530_v29  ;;  %3216 = vmatpush1.bf16.msra.mxu0 %v1694_v20  ;;  %v1760_v20 = vand.u32 %v10716_v16, %v11510_v5 }
  0x6d   : > { %3259 = vmatpush1.bf16.msra.mxu1 %v1700_v21  ;;  %3233 = vmatprep.mubr.bf16.mxu0 %v16344_v0  ;;  %v1769_v21 = vand.u32 %v10719_v17, %v11510_v5  ;;  %v10741_v17 = vcombine.high %v323_v13, %v451_v14  ;;  %v461_v13 = vld [vmem:[%s11506_s17 + $0x5a8] sm:$0x11] }
  0x6e   : > { %3276 = vmatprep.mubr.bf16.mxu1 %v16344_v0  ;;  %3301 = vmatprep.subr.bf16.mxu0 %v1709_v22  ;;  %v1775_v22 = vand.u32 %v10721_v18, %v11510_v5 }
  0x6f   : > { %3344 = vmatprep.subr.bf16.mxu1 %v1715_v23  ;;  %v314_v23 = vld [vmem:[%s11506_s17 + $0x110] sm:$0xff] }
  0x70   : > { %v10723_v30 = vcombine.high %v314_v23, %v442_v24  ;;  %v10722_v38 = vcombine.low %v314_v23, %v442_v24  ;;  %v452_v23 = vld [vmem:[%s11506_s17 + $0x560] sm:$0x11] }
  0x72   : > { %v1778_v44 = vand.u32 %v10722_v38, %v11510_v5  ;;  %v327_v38 = vld [vmem:[%s11506_s17 + $0x178] sm:$0xff] }
  0x73   : > { %10930 = vmatmul.mubr.msk.bf16.vlgmr.msra.gmra.mxu0 %vm1565_vm2, %v11530_v29  ;;  %v10748_v52 = vcombine.low %v327_v38, %v455_v39 }
  0x74   : > { %10931 = vmatmul.mubr.msk.bf16.vlgmr.msra.gmra.mxu1 %vm1565_vm2, %v11530_v29  ;;  %3302 = vmatpush1.bf16.msra.mxu0 %v1706_v33  ;;  %v1772_v33 = vand.u32 %v10720_v28, %v11510_v5 }
  0x75   : > { %3345 = vmatpush1.bf16.msra.mxu1 %v1712_v34  ;;  %3319 = vmatprep.mubr.bf16.mxu0 %v16344_v0  ;;  %v1781_v34 = vand.u32 %v10723_v30, %v11510_v5  ;;  %v10745_v30 = vcombine.high %v325_v25, %v453_v26  ;;  %v335_v26 = vld [vmem:[%s11506_s17 + $0x1b8] sm:$0xff] }
  0x76   : > { %3362 = vmatprep.mubr.bf16.mxu1 %v16344_v0  ;;  %3387 = vmatprep.subr.bf16.mxu0 %v1721_v35  ;;  %v1787_v35 = vand.u32 %v10725_v31, %v11510_v5 }
  0x77   : > { %3430 = vmatprep.subr.bf16.mxu1 %v1727_v36  ;;  %v316_v36 = vld [vmem:[%s11506_s17 + $0x120] sm:$0xff] }
  0x78   : > { %v10727_v42 = vcombine.high %v316_v36, %v444_v37  ;;  %v10726_v50 = vcombine.low %v316_v36, %v444_v37  ;;  %v454_v36 = vld [vmem:[%s11506_s17 + $0x570] sm:$0x11] }
  0x7a   : > { %v1790_v56 = vand.u32 %v10726_v50, %v11510_v5  ;;  %v329_v50 = vld [vmem:[%s11506_s17 + $0x188] sm:$0xff] }
  0x7b   : > { %10932 = vmatmul.mubr.msk.bf16.vlgmr.msra.gmra.mxu0 %vm1565_vm2, %v11530_v29  ;;  %v10752_v1 = vcombine.low %v329_v50, %v457_v51 }
  0x7c   : > { %10933 = vmatmul.mubr.msk.bf16.vlgmr.msra.gmra.mxu1 %vm1565_vm2, %v11530_v29  ;;  %3388 = vmatpush1.bf16.msra.mxu0 %v1718_v45  ;;  %v1784_v45 = vand.u32 %v10724_v41, %v11510_v5 }
  0x7d   : > { %3431 = vmatpush1.bf16.msra.mxu1 %v1724_v46  ;;  %3405 = vmatprep.mubr.bf16.mxu0 %v16344_v0  ;;  %v1793_v46 = vand.u32 %v10727_v42, %v11510_v5  ;;  %v10749_v42 = vcombine.high %v327_v38, %v455_v39 }
  0x7e   : > { %3448 = vmatprep.mubr.bf16.mxu1 %v16344_v0  ;;  %3473 = vmatprep.subr.bf16.mxu0 %v1733_v47  ;;  %v1799_v47 = vand.u32 %v10729_v43, %v11510_v5 }
  0x7f   : > { %3516 = vmatprep.subr.bf16.mxu1 %v1739_v48  ;;  %v318_v48 = vld [vmem:[%s11506_s17 + $0x130] sm:$0xff] }
  0x80   : > { %v10731_v54 = vcombine.high %v318_v48, %v446_v49  ;;  %v10730_v62 = vcombine.low %v318_v48, %v446_v49  ;;  %v456_v48 = vld [vmem:[%s11506_s17 + $0x580] sm:$0x11] }
  0x82   : > { %v1802_v6 = vand.u32 %v10730_v62, %v11510_v5  ;;  %v331_v62 = vld [vmem:[%s11506_s17 + $0x198] sm:$0xff] }
  0x83   : > { %10934 = vmatmul.mubr.msk.bf16.vlgmr.msra.gmra.mxu0 %vm1565_vm2, %v11530_v29  ;;  %v10756_v14 = vcombine.low %v331_v62, %v459_v63 }
  0x84   : > { %10935 = vmatmul.mubr.msk.bf16.vlgmr.msra.gmra.mxu1 %vm1565_vm2, %v11530_v29  ;;  %3474 = vmatpush1.bf16.msra.mxu0 %v1730_v57  ;;  %v1796_v57 = vand.u32 %v10728_v53, %v11510_v5 }
  0x85   : > { %3517 = vmatpush1.bf16.msra.mxu1 %v1736_v58  ;;  %3491 = vmatprep.mubr.bf16.mxu0 %v16344_v0  ;;  %v1805_v58 = vand.u32 %v10731_v54, %v11510_v5  ;;  %v10753_v54 = vcombine.high %v329_v50, %v457_v51 }
  0x86   : > { %3534 = vmatprep.mubr.bf16.mxu1 %v16344_v0  ;;  %3559 = vmatprep.subr.bf16.mxu0 %v1745_v59  ;;  %v1811_v59 = vand.u32 %v10733_v55, %v11510_v5 }
  0x87   : > { %3602 = vmatprep.subr.bf16.mxu1 %v1751_v60  ;;  %v320_v60 = vld [vmem:[%s11506_s17 + $0x140] sm:$0xff] }
  0x88   : > { %v10735_v3 = vcombine.high %v320_v60, %v448_v61  ;;  %v10734_v12 = vcombine.low %v320_v60, %v448_v61  ;;  %v458_v60 = vld [vmem:[%s11506_s17 + $0x590] sm:$0x11] }
  0x8a   : > { %v1814_v18 = vand.u32 %v10734_v12, %v11510_v5  ;;  %v333_v12 = vld [vmem:[%s11506_s17 + $0x1a8] sm:$0xff] }
  0x8b   : > { %10936 = vmatmul.mubr.msk.bf16.vlgmr.msra.gmra.mxu0 %vm1565_vm2, %v11530_v29 }
  0x8c   : > { %10937 = vmatmul.mubr.msk.bf16.vlgmr.msra.gmra.mxu1 %vm1565_vm2, %v11530_v29  ;;  %3560 = vmatpush1.bf16.msra.mxu0 %v1742_v7  ;;  %v1808_v7 = vand.u32 %v10732_v2, %v11510_v5 }
  0x8d   : > { %3603 = vmatpush1.bf16.msra.mxu1 %v1748_v8  ;;  %3577 = vmatprep.mubr.bf16.mxu0 %v16344_v0  ;;  %v1817_v8 = vand.u32 %v10735_v3, %v11510_v5  ;;  %v10757_v3 = vcombine.high %v331_v62, %v459_v63 }
  0x8e   : > { %3620 = vmatprep.mubr.bf16.mxu1 %v16344_v0  ;;  %3645 = vmatprep.subr.bf16.mxu0 %v1757_v9  ;;  %v1823_v9 = vand.u32 %v10737_v4, %v11510_v5 }
  0x8f   : > { %3688 = vmatprep.subr.bf16.mxu1 %v1763_v10  ;;  %v322_v10 = vld [vmem:[%s11506_s17 + $0x150] sm:$0xff] }
  0x90   : > { %v10739_v16 = vcombine.high %v322_v10, %v450_v11  ;;  %v10738_v24 = vcombine.low %v322_v10, %v450_v11  ;;  %v460_v10 = vld [vmem:[%s11506_s17 + $0x5a0] sm:$0x11] }
  0x92   : > { %v1826_v31 = vand.u32 %v10738_v24, %v11510_v5 }
  0x93   : > { %10938 = vmatmul.mubr.msk.bf16.vlgmr.msra.gmra.mxu0 %vm1565_vm2, %v11530_v29 }
  0x94   : > { %10939 = vmatmul.mubr.msk.bf16.vlgmr.msra.gmra.mxu1 %vm1565_vm2, %v11530_v29  ;;  %3646 = vmatpush1.bf16.msra.mxu0 %v1754_v19  ;;  %v1820_v19 = vand.u32 %v10736_v15, %v11510_v5 }
  0x95   : > { %3689 = vmatpush1.bf16.msra.mxu1 %v1760_v20  ;;  %3663 = vmatprep.mubr.bf16.mxu0 %v16344_v0  ;;  %v1829_v20 = vand.u32 %v10739_v16, %v11510_v5  ;;  %v10761_v16 = vcombine.high %v333_v12, %v461_v13 }
  0x96   : > { %3706 = vmatprep.mubr.bf16.mxu1 %v16344_v0  ;;  %3731 = vmatprep.subr.bf16.mxu0 %v1769_v21  ;;  %v1835_v21 = vand.u32 %v10741_v17, %v11510_v5 }
  0x97   : > { %3774 = vmatprep.subr.bf16.mxu1 %v1775_v22  ;;  %v324_v22 = vld [vmem:[%s11506_s17 + $0x160] sm:$0xff] }
  0x98   : > { %v10743_v28 = vcombine.high %v324_v22, %v452_v23  ;;  %v10742_v37 = vcombine.low %v324_v22, %v452_v23  ;;  %v334_v22 = vld [vmem:[%s11506_s17 + $0x1b0] sm:$0xff] }
  0x99   : > { %v462_v23 = vld [vmem:[%s11506_s17 + $0x5b0] sm:$0x11] }
  0x9a   : > { %v1838_v43 = vand.u32 %v10742_v37, %v11510_v5 }
  0x9b   : > { %10940 = vmatmul.mubr.msk.bf16.vlgmr.msra.gmra.mxu0 %vm1565_vm2, %v11530_v29 }
  0x9c   : > { %10941 = vmatmul.mubr.msk.bf16.vlgmr.msra.gmra.mxu1 %vm1565_vm2, %v11530_v29  ;;  %3732 = vmatpush1.bf16.msra.mxu0 %v1766_v32  ;;  %v1832_v32 = vand.u32 %v10740_v27, %v11510_v5  ;;  %v463_v27 = vld [vmem:[%s11506_s17 + $0x5b8] sm:$0x11] }
  0x9d   : > { %3775 = vmatpush1.bf16.msra.mxu1 %v1772_v33  ;;  %3749 = vmatprep.mubr.bf16.mxu0 %v16344_v0  ;;  %v1841_v33 = vand.u32 %v10743_v28, %v11510_v5 }
  0x9e   : > { %3792 = vmatprep.mubr.bf16.mxu1 %v16344_v0  ;;  %3817 = vmatprep.subr.bf16.mxu0 %v1781_v34  ;;  %v1847_v34 = vand.u32 %v10745_v30, %v11510_v5  ;;  %v10760_v30 = vcombine.low %v333_v12, %v461_v13  ;;  %v339_v13 = vld [vmem:[%s11506_s17 + $0x1d8] sm:$0xff] }
  0x9f   : > { %3860 = vmatprep.subr.bf16.mxu1 %v1787_v35  ;;  %v326_v35 = vld [vmem:[%s11506_s17 + $0x170] sm:$0xff] }
  0xa0   : > { %v10747_v41 = vcombine.high %v326_v35, %v454_v36  ;;  %v10746_v49 = vcombine.low %v326_v35, %v454_v36  ;;  %v1892_v37 = vand.u32 %v10760_v30, %v11510_v5 }
  0xa2   : > { %v1850_v55 = vand.u32 %v10746_v49, %v11510_v5  ;;  %v465_v49 = vld [vmem:[%s11506_s17 + $0x5c8] sm:$0x11] }
  0xa3   : > { %10942 = vmatmul.mubr.msk.bf16.vlgmr.msra.gmra.mxu0 %vm1565_vm2, %v11530_v29 }
  0xa4   : > { %10943 = vmatmul.mubr.msk.bf16.vlgmr.msra.gmra.mxu1 %vm1565_vm2, %v11530_v29  ;;  %3818 = vmatpush1.bf16.msra.mxu0 %v1778_v44  ;;  %v1844_v44 = vand.u32 %v10744_v40, %v11510_v5 }
  0xa5   : > { %3861 = vmatpush1.bf16.msra.mxu1 %v1784_v45  ;;  %3835 = vmatprep.mubr.bf16.mxu0 %v16344_v0  ;;  %v1853_v45 = vand.u32 %v10747_v41, %v11510_v5  ;;  %v11913_v41 = vld [vmem:[%s16337_s1] sm:$0xff]  }
  0xa6   : > { %3878 = vmatprep.mubr.bf16.mxu1 %v16344_v0  ;;  %3903 = vmatprep.subr.bf16.mxu0 %v1793_v46  ;;  %v1859_v46 = vand.u32 %v10749_v42, %v11510_v5 }
  0xa7   : > { %3946 = vmatprep.subr.bf16.mxu1 %v1799_v47  ;;  %v328_v47 = vld [vmem:[%s11506_s17 + $0x180] sm:$0xff] }
  0xa8   : > { %v10751_v53 = vcombine.high %v328_v47, %v456_v48  ;;  %v10750_v61 = vcombine.low %v328_v47, %v456_v48  ;;  %v10762_v47 = vcombine.low %v334_v22, %v462_v23  ;;  %v337_v48 = vld [vmem:[%s11506_s17 + $0x1c8] sm:$0xff] }
  0xaa   : > { %v1862_v4 = vand.u32 %v10750_v61, %v11510_v5  ;;  %v1898_v61 = vand.u32 %v10762_v47, %v11510_v5  ;;  %v469_v47 = vld [vmem:[%s11506_s17 + $0x5e8] sm:$0x11] }
  0xab   : > { %10944 = vmatmul.mubr.msk.bf16.vlgmr.msra.gmra.mxu0 %vm1565_vm2, %v11530_v29 }
  0xac   : > { %10945 = vmatmul.mubr.msk.bf16.vlgmr.msra.gmra.mxu1 %vm1565_vm2, %v11530_v29  ;;  %3904 = vmatpush1.bf16.msra.mxu0 %v1790_v56  ;;  %v1856_v56 = vand.u32 %v10748_v52, %v11510_v5  ;;  %v10764_v52 = vcombine.low %v335_v26, %v463_v27 }
  0xad   : > { %3947 = vmatpush1.bf16.msra.mxu1 %v1796_v57  ;;  %3921 = vmatprep.mubr.bf16.mxu0 %v16344_v0  ;;  %v1865_v57 = vand.u32 %v10751_v53, %v11510_v5 }
  0xae   : > { %3964 = vmatprep.mubr.bf16.mxu1 %v16344_v0  ;;  %3989 = vmatprep.subr.bf16.mxu0 %v1805_v58  ;;  %v1871_v58 = vand.u32 %v10753_v54, %v11510_v5 }
  0xaf   : > { %4032 = vmatprep.subr.bf16.mxu1 %v1811_v59  ;;  %v330_v59 = vld [vmem:[%s11506_s17 + $0x190] sm:$0xff] }
  0xb0   : > { %v10755_v2 = vcombine.high %v330_v59, %v458_v60  ;;  %v10754_v11 = vcombine.low %v330_v59, %v458_v60  ;;  %v473_v59 = vld [vmem:[%s11506_s17 + $0x608] sm:$0x11] }
  0xb2   : > { %v1874_v17 = vand.u32 %v10754_v11, %v11510_v5 }
  0xb3   : > { %10946 = vmatmul.mubr.msk.bf16.vlgmr.msra.gmra.mxu0 %vm1565_vm2, %v11530_v29 }
  0xb4   : > { %10947 = vmatmul.mubr.msk.bf16.vlgmr.msra.gmra.mxu1 %vm1565_vm2, %v11530_v29  ;;  %3990 = vmatpush1.bf16.msra.mxu0 %v1802_v6  ;;  %v1868_v6 = vand.u32 %v10752_v1, %v11510_v5  ;;  %v1904_v1 = vand.u32 %v10764_v52, %v11510_v5 }
  0xb5   : > { %4033 = vmatpush1.bf16.msra.mxu1 %v1808_v7  ;;  %4007 = vmatprep.mubr.bf16.mxu0 %v16344_v0  ;;  %v1877_v7 = vand.u32 %v10755_v2, %v11510_v5  ;;  %v472_v2 = vld [vmem:[%s11506_s17 + $0x600] sm:$0x11] }
  0xb6   : > { %4050 = vmatprep.mubr.bf16.mxu1 %v16344_v0  ;;  %4075 = vmatprep.subr.bf16.mxu0 %v1817_v8  ;;  %v1883_v8 = vand.u32 %v10757_v3, %v11510_v5 }
  0xb7   : > { %4118 = vmatprep.subr.bf16.mxu1 %v1823_v9  ;;  %v332_v9 = vld [vmem:[%s11506_s17 + $0x1a0] sm:$0xff] }
  0xb8   : > { %v10759_v15 = vcombine.high %v332_v9, %v460_v10  ;;  %v10758_v25 = vcombine.low %v332_v9, %v460_v10  ;;  %v338_v9 = vld [vmem:[%s11506_s17 + $0x1d0] sm:$0xff] }
  0xb9   : > { %v466_v10 = vld [vmem:[%s11506_s17 + $0x5d0] sm:$0x11] }
  0xba   : > { %v1886_v35 = vand.u32 %v10758_v25, %v11510_v5 }
  0xbb   : > { %10948 = vmatmul.mubr.msk.bf16.vlgmr.msra.gmra.mxu0 %vm1565_vm2, %v11530_v29 }
  0xbc   : > { %10949 = vmatmul.mubr.msk.bf16.vlgmr.msra.gmra.mxu1 %vm1565_vm2, %v11530_v29  ;;  %4076 = vmatpush1.bf16.msra.mxu0 %v1814_v18  ;;  %v1880_v18 = vand.u32 %v10756_v14, %v11510_v5  ;;  %v467_v14 = vld [vmem:[%s11506_s17 + $0x5d8] sm:$0x11] }
  0xbd   : > { %4119 = vmatpush1.bf16.msra.mxu1 %v1820_v19  ;;  %4093 = vmatprep.mubr.bf16.mxu0 %v16344_v0  ;;  %v1889_v19 = vand.u32 %v10759_v15, %v11510_v5  ;;  %v10772_v52 = vcombine.low %v339_v13, %v467_v14 }
  0xbe   : > { %4136 = vmatprep.mubr.bf16.mxu1 %v16344_v0  ;;  %4161 = vmatprep.subr.bf16.mxu0 %v1829_v20 }
  0xbf   : > { %4204 = vmatprep.subr.bf16.mxu1 %v1835_v21  ;;  %v1895_v21 = vand.u32 %v10761_v16, %v11510_v5  ;;  %v10768_v16 = vcombine.low %v337_v48, %v465_v49 }
  0xc3   : > { %10950 = vmatmul.mubr.msk.bf16.vlgmr.msra.gmra.mxu0 %vm1565_vm2, %v11530_v29 }
  0xc4   : > { %10951 = vmatmul.mubr.msk.bf16.vlgmr.msra.gmra.mxu1 %vm1565_vm2, %v11530_v29  ;;  %4162 = vmatpush1.bf16.msra.mxu0 %v1826_v31 }
  0xc5   : > { %4205 = vmatpush1.bf16.msra.mxu1 %v1832_v32  ;;  %4179 = vmatprep.mubr.bf16.mxu0 %v16344_v0  ;;  %v10763_v32 = vcombine.high %v334_v22, %v462_v23 }
  0xc6   : > { %4222 = vmatprep.mubr.bf16.mxu1 %v16344_v0  ;;  %4247 = vmatprep.subr.bf16.mxu0 %v1841_v33 }
  0xc7   : > { %4290 = vmatprep.subr.bf16.mxu1 %v1847_v34  ;;  %v1901_v39 = vand.u32 %v10763_v32, %v11510_v5 }
  0xcb   : > { %10952 = vmatmul.mubr.msk.bf16.vlgmr.msra.gmra.mxu0 %vm1565_vm2, %v11530_v29 }
  0xcc   : > { %10953 = vmatmul.mubr.msk.bf16.vlgmr.msra.gmra.mxu1 %vm1565_vm2, %v11530_v29  ;;  %4248 = vmatpush1.bf16.msra.mxu0 %v1838_v43  ;;  %v336_v43 = vld [vmem:[%s11506_s17 + $0x1c0] sm:$0xff] }
  0xcd   : > { %4291 = vmatpush1.bf16.msra.mxu1 %v1844_v44  ;;  %4265 = vmatprep.mubr.bf16.mxu0 %v16344_v0  ;;  %v464_v44 = vld [vmem:[%s11506_s17 + $0x5c0] sm:$0x11] }
  0xce   : > { %4308 = vmatprep.mubr.bf16.mxu1 %v16344_v0  ;;  %4333 = vmatprep.subr.bf16.mxu0 %v1853_v45  ;;  %v10766_v12 = vcombine.low %v336_v43, %v464_v44 }
  0xcf   : > { %4376 = vmatprep.subr.bf16.mxu1 %v1859_v46 }
  0xd0   : > { %v1910_v23 = vand.u32 %v10766_v12, %v11510_v5 }
  0xd3   : > { %10954 = vmatmul.mubr.msk.bf16.vlgmr.msra.gmra.mxu0 %vm1565_vm2, %v11530_v29 }
  0xd4   : > { %10955 = vmatmul.mubr.msk.bf16.vlgmr.msra.gmra.mxu1 %vm1565_vm2, %v11530_v29  ;;  %4334 = vmatpush1.bf16.msra.mxu0 %v1850_v55  ;;  %v10767_v55 = vcombine.high %v336_v43, %v464_v44  ;;  %v10770_v43 = vcombine.low %v338_v9, %v466_v10  ;;  %v341_v44 = vld [vmem:[%s11506_s17 + $0x1e8] sm:$0xff] }
  0xd5   : > { %4377 = vmatpush1.bf16.msra.mxu1 %v1856_v56  ;;  %4351 = vmatprep.mubr.bf16.mxu0 %v16344_v0 }
  0xd6   : > { %4394 = vmatprep.mubr.bf16.mxu1 %v16344_v0  ;;  %4419 = vmatprep.subr.bf16.mxu0 %v1865_v57  ;;  %v1922_v12 = vand.u32 %v10770_v43, %v11510_v5  ;;  %v342_v43 = vld [vmem:[%s11506_s17 + $0x1f0] sm:$0xff] }
  0xd7   : > { %4462 = vmatprep.subr.bf16.mxu1 %v1871_v58  ;;  %v10769_v58 = vcombine.high %v337_v48, %v465_v49 }
  0xdb   : > { %10956 = vmatmul.mubr.msk.bf16.vlgmr.msra.gmra.mxu0 %vm1565_vm2, %v11530_v29 }
  0xdc   : > { %10957 = vmatmul.mubr.msk.bf16.vlgmr.msra.gmra.mxu1 %vm1565_vm2, %v11530_v29  ;;  %4420 = vmatpush1.bf16.msra.mxu0 %v1862_v4  ;;  %v1913_v4 = vand.u32 %v10767_v55, %v11510_v5 }
  0xdd   : > { %4463 = vmatpush1.bf16.msra.mxu1 %v1868_v6  ;;  %4437 = vmatprep.mubr.bf16.mxu0 %v16344_v0  ;;  %v344_v6 = vld [vmem:[%s11506_s17 + $0x200] sm:$0xff] }
  0xde   : > { %4480 = vmatprep.mubr.bf16.mxu1 %v16344_v0  ;;  %4505 = vmatprep.subr.bf16.mxu0 %v1877_v7 }
  0xdf   : > { %4548 = vmatprep.subr.bf16.mxu1 %v1883_v8  ;;  %v1919_v8 = vand.u32 %v10769_v58, %v11510_v5 }
  0xe3   : > { %v11878_v20 = vpop.f32.mrf.mxu0  ;;  %10958 = vmatmul.mubr.msk.bf16.vlgmr.msra.gmra.mxu0 %vm1565_vm2, %v11530_v29 }
  0xe4   : > { %v11885_v24 = vpop.f32.mrf.mxu1  ;;  %10959 = vmatmul.mubr.msk.bf16.vlgmr.msra.gmra.mxu1 %vm1565_vm2, %v11530_v29  ;;  %4506 = vmatpush1.bf16.msra.mxu0 %v1874_v17  ;;  %v10765_v29 = vcombine.high %v335_v26, %v463_v27  ;;  %v1916_v26 = vand.u32 %v10768_v16, %v11510_v5  ;;  %v1928_v16 = vand.u32 %v10772_v52, %v11510_v5 }
  0xe5   : > { %v11891_v28 = vpop.f32.mrf.mxu0  ;;  %4549 = vmatpush1.bf16.msra.mxu1 %v1880_v18  ;;  %4523 = vmatprep.mubr.bf16.mxu0 %v16344_v0  ;;  %v10771_v18 = vcombine.high %v338_v9, %v466_v10  ;;  %v471_v9 = vld [vmem:[%s11506_s17 + $0x5f8] sm:$0x11] }
  0xe6   : > { %v11894_v31 = vpop.f32.mrf.mxu1  ;;  %4566 = vmatprep.mubr.bf16.mxu1 %v16344_v0  ;;  %4591 = vmatprep.subr.bf16.mxu0 %v1889_v19  ;;  %v1907_v42 = vand.u32 %v10765_v29, %v11510_v5 }
  0xe7   : > { %v11897_v33 = vpop.f32.mrf.mxu0  ;;  %4634 = vmatprep.subr.bf16.mxu1 %v1895_v21  ;;  %v10773_v21 = vcombine.high %v339_v13, %v467_v14  ;;  %v1925_v30 = vand.u32 %v10771_v18, %v11510_v5  ;;  %v470_v13 = vld [vmem:[%s11506_s17 + $0x5f0] sm:$0x11] }
  0xe8   : > { %v11899_v34 = vpop.f32.mrf.mxu1 }
  0xe9   : > { %v11902_v36 = vpop.f32.mrf.mxu0  ;;  %v1931_v29 = vand.u32 %v10773_v21, %v11510_v5 }
  0xea   : > { %v11905_v38 = vpop.f32.mrf.mxu1 }
  0xeb   : > { %v11908_v40 = vpop.f32.mrf.mxu0  ;;  %10960 = vmatmul.mubr.msk.bf16.vlgmr.msra.gmra.mxu0 %vm1565_vm2, %v11913_v41 }
  0xec   : > { %v11922_v46 = vpop.f32.mrf.mxu1  ;;  %10961 = vmatmul.mubr.msk.bf16.vlgmr.msra.gmra.mxu1 %vm1565_vm2, %v11913_v41  ;;  %4592 = vmatpush1.bf16.msra.mxu0 %v1886_v35  ;;  %v340_v35 = vld [vmem:[%s11506_s17 + $0x1e0] sm:$0xff] }
  0xed   : > { %v11930_v51 = vpop.f32.mrf.mxu0  ;;  %4635 = vmatpush1.bf16.msra.mxu1 %v1892_v37  ;;  %4609 = vmatprep.mubr.bf16.mxu0 %v16344_v0  ;;  %v468_v37 = vld [vmem:[%s11506_s17 + $0x5e0] sm:$0x11] }
  0xee   : > { %v11935_v54 = vpop.f32.mrf.mxu1  ;;  %4652 = vmatprep.mubr.bf16.mxu1 %v16344_v0  ;;  %4677 = vmatprep.subr.bf16.mxu0 %v1901_v39  ;;  %v10774_v18 = vcombine.low %v340_v35, %v468_v37 }
  0xef   : > { %v11940_v57 = vpop.f32.mrf.mxu0  ;;  %4720 = vmatprep.subr.bf16.mxu1 %v1907_v42 }
  0xf0   : > { %v11944_v60 = vpop.f32.mrf.mxu1 }
  0xf1   : > { %v11949_v63 = vpop.f32.mrf.mxu0 }
  0xf2   : > { %v11954_v3 = vpop.f32.mrf.mxu1 }
  0xf3   : > { %v11959_v7 = vpop.f32.mrf.mxu0  ;;  %10962 = vmatmul.mubr.msk.bf16.vlgmr.msra.gmra.mxu0 %vm1565_vm2, %v11913_v41 }
  0xf4   : > { %v11966_v11 = vpop.f32.mrf.mxu1  ;;  %10963 = vmatmul.mubr.msk.bf16.vlgmr.msra.gmra.mxu1 %vm1565_vm2, %v11913_v41  ;;  %4678 = vmatpush1.bf16.msra.mxu0 %v1898_v61  ;;  %v10775_v61 = vcombine.high %v340_v35, %v468_v37 }
  0xf5   : > { %v11972_v15 = vpop.f32.mrf.mxu0  ;;  %4721 = vmatpush1.bf16.msra.mxu1 %v1904_v1  ;;  %4695 = vmatprep.mubr.bf16.mxu0 %v16344_v0 }
  0xf6   : > { %v11975_v17 = vpop.f32.mrf.mxu1  ;;  %4738 = vmatprep.mubr.bf16.mxu1 %v16344_v0  ;;  %4763 = vmatprep.subr.bf16.mxu0 %v1913_v4 }
  0xf7   : > { %v11978_v19 = vpop.f32.mrf.mxu0  ;;  %4806 = vmatprep.subr.bf16.mxu1 %v1919_v8  ;;  %v10777_v8 = vcombine.high %v341_v44, %v469_v47 }
  0xf8   : > { %v11980_v22 = vpop.f32.mrf.mxu1 }
  0xf9   : > { %v11983_v25 = vpop.f32.mrf.mxu0 }
  0xfa   : > { %v11986_v27 = vpop.f32.mrf.mxu1 }
  0xfb   : > { %v11989_v32 = vpop.f32.mrf.mxu0  ;;  %10964 = vmatmul.mubr.msk.bf16.vlgmr.msra.gmra.mxu0 %vm1565_vm2, %v11913_v41 }
  0xfc   : > { %v11998_v42 = vpop.f32.mrf.mxu1  ;;  %10965 = vmatmul.mubr.msk.bf16.vlgmr.msra.gmra.mxu1 %vm1565_vm2, %v11913_v41  ;;  %4764 = vmatpush1.bf16.msra.mxu0 %v1910_v23  ;;  %v1937_v23 = vand.u32 %v10775_v61, %v11510_v5  ;;  %v343_v61 = vld [vmem:[%s11506_s17 + $0x1f8] sm:$0xff] }
  0xfd   : > { %v12006_v49 = vpop.f32.mrf.mxu0  ;;  %4807 = vmatpush1.bf16.msra.mxu1 %v1916_v26  ;;  %4781 = vmatprep.mubr.bf16.mxu0 %v16344_v0  ;;  %v10776_v26 = vcombine.low %v341_v44, %v469_v47  ;;  %v10781_v35 = vcombine.high %v343_v61, %v471_v9 }
  0xfe   : > { %v12011_v58 = vpop.f32.mrf.mxu1  ;;  %4824 = vmatprep.mubr.bf16.mxu1 %v16344_v0  ;;  %4849 = vmatprep.subr.bf16.mxu0 %v1925_v30 }
  0xff   : > { %v12016_v4 = vpop.f32.mrf.mxu0  ;;  %4892 = vmatprep.subr.bf16.mxu1 %v1931_v29  ;;  %v1943_v29 = vand.u32 %v10777_v8, %v11510_v5  ;;  %v10779_v8 = vcombine.high %v342_v43, %v470_v13  ;;  %v1940_v44 = vand.u32 %v10776_v26, %v11510_v5  ;;  %v10778_v26 = vcombine.low %v342_v43, %v470_v13 }
 0x100   : > { %v12020_v10 = vpop.f32.mrf.mxu1  ;;  %v10783_v13 = vcombine.high %v344_v6, %v472_v2 }
 0x101   : > { %v12025_v14 = vpop.f32.mrf.mxu0  ;;  %v1949_v39 = vand.u32 %v10779_v8, %v11510_v5  ;;  %v345_v8 = vld [vmem:[%s11506_s17 + $0x208] sm:$0xff] }
 0x102   : > { %v12030_v21 = vpop.f32.mrf.mxu1 }
 0x103   : > { %v12035_v30 = vpop.f32.mrf.mxu0  ;;  %10966 = vmatmul.mubr.msk.bf16.vlgmr.msra.gmra.mxu0 %vm1565_vm2, %v11913_v41 }
 0x104   : > { %16616 = vst [vmem:[#allocation6_spill] sm:$0xff] %v12035_v30  ;;  %v12042_v52 = vpop.f32.mrf.mxu1  ;;  %10967 = vmatmul.mubr.msk.bf16.vlgmr.msra.gmra.mxu1 %vm1565_vm2, %v11913_v41  ;;  %4850 = vmatpush1.bf16.msra.mxu0 %v1922_v12  ;;  %v1934_v12 = vand.u32 %v10774_v18, %v11510_v5  ;;  %v1946_v18 = vand.u32 %v10778_v26, %v11510_v5 }
 0x105   : > { %16617 = vst [vmem:[#allocation7_spill] sm:$0xff] %v12042_v52  ;;  %v12048_v1 = vpop.f32.mrf.mxu0  ;;  %4893 = vmatpush1.bf16.msra.mxu1 %v1928_v16  ;;  %4867 = vmatprep.mubr.bf16.mxu0 %v16344_v0 }
 0x106   : > { %16618 = vst [vmem:[#allocation8_spill] sm:$0xff] %v12048_v1  ;;  %v12051_v55 = vpop.f32.mrf.mxu1  ;;  %4910 = vmatprep.mubr.bf16.mxu1 %v16344_v0  ;;  %4935 = vmatprep.subr.bf16.mxu0 %v1937_v23  ;;  %v477_v1 = vld [vmem:[%s11506_s17 + $0x628] sm:$0x11] }
 0x107   : > { %16619 = vst [vmem:[#allocation9_spill] sm:$0xff] %v12051_v55  ;;  %v12054_v48 = vpop.f32.mrf.mxu0  ;;  %4978 = vmatprep.subr.bf16.mxu1 %v1943_v29  ;;  %v1955_v29 = vand.u32 %v10781_v35, %v11510_v5  ;;  %v10780_v35 = vcombine.low %v343_v61, %v471_v9  ;;  %v1961_v9 = vand.u32 %v10783_v13, %v11510_v5  ;;  %v347_v13 = vld [vmem:[%s11506_s17 + $0x218] sm:$0xff]  ;;  %v476_v55 = vld [vmem:[%s11506_s17 + $0x620] sm:$0x11] }
 0x108   : > { %16620 = vst [vmem:[#allocation10_spill] sm:$0xff] %v12054_v48  ;;  %v12056_v37 = vpop.f32.mrf.mxu1 }
 0x109   : > { %16621 = vst [vmem:[#allocation11_spill] sm:$0xff] %v12056_v37  ;;  %v12059_v16 = vpop.f32.mrf.mxu0  ;;  %v1952_v43 = vand.u32 %v10780_v35, %v11510_v5  ;;  %v474_v37 = vld [vmem:[%s11506_s17 + $0x610] sm:$0x11] }
 0x10a   : > { %16622 = vst [vmem:[#allocation12_spill] sm:$0xff] %v12059_v16  ;;  %v12062_v47 = vpop.f32.mrf.mxu1 }
 0x10b   : > { %16623 = vst [vmem:[#allocation13_spill] sm:$0xff] %v12062_v47  ;;  %v12065_v23 = vpop.f32.mrf.mxu0  ;;  %10968 = vmatmul.mubr.msk.bf16.vlgmr.msra.gmra.mxu0 %vm1565_vm2, %v11913_v41 }
 0x10c   : > { %16624 = vst [vmem:[#allocation14_spill] sm:$0xff] %v12065_v23  ;;  %v12074_v62 = vpop.f32.mrf.mxu1  ;;  %10969 = vmatmul.mubr.msk.bf16.vlgmr.msra.gmra.mxu1 %vm1565_vm2, %v11913_v41  ;;  %4936 = vmatpush1.bf16.msra.mxu0 %v1934_v12 }
 0x10d   : > { %16625 = vst [vmem:[#allocation15_spill] sm:$0xff] %v12074_v62  ;;  %v12082_v53 = vpop.f32.mrf.mxu0  ;;  %4979 = vmatpush1.bf16.msra.mxu1 %v1940_v44  ;;  %4953 = vmatprep.mubr.bf16.mxu0 %v16344_v0  ;;  %v10785_v44 = vcombine.high %v345_v8, %v473_v59 }
 0x10e   : > { %16626 = vst [vmem:[#allocation16_spill] sm:$0xff] %v12082_v53  ;;  %v12087_v50 = vpop.f32.mrf.mxu1  ;;  %4996 = vmatprep.mubr.bf16.mxu1 %v16344_v0  ;;  %5021 = vmatprep.subr.bf16.mxu0 %v1949_v39  ;;  %v16635_v0 = vmov 0  }
 0x10f   : > { %16627 = vst [vmem:[#allocation17_spill] sm:$0xff] %v12087_v50  ;;  %v12092_v12 = vpop.f32.mrf.mxu0  ;;  %5064 = vmatprep.subr.bf16.mxu1 %v1955_v29  ;;  %v1967_v39 = vand.u32 %v10785_v44, %v11510_v5  ;;  %v10782_v29 = vcombine.low %v344_v6, %v472_v2  ;;  %v348_v50 = vld [vmem:[%s11506_s17 + $0x220] sm:$0xff] }
 0x110   : > { %16628 = vst [vmem:[#allocation18_spill] sm:$0xff] %v12092_v12  ;;  %v12096_v61 = vpop.f32.mrf.mxu1 }
 0x111   : > { %16629 = vst [vmem:[#allocation19_spill] sm:$0xff] %v12096_v61  ;;  %v12101_v56 = vpop.f32.mrf.mxu0  ;;  %v346_v61 = vld [vmem:[%s11506_s17 + $0x210] sm:$0xff] }
 0x112   : > { %16630 = vst [vmem:[#allocation20_spill] sm:$0xff] %v12101_v56  ;;  %v12106_v45 = vpop.f32.mrf.mxu1  ;;  %v475_v56 = vld [vmem:[%s11506_s17 + $0x618] sm:$0x11]  ;;  %v10787_v44 = vcombine.high %v346_v61, %v474_v37 }
 0x113   : > { %16631 = vst [vmem:[#allocation21_spill] sm:$0xff] %v12106_v45  ;;  %v12111_v26 = vpop.f32.mrf.mxu0  ;;  %10970 = vmatmul.mubr.msk.bf16.vlgmr.msra.gmra.mxu0 %vm1565_vm2, %v11913_v41  ;;  %v10784_v45 = vcombine.low %v345_v8, %v473_v59  ;;  %v10789_v2 = vcombine.high %v347_v13, %v475_v56 }
 0x114   : > { %16632 = vst [vmem:[#allocation22_spill] sm:$0xff] %v12111_v26  ;;  %v12118_v35 = vpop.f32.mrf.mxu1  ;;  %10971 = vmatmul.mubr.msk.bf16.vlgmr.msra.gmra.mxu1 %vm1565_vm2, %v11913_v41  ;;  %5022 = vmatpush1.bf16.msra.mxu0 %v1946_v18  ;;  %v1958_v18 = vand.u32 %v10782_v29, %v11510_v5  ;;  %v1973_v48 = vand.u32 %v10787_v44, %v11510_v5  ;;  %v349_v44 = vld [vmem:[%s11506_s17 + $0x228] sm:$0xff] }
 0x115   : > { %16633 = vst [vmem:[#allocation23_spill] sm:$0xff] %v12118_v35  ;;  %v12124_v16 = vpop.f32.mrf.mxu0  ;;  %5065 = vmatpush1.bf16.msra.mxu1 %v1952_v43  ;;  %5039 = vmatprep.mubr.bf16.mxu0 %v16635_v0  ;;  %v1964_v59 = vand.u32 %v10784_v45, %v11510_v5  ;;  %v10786_v45 = vcombine.low %v346_v61, %v474_v37  ;;  %v481_v35 = vld [vmem:[%s11506_s17 + $0x648] sm:$0x11] }
 0x116   : > { %16634 = vst [vmem:[#allocation24_spill] sm:$0xff] %v12124_v16  ;;  %v12127_v47 = vpop.f32.mrf.mxu1  ;;  %5082 = vmatprep.mubr.bf16.mxu1 %v16635_v0  ;;  %5107 = vmatprep.subr.bf16.mxu0 %v1961_v9  ;;  %v10791_v37 = vcombine.high %v348_v50, %v476_v55 }
 0x117   : > { %16636 = vst [vmem:[#allocation25_spill] sm:$0xff] %v12127_v47  ;;  %v12130_v12 = vpop.f32.mrf.mxu0  ;;  %5150 = vmatprep.subr.bf16.mxu1 %v1967_v39  ;;  %v1979_v39 = vand.u32 %v10789_v2, %v11510_v5  ;;  %v10788_v2 = vcombine.low %v347_v13, %v475_v56  ;;  %v1970_v29 = vand.u32 %v10786_v45, %v11510_v5 }
 0x118   : > { %16637 = vst [vmem:[#allocation26_spill] sm:$0xff] %v12130_v12  ;;  %v12132_v6 = vpop.f32.mrf.mxu1  ;;  %v1985_v56 = vand.u32 %v10791_v37, %v11510_v5 }
 0x119   : > { %16638 = vst [vmem:[#allocation27_spill] sm:$0xff] %v12132_v6  ;;  %v12135_v43 = vpop.f32.mrf.mxu0  ;;  %v1976_v61 = vand.u32 %v10788_v2, %v11510_v5  ;;  %v478_v6 = vld [vmem:[%s11506_s17 + $0x630] sm:$0x11]  ;;  %v10790_v2 = vcombine.low %v348_v50, %v476_v55 }
 0x11a   : > { %16639 = vst [vmem:[#allocation28_spill] sm:$0xff] %v12135_v43  ;;  %v12138_v8 = vpop.f32.mrf.mxu1 }
 0x11b   : > { %16640 = vst [vmem:[#allocation29_spill] sm:$0xff] %v12138_v8  ;;  %v12141_v9 = vpop.f32.mrf.mxu0  ;;  %10972 = vmatmul.mubr.msk.bf16.vlgmr.msra.gmra.mxu0 %vm1565_vm2, %v11913_v41  ;;  %v1982_v50 = vand.u32 %v10790_v2, %v11510_v5  ;;  %v353_v2 = vld [vmem:[%s11506_s17 + $0x248] sm:$0xff] }
 0x11c   : > { %16641 = vst [vmem:[#allocation30_spill] sm:$0xff] %v12141_v9  ;;  %v12150_v53 = vpop.f32.mrf.mxu1  ;;  %10973 = vmatmul.mubr.msk.bf16.vlgmr.msra.gmra.mxu1 %vm1565_vm2, %v11913_v41  ;;  %5108 = vmatpush1.bf16.msra.mxu0 %v1958_v18 }
 0x11d   : > { %16642 = vst [vmem:[#allocation31_spill] sm:$0xff] %v12150_v53  ;;  %v12158_v52 = vpop.f32.mrf.mxu0  ;;  %5151 = vmatpush1.bf16.msra.mxu1 %v1964_v59  ;;  %5125 = vmatprep.mubr.bf16.mxu0 %v16635_v0  ;;  %v10793_v59 = vcombine.high %v349_v44, %v477_v1 }
 0x11e   : > { %16643 = vst [vmem:[#allocation32_spill] sm:$0xff] %v12158_v52  ;;  %v12163_v9 = vpop.f32.mrf.mxu1  ;;  %5168 = vmatprep.mubr.bf16.mxu1 %v16635_v0  ;;  %5193 = vmatprep.subr.bf16.mxu0 %v1973_v48  ;;  %v12205_v52 = vld [vmem:[%s11506_s17 + $0x240] sm:$0xff] }
 0x11f   : > { %16644 = vst [vmem:[#allocation33_spill] sm:$0xff] %v12163_v9  ;;  %v12168_v18 = vpop.f32.mrf.mxu0  ;;  %5236 = vmatprep.subr.bf16.mxu1 %v1979_v39  ;;  %v1991_v48 = vand.u32 %v10793_v59, %v11510_v5  ;;  %v351_v39 = vld [vmem:[%s11506_s17 + $0x238] sm:$0xff] }
 0x120   : > { %16645 = vst [vmem:[#allocation34_spill] sm:$0xff] %v12168_v18  ;;  %v12172_v13 = vpop.f32.mrf.mxu1  ;;  %v10792_v18 = vcombine.low %v349_v44, %v477_v1 }
 0x121   : > { %16646 = vst [vmem:[#allocation35_spill] sm:$0xff] %v12172_v13  ;;  %v12177_v62 = vpop.f32.mrf.mxu0  ;;  %v350_v13 = vld [vmem:[%s11506_s17 + $0x230] sm:$0xff] }
 0x122   : > { %16647 = vst [vmem:[#allocation36_spill] sm:$0xff] %v12177_v62  ;;  %v12182_v9 = vpop.f32.mrf.mxu1  ;;  %v479_v62 = vld [vmem:[%s11506_s17 + $0x638] sm:$0x11]  ;;  %v10795_v59 = vcombine.high %v350_v13, %v478_v6 }
 0x123   : > { %16648 = vst [vmem:[#allocation37_spill] sm:$0xff] %v12182_v9  ;;  %v3063_v45 = vpop.f32.mrf.mxu0  ;;  %10974 = vmatmul.mubr.msk.bf16.vlgmr.msra.gmra.mxu0 %vm1565_vm2, %v11913_v41  ;;  %v10797_v43 = vcombine.high %v351_v39, %v479_v62  ;;  %v10796_v23 = vcombine.low %v351_v39, %v479_v62  ;;  %v10801_v39 = vcombine.high %v353_v2, %v481_v35 }
 0x124   : > { %v3106_v12 = vpop.f32.mrf.mxu1  ;;  %10975 = vmatmul.mubr.msk.bf16.vlgmr.msra.gmra.mxu1 %vm1565_vm2, %v11913_v41  ;;  %5194 = vmatpush1.bf16.msra.mxu0 %v1970_v29  ;;  %v1988_v29 = vand.u32 %v10792_v18, %v11510_v5  ;;  %v1997_v1 = vand.u32 %v10795_v59, %v11510_v5  ;;  %v10794_v18 = vcombine.low %v350_v13, %v478_v6 }
 0x125   : > { %v3065_v37 = vpop.f32.mrf.mxu0  ;;  %5237 = vmatpush1.bf16.msra.mxu1 %v1976_v61  ;;  %5211 = vmatprep.mubr.bf16.mxu0 %v16635_v0 }
 0x126   : > { %v3108_v9 = vpop.f32.mrf.mxu1  ;;  %5254 = vmatprep.mubr.bf16.mxu1 %v16635_v0  ;;  %5279 = vmatprep.subr.bf16.mxu0 %v1985_v56  ;;  %v2003_v56 = vand.u32 %v10797_v43, %v11510_v5  ;;  %v16649_v43 = vmax.f32 %v11878_v20, %v11908_v40  ;;  %v16653_v20 = vmax.f32 %v11891_v28, %v11930_v51 }
 0x127   : > { %v3067_v8 = vpop.f32.mrf.mxu0  ;;  %5322 = vmatprep.subr.bf16.mxu1 %v1991_v48  ;;  %v12208_v48 = vld [vmem:[%s11506_s17 + $0x640] sm:$0x11]  ;;  %v16657_v28 = vmax.f32 %v11897_v33, %v11940_v57  ;;  %v2015_v33 = vand.u32 %v10801_v39, %v11510_v5  ;;  %v354_v57 = vld [vmem:[%s11506_s17 + $0x250] sm:$0xff] }
 0x128   : > { %v3110_v47 = vpop.f32.mrf.mxu1  ;;  %v10799_v6 = vcombine.high %v12205_v52, %v12208_v48 }
 0x129   : > { %v3069_v55 = vpop.f32.mrf.mxu0 }
 0x12a   : > { %v3112_v61 = vpop.f32.mrf.mxu1 }
 0x12b   : > { %v3149_v44 = vpop.f32.mrf.mxu0  ;;  %10976 = vmatmul.mubr.msk.bf16.vlgmr.msra.gmra.mxu0 %vm1565_vm2, %v11913_v41 }
 0x12c   : > { %v7855_v16 = vmax.f32 %v3063_v45, %v3149_v44  ;;  %v3192_v53 = vpop.f32.mrf.mxu1  ;;  %10977 = vmatmul.mubr.msk.bf16.vlgmr.msra.gmra.mxu1 %vm1565_vm2, %v11913_v41  ;;  %5280 = vmatpush1.bf16.msra.mxu0 %v1982_v50 }
 0x12d   : > { %v7857_v59 = vmax.f32 %v3106_v12, %v3192_v53  ;;  %v3151_v26 = vpop.f32.mrf.mxu0  ;;  %5323 = vmatpush1.bf16.msra.mxu1 %v1988_v29  ;;  %5297 = vmatprep.mubr.bf16.mxu0 %v16635_v0  ;;  %v16651_v53 = vmax.f32 %v11885_v24, %v11922_v46  ;;  %v16655_v24 = vmax.f32 %v11894_v31, %v11935_v54 }
 0x12e   : > { %v12218_v30 = vmax.f32 %v16649_v43, %v7855_v16  ;;  %v7856_v45 = vmax.f32 %v3065_v37, %v3151_v26  ;;  %v3194_v44 = vpop.f32.mrf.mxu1  ;;  %5340 = vmatprep.mubr.bf16.mxu1 %v16635_v0  ;;  %5365 = vmatprep.subr.bf16.mxu0 %v1997_v1  ;;  %v1994_v37 = vand.u32 %v10794_v18, %v11510_v5 }
 0x12f   : > { %v12226_v12 = vmax.f32 %v16651_v53, %v7857_v59  ;;  %v7858_v13 = vmax.f32 %v3108_v9, %v3194_v44  ;;  %v3153_v62 = vpop.f32.mrf.mxu0  ;;  %5408 = vmatprep.subr.bf16.mxu1 %v2003_v56  ;;  %v2000_v29 = vand.u32 %v10796_v23, %v11510_v5  ;;  %v2009_v56 = vand.u32 %v10799_v6, %v11510_v5  ;;  %v482_v23 = vld [vmem:[%s11506_s17 + $0x650] sm:$0x11] }
 0x130   : > { %16650 = vst [vmem:[#allocation38_spill] sm:$0xff] %v12218_v30  ;;  %v12231_v40 = vmax.f32 %v16653_v20, %v7856_v45  ;;  %v7859_v16 = vmax.f32 %v3067_v8, %v3153_v62  ;;  %v3196_v26 = vpop.f32.mrf.mxu1  ;;  %v16659_v31 = vmax.f32 %v11899_v34, %v11944_v60  ;;  %v10798_v34 = vcombine.low %v12205_v52, %v12208_v48  ;;  %v355_v60 = vld [vmem:[%s11506_s17 + $0x258] sm:$0xff] }
 0x131   : > { %16652 = vst [vmem:[#allocation39_spill] sm:$0xff] %v12226_v12  ;;  %v12237_v46 = vmax.f32 %v16655_v24, %v7858_v13  ;;  %v7861_v9 = vmax.f32 %v3110_v47, %v3196_v26  ;;  %v3155_v50 = vpop.f32.mrf.mxu0  ;;  %v16663_v45 = vmax.f32 %v11905_v38, %v11954_v3  ;;  %v10803_v53 = vcombine.high %v354_v57, %v482_v23  ;;  %v12284_v26 = vld [vmem:[%s11506_s17 + $0x660] sm:$0x11] }
 0x132   : > { %16654 = vst [vmem:[#allocation40_spill] sm:$0xff] %v12231_v40  ;;  %v12243_v51 = vmax.f32 %v16657_v28, %v7859_v16  ;;  %v7860_v8 = vmax.f32 %v3069_v55, %v3155_v50  ;;  %v3198_v1 = vpop.f32.mrf.mxu1  ;;  %v16661_v55 = vmax.f32 %v11902_v36, %v11949_v63  ;;  %v10800_v36 = vcombine.low %v353_v2, %v481_v35  ;;  %v12281_v16 = vld [vmem:[%s11506_s17 + $0x260] sm:$0xff]  ;;  %v357_v50 = vld [vmem:[%s11506_s17 + $0x268] sm:$0xff] }
 0x133   : > { %16656 = vst [vmem:[#allocation41_spill] sm:$0xff] %v12237_v46  ;;  %v12249_v54 = vmax.f32 %v16659_v31, %v7861_v9  ;;  %v7862_v47 = vmax.f32 %v3112_v61, %v3198_v1  ;;  %v3235_v18 = vpop.f32.mrf.mxu0  ;;  %10978 = vmatmul.mubr.msk.bf16.vlgmr.msra.gmra.mxu0 %vm1565_vm2, %v11913_v41  ;;  %v483_v61 = vld [vmem:[%s11506_s17 + $0x658] sm:$0x11]  ;;  %v2006_v38 = vand.u32 %v10798_v34, %v11510_v5 }
 0x134   : > { %16658 = vst [vmem:[#allocation42_spill] sm:$0xff] %v12243_v51  ;;  %v12259_v59 = vmax.f32 %v16661_v55, %v7860_v8  ;;  %v3278_v43 = vpop.f32.mrf.mxu1  ;;  %10979 = vmatmul.mubr.msk.bf16.vlgmr.msra.gmra.mxu1 %vm1565_vm2, %v11913_v41  ;;  %5366 = vmatpush1.bf16.msra.mxu0 %v1994_v37  ;;  %v10805_v48 = vcombine.high %v355_v60, %v483_v61 }
 0x135   : > { %16660 = vst [vmem:[#allocation43_spill] sm:$0xff] %v12249_v54  ;;  %v12270_v44 = vmax.f32 %v16663_v45, %v7862_v47  ;;  %v3237_v6 = vpop.f32.mrf.mxu0  ;;  %5409 = vmatpush1.bf16.msra.mxu1 %v2000_v29  ;;  %5383 = vmatprep.mubr.bf16.mxu0 %v16635_v0  ;;  %v2012_v62 = vand.u32 %v10800_v36, %v11510_v5  ;;  %v485_v29 = vld [vmem:[%s11506_s17 + $0x668] sm:$0x11] }
 0x136   : > { %16662 = vst [vmem:[#allocation44_spill] sm:$0xff] %v12259_v59  ;;  %v3280_v63 = vpop.f32.mrf.mxu1  ;;  %5426 = vmatprep.mubr.bf16.mxu1 %v16635_v0  ;;  %5451 = vmatprep.subr.bf16.mxu0 %v2009_v56  ;;  %v2021_v35 = vand.u32 %v10803_v53, %v11510_v5  ;;  %v2027_v20 = vand.u32 %v10805_v48, %v11510_v5  ;;  %v376_v59 = vld [vmem:[%s11506_s17 + $0x300] sm:$0xff] }
 0x137   : > { %16664 = vst [vmem:[#allocation45_spill] sm:$0xff] %v12270_v44  ;;  %v3239_v52 = vpop.f32.mrf.mxu0  ;;  %5494 = vmatprep.subr.bf16.mxu1 %v2015_v33  ;;  %v10802_v9 = vcombine.low %v354_v57, %v482_v23  ;;  %v10804_v1 = vcombine.low %v355_v60, %v483_v61  ;;  %v16665_v56 = vmax.f32 %v11959_v7, %v11989_v32  ;;  %v374_v44 = vld [vmem:[%s11506_s17 + $0x2f0] sm:$0xff] }
 0x138   : > { %v3282_v13 = vpop.f32.mrf.mxu1  ;;  %v10807_v33 = vcombine.high %v12281_v16, %v12284_v26  ;;  %v16667_v57 = vmax.f32 %v11966_v11, %v11998_v42  ;;  %v10809_v34 = vcombine.high %v357_v50, %v485_v29  ;;  %v16669_v7 = vmax.f32 %v11972_v15, %v12006_v49 }
 0x139   : > { %v3241_v3 = vpop.f32.mrf.mxu0  ;;  %v2018_v45 = vand.u32 %v10802_v9, %v11510_v5  ;;  %v16671_v11 = vmax.f32 %v11975_v17, %v12011_v58  ;;  %v16673_v15 = vmax.f32 %v11978_v19, %v12016_v4  ;;  %v16675_v17 = vmax.f32 %v11980_v22, %v12020_v10  ;;  %v358_v4 = vld [vmem:[%s11506_s17 + $0x270] sm:$0xff]  ;;  %v359_v10 = vld [vmem:[%s11506_s17 + $0x278] sm:$0xff] }
 0x13a   : > { %v3284_v39 = vpop.f32.mrf.mxu1  ;;  %v2033_v48 = vand.u32 %v10807_v33, %v11510_v5  ;;  %v2039_v19 = vand.u32 %v10809_v34, %v11510_v5  ;;  %v10806_v22 = vcombine.low %v12281_v16, %v12284_v26  ;;  %v489_v34 = vld [vmem:[%s11506_s17 + $0x688] sm:$0x11] }
 0x13b   : > { %v3321_v2 = vpop.f32.mrf.mxu0  ;;  %10980 = vmatmul.mubr.msk.bf16.vlgmr.msra.gmra.mxu0 %vm1565_vm2, %v11913_v41 }
 0x13c   : > { %v7905_v37 = vmax.f32 %v3235_v18, %v3321_v2  ;;  %v3364_v24 = vpop.f32.mrf.mxu1  ;;  %10981 = vmatmul.mubr.msk.bf16.vlgmr.msra.gmra.mxu1 %vm1565_vm2, %v11913_v41  ;;  %5452 = vmatpush1.bf16.msra.mxu0 %v2006_v38 }
 0x13d   : > { %v7907_v28 = vmax.f32 %v3278_v43, %v3364_v24  ;;  %v3323_v8 = vpop.f32.mrf.mxu0  ;;  %5495 = vmatpush1.bf16.msra.mxu1 %v2012_v62  ;;  %5469 = vmatprep.mubr.bf16.mxu0 %v16635_v0  ;;  %v486_v62 = vld [vmem:[%s11506_s17 + $0x670] sm:$0x11] }
 0x13e   : > { %v12294_v31 = vmax.f32 %v16665_v56, %v7905_v37  ;;  %v7906_v47 = vmax.f32 %v3237_v6, %v3323_v8  ;;  %v3366_v18 = vpop.f32.mrf.mxu1  ;;  %5512 = vmatprep.mubr.bf16.mxu1 %v16635_v0  ;;  %5537 = vmatprep.subr.bf16.mxu0 %v2021_v35  ;;  %v10811_v9 = vcombine.high %v358_v4, %v486_v62 }
 0x13f   : > { %v12302_v23 = vmax.f32 %v16667_v57, %v7907_v28  ;;  %v7908_v55 = vmax.f32 %v3280_v63, %v3366_v18  ;;  %v3325_v43 = vpop.f32.mrf.mxu0  ;;  %5580 = vmatprep.subr.bf16.mxu1 %v2027_v20  ;;  %v2024_v63 = vand.u32 %v10804_v1, %v11510_v5  ;;  %v16679_v20 = vmax.f32 %v11986_v27, %v12030_v21  ;;  %v12360_v18 = vld [vmem:[%s11506_s17 + $0x680] sm:$0x11] }
 0x140   : > { %16666 = vst [vmem:[#allocation46_spill] sm:$0xff] %v12294_v31  ;;  %v12307_v32 = vmax.f32 %v16669_v7, %v7906_v47  ;;  %v7909_v60 = vmax.f32 %v3239_v52, %v3325_v43  ;;  %v3368_v61 = vpop.f32.mrf.mxu1  ;;  %v2030_v27 = vand.u32 %v10806_v22, %v11510_v5  ;;  %v12357_v47 = vld [vmem:[%s11506_s17 + $0x280] sm:$0xff]  ;;  %v361_v43 = vld [vmem:[%s11506_s17 + $0x288] sm:$0xff] }
 0x141   : > { %16668 = vst [vmem:[#allocation47_spill] sm:$0xff] %v12302_v23  ;;  %v12313_v42 = vmax.f32 %v16671_v11, %v7908_v55  ;;  %v7911_v6 = vmax.f32 %v3282_v13, %v3368_v61  ;;  %v3327_v36 = vpop.f32.mrf.mxu0  ;;  %v10810_v55 = vcombine.low %v358_v4, %v486_v62  ;;  %v16682_v11 = vld [vmem:[#allocation14_spill] sm:$0xff]  ;;  %v10817_v4 = vcombine.high %v361_v43, %v489_v34  ;;  %v16689_v62 = vld [vmem:[#allocation8_spill] sm:$0xff] }
 0x142   : > { %16670 = vst [vmem:[#allocation48_spill] sm:$0xff] %v12307_v32  ;;  %v12319_v49 = vmax.f32 %v16673_v15, %v7909_v60  ;;  %v7910_v53 = vmax.f32 %v3241_v3, %v3327_v36  ;;  %v3370_v52 = vpop.f32.mrf.mxu1  ;;  %v16677_v3 = vmax.f32 %v11983_v25, %v12025_v14  ;;  %v10808_v25 = vcombine.low %v357_v50, %v485_v29  ;;  %v502_v23 = vld [vmem:[%s11506_s17 + $0x6f0] sm:$0x11]  ;;  %v504_v31 = vld [vmem:[%s11506_s17 + $0x700] sm:$0x11] }
 0x143   : > { %16672 = vst [vmem:[#allocation49_spill] sm:$0xff] %v12313_v42  ;;  %v12325_v58 = vmax.f32 %v16675_v17, %v7911_v6  ;;  %v7912_v13 = vmax.f32 %v3284_v39, %v3370_v52  ;;  %v3407_v38 = vpop.f32.mrf.mxu0  ;;  %10982 = vmatmul.mubr.msk.bf16.vlgmr.msra.gmra.mxu0 %vm1565_vm2, %v11913_v41  ;;  %v487_v39 = vld [vmem:[%s11506_s17 + $0x678] sm:$0x11]  ;;  %v2045_v50 = vand.u32 %v10811_v9, %v11510_v5  ;;  %v505_v32 = vld [vmem:[%s11506_s17 + $0x708] sm:$0x11] }
 0x144   : > { %16674 = vst [vmem:[#allocation50_spill] sm:$0xff] %v12319_v49  ;;  %v12335_v35 = vmax.f32 %v16677_v3, %v7910_v53  ;;  %v3450_v2 = vpop.f32.mrf.mxu1  ;;  %10983 = vmatmul.mubr.msk.bf16.vlgmr.msra.gmra.mxu1 %vm1565_vm2, %v11913_v41  ;;  %5538 = vmatpush1.bf16.msra.mxu0 %v2018_v45  ;;  %v10813_v26 = vcombine.high %v359_v10, %v487_v39  ;;  %v16681_v45 = vld [vmem:[#allocation6_spill] sm:$0xff]  ;;  %v16685_v52 = vld [vmem:[#allocation7_spill] sm:$0xff]  ;;  %v16690_v3 = vld [vmem:[#allocation16_spill] sm:$0xff] }
 0x145   : > { %16676 = vst [vmem:[#allocation51_spill] sm:$0xff] %v12325_v58  ;;  %v12346_v37 = vmax.f32 %v16679_v20, %v7912_v13  ;;  %v3409_v24 = vpop.f32.mrf.mxu0  ;;  %5581 = vmatpush1.bf16.msra.mxu1 %v2024_v63  ;;  %5555 = vmatprep.mubr.bf16.mxu0 %v16635_v0  ;;  %v2036_v8 = vand.u32 %v10808_v25, %v11510_v5  ;;  %v16694_v25 = vld [vmem:[#allocation17_spill] sm:$0xff]  ;;  %v503_v42 = vld [vmem:[%s11506_s17 + $0x6f8] sm:$0x11] }
 0x146   : > { %16678 = vst [vmem:[#allocation52_spill] sm:$0xff] %v12335_v35  ;;  %v3452_v14 = vpop.f32.mrf.mxu1  ;;  %5598 = vmatprep.mubr.bf16.mxu1 %v16635_v0  ;;  %5623 = vmatprep.subr.bf16.mxu0 %v2033_v48  ;;  %v2051_v56 = vand.u32 %v10813_v26, %v11510_v5  ;;  %v10812_v61 = vcombine.low %v359_v10, %v487_v39  ;;  %v16686_v48 = vld [vmem:[#allocation15_spill] sm:$0xff] }
 0x147   : > { %16680 = vst [vmem:[#allocation53_spill] sm:$0xff] %v12346_v37  ;;  %v3411_v16 = vpop.f32.mrf.mxu0  ;;  %5666 = vmatprep.subr.bf16.mxu1 %v2039_v19  ;;  %v16683_v6 = vmax.f32 %v16681_v45, %v16682_v11  ;;  %v10815_v53 = vcombine.high %v12357_v47, %v12360_v18  ;;  %v16687_v17 = vmax.f32 %v16685_v52, %v16686_v48  ;;  %v16705_v52 = vld [vmem:[#allocation12_spill] sm:$0xff] }
 0x148   : > { %v3454_v28 = vpop.f32.mrf.mxu1  ;;  %v2042_v20 = vand.u32 %v10810_v55, %v11510_v5 }
 0x149   : > { %v3413_v21 = vpop.f32.mrf.mxu0  ;;  %v2057_v55 = vand.u32 %v10815_v53, %v11510_v5 }
 0x14a   : > { %v3456_v1 = vpop.f32.mrf.mxu1 }
 0x14b   : > { %v3493_v29 = vpop.f32.mrf.mxu0  ;;  %10984 = vmatmul.mubr.msk.bf16.vlgmr.msra.gmra.mxu0 %vm1565_vm2, %v11913_v41 }
 0x14c   : > { %v7945_v33 = vmax.f32 %v3407_v38, %v3493_v29  ;;  %v3536_v57 = vpop.f32.mrf.mxu1  ;;  %10985 = vmatmul.mubr.msk.bf16.vlgmr.msra.gmra.mxu1 %vm1565_vm2, %v11913_v41  ;;  %5624 = vmatpush1.bf16.msra.mxu0 %v2030_v27  ;;  %v16698_v29 = vld [vmem:[#allocation18_spill] sm:$0xff] }
 0x14d   : > { %v7947_v7 = vmax.f32 %v3450_v2, %v3536_v57  ;;  %v3495_v60 = vpop.f32.mrf.mxu0  ;;  %5667 = vmatpush1.bf16.msra.mxu1 %v2036_v8  ;;  %5641 = vmatprep.mubr.bf16.mxu0 %v16635_v0  ;;  %v16691_v2 = vmax.f32 %v16689_v62, %v16690_v3  ;;  %v2048_v8 = vand.u32 %v10812_v61, %v11510_v5  ;;  %v16709_v62 = vld [vmem:[#allocation13_spill] sm:$0xff] }
 0x14e   : > { %v12370_v36 = vmax.f32 %v16683_v6, %v7945_v33  ;;  %v7946_v63 = vmax.f32 %v3409_v24, %v3495_v60  ;;  %v3538_v15 = vpop.f32.mrf.mxu1  ;;  %5684 = vmatprep.mubr.bf16.mxu1 %v16635_v0  ;;  %5709 = vmatprep.subr.bf16.mxu0 %v2045_v50  ;;  %v16693_v24 = vld [vmem:[#allocation9_spill] sm:$0xff]  ;;  %v16697_v50 = vld [vmem:[#allocation10_spill] sm:$0xff]  ;;  %v16702_v60 = vld [vmem:[#allocation19_spill] sm:$0xff]  ;;  %v2063_v61 = vand.u32 %v10817_v4, %v11510_v5 }
 0x14f   : > { %v12378_v13 = vmax.f32 %v16687_v17, %v7947_v7  ;;  %v7948_v38 = vmax.f32 %v3452_v14, %v3538_v15  ;;  %v3497_v19 = vpop.f32.mrf.mxu0  ;;  %5752 = vmatprep.subr.bf16.mxu1 %v2051_v56  ;;  %v16695_v9 = vmax.f32 %v16693_v24, %v16694_v25  ;;  %v16699_v56 = vmax.f32 %v16697_v50, %v16698_v29  ;;  %v16701_v7 = vld [vmem:[#allocation11_spill] sm:$0xff]  ;;  %v490_v15 = vld [vmem:[%s11506_s17 + $0x690] sm:$0x11]  ;;  %v16710_v3 = vld [vmem:[#allocation21_spill] sm:$0xff] }
 0x150   : > { %16684 = vst [vmem:[#allocation6_spill] sm:$0xff] %v12370_v36  ;;  %v12383_v22 = vmax.f32 %v16691_v2, %v7946_v63  ;;  %v7949_v10 = vmax.f32 %v3411_v16, %v3497_v19  ;;  %v3540_v39 = vpop.f32.mrf.mxu1  ;;  %v16703_v45 = vmax.f32 %v16701_v7, %v16702_v60  ;;  %v362_v63 = vld [vmem:[%s11506_s17 + $0x290] sm:$0xff]  ;;  %v491_v19 = vld [vmem:[%s11506_s17 + $0x698] sm:$0x11]  ;;  %v16711_v4 = vmax.f32 %v16709_v62, %v16710_v3  ;;  %v12447_v60 = vld [vmem:[%s11506_s17 + $0x2a8] sm:$0xff] }
 0x151   : > { %16688 = vst [vmem:[#allocation14_spill] sm:$0xff] %v12378_v13  ;;  %v12389_v26 = vmax.f32 %v16695_v9, %v7948_v38  ;;  %v7951_v14 = vmax.f32 %v3454_v28, %v3540_v39  ;;  %v3499_v27 = vpop.f32.mrf.mxu0  ;;  %v363_v38 = vld [vmem:[%s11506_s17 + $0x298] sm:$0xff]  ;;  %v10816_v39 = vcombine.low %v361_v43, %v489_v34  ;;  %v10818_v7 = vcombine.low %v362_v63, %v490_v15  ;;  %v500_v36 = vld [vmem:[%s11506_s17 + $0x6e0] sm:$0x11] }
 0x152   : > { %16692 = vst [vmem:[#allocation7_spill] sm:$0xff] %v12383_v22  ;;  %v12395_v33 = vmax.f32 %v16699_v56, %v7949_v10  ;;  %v7950_v16 = vmax.f32 %v3413_v21, %v3499_v27  ;;  %v3542_v57 = vpop.f32.mrf.mxu1  ;;  %v16706_v21 = vld [vmem:[#allocation20_spill] sm:$0xff] }
 0x153   : > { %16696 = vst [vmem:[#allocation15_spill] sm:$0xff] %v12389_v26  ;;  %v12401_v11 = vmax.f32 %v16703_v45, %v7951_v14  ;;  %v7952_v28 = vmax.f32 %v3456_v1, %v3542_v57  ;;  %v3579_v6 = vpop.f32.mrf.mxu0  ;;  %10986 = vmatmul.mubr.msk.bf16.vlgmr.msra.gmra.mxu0 %vm1565_vm2, %v11913_v41  ;;  %v16707_v48 = vmax.f32 %v16705_v52, %v16706_v21  ;;  %v12429_v14 = vpop.permute.xlu0 %7878  ;;  %v12439_v56 = vld [vmem:[%s11506_s17 + $0x2a0] sm:$0xff]  ;;  %v12450_v45 = vld [vmem:[%s11506_s17 + $0x6a8] sm:$0x11]  ;;  %v16714_v21 = vld [vmem:[#allocation22_spill] sm:$0xff] }
 0x154   : > { %16700 = vst [vmem:[#allocation8_spill] sm:$0xff] %v12395_v33  ;;  %v3622_v53 = vpop.f32.mrf.mxu1  ;;  %10987 = vmatmul.mubr.msk.bf16.vlgmr.msra.gmra.mxu1 %vm1565_vm2, %v11913_v41  ;;  %5710 = vmatpush1.bf16.msra.mxu0 %v2042_v20  ;;  %v10814_v1 = vcombine.low %v12357_v47, %v12360_v18  ;;  %v10819_v20 = vcombine.high %v362_v63, %v490_v15  ;;  %16713 = vst [vmem:[#allocation10_spill] sm:$0xff] %v12429_v14  ;;  %v16718_v15 = vld [vmem:[#allocation23_spill] sm:$0xff] }
 0x155   : > { %16704 = vst [vmem:[#allocation16_spill] sm:$0xff] %v12401_v11  ;;  %v12411_v17 = vmax.f32 %v16707_v48, %v7950_v16  ;;  %v12422_v2 = vmax.f32 %v16711_v4, %v7952_v28  ;;  %v3581_v10 = vpop.f32.mrf.mxu0  ;;  %5753 = vmatpush1.bf16.msra.mxu1 %v2048_v8  ;;  %5727 = vmatprep.mubr.bf16.mxu0 %v16635_v0  ;;  %v12442_v16 = vld [vmem:[%s11506_s17 + $0x6a0] sm:$0x11]  ;;  %v16715_v48 = vld [vmem:[#allocation30_spill] sm:$0xff] }
 0x156   : > { %v3624_v24 = vpop.f32.mrf.mxu1  ;;  %5770 = vmatprep.mubr.bf16.mxu1 %v16635_v0  ;;  %5795 = vmatprep.subr.bf16.mxu0 %v2057_v55  ;;  %v10821_v18 = vcombine.high %v363_v38, %v491_v19  ;;  %v2054_v9 = vand.u32 %v10814_v1, %v11510_v5  ;;  %v2060_v43 = vand.u32 %v10816_v39, %v11510_v5 }
 0x157   : > { %16708 = vst [vmem:[#allocation9_spill] sm:$0xff] %v12411_v17  ;;  %16712 = vst [vmem:[#allocation17_spill] sm:$0xff] %v12422_v2  ;;  %v3583_v47 = vpop.f32.mrf.mxu0  ;;  %5838 = vmatprep.subr.bf16.mxu1 %v2063_v61  ;;  %v2069_v8 = vand.u32 %v10819_v20, %v11510_v5  ;;  %v10820_v52 = vcombine.low %v363_v38, %v491_v19  ;;  %v16716_v1 = vmax.f32 %v16714_v21, %v16715_v48  ;;  %v12459_v63 = vpop.permute.xlu0 %7873  ;;  %v16726_v21 = vld [vmem:[#allocation33_spill] sm:$0xff] }
 0x158   : > { %v12426_v25 = vpop.f32.mrf.mxu1  ;;  %v2075_v29 = vand.u32 %v10821_v18, %v11510_v5  ;;  %16717 = vst [vmem:[#allocation18_spill] sm:$0xff] %v12459_v63  ;;  %v10825_v19 = vcombine.high %v12447_v60, %v12450_v45  ;;  %v16722_v18 = vld [vmem:[#allocation32_spill] sm:$0xff] }
 0x159   : > { %v3585_v27 = vpop.f32.mrf.mxu0 }
 0x15a   : > { %v12432_v34 = vpop.f32.mrf.mxu1 }
 0x15b   : > { %v3665_v50 = vpop.f32.mrf.mxu0  ;;  %10988 = vmatmul.mubr.msk.bf16.vlgmr.msra.gmra.mxu0 %vm1565_vm2, %v11913_v41 }
 0x15c   : > { %v7985_v57 = vmax.f32 %v3579_v6, %v3665_v50  ;;  %v3708_v55 = vpop.f32.mrf.mxu1  ;;  %10989 = vmatmul.mubr.msk.bf16.vlgmr.msra.gmra.mxu1 %vm1565_vm2, %v11913_v41  ;;  %5796 = vmatpush1.bf16.msra.mxu0 %v2054_v9  ;;  %v10823_v41 = vcombine.high %v12439_v56, %v12442_v16 }
 0x15d   : > { %v7987_v28 = vmax.f32 %v3622_v53, %v3708_v55  ;;  %v3667_v61 = vpop.f32.mrf.mxu0  ;;  %5839 = vmatpush1.bf16.msra.mxu1 %v2060_v43  ;;  %5813 = vmatprep.mubr.bf16.mxu0 %v16635_v0  ;;  %v16719_v53 = vld [vmem:[#allocation31_spill] sm:$0xff] }
 0x15e   : > { %v7993_v6 = vmax.f32 %v16716_v1, %v7985_v57  ;;  %v7986_v62 = vmax.f32 %v3581_v10, %v3667_v61  ;;  %v3710_v3 = vpop.f32.mrf.mxu1  ;;  %5856 = vmatprep.mubr.bf16.mxu1 %v16635_v0  ;;  %5881 = vmatprep.subr.bf16.mxu0 %v2069_v8  ;;  %v16720_v4 = vmax.f32 %v16718_v15, %v16719_v53  ;;  %v16721_v10 = vld [vmem:[#allocation24_spill] sm:$0xff]  ;;  %v16725_v61 = vld [vmem:[#allocation25_spill] sm:$0xff]  ;;  %v16730_v53 = vld [vmem:[#allocation34_spill] sm:$0xff] }
 0x15f   : > { %v7988_v20 = vmax.f32 %v3624_v24, %v3710_v3  ;;  %v3669_v38 = vpop.f32.mrf.mxu0  ;;  %5924 = vmatprep.subr.bf16.mxu1 %v2075_v29  ;;  %v16723_v9 = vmax.f32 %v16721_v10, %v16722_v18  ;;  %v2066_v57 = vand.u32 %v10818_v7, %v11510_v5  ;;  %v2072_v29 = vand.u32 %v10820_v52, %v11510_v5  ;;  %v16734_v10 = vld [vmem:[#allocation36_spill] sm:$0xff] }
 0x160   : > { %v7995_v39 = vmax.f32 %v16720_v4, %v7987_v28  ;;  %v7989_v8 = vmax.f32 %v3583_v47, %v3669_v38  ;;  %v3712_v50 = vpop.f32.mrf.mxu1  ;;  %v12471_v55 = vadd.f32 %v7993_v6, %v12459_v63  ;;  %v16727_v28 = vmax.f32 %v16725_v61, %v16726_v21  ;;  %v16729_v6 = vld [vmem:[#allocation26_spill] sm:$0xff]  ;;  %v12527_v61 = vld [vmem:[%s11506_s17 + $0x2b8] sm:$0xff] }
 0x161   : > { %v7994_v43 = vmax.f32 %v16723_v9, %v7986_v62  ;;  %v3671_v48 = vpop.f32.mrf.mxu0  ;;  %v10822_v1 = vcombine.low %v12439_v56, %v12442_v16  ;;  %v2081_v7 = vand.u32 %v10823_v41, %v11510_v5  ;;  %v16731_v4 = vmax.f32 %v16729_v6, %v16730_v53  ;;  %v16733_v41 = vld [vmem:[#allocation28_spill] sm:$0xff]  ;;  %v12530_v21 = vld [vmem:[%s11506_s17 + $0x6b8] sm:$0x11] }
 0x162   : > { %16724 = vst [vmem:[#allocation11_spill] sm:$0xff] %v12471_v55  ;;  %v7996_v24 = vmax.f32 %v16727_v28, %v7988_v20  ;;  %v7990_v3 = vmax.f32 %v3585_v27, %v3671_v48  ;;  %v3714_v15 = vpop.f32.mrf.mxu1  ;;  %v16380_v47 = vmax.f32 %v12471_v55, 0.0  ;;  %v7991_v52 = vmax.f32 %v12426_v25, %v3712_v50  ;;  %v12493_v27 = vld [vmem:[%s16337_s1] sm:$0xff]   ;;  %v12514_v50 = vld [vmem:[%s11506_s17 + $0x2b0] sm:$0xff]  ;;  %v16737_v48 = vld [vmem:[#allocation27_spill] sm:$0xff] }
 0x163   : > { %v12481_v62 = vadd.f32 %v7994_v43, %v12459_v63  ;;  %v7997_v20 = vmax.f32 %v16731_v4, %v7989_v8  ;;  %v12488_v38 = vpop.f32.mrf.mxu0  ;;  %10990 = vmatmul.mubr.msk.bf16.vlgmr.msra.gmra.mxu0 %vm1565_vm2, %v12493_v27  ;;  %v12498_v56 = vadd.f32 %v7995_v39, %v12459_v63  ;;  %v2087_v16 = vand.u32 %v10825_v19, %v11510_v5  ;;  %v12517_v19 = vld [vmem:[%s11506_s17 + $0x6b0] sm:$0x11]  ;;  %v16741_v4 = vld [vmem:[#allocation29_spill] sm:$0xff] }
 0x164   : > { %v16735_v18 = vmax.f32 %v16733_v41, %v16734_v10  ;;  %v7992_v9 = vmax.f32 %v12432_v34, %v3714_v15  ;;  %v12505_v43 = vpop.f32.mrf.mxu1  ;;  %10991 = vmatmul.mubr.msk.bf16.vlgmr.msra.gmra.mxu1 %vm1565_vm2, %v12493_v27  ;;  %5882 = vmatpush1.bf16.msra.mxu0 %v2066_v57  ;;  %v12511_v39 = vadd.f32 %v7996_v24, %v12459_v63  ;;  %v16742_v41 = vld [vmem:[#allocation37_spill] sm:$0xff] }
 0x165   : > { %16728 = vst [vmem:[#allocation19_spill] sm:$0xff] %v12481_v62  ;;  %16732 = vst [vmem:[#allocation12_spill] sm:$0xff] %v12498_v56  ;;  %v16381_v8 = vmax.f32 %v12481_v62, 0.0  ;;  %8767 = vrot.lane.b32.xlu0 %v16380_v47, %s11404_s14  ;;  %v12522_v34 = vpop.f32.mrf.mxu0  ;;  %5925 = vmatpush1.bf16.msra.mxu1 %v2072_v29  ;;  %v10824_v57 = vcombine.low %v12447_v60, %v12450_v45  ;;  %v2078_v24 = vand.u32 %v10822_v1, %v11510_v5 }
 0x166   : > { %v7998_v25 = vmax.f32 %v16735_v18, %v7990_v3  ;;  %16736 = vst [vmem:[#allocation20_spill] sm:$0xff] %v12511_v39  ;;  %v12532_v28 = vpop.f32.mrf.mxu1  ;;  %5899 = vmatprep.mubr.bf16.mxu0 %v16635_v0  ;;  %v16738_v3 = vld [vmem:[#allocation35_spill] sm:$0xff]  ;;  %v16378_v60 = vmax.f32 %v12498_v56, 0.0  ;;  %5942 = vmatprep.mubr.bf16.mxu1 %v16635_v0  ;;  %v12547_v45 = vadd.f32 %v7997_v20, %v12429_v14  ;;  %v498_v56 = vld [vmem:[%s11506_s17 + $0x6d0] sm:$0x11] }
 0x167   : > { %8769 = vrot.lane.b32.xlu1 %v16381_v8, %s11404_s14  ;;  %v16739_v29 = vmax.f32 %v16737_v48, %v16738_v3  ;;  %v12542_v6 = vpop.f32.mrf.mxu0  ;;  %5967 = vmatprep.subr.bf16.mxu0 %v2081_v7  ;;  %v10827_v53 = vcombine.high %v12514_v50, %v12517_v19  ;;  %v16743_v1 = vmax.f32 %v16741_v4, %v16742_v41  ;;  %v12585_v41 = vld [vmem:[%s11506_s17 + $0x2c0] sm:$0xff] }
 0x168   : > { %16740 = vst [vmem:[#allocation13_spill] sm:$0xff] %v12547_v45  ;;  %v12554_v18 = vpop.f32.mrf.mxu1  ;;  %v12558_v48 = vadd.f32 %v7998_v25, %v12429_v14  ;;  %6010 = vmatprep.subr.bf16.mxu1 %v2087_v16  ;;  %v10829_v7 = vcombine.high %v12527_v61, %v12530_v21  ;;  %v16382_v16 = vmax.f32 %v12547_v45, 0.0  ;;  %v372_v45 = vld [vmem:[%s11506_s17 + $0x2e0] sm:$0xff] }
 0x169   : > { %v7999_v15 = vmax.f32 %v16739_v29, %v7991_v52  ;;  %v8000_v10 = vmax.f32 %v16743_v1, %v7992_v9  ;;  %v16379_v52 = vmax.f32 %v12511_v39, 0.0  ;;  %8771 = vrot.lane.b32.xlu0 %v16378_v60, %s11404_s14  ;;  %v12565_v20 = vpop.f32.mrf.mxu0  ;;  %v2084_v9 = vand.u32 %v10824_v57, %v11510_v5  ;;  %v12588_v1 = vld [vmem:[%s11506_s17 + $0x6c0] sm:$0x11] }
 0x16a   : > { %16744 = vst [vmem:[#allocation21_spill] sm:$0xff] %v12558_v48  ;;  %v12568_v3 = vpop.f32.mrf.mxu1  ;;  %v10826_v57 = vcombine.low %v12514_v50, %v12517_v19  ;;  %v2093_v4 = vand.u32 %v10827_v53, %v11510_v5  ;;  %v2099_v50 = vand.u32 %v10829_v7, %v11510_v5  ;;  %v369_v19 = vld [vmem:[%s11506_s17 + $0x2c8] sm:$0xff]  ;;  %v16747_v7 = vmax.f32 %v12558_v48, 0.0 }
 0x16b   : > { %8773 = vrot.lane.b32.xlu1 %v16379_v52, %s11404_s14  ;;  %v12573_v25 = vpop.f32.mrf.mxu0  ;;  %10992 = vmatmul.mubr.msk.bf16.vlgmr.msra.gmra.mxu0 %vm1565_vm2, %v12493_v27  ;;  %v12579_v29 = vadd.f32 %v7999_v15, %v12429_v14  ;;  %v12598_v47 = vadd.f32 %v8000_v10, %v12429_v14  ;;  %v497_v53 = vld [vmem:[%s11506_s17 + $0x6c8] sm:$0x11] }
 0x16c   : > { %v12592_v52 = vpop.f32.mrf.mxu1  ;;  %10993 = vmatmul.mubr.msk.bf16.vlgmr.msra.gmra.mxu1 %vm1565_vm2, %v12493_v27  ;;  %5968 = vmatpush1.bf16.msra.mxu0 %v2078_v24  ;;  %v10828_v24 = vcombine.low %v12527_v61, %v12530_v21  ;;  %v10833_v21 = vcombine.high %v369_v19, %v497_v53  ;;  %v2090_v39 = vand.u32 %v10826_v57, %v11510_v5  ;;  %v501_v48 = vld [vmem:[%s11506_s17 + $0x6e8] sm:$0x11] }
 0x16d   : > { %16745 = vst [vmem:[#allocation22_spill] sm:$0xff] %v12579_v29  ;;  %16746 = vst [vmem:[#allocation30_spill] sm:$0xff] %v12598_v47  ;;  %8775 = vrot.lane.b32.xlu0 %v16382_v16, %s11404_s14  ;;  %v12608_v60 = vpop.f32.mrf.mxu0  ;;  %6011 = vmatpush1.bf16.msra.mxu1 %v2084_v9  ;;  %v10831_v16 = vcombine.high %v12585_v41, %v12588_v1  ;;  %v16385_v61 = vmax.f32 %v12579_v29, 0.0  ;;  %v16748_v57 = vmax.f32 %v12598_v47, 0.0  ;;  %v370_v29 = vld [vmem:[%s11506_s17 + $0x2d0] sm:$0xff] }
 0x16e   : > { %v12614_v15 = vpop.f32.mrf.mxu1  ;;  %5985 = vmatprep.mubr.bf16.mxu0 %v16635_v0  ;;  %6028 = vmatprep.mubr.bf16.mxu1 %v16635_v0  ;;  %v2096_v10 = vand.u32 %v10828_v24, %v11510_v5  ;;  %v2111_v24 = vand.u32 %v10833_v21, %v11510_v5  ;;  %v10832_v55 = vcombine.low %v369_v19, %v497_v53 }
 0x16f   : > { %8777 = vrot.lane.b32.xlu1 %v16747_v7, %s11404_s14  ;;  %v12624_v8 = vpop.f32.mrf.mxu0  ;;  %6053 = vmatprep.subr.bf16.mxu0 %v2093_v4  ;;  %v10835_v11 = vcombine.high %v370_v29, %v498_v56 }
 0x170   : > { %v12630_v7 = vpop.f32.mrf.mxu1  ;;  %6096 = vmatprep.subr.bf16.mxu1 %v2099_v50  ;;  %v2105_v50 = vand.u32 %v10831_v16, %v11510_v5  ;;  %v10830_v16 = vcombine.low %v12585_v41, %v12588_v1  ;;  %v2108_v19 = vand.u32 %v10832_v55, %v11510_v5  ;;  %v10834_v55 = vcombine.low %v370_v29, %v498_v56 }
 0x171   : > { %8779 = vrot.lane.b32.xlu0 %v16385_v61, %s11404_s14  ;;  %v12639_v4 = vpop.f32.mrf.mxu0  ;;  %v499_v61 = vld [vmem:[%s11506_s17 + $0x6d8] sm:$0x11]  ;;  %v2117_v62 = vand.u32 %v10835_v11, %v11510_v5  ;;  %v373_v11 = vld [vmem:[%s11506_s17 + $0x2e8] sm:$0xff]  ;;  %v10839_v56 = vcombine.high %v372_v45, %v500_v36 }
 0x172   : > { %v12644_v13 = vpop.f32.mrf.mxu1  ;;  %v10840_v54 = vcombine.low %v373_v11, %v501_v48 }
 0x173   : > { %8781 = vrot.lane.b32.xlu1 %v16748_v57, %s11404_s14  ;;  %v12652_v9 = vpop.f32.mrf.mxu0  ;;  %10994 = vmatmul.mubr.msk.bf16.vlgmr.msra.gmra.mxu0 %vm1565_vm2, %v12493_v27  ;;  %v371_v57 = vld [vmem:[%s11506_s17 + $0x2d8] sm:$0xff] }
 0x174   : > { %v12659_v26 = vpop.f32.mrf.mxu1  ;;  %10995 = vmatmul.mubr.msk.bf16.vlgmr.msra.gmra.mxu1 %vm1565_vm2, %v12493_v27  ;;  %6054 = vmatpush1.bf16.msra.mxu0 %v2090_v39  ;;  %v10837_v41 = vcombine.high %v371_v57, %v499_v61 }
 0x175   : > { %v12667_v47 = vpop.f32.mrf.mxu0  ;;  %6097 = vmatpush1.bf16.msra.mxu1 %v2096_v10  ;;  %6071 = vmatprep.mubr.bf16.mxu0 %v16635_v0  ;;  %v2102_v10 = vand.u32 %v10830_v16, %v11510_v5  ;;  %v2114_v16 = vand.u32 %v10834_v55, %v11510_v5 }
 0x176   : > { %v12670_v21 = vpop.f32.mrf.mxu1  ;;  %6114 = vmatprep.mubr.bf16.mxu1 %v16635_v0  ;;  %6139 = vmatprep.subr.bf16.mxu0 %v2105_v50 }
 0x177   : > { %v12673_v39 = vpop.f32.mrf.mxu0  ;;  %6182 = vmatprep.subr.bf16.mxu1 %v2111_v24  ;;  %v2123_v24 = vand.u32 %v10837_v41, %v11510_v5  ;;  %v10836_v41 = vcombine.low %v371_v57, %v499_v61  ;;  %v2129_v61 = vand.u32 %v10839_v56, %v11510_v5  ;;  %v375_v56 = vld [vmem:[%s11506_s17 + $0x2f8] sm:$0xff] }
 0x178   : > { %v12675_v1 = vpop.f32.mrf.mxu1 }
 0x179   : > { %v12678_v2 = vpop.f32.mrf.mxu0  ;;  %v2120_v29 = vand.u32 %v10836_v41, %v11510_v5 }
 0x17a   : > { %v12681_v53 = vpop.f32.mrf.mxu1 }
 0x17b   : > { %v12684_v50 = vpop.f32.mrf.mxu0  ;;  %10996 = vmatmul.mubr.msk.bf16.vlgmr.msra.gmra.mxu0 %vm1565_vm2, %v12493_v27 }
 0x17c   : > { %v12693_v22 = vpop.f32.mrf.mxu1  ;;  %10997 = vmatmul.mubr.msk.bf16.vlgmr.msra.gmra.mxu1 %vm1565_vm2, %v12493_v27  ;;  %6140 = vmatpush1.bf16.msra.mxu0 %v2102_v10 }
 0x17d   : > { %v12701_v17 = vpop.f32.mrf.mxu0  ;;  %6183 = vmatpush1.bf16.msra.mxu1 %v2108_v19  ;;  %6157 = vmatprep.mubr.bf16.mxu0 %v16635_v0  ;;  %v10841_v19 = vcombine.high %v373_v11, %v501_v48  ;;  %v2132_v48 = vand.u32 %v10840_v54, %v11510_v5  ;;  %v10842_v54 = vcombine.low %v374_v44, %v502_v23 }
 0x17e   : > { %v12706_v12 = vpop.f32.mrf.mxu1  ;;  %6200 = vmatprep.mubr.bf16.mxu1 %v16635_v0  ;;  %6225 = vmatprep.subr.bf16.mxu0 %v2117_v62 }
 0x17f   : > { %v12711_v10 = vpop.f32.mrf.mxu0  ;;  %6268 = vmatprep.subr.bf16.mxu1 %v2123_v24  ;;  %v2135_v62 = vand.u32 %v10841_v19, %v11510_v5  ;;  %v10838_v24 = vcombine.low %v372_v45, %v500_v36  ;;  %v10843_v19 = vcombine.high %v374_v44, %v502_v23  ;;  %v10845_v36 = vcombine.high %v375_v56, %v503_v42 }
 0x180   : > { %v12715_v57 = vpop.f32.mrf.mxu1  ;;  %v10847_v44 = vcombine.high %v376_v59, %v504_v31 }
 0x181   : > { %v12720_v33 = vpop.f32.mrf.mxu0  ;;  %v2141_v37 = vand.u32 %v10843_v19, %v11510_v5  ;;  %v377_v19 = vld [vmem:[%s11506_s17 + $0x308] sm:$0xff] }
 0x182   : > { %v12725_v46 = vpop.f32.mrf.mxu1 }
 0x183   : > { %v12730_v55 = vpop.f32.mrf.mxu0  ;;  %10998 = vmatmul.mubr.msk.bf16.vlgmr.msra.gmra.mxu0 %vm1565_vm2, %v12493_v27 }
 0x184   : > { %16749 = vst [vmem:[#allocation23_spill] sm:$0xff] %v12730_v55  ;;  %v12737_v41 = vpop.f32.mrf.mxu1  ;;  %10999 = vmatmul.mubr.msk.bf16.vlgmr.msra.gmra.mxu1 %vm1565_vm2, %v12493_v27  ;;  %6226 = vmatpush1.bf16.msra.mxu0 %v2114_v16  ;;  %v2126_v16 = vand.u32 %v10838_v24, %v11510_v5  ;;  %v2138_v24 = vand.u32 %v10842_v54, %v11510_v5 }
 0x185   : > { %16750 = vst [vmem:[#allocation31_spill] sm:$0xff] %v12737_v41  ;;  %v12743_v40 = vpop.f32.mrf.mxu0  ;;  %6269 = vmatpush1.bf16.msra.mxu1 %v2120_v29  ;;  %6243 = vmatprep.mubr.bf16.mxu0 %v16635_v0 }
 0x186   : > { %16751 = vst [vmem:[#allocation24_spill] sm:$0xff] %v12743_v40  ;;  %v12746_v58 = vpop.f32.mrf.mxu1  ;;  %6286 = vmatprep.mubr.bf16.mxu1 %v16635_v0  ;;  %6311 = vmatprep.subr.bf16.mxu0 %v2129_v61  ;;  %v509_v40 = vld [vmem:[%s11506_s17 + $0x728] sm:$0x11] }
 0x187   : > { %16752 = vst [vmem:[#allocation32_spill] sm:$0xff] %v12746_v58  ;;  %v12749_v51 = vpop.f32.mrf.mxu0  ;;  %6354 = vmatprep.subr.bf16.mxu1 %v2135_v62  ;;  %v2147_v62 = vand.u32 %v10845_v36, %v11510_v5  ;;  %v10844_v36 = vcombine.low %v375_v56, %v503_v42  ;;  %v2153_v42 = vand.u32 %v10847_v44, %v11510_v5  ;;  %v379_v44 = vld [vmem:[%s11506_s17 + $0x318] sm:$0xff]  ;;  %v508_v58 = vld [vmem:[%s11506_s17 + $0x720] sm:$0x11] }
 0x188   : > { %16753 = vst [vmem:[#allocation25_spill] sm:$0xff] %v12749_v51  ;;  %v12751_v45 = vpop.f32.mrf.mxu1 }
 0x189   : > { %16754 = vst [vmem:[#allocation33_spill] sm:$0xff] %v12751_v45  ;;  %v12754_v29 = vpop.f32.mrf.mxu0  ;;  %v2144_v23 = vand.u32 %v10844_v36, %v11510_v5  ;;  %v506_v45 = vld [vmem:[%s11506_s17 + $0x710] sm:$0x11] }
 0x18a   : > { %16755 = vst [vmem:[#allocation26_spill] sm:$0xff] %v12754_v29  ;;  %v12757_v11 = vpop.f32.mrf.mxu1 }
 0x18b   : > { %16756 = vst [vmem:[#allocation34_spill] sm:$0xff] %v12757_v11  ;;  %v12760_v61 = vpop.f32.mrf.mxu0  ;;  %11000 = vmatmul.mubr.msk.bf16.vlgmr.msra.gmra.mxu0 %vm1565_vm2, %v12493_v27 }
 0x18c   : > { %16757 = vst [vmem:[#allocation28_spill] sm:$0xff] %v12760_v61  ;;  %v12769_v30 = vpop.f32.mrf.mxu1  ;;  %11001 = vmatmul.mubr.msk.bf16.vlgmr.msra.gmra.mxu1 %vm1565_vm2, %v12493_v27  ;;  %6312 = vmatpush1.bf16.msra.mxu0 %v2126_v16 }
 0x18d   : > { %16758 = vst [vmem:[#allocation36_spill] sm:$0xff] %v12769_v30  ;;  %v12777_v35 = vpop.f32.mrf.mxu0  ;;  %6355 = vmatpush1.bf16.msra.mxu1 %v2132_v48  ;;  %6329 = vmatprep.mubr.bf16.mxu0 %v16635_v0  ;;  %v10849_v48 = vcombine.high %v377_v19, %v505_v32 }
 0x18e   : > { %16759 = vst [vmem:[#allocation27_spill] sm:$0xff] %v12777_v35  ;;  %v12782_v14 = vpop.f32.mrf.mxu1  ;;  %6372 = vmatprep.mubr.bf16.mxu1 %v16635_v0  ;;  %6397 = vmatprep.subr.bf16.mxu0 %v2141_v37 }
 0x18f   : > { %16760 = vst [vmem:[#allocation35_spill] sm:$0xff] %v12782_v14  ;;  %v12787_v16 = vpop.f32.mrf.mxu0  ;;  %6440 = vmatprep.subr.bf16.mxu1 %v2147_v62  ;;  %v2159_v37 = vand.u32 %v10849_v48, %v11510_v5  ;;  %v10846_v62 = vcombine.low %v376_v59, %v504_v31  ;;  %v380_v14 = vld [vmem:[%s11506_s17 + $0x320] sm:$0xff] }
 0x190   : > { %16761 = vst [vmem:[#allocation29_spill] sm:$0xff] %v12787_v16  ;;  %v12791_v56 = vpop.f32.mrf.mxu1  ;;  %v10848_v16 = vcombine.low %v377_v19, %v505_v32 }
 0x191   : > { %16762 = vst [vmem:[#allocation37_spill] sm:$0xff] %v12791_v56  ;;  %v12796_v49 = vpop.f32.mrf.mxu0  ;;  %v378_v56 = vld [vmem:[%s11506_s17 + $0x310] sm:$0xff] }
 0x192   : > { %16763 = vst [vmem:[#allocation54_spill] sm:$0xff] %v12796_v49  ;;  %v12801_v63 = vpop.f32.mrf.mxu1  ;;  %v507_v49 = vld [vmem:[%s11506_s17 + $0x718] sm:$0x11]  ;;  %v10851_v48 = vcombine.high %v378_v56, %v506_v45  ;;  %v2156_v32 = vand.u32 %v10848_v16, %v11510_v5  ;;  %v10850_v16 = vcombine.low %v378_v56, %v506_v45  ;;  %v10855_v45 = vcombine.high %v380_v14, %v508_v58 }
 0x193   : > { %16764 = vst [vmem:[#allocation55_spill] sm:$0xff] %v12801_v63  ;;  %v12806_v54 = vpop.f32.mrf.mxu0  ;;  %11002 = vmatmul.mubr.msk.bf16.vlgmr.msra.gmra.mxu0 %vm1565_vm2, %v12493_v27  ;;  %v10853_v59 = vcombine.high %v379_v44, %v507_v49 }
 0x194   : > { %16765 = vst [vmem:[#allocation56_spill] sm:$0xff] %v12806_v54  ;;  %v12813_v36 = vpop.f32.mrf.mxu1  ;;  %11003 = vmatmul.mubr.msk.bf16.vlgmr.msra.gmra.mxu1 %vm1565_vm2, %v12493_v27  ;;  %6398 = vmatpush1.bf16.msra.mxu0 %v2138_v24  ;;  %v2150_v24 = vand.u32 %v10846_v62, %v11510_v5  ;;  %v2165_v51 = vand.u32 %v10851_v48, %v11510_v5  ;;  %v381_v48 = vld [vmem:[%s11506_s17 + $0x328] sm:$0xff] }
 0x195   : > { %16766 = vst [vmem:[#allocation57_spill] sm:$0xff] %v12813_v36  ;;  %v12819_v29 = vpop.f32.mrf.mxu0  ;;  %6441 = vmatpush1.bf16.msra.mxu1 %v2144_v23  ;;  %6415 = vmatprep.mubr.bf16.mxu0 %v16635_v0  ;;  %v2162_v62 = vand.u32 %v10850_v16, %v11510_v5  ;;  %v513_v36 = vld [vmem:[%s11506_s17 + $0x748] sm:$0x11] }
 0x196   : > { %16767 = vst [vmem:[#allocation58_spill] sm:$0xff] %v12819_v29  ;;  %v12822_v63 = vpop.f32.mrf.mxu1  ;;  %6458 = vmatprep.mubr.bf16.mxu1 %v16635_v0  ;;  %6483 = vmatprep.subr.bf16.mxu0 %v2153_v42 }
 0x197   : > { %16768 = vst [vmem:[#allocation59_spill] sm:$0xff] %v12822_v63  ;;  %v12825_v11 = vpop.f32.mrf.mxu0  ;;  %6526 = vmatprep.subr.bf16.mxu1 %v2159_v37  ;;  %v2171_v37 = vand.u32 %v10853_v59, %v11510_v5  ;;  %v10852_v59 = vcombine.low %v379_v44, %v507_v49  ;;  %v2177_v49 = vand.u32 %v10855_v45, %v11510_v5 }
 0x198   : > { %16769 = vst [vmem:[#allocation60_spill] sm:$0xff] %v12825_v11  ;;  %v12827_v31 = vpop.f32.mrf.mxu1  ;;  %v382_v11 = vld [vmem:[%s11506_s17 + $0x330] sm:$0xff] }
 0x199   : > { %16770 = vst [vmem:[#allocation61_spill] sm:$0xff] %v12827_v31  ;;  %v12830_v23 = vpop.f32.mrf.mxu0  ;;  %v2168_v56 = vand.u32 %v10852_v59, %v11510_v5  ;;  %v10854_v59 = vcombine.low %v380_v14, %v508_v58 }
 0x19a   : > { %16771 = vst [vmem:[#allocation62_spill] sm:$0xff] %v12830_v23  ;;  %v12833_v19 = vpop.f32.mrf.mxu1 }
 0x19b   : > { %16772 = vst [vmem:[#allocation63_spill] sm:$0xff] %v12833_v19  ;;  %v12836_v42 = vpop.f32.mrf.mxu0  ;;  %11004 = vmatmul.mubr.msk.bf16.vlgmr.msra.gmra.mxu0 %vm1565_vm2, %v12493_v27  ;;  %v2174_v58 = vand.u32 %v10854_v59, %v11510_v5  ;;  %v385_v59 = vld [vmem:[%s11506_s17 + $0x348] sm:$0xff] }
 0x19c   : > { %16773 = vst [vmem:[#allocation64_spill] sm:$0xff] %v12836_v42  ;;  %v12845_v35 = vpop.f32.mrf.mxu1  ;;  %11005 = vmatmul.mubr.msk.bf16.vlgmr.msra.gmra.mxu1 %vm1565_vm2, %v12493_v27  ;;  %6484 = vmatpush1.bf16.msra.mxu0 %v2150_v24 }
 0x19d   : > { %16774 = vst [vmem:[#allocation65_spill] sm:$0xff] %v12845_v35  ;;  %v12853_v41 = vpop.f32.mrf.mxu0  ;;  %6527 = vmatpush1.bf16.msra.mxu1 %v2156_v32  ;;  %6501 = vmatprep.mubr.bf16.mxu0 %v16635_v0  ;;  %v10857_v32 = vcombine.high %v381_v48, %v509_v40 }
 0x19e   : > { %16775 = vst [vmem:[#allocation66_spill] sm:$0xff] %v12853_v41  ;;  %v12858_v42 = vpop.f32.mrf.mxu1  ;;  %6544 = vmatprep.mubr.bf16.mxu1 %v16635_v0  ;;  %6569 = vmatprep.subr.bf16.mxu0 %v2165_v51  ;;  %v12900_v41 = vld [vmem:[%s11506_s17 + $0x340] sm:$0xff] }
 0x19f   : > { %16776 = vst [vmem:[#allocation67_spill] sm:$0xff] %v12858_v42  ;;  %v12863_v24 = vpop.f32.mrf.mxu0  ;;  %6612 = vmatprep.subr.bf16.mxu1 %v2171_v37  ;;  %v2183_v51 = vand.u32 %v10857_v32, %v11510_v5  ;;  %v383_v37 = vld [vmem:[%s11506_s17 + $0x338] sm:$0xff] }
 0x1a0   : > { %16777 = vst [vmem:[#allocation68_spill] sm:$0xff] %v12863_v24  ;;  %v12867_v44 = vpop.f32.mrf.mxu1  ;;  %v10856_v24 = vcombine.low %v381_v48, %v509_v40 }
 0x1a1   : > { %16778 = vst [vmem:[#allocation69_spill] sm:$0xff] %v12867_v44  ;;  %v12872_v30 = vpop.f32.mrf.mxu0  ;;  %v510_v44 = vld [vmem:[%s11506_s17 + $0x730] sm:$0x11] }
 0x1a2   : > { %16779 = vst [vmem:[#allocation70_spill] sm:$0xff] %v12872_v30  ;;  %v12877_v42 = vpop.f32.mrf.mxu1  ;;  %v511_v30 = vld [vmem:[%s11506_s17 + $0x738] sm:$0x11]  ;;  %v10859_v32 = vcombine.high %v382_v11, %v510_v44 }
 0x1a3   : > { %16780 = vst [vmem:[#allocation71_spill] sm:$0xff] %v12877_v42  ;;  %v4439_v16 = vpop.f32.mrf.mxu0  ;;  %11006 = vmatmul.mubr.msk.bf16.vlgmr.msra.gmra.mxu0 %vm1565_vm2, %v12493_v27  ;;  %v10861_v23 = vcombine.high %v383_v37, %v511_v30  ;;  %v10860_v61 = vcombine.low %v383_v37, %v511_v30  ;;  %v10865_v37 = vcombine.high %v385_v59, %v513_v36 }
 0x1a4   : > { %v4482_v31 = vpop.f32.mrf.mxu1  ;;  %11007 = vmatmul.mubr.msk.bf16.vlgmr.msra.gmra.mxu1 %vm1565_vm2, %v12493_v27  ;;  %6570 = vmatpush1.bf16.msra.mxu0 %v2162_v62  ;;  %v2180_v62 = vand.u32 %v10856_v24, %v11510_v5  ;;  %v2189_v40 = vand.u32 %v10859_v32, %v11510_v5  ;;  %v10858_v24 = vcombine.low %v382_v11, %v510_v44 }
 0x1a5   : > { %v4441_v45 = vpop.f32.mrf.mxu0  ;;  %6613 = vmatpush1.bf16.msra.mxu1 %v2168_v56  ;;  %6587 = vmatprep.mubr.bf16.mxu0 %v16635_v0 }
 0x1a6   : > { %v4484_v42 = vpop.f32.mrf.mxu1  ;;  %6630 = vmatprep.mubr.bf16.mxu1 %v16635_v0  ;;  %6655 = vmatprep.subr.bf16.mxu0 %v2177_v49  ;;  %v2195_v49 = vand.u32 %v10861_v23, %v11510_v5  ;;  %v16781_v23 = vmax.f32 %v12488_v38, %v12573_v25  ;;  %v16783_v38 = vmax.f32 %v12522_v34, %v12608_v60 }
 0x1a7   : > { %v4443_v19 = vpop.f32.mrf.mxu0  ;;  %6698 = vmatprep.subr.bf16.mxu1 %v2183_v51  ;;  %v12903_v51 = vld [vmem:[%s11506_s17 + $0x740] sm:$0x11]  ;;  %v16785_v34 = vmax.f32 %v12542_v6, %v12624_v8  ;;  %v2207_v8 = vand.u32 %v10865_v37, %v11510_v5  ;;  %v386_v6 = vld [vmem:[%s11506_s17 + $0x350] sm:$0xff] }
 0x1a8   : > { %v4486_v63 = vpop.f32.mrf.mxu1  ;;  %v10863_v11 = vcombine.high %v12900_v41, %v12903_v51 }
 0x1a9   : > { %v4445_v14 = vpop.f32.mrf.mxu0 }
 0x1aa   : > { %v4488_v56 = vpop.f32.mrf.mxu1 }
 0x1ab   : > { %v4525_v48 = vpop.f32.mrf.mxu0  ;;  %11008 = vmatmul.mubr.msk.bf16.vlgmr.msra.gmra.mxu0 %vm1565_vm2, %v12493_v27 }
 0x1ac   : > { %v8025_v29 = vmax.f32 %v4439_v16, %v4525_v48  ;;  %v4568_v35 = vpop.f32.mrf.mxu1  ;;  %11009 = vmatmul.mubr.msk.bf16.vlgmr.msra.gmra.mxu1 %vm1565_vm2, %v12493_v27  ;;  %6656 = vmatpush1.bf16.msra.mxu0 %v2174_v58 }
 0x1ad   : > { %v8027_v32 = vmax.f32 %v4482_v31, %v4568_v35  ;;  %v4527_v54 = vpop.f32.mrf.mxu0  ;;  %6699 = vmatpush1.bf16.msra.mxu1 %v2180_v62  ;;  %6673 = vmatprep.mubr.bf16.mxu0 %v16635_v0  ;;  %v16782_v35 = vmax.f32 %v12505_v43, %v12592_v52  ;;  %v16784_v43 = vmax.f32 %v12532_v28, %v12614_v15 }
 0x1ae   : > { %v12913_v55 = vmax.f32 %v16781_v23, %v8025_v29  ;;  %v8026_v16 = vmax.f32 %v4441_v45, %v4527_v54  ;;  %v4570_v48 = vpop.f32.mrf.mxu1  ;;  %6716 = vmatprep.mubr.bf16.mxu1 %v16635_v0  ;;  %6741 = vmatprep.subr.bf16.mxu0 %v2189_v40  ;;  %v2186_v45 = vand.u32 %v10858_v24, %v11510_v5 }
 0x1af   : > { %v12921_v31 = vmax.f32 %v16782_v35, %v8027_v32  ;;  %v8028_v44 = vmax.f32 %v4484_v42, %v4570_v48  ;;  %v4529_v30 = vpop.f32.mrf.mxu0  ;;  %6784 = vmatprep.subr.bf16.mxu1 %v2195_v49  ;;  %v2192_v62 = vand.u32 %v10860_v61, %v11510_v5  ;;  %v2201_v49 = vand.u32 %v10863_v11, %v11510_v5  ;;  %v514_v61 = vld [vmem:[%s11506_s17 + $0x750] sm:$0x11] }
 0x1b0   : > { %v12926_v25 = vmax.f32 %v16783_v38, %v8026_v16  ;;  %v8029_v29 = vmax.f32 %v4443_v19, %v4529_v30  ;;  %v4572_v54 = vpop.f32.mrf.mxu1  ;;  %v16786_v28 = vmax.f32 %v12554_v18, %v12630_v7  ;;  %v10862_v18 = vcombine.low %v12900_v41, %v12903_v51  ;;  %v387_v7 = vld [vmem:[%s11506_s17 + $0x358] sm:$0xff] }
 0x1b1   : > { %v12932_v52 = vmax.f32 %v16784_v43, %v8028_v44  ;;  %v8031_v42 = vmax.f32 %v4486_v63, %v4572_v54  ;;  %v4531_v58 = vpop.f32.mrf.mxu0  ;;  %v16788_v16 = vmax.f32 %v12568_v3, %v12644_v13  ;;  %v10867_v35 = vcombine.high %v386_v6, %v514_v61  ;;  %v12979_v54 = vld [vmem:[%s11506_s17 + $0x760] sm:$0x11] }
 0x1b2   : > { %v12938_v60 = vmax.f32 %v16785_v34, %v8029_v29  ;;  %v8030_v19 = vmax.f32 %v4445_v14, %v4531_v58  ;;  %v4574_v40 = vpop.f32.mrf.mxu1  ;;  %v16787_v14 = vmax.f32 %v12565_v20, %v12639_v4  ;;  %v10864_v20 = vcombine.low %v385_v59, %v513_v36  ;;  %v12976_v29 = vld [vmem:[%s11506_s17 + $0x360] sm:$0xff]  ;;  %v389_v58 = vld [vmem:[%s11506_s17 + $0x368] sm:$0xff] }
 0x1b3   : > { %v12944_v15 = vmax.f32 %v16786_v28, %v8031_v42  ;;  %v8032_v63 = vmax.f32 %v4488_v56, %v4574_v40  ;;  %v4611_v24 = vpop.f32.mrf.mxu0  ;;  %11010 = vmatmul.mubr.msk.bf16.vlgmr.msra.gmra.mxu0 %vm1565_vm2, %v12493_v27  ;;  %v515_v56 = vld [vmem:[%s11506_s17 + $0x758] sm:$0x11]  ;;  %v2198_v13 = vand.u32 %v10862_v18, %v11510_v5  ;;  %v2213_v36 = vand.u32 %v10867_v35, %v11510_v5 }
 0x1b4   : > { %v12954_v32 = vmax.f32 %v16787_v14, %v8030_v19  ;;  %v4654_v23 = vpop.f32.mrf.mxu1  ;;  %11011 = vmatmul.mubr.msk.bf16.vlgmr.msra.gmra.mxu1 %vm1565_vm2, %v12493_v27  ;;  %6742 = vmatpush1.bf16.msra.mxu0 %v2186_v45  ;;  %v10869_v51 = vcombine.high %v387_v7, %v515_v56  ;;  %v2204_v30 = vand.u32 %v10864_v20, %v11510_v5 }
 0x1b5   : > { %v12965_v48 = vmax.f32 %v16788_v16, %v8032_v63  ;;  %v4613_v11 = vpop.f32.mrf.mxu0  ;;  %6785 = vmatpush1.bf16.msra.mxu1 %v2192_v62  ;;  %6759 = vmatprep.mubr.bf16.mxu0 %v16635_v0  ;;  %v10866_v42 = vcombine.low %v386_v6, %v514_v61  ;;  %v517_v62 = vld [vmem:[%s11506_s17 + $0x768] sm:$0x11]  ;;  %v10868_v40 = vcombine.low %v387_v7, %v515_v56 }
 0x1b6   : > { %v4656_v4 = vpop.f32.mrf.mxu1  ;;  %6802 = vmatprep.mubr.bf16.mxu1 %v16635_v0  ;;  %6827 = vmatprep.subr.bf16.mxu0 %v2201_v49  ;;  %v2219_v38 = vand.u32 %v10869_v51, %v11510_v5  ;;  %v16789_v49 = vmax.f32 %v12652_v9, %v12684_v50  ;;  %v16791_v6 = vmax.f32 %v12659_v26, %v12693_v22 }
 0x1b7   : > { %v4615_v41 = vpop.f32.mrf.mxu0  ;;  %6870 = vmatprep.subr.bf16.mxu1 %v2207_v8  ;;  %v10871_v8 = vcombine.high %v12976_v29, %v12979_v54  ;;  %v10873_v18 = vcombine.high %v389_v58, %v517_v62  ;;  %v16793_v9 = vmax.f32 %v12667_v47, %v12701_v17  ;;  %v2210_v16 = vand.u32 %v10866_v42, %v11510_v5 }
 0x1b8   : > { %v4658_v44 = vpop.f32.mrf.mxu1  ;;  %v16795_v22 = vmax.f32 %v12670_v21, %v12706_v12  ;;  %v16797_v17 = vmax.f32 %v12673_v39, %v12711_v10  ;;  %v16799_v12 = vmax.f32 %v12675_v1, %v12715_v57  ;;  %v390_v10 = vld [vmem:[%s11506_s17 + $0x370] sm:$0xff]  ;;  %v10870_v1 = vcombine.low %v12976_v29, %v12979_v54  ;;  %v391_v57 = vld [vmem:[%s11506_s17 + $0x378] sm:$0xff] }
 0x1b9   : > { %v4617_v3 = vpop.f32.mrf.mxu0  ;;  %v2225_v51 = vand.u32 %v10871_v8, %v11510_v5  ;;  %v2231_v39 = vand.u32 %v10873_v18, %v11510_v5  ;;  %v521_v18 = vld [vmem:[%s11506_s17 + $0x788] sm:$0x11] }
 0x1ba   : > { %v4660_v37 = vpop.f32.mrf.mxu1 }
 0x1bb   : > { %v4697_v59 = vpop.f32.mrf.mxu0  ;;  %11012 = vmatmul.mubr.msk.bf16.vlgmr.msra.gmra.mxu0 %vm1565_vm2, %v12493_v27 }
 0x1bc   : > { %v8065_v45 = vmax.f32 %v4611_v24, %v4697_v59  ;;  %v4740_v43 = vpop.f32.mrf.mxu1  ;;  %11013 = vmatmul.mubr.msk.bf16.vlgmr.msra.gmra.mxu1 %vm1565_vm2, %v12493_v27  ;;  %6828 = vmatpush1.bf16.msra.mxu0 %v2198_v13 }
 0x1bd   : > { %v8067_v34 = vmax.f32 %v4654_v23, %v4740_v43  ;;  %v4699_v19 = vpop.f32.mrf.mxu0  ;;  %6871 = vmatpush1.bf16.msra.mxu1 %v2204_v30  ;;  %6845 = vmatprep.mubr.bf16.mxu0 %v16635_v0  ;;  %v518_v30 = vld [vmem:[%s11506_s17 + $0x770] sm:$0x11] }
 0x1be   : > { %v12989_v28 = vmax.f32 %v16789_v49, %v8065_v45  ;;  %v8066_v63 = vmax.f32 %v4613_v11, %v4699_v19  ;;  %v4742_v24 = vpop.f32.mrf.mxu1  ;;  %6888 = vmatprep.mubr.bf16.mxu1 %v16635_v0  ;;  %6913 = vmatprep.subr.bf16.mxu0 %v2213_v36  ;;  %v10875_v42 = vcombine.high %v390_v10, %v518_v30 }
 0x1bf   : > { %v12997_v61 = vmax.f32 %v16791_v6, %v8067_v34  ;;  %v8068_v14 = vmax.f32 %v4656_v4, %v4742_v24  ;;  %v4701_v23 = vpop.f32.mrf.mxu0  ;;  %6956 = vmatprep.subr.bf16.mxu1 %v2219_v38  ;;  %v2216_v4 = vand.u32 %v10868_v40, %v11510_v5  ;;  %v16803_v38 = vmax.f32 %v12681_v53, %v12725_v46  ;;  %v13055_v24 = vld [vmem:[%s11506_s17 + $0x780] sm:$0x11] }
 0x1c0   : > { %16790 = vst [vmem:[#allocation72_spill] sm:$0xff] %v12989_v28  ;;  %v13002_v50 = vmax.f32 %v16793_v9, %v8066_v63  ;;  %v8069_v7 = vmax.f32 %v4615_v41, %v4701_v23  ;;  %v4744_v56 = vpop.f32.mrf.mxu1  ;;  %v2222_v46 = vand.u32 %v10870_v1, %v11510_v5  ;;  %v13052_v63 = vld [vmem:[%s11506_s17 + $0x380] sm:$0xff]  ;;  %v393_v23 = vld [vmem:[%s11506_s17 + $0x388] sm:$0xff]  ;;  %v534_v28 = vld [vmem:[%s11506_s17 + $0x7f0] sm:$0x11] }
 0x1c1   : > { %16792 = vst [vmem:[#allocation73_spill] sm:$0xff] %v12997_v61  ;;  %v13008_v26 = vmax.f32 %v16795_v22, %v8068_v14  ;;  %v8071_v11 = vmax.f32 %v4658_v44, %v4744_v56  ;;  %v4703_v20 = vpop.f32.mrf.mxu0  ;;  %v10874_v14 = vcombine.low %v390_v10, %v518_v30  ;;  %v16806_v22 = vld [vmem:[#allocation28_spill] sm:$0xff]  ;;  %v10881_v10 = vcombine.high %v393_v23, %v521_v18 }
 0x1c2   : > { %16794 = vst [vmem:[#allocation74_spill] sm:$0xff] %v13002_v50  ;;  %v13014_v47 = vmax.f32 %v16797_v17, %v8069_v7  ;;  %v8070_v35 = vmax.f32 %v4617_v3, %v4703_v20  ;;  %v4746_v41 = vpop.f32.mrf.mxu1  ;;  %v16801_v3 = vmax.f32 %v12678_v2, %v12720_v33  ;;  %v10872_v33 = vcombine.low %v389_v58, %v517_v62  ;;  %v16813_v30 = vld [vmem:[#allocation24_spill] sm:$0xff]  ;;  %v535_v50 = vld [vmem:[%s11506_s17 + $0x7f8] sm:$0x11] }
 0x1c3   : > { %16796 = vst [vmem:[#allocation75_spill] sm:$0xff] %v13008_v26  ;;  %v13020_v21 = vmax.f32 %v16799_v12, %v8071_v11  ;;  %v8072_v44 = vmax.f32 %v4660_v37, %v4746_v41  ;;  %v4783_v13 = vpop.f32.mrf.mxu0  ;;  %11014 = vmatmul.mubr.msk.bf16.vlgmr.msra.gmra.mxu0 %vm1565_vm2, %v12493_v27  ;;  %v519_v37 = vld [vmem:[%s11506_s17 + $0x778] sm:$0x11]  ;;  %v2237_v58 = vand.u32 %v10875_v42, %v11510_v5 }
 0x1c4   : > { %16798 = vst [vmem:[#allocation76_spill] sm:$0xff] %v13014_v47  ;;  %v13030_v36 = vmax.f32 %v16801_v3, %v8070_v35  ;;  %v4826_v59 = vpop.f32.mrf.mxu1  ;;  %11015 = vmatmul.mubr.msk.bf16.vlgmr.msra.gmra.mxu1 %vm1565_vm2, %v12493_v27  ;;  %6914 = vmatpush1.bf16.msra.mxu0 %v2210_v16  ;;  %v10877_v54 = vcombine.high %v391_v57, %v519_v37  ;;  %v16805_v16 = vld [vmem:[#allocation23_spill] sm:$0xff] }
 0x1c5   : > { %16800 = vst [vmem:[#allocation77_spill] sm:$0xff] %v13020_v21  ;;  %v13041_v45 = vmax.f32 %v16803_v38, %v8072_v44  ;;  %v4785_v43 = vpop.f32.mrf.mxu0  ;;  %6957 = vmatpush1.bf16.msra.mxu1 %v2216_v4  ;;  %6931 = vmatprep.mubr.bf16.mxu0 %v16635_v0  ;;  %v2228_v19 = vand.u32 %v10872_v33, %v11510_v5  ;;  %v16809_v41 = vld [vmem:[#allocation31_spill] sm:$0xff] }
 0x1c6   : > { %16802 = vst [vmem:[#allocation78_spill] sm:$0xff] %v13030_v36  ;;  %v4828_v2 = vpop.f32.mrf.mxu1  ;;  %6974 = vmatprep.mubr.bf16.mxu1 %v16635_v0  ;;  %6999 = vmatprep.subr.bf16.mxu0 %v2225_v51  ;;  %v2243_v49 = vand.u32 %v10877_v54, %v11510_v5  ;;  %v10876_v56 = vcombine.low %v391_v57, %v519_v37  ;;  %v16810_v51 = vld [vmem:[#allocation36_spill] sm:$0xff]  ;;  %v16814_v3 = vld [vmem:[#allocation27_spill] sm:$0xff] }
 0x1c7   : > { %16804 = vst [vmem:[#allocation79_spill] sm:$0xff] %v13041_v45  ;;  %v4787_v29 = vpop.f32.mrf.mxu0  ;;  %7042 = vmatprep.subr.bf16.mxu1 %v2231_v39  ;;  %v16807_v11 = vmax.f32 %v16805_v16, %v16806_v22  ;;  %v10879_v35 = vcombine.high %v13052_v63, %v13055_v24  ;;  %v16811_v12 = vmax.f32 %v16809_v41, %v16810_v51  ;;  %v16818_v33 = vld [vmem:[#allocation35_spill] sm:$0xff]  ;;  %v16829_v41 = vld [vmem:[#allocation26_spill] sm:$0xff] }
 0x1c8   : > { %v4830_v34 = vpop.f32.mrf.mxu1  ;;  %v2234_v38 = vand.u32 %v10874_v14, %v11510_v5  ;;  %v406_v45 = vld [vmem:[%s11506_s17 + $0x3f0] sm:$0xff] }
 0x1c9   : > { %v4789_v53 = vpop.f32.mrf.mxu0  ;;  %v2249_v14 = vand.u32 %v10879_v35, %v11510_v5 }
 0x1ca   : > { %v4832_v40 = vpop.f32.mrf.mxu1 }
 0x1cb   : > { %v4869_v62 = vpop.f32.mrf.mxu0  ;;  %11016 = vmatmul.mubr.msk.bf16.vlgmr.msra.gmra.mxu0 %vm1565_vm2, %v12493_v27 }
 0x1cc   : > { %v8105_v8 = vmax.f32 %v4783_v13, %v4869_v62  ;;  %v4912_v6 = vpop.f32.mrf.mxu1  ;;  %11017 = vmatmul.mubr.msk.bf16.vlgmr.msra.gmra.mxu1 %vm1565_vm2, %v12493_v27  ;;  %7000 = vmatpush1.bf16.msra.mxu0 %v2222_v46  ;;  %v16822_v62 = vld [vmem:[#allocation29_spill] sm:$0xff] }
 0x1cd   : > { %v8107_v9 = vmax.f32 %v4826_v59, %v4912_v6  ;;  %v4871_v7 = vpop.f32.mrf.mxu0  ;;  %7043 = vmatpush1.bf16.msra.mxu1 %v2228_v19  ;;  %7017 = vmatprep.mubr.bf16.mxu0 %v16635_v0  ;;  %v16815_v59 = vmax.f32 %v16813_v30, %v16814_v3  ;;  %v2240_v19 = vand.u32 %v10876_v56, %v11510_v5  ;;  %v16833_v30 = vld [vmem:[#allocation34_spill] sm:$0xff]  ;;  %v16834_v3 = vld [vmem:[#allocation55_spill] sm:$0xff] }
 0x1ce   : > { %v13065_v20 = vmax.f32 %v16807_v11, %v8105_v8  ;;  %v8106_v4 = vmax.f32 %v4785_v43, %v4871_v7  ;;  %v4914_v17 = vpop.f32.mrf.mxu1  ;;  %7060 = vmatprep.mubr.bf16.mxu1 %v16635_v0  ;;  %7085 = vmatprep.subr.bf16.mxu0 %v2237_v58  ;;  %v16817_v43 = vld [vmem:[#allocation32_spill] sm:$0xff]  ;;  %v16821_v58 = vld [vmem:[#allocation25_spill] sm:$0xff]  ;;  %v2255_v56 = vand.u32 %v10881_v10, %v11510_v5 }
 0x1cf   : > { %v13073_v44 = vmax.f32 %v16811_v12, %v8107_v9  ;;  %v8108_v13 = vmax.f32 %v4828_v2, %v4914_v17  ;;  %v4873_v39 = vpop.f32.mrf.mxu0  ;;  %7128 = vmatprep.subr.bf16.mxu1 %v2243_v49  ;;  %v16819_v42 = vmax.f32 %v16817_v43, %v16818_v33  ;;  %v16823_v49 = vmax.f32 %v16821_v58, %v16822_v62  ;;  %v16825_v9 = vld [vmem:[#allocation33_spill] sm:$0xff]  ;;  %v522_v17 = vld [vmem:[%s11506_s17 + $0x790] sm:$0x11]  ;;  %v13137_v62 = vld [vmem:[%s11506_s17 + $0x3a0] sm:$0xff] }
 0x1d0   : > { %16808 = vst [vmem:[#allocation23_spill] sm:$0xff] %v13065_v20  ;;  %v13078_v1 = vmax.f32 %v16815_v59, %v8106_v4  ;;  %v8109_v57 = vmax.f32 %v4787_v29, %v4873_v39  ;;  %v4916_v37 = vpop.f32.mrf.mxu1  ;;  %v16826_v7 = vld [vmem:[#allocation37_spill] sm:$0xff]  ;;  %v394_v4 = vld [vmem:[%s11506_s17 + $0x390] sm:$0xff]  ;;  %v523_v39 = vld [vmem:[%s11506_s17 + $0x798] sm:$0x11]  ;;  %v16835_v10 = vmax.f32 %v16833_v30, %v16834_v3 }
 0x1d1   : > { %16812 = vst [vmem:[#allocation28_spill] sm:$0xff] %v13073_v44  ;;  %v13084_v54 = vmax.f32 %v16819_v42, %v8108_v13  ;;  %v8111_v2 = vmax.f32 %v4830_v34, %v4916_v37  ;;  %v4875_v46 = vpop.f32.mrf.mxu0  ;;  %v16827_v16 = vmax.f32 %v16825_v9, %v16826_v7  ;;  %v395_v13 = vld [vmem:[%s11506_s17 + $0x398] sm:$0xff]  ;;  %v10880_v37 = vcombine.low %v393_v23, %v521_v18  ;;  %v13143_v9 = vld [vmem:[%s11506_s17 + $0x3a8] sm:$0xff] }
 0x1d2   : > { %16816 = vst [vmem:[#allocation31_spill] sm:$0xff] %v13078_v1  ;;  %v13090_v8 = vmax.f32 %v16823_v49, %v8109_v57  ;;  %v8110_v29 = vmax.f32 %v4789_v53, %v4875_v46  ;;  %v4918_v6 = vpop.f32.mrf.mxu1  ;;  %v16830_v53 = vld [vmem:[#allocation54_spill] sm:$0xff]  ;;  %v13146_v7 = vld [vmem:[%s11506_s17 + $0x7a8] sm:$0x11] }
 0x1d3   : > { %16820 = vst [vmem:[#allocation36_spill] sm:$0xff] %v13084_v54  ;;  %v13096_v22 = vmax.f32 %v16827_v16, %v8111_v2  ;;  %v8112_v34 = vmax.f32 %v4832_v40, %v4918_v6  ;;  %v4955_v11 = vpop.f32.mrf.mxu0  ;;  %11018 = vmatmul.mubr.msk.bf16.vlgmr.msra.gmra.mxu0 %vm1565_vm2, %v12493_v27  ;;  %v16831_v51 = vmax.f32 %v16829_v41, %v16830_v53  ;;  %v16837_v41 = vld [vmem:[#allocation56_spill] sm:$0xff]  ;;  %v533_v1 = vld [vmem:[%s11506_s17 + $0x7e8] sm:$0x11] }
 0x1d4   : > { %16824 = vst [vmem:[#allocation24_spill] sm:$0xff] %v13090_v8  ;;  %v4998_v35 = vpop.f32.mrf.mxu1  ;;  %11019 = vmatmul.mubr.msk.bf16.vlgmr.msra.gmra.mxu1 %vm1565_vm2, %v12493_v27  ;;  %7086 = vmatpush1.bf16.msra.mxu0 %v2234_v38  ;;  %v10878_v40 = vcombine.low %v13052_v63, %v13055_v24  ;;  %v10883_v27 = vcombine.high %v394_v4, %v522_v17  ;;  %v16838_v53 = vld [vmem:[#allocation64_spill] sm:$0xff] }
 0x1d5   : > { %16828 = vst [vmem:[#allocation27_spill] sm:$0xff] %v13096_v22  ;;  %v13106_v12 = vmax.f32 %v16831_v51, %v8110_v29  ;;  %v13117_v59 = vmax.f32 %v16835_v10, %v8112_v34  ;;  %v4957_v57 = vpop.f32.mrf.mxu0  ;;  %7129 = vmatpush1.bf16.msra.mxu1 %v2240_v19  ;;  %7146 = vmatprep.mubr.bf16.mxu1 %v16635_v0  ;;  %v13131_v19 = vld [vmem:[%s16337_s1] sm:$0xff]  }
 0x1d6   : > { %v5000_v43 = vpop.f32.mrf.mxu1  ;;  %7103 = vmatprep.mubr.bf16.mxu0 %v16635_v0  ;;  %7171 = vmatprep.subr.bf16.mxu0 %v2249_v14  ;;  %v10885_v63 = vcombine.high %v395_v13, %v523_v39  ;;  %v2246_v33 = vand.u32 %v10878_v40, %v11510_v5  ;;  %v2252_v2 = vand.u32 %v10880_v37, %v11510_v5  ;;  %v524_v14 = vld [vmem:[%s11506_s17 + $0x7a0] sm:$0x11] }
 0x1d7   : > { %16832 = vst [vmem:[#allocation32_spill] sm:$0xff] %v13106_v12  ;;  %16836 = vst [vmem:[#allocation35_spill] sm:$0xff] %v13117_v59  ;;  %v4959_v38 = vpop.f32.mrf.mxu0  ;;  %7214 = vmatprep.subr.bf16.mxu1 %v2255_v56  ;;  %v2261_v18 = vand.u32 %v10883_v27, %v11510_v5  ;;  %v10882_v6 = vcombine.low %v394_v4, %v522_v17  ;;  %v10884_v56 = vcombine.low %v395_v13, %v523_v39  ;;  %v16840_v4 = vld [vmem:[#allocation57_spill] sm:$0xff]  ;;  %v16843_v39 = vld [vmem:[#allocation58_spill] sm:$0xff] }
 0x1d8   : > { %v5002_v24 = vpop.f32.mrf.mxu1  ;;  %v2267_v58 = vand.u32 %v10885_v63, %v11510_v5  ;;  %v16841_v17 = vld [vmem:[#allocation65_spill] sm:$0xff]  ;;  %v10887_v27 = vcombine.high %v13137_v62, %v524_v14  ;;  %v10889_v13 = vcombine.high %v13143_v9, %v13146_v7  ;;  %v16844_v63 = vld [vmem:[#allocation66_spill] sm:$0xff]  ;;  %v532_v59 = vld [vmem:[%s11506_s17 + $0x7e0] sm:$0x11] }
 0x1d9   : > { %v13122_v42 = vpop.f32.mrf.mxu0  ;;  %v16842_v3 = vmax.f32 %v16840_v4, %v16841_v17  ;;  %v16852_v17 = vld [vmem:[#allocation69_spill] sm:$0xff] }
 0x1da   : > { %v13125_v23 = vpop.f32.mrf.mxu1 }
 0x1db   : > { %v5041_v46 = vpop.f32.mrf.mxu0  ;;  %11020 = vmatmul.mubr.msk.bf16.vlgmr.msra.gmra.mxu0 %vm1565_vm2, %v13131_v19 }
 0x1dc   : > { %v8145_v49 = vmax.f32 %v4955_v11, %v5041_v46  ;;  %v5084_v29 = vpop.f32.mrf.mxu1  ;;  %11021 = vmatmul.mubr.msk.bf16.vlgmr.msra.gmra.mxu1 %vm1565_vm2, %v13131_v19  ;;  %7172 = vmatpush1.bf16.msra.mxu0 %v2246_v33  ;;  %v16839_v11 = vmax.f32 %v16837_v41, %v16838_v53  ;;  %v16845_v33 = vmax.f32 %v16843_v39, %v16844_v63  ;;  %v13183_v39 = vld [vmem:[%s11506_s17 + $0x3b0] sm:$0xff] }
 0x1dd   : > { %v8147_v16 = vmax.f32 %v4998_v35, %v5084_v29  ;;  %v5043_v34 = vpop.f32.mrf.mxu0  ;;  %7215 = vmatpush1.bf16.msra.mxu1 %v2252_v2  ;;  %7232 = vmatprep.mubr.bf16.mxu1 %v16635_v0 }
 0x1de   : > { %v8153_v51 = vmax.f32 %v16839_v11, %v8145_v49  ;;  %v8146_v40 = vmax.f32 %v4957_v57, %v5043_v34  ;;  %v5086_v30 = vpop.f32.mrf.mxu1  ;;  %7189 = vmatprep.mubr.bf16.mxu0 %v16635_v0  ;;  %7257 = vmatprep.subr.bf16.mxu0 %v2261_v18  ;;  %v2258_v18 = vand.u32 %v10882_v6, %v11510_v5  ;;  %v16846_v49 = vld [vmem:[#allocation18_spill] sm:$0xff]  ;;  %v16851_v6 = vld [vmem:[#allocation61_spill] sm:$0xff] }
 0x1df   : > { %v8155_v10 = vmax.f32 %v16842_v3, %v8147_v16  ;;  %v8148_v37 = vmax.f32 %v5000_v43, %v5086_v30  ;;  %v5045_v35 = vpop.f32.mrf.mxu0  ;;  %7300 = vmatprep.subr.bf16.mxu1 %v2267_v58  ;;  %v16847_v16 = vld [vmem:[#allocation59_spill] sm:$0xff]  ;;  %v2264_v11 = vand.u32 %v10884_v56, %v11510_v5  ;;  %v16853_v3 = vmax.f32 %v16851_v6, %v16852_v17 }
 0x1e0   : > { %v8154_v57 = vmax.f32 %v16845_v33, %v8146_v40  ;;  %v8149_v2 = vmax.f32 %v4959_v38, %v5045_v35  ;;  %v5088_v46 = vpop.f32.mrf.mxu1  ;;  %v8161_v29 = vadd.f32 %v8153_v51, %v16846_v49  ;;  %v16848_v43 = vld [vmem:[#allocation67_spill] sm:$0xff]  ;;  %v10886_v38 = vcombine.low %v13137_v62, %v524_v14  ;;  %v16854_v62 = vld [vmem:[#allocation60_spill] sm:$0xff] }
 0x1e1   : > { %v16849_v34 = vmax.f32 %v16847_v16, %v16848_v43  ;;  %v8151_v41 = vmax.f32 %v5002_v24, %v5088_v46  ;;  %v5047_v53 = vpop.f32.mrf.mxu0  ;;  %v8163_v24 = vadd.f32 %v8155_v10, %v16846_v49  ;;  %v2273_v56 = vand.u32 %v10887_v27, %v11510_v5  ;;  %v16855_v14 = vld [vmem:[#allocation68_spill] sm:$0xff]  ;;  %v13197_v27 = vld [vmem:[%s11506_s17 + $0x7b0] sm:$0x11]  ;;  %v13203_v16 = vld [vmem:[%s11506_s17 + $0x7b8] sm:$0x11] }
 0x1e2   : > { %v5090_v30 = vpop.f32.mrf.mxu1  ;;  %v13168_v4 = vmax.f32 %v8161_v29, 0.0  ;;  %v8162_v40 = vadd.f32 %v8154_v57, %v16846_v49  ;;  %v16856_v63 = vmax.f32 %v16854_v62, %v16855_v14  ;;  %v8150_v57 = vmax.f32 %v13122_v42, %v5047_v53 }
 0x1e3   : > { %v8156_v58 = vmax.f32 %v16849_v34, %v8148_v37  ;;  %v8159_v51 = vmax.f32 %v16853_v3, %v8151_v41  ;;  %v13175_v35 = vpop.f32.mrf.mxu0  ;;  %11022 = vmatmul.mubr.msk.bf16.vlgmr.msra.gmra.mxu0 %vm1565_vm2, %v13131_v19  ;;  %v2279_v37 = vand.u32 %v10889_v13, %v11510_v5  ;;  %v13200_v13 = vld [vmem:[%s11506_s17 + $0x3b8] sm:$0xff]  ;;  %v2270_v43 = vand.u32 %v10886_v38, %v11510_v5  ;;  %v16859_v41 = vld [vmem:[#allocation10_spill] sm:$0xff] }
 0x1e4   : > { %16850 = vst [vmem:[#allocation25_spill] sm:$0xff] %v13168_v4  ;;  %v8157_v33 = vmax.f32 %v16856_v63, %v8149_v2  ;;  %v13189_v46 = vpop.f32.mrf.mxu1  ;;  %11023 = vmatmul.mubr.msk.bf16.vlgmr.msra.gmra.mxu1 %vm1565_vm2, %v13131_v19  ;;  %7258 = vmatpush1.bf16.msra.mxu0 %v2258_v18  ;;  %v13193_v29 = vmax.f32 %v8162_v40, 0.0  ;;  %v10888_v2 = vcombine.low %v13143_v9, %v13146_v7  ;;  %v16861_v40 = vld [vmem:[#allocation70_spill] sm:$0xff] }
 0x1e5   : > { %v8164_v10 = vadd.f32 %v8156_v58, %v16846_v49  ;;  %8816 = vrot.lane.b32.xlu0 %v13168_v4, %s11404_s14  ;;  %v13207_v42 = vpop.f32.mrf.mxu0  ;;  %7301 = vmatpush1.bf16.msra.mxu1 %v2264_v11  ;;  %v13219_v58 = vmax.f32 %v8163_v24, 0.0  ;;  %v8167_v53 = vadd.f32 %v8159_v51, %v16859_v41  ;;  %v10891_v9 = vcombine.high %v13183_v39, %v13197_v27  ;;  %v16860_v11 = vld [vmem:[#allocation62_spill] sm:$0xff] }
 0x1e6   : > { %16857 = vst [vmem:[#allocation29_spill] sm:$0xff] %v13193_v29  ;;  %v13211_v18 = vpop.f32.mrf.mxu1  ;;  %8818 = vrot.lane.b32.xlu1 %v13193_v29, %s11404_s14  ;;  %7275 = vmatprep.mubr.bf16.mxu0 %v16635_v0  ;;  %v10893_v7 = vcombine.high %v13200_v13, %v13203_v16  ;;  %v16862_v6 = vmax.f32 %v16860_v11, %v16861_v40 }
 0x1e7   : > { %v13217_v34 = vpop.f32.mrf.mxu0  ;;  %16858 = vst [vmem:[#allocation33_spill] sm:$0xff] %v13219_v58  ;;  %7318 = vmatprep.mubr.bf16.mxu1 %v16635_v0  ;;  %7343 = vmatprep.subr.bf16.mxu0 %v2273_v56  ;;  %v8152_v38 = vmax.f32 %v13125_v23, %v5090_v30  ;;  %v13233_v24 = vmax.f32 %v8164_v10, 0.0  ;;  %v8165_v56 = vadd.f32 %v8157_v33, %v16859_v41  ;;  %v13249_v30 = vmax.f32 %v8167_v53, 0.0  ;;  %v16865_v10 = vld [vmem:[#allocation63_spill] sm:$0xff]  ;;  %v528_v53 = vld [vmem:[%s11506_s17 + $0x7c0] sm:$0x11] }
 0x1e8   : > { %v8158_v17 = vmax.f32 %v16862_v6, %v8150_v57  ;;  %v13231_v3 = vpop.f32.mrf.mxu1  ;;  %7386 = vmatprep.subr.bf16.mxu1 %v2279_v37  ;;  %v2276_v62 = vand.u32 %v10888_v2, %v11510_v5  ;;  %v10890_v37 = vcombine.low %v13183_v39, %v13197_v27  ;;  %v2285_v63 = vand.u32 %v10891_v9, %v11510_v5  ;;  %v13256_v57 = vld [vmem:[%s11506_s17 + $0x3c0] sm:$0xff]  ;;  %v16866_v2 = vld [vmem:[#allocation71_spill] sm:$0xff]  ;;  %v401_v9 = vld [vmem:[%s11506_s17 + $0x3c8] sm:$0xff] }
 0x1e9   : > { %16863 = vst [vmem:[#allocation37_spill] sm:$0xff] %v13233_v24  ;;  %8820 = vrot.lane.b32.xlu0 %v13219_v58, %s11404_s14  ;;  %v13238_v51 = vpop.f32.mrf.mxu0  ;;  %16864 = vst [vmem:[#allocation26_spill] sm:$0xff] %v13249_v30  ;;  %v2291_v33 = vand.u32 %v10893_v7, %v11510_v5  ;;  %v16867_v11 = vmax.f32 %v16865_v10, %v16866_v2  ;;  %v13267_v39 = vmax.f32 %v8165_v56, 0.0  ;;  %v529_v7 = vld [vmem:[%s11506_s17 + $0x7c8] sm:$0x11] }
 0x1ea   : > { %v13241_v14 = vpop.f32.mrf.mxu1  ;;  %8822 = vrot.lane.b32.xlu1 %v13233_v24, %s11404_s14  ;;  %v8166_v27 = vadd.f32 %v8158_v17, %v16859_v41  ;;  %v10892_v2 = vcombine.low %v13200_v13, %v13203_v16  ;;  %v10895_v13 = vcombine.high %v13256_v57, %v528_v53  ;;  %v10897_v16 = vcombine.high %v401_v9, %v529_v7 }
 0x1eb   : > { %v13245_v23 = vpop.f32.mrf.mxu0  ;;  %11024 = vmatmul.mubr.msk.bf16.vlgmr.msra.gmra.mxu0 %vm1565_vm2, %v13131_v19  ;;  %v8160_v40 = vmax.f32 %v16867_v11, %v8152_v38  ;;  %16868 = vst [vmem:[#allocation54_spill] sm:$0xff] %v13267_v39  ;;  %v2282_v6 = vand.u32 %v10890_v37, %v11510_v5  ;;  %v10894_v37 = vcombine.low %v13256_v57, %v528_v53 }
 0x1ec   : > { %v13263_v58 = vpop.f32.mrf.mxu1  ;;  %11025 = vmatmul.mubr.msk.bf16.vlgmr.msra.gmra.mxu1 %vm1565_vm2, %v13131_v19  ;;  %7344 = vmatpush1.bf16.msra.mxu0 %v2270_v43  ;;  %v13298_v10 = vmax.f32 %v8166_v27, 0.0 }
 0x1ed   : > { %8828 = vrot.lane.b32.xlu0 %v13249_v30, %s11404_s14  ;;  %v13277_v38 = vpop.f32.mrf.mxu0  ;;  %7387 = vmatpush1.bf16.msra.mxu1 %v2276_v62  ;;  %v8168_v17 = vadd.f32 %v8160_v40, %v16859_v41  ;;  %v2288_v30 = vand.u32 %v10892_v2, %v11510_v5  ;;  %v2297_v40 = vand.u32 %v10895_v13, %v11510_v5  ;;  %v530_v62 = vld [vmem:[%s11506_s17 + $0x7d0] sm:$0x11] }
 0x1ee   : > { %v13283_v56 = vpop.f32.mrf.mxu1  ;;  %8824 = vrot.lane.b32.xlu1 %v13267_v39, %s11404_s14  ;;  %7361 = vmatprep.mubr.bf16.mxu0 %v16635_v0  ;;  %16869 = vst [vmem:[#allocation34_spill] sm:$0xff] %v13298_v10  ;;  %v2303_v2 = vand.u32 %v10897_v16, %v11510_v5  ;;  %v403_v39 = vld [vmem:[%s11506_s17 + $0x3d8] sm:$0xff]  ;;  %v10896_v13 = vcombine.low %v401_v9, %v529_v7 }
 0x1ef   : > { %v13290_v11 = vpop.f32.mrf.mxu0  ;;  %7404 = vmatprep.mubr.bf16.mxu1 %v16635_v0  ;;  %7429 = vmatprep.subr.bf16.mxu0 %v2285_v63  ;;  %v402_v63 = vld [vmem:[%s11506_s17 + $0x3d0] sm:$0xff]  ;;  %v13327_v29 = vmax.f32 %v8168_v17, 0.0 }
 0x1f0   : > { %v13296_v43 = vpop.f32.mrf.mxu1  ;;  %7472 = vmatprep.subr.bf16.mxu1 %v2291_v33  ;;  %v2300_v7 = vand.u32 %v10896_v13, %v11510_v5  ;;  %v10898_v13 = vcombine.low %v402_v63, %v530_v62 }
 0x1f1   : > { %v13304_v24 = vpop.f32.mrf.mxu0  ;;  %16870 = vst [vmem:[#allocation55_spill] sm:$0xff] %v13327_v29 }
 0x1f2   : > { %v13309_v27 = vpop.f32.mrf.mxu1  ;;  %8826 = vrot.lane.b32.xlu1 %v13298_v10, %s11404_s14  ;;  %v531_v10 = vld [vmem:[%s11506_s17 + $0x7d8] sm:$0x11] }
 0x1f3   : > { %v13315_v33 = vpop.f32.mrf.mxu0  ;;  %11026 = vmatmul.mubr.msk.bf16.vlgmr.msra.gmra.mxu0 %vm1565_vm2, %v13131_v19  ;;  %v10901_v57 = vcombine.high %v403_v39, %v531_v10 }
 0x1f4   : > { %v13323_v4 = vpop.f32.mrf.mxu1  ;;  %11027 = vmatmul.mubr.msk.bf16.vlgmr.msra.gmra.mxu1 %vm1565_vm2, %v13131_v19  ;;  %7430 = vmatpush1.bf16.msra.mxu0 %v2282_v6  ;;  %v10899_v6 = vcombine.high %v402_v63, %v530_v62 }
 0x1f5   : > { %v13332_v44 = vpop.f32.mrf.mxu0  ;;  %7473 = vmatpush1.bf16.msra.mxu1 %v2288_v30  ;;  %7447 = vmatprep.mubr.bf16.mxu0 %v16635_v0  ;;  %v2294_v30 = vand.u32 %v10894_v37, %v11510_v5  ;;  %v2306_v37 = vand.u32 %v10898_v13, %v11510_v5 }
 0x1f6   : > { %v13335_v16 = vpop.f32.mrf.mxu1  ;;  %8830 = vrot.lane.b32.xlu1 %v13327_v29, %s11404_s14  ;;  %7490 = vmatprep.mubr.bf16.mxu1 %v16635_v0  ;;  %v2309_v54 = vand.u32 %v10899_v6, %v11510_v5  ;;  %v405_v6 = vld [vmem:[%s11506_s17 + $0x3e8] sm:$0xff] }
 0x1f7   : > { %v13340_v17 = vpop.f32.mrf.mxu0  ;;  %7515 = vmatprep.subr.bf16.mxu0 %v2297_v40  ;;  %7558 = vmatprep.subr.bf16.mxu1 %v2303_v2  ;;  %v2315_v40 = vand.u32 %v10901_v57, %v11510_v5  ;;  %v404_v2 = vld [vmem:[%s11506_s17 + $0x3e0] sm:$0xff]  ;;  %v10900_v57 = vcombine.low %v403_v39, %v531_v10  ;;  %v10904_v12 = vcombine.low %v405_v6, %v533_v1 }
 0x1f8   : > { %v13342_v53 = vpop.f32.mrf.mxu1  ;;  %v10903_v62 = vcombine.high %v404_v2, %v532_v59 }
 0x1f9   : > { %v13345_v9 = vpop.f32.mrf.mxu0  ;;  %v2312_v63 = vand.u32 %v10900_v57, %v11510_v5 }
 0x1fa   : > { %v13348_v29 = vpop.f32.mrf.mxu1  ;;  %v2321_v39 = vand.u32 %v10903_v62, %v11510_v5  ;;  %v407_v62 = vld [vmem:[%s11506_s17 + $0x3f8] sm:$0xff]  ;;  %s11405_s17 = smov 8  }
 0x1fb   : > { %16871 = vst [vmem:[#allocation56_spill] sm:$0xff] %v13348_v29  ;;  %v13351_v22 = vpop.f32.mrf.mxu0  ;;  %11028 = vmatmul.mubr.msk.bf16.vlgmr.msra.gmra.mxu0 %vm1565_vm2, %v13131_v19  ;;  %v10909_v29 = vcombine.high %v407_v62, %v535_v50 }
 0x1fc   : > { %v13360_v20 = vpop.f32.mrf.mxu1  ;;  %11029 = vmatmul.mubr.msk.bf16.vlgmr.msra.gmra.mxu1 %vm1565_vm2, %v13131_v19  ;;  %7516 = vmatpush1.bf16.msra.mxu0 %v2294_v30 }
 0x1fd   : > { %v13368_v26 = vpop.f32.mrf.mxu0  ;;  %7559 = vmatpush1.bf16.msra.mxu1 %v2300_v7  ;;  %7533 = vmatprep.mubr.bf16.mxu0 %v16635_v0  ;;  %v10905_v7 = vcombine.high %v405_v6, %v533_v1 }
 0x1fe   : > { %v13373_v21 = vpop.f32.mrf.mxu1  ;;  %7576 = vmatprep.mubr.bf16.mxu1 %v16635_v0  ;;  %7601 = vmatprep.subr.bf16.mxu0 %v2309_v54 }
 0x1ff   : > { %v13378_v30 = vpop.f32.mrf.mxu0  ;;  %7644 = vmatprep.subr.bf16.mxu1 %v2315_v40  ;;  %v2327_v54 = vand.u32 %v10905_v7, %v11510_v5  ;;  %v10902_v40 = vcombine.low %v404_v2, %v532_v59  ;;  %v10907_v7 = vcombine.high %v406_v45, %v534_v28 }
 0x200   : > { %v13382_v10 = vpop.f32.mrf.mxu1 }
 0x201   : > { %v13387_v8 = vpop.f32.mrf.mxu0  ;;  %v2318_v59 = vand.u32 %v10902_v40, %v11510_v5  ;;  %v2333_v1 = vand.u32 %v10907_v7, %v11510_v5 }
 0x202   : > { %v13392_v61 = vpop.f32.mrf.mxu1 }
 0x203   : > { %16872 = vst [vmem:[#allocation64_spill] sm:$0xff] %v13392_v61  ;;  %v13397_v13 = vpop.f32.mrf.mxu0  ;;  %11030 = vmatmul.mubr.msk.bf16.vlgmr.msra.gmra.mxu0 %vm1565_vm2, %v13131_v19 }
 0x204   : > { %v13404_v57 = vpop.f32.mrf.mxu1  ;;  %11031 = vmatmul.mubr.msk.bf16.vlgmr.msra.gmra.mxu1 %vm1565_vm2, %v13131_v19  ;;  %7602 = vmatpush1.bf16.msra.mxu0 %v2306_v37 }
 0x205   : > { %v13410_v47 = vpop.f32.mrf.mxu0  ;;  %7645 = vmatpush1.bf16.msra.mxu1 %v2312_v63  ;;  %7619 = vmatprep.mubr.bf16.mxu0 %v16635_v0  ;;  %v2324_v63 = vand.u32 %v10904_v12, %v11510_v5  ;;  %v10906_v12 = vcombine.low %v406_v45, %v534_v28  ;;  %v13450_v28 = vadd.f32 %v12954_v32, %v16859_v41 }
 0x206   : > { %16873 = vst [vmem:[#allocation57_spill] sm:$0xff] %v13410_v47  ;;  %v13413_v36 = vpop.f32.mrf.mxu1  ;;  %7662 = vmatprep.mubr.bf16.mxu1 %v16635_v0  ;;  %7687 = vmatprep.subr.bf16.mxu0 %v2321_v39  ;;  %v2339_v39 = vand.u32 %v10909_v29, %v11510_v5 }
 0x207   : > { %16874 = vst [vmem:[#allocation65_spill] sm:$0xff] %v13413_v36  ;;  %v13416_v61 = vpop.f32.mrf.mxu0  ;;  %7730 = vmatprep.subr.bf16.mxu1 %v2327_v54  ;;  %16879 = vst [vmem:[#allocation61_spill] sm:$0xff] %v13450_v28 }
 0x208   : > { %v13418_v37 = vpop.f32.mrf.mxu1 }
 0x209   : > { %v13421_v2 = vpop.f32.mrf.mxu0 }
 0x20a   : > { %16875 = vst [vmem:[#allocation58_spill] sm:$0xff] %v13421_v2  ;;  %v13424_v47 = vpop.f32.mrf.mxu1 }
 0x20b   : > { %16876 = vst [vmem:[#allocation66_spill] sm:$0xff] %v13424_v47  ;;  %v13427_v6 = vpop.f32.mrf.mxu0  ;;  %11032 = vmatmul.mubr.msk.bf16.vlgmr.msra.gmra.mxu0 %vm1565_vm2, %v13131_v19  ;;  %v10908_v47 = vcombine.low %v407_v62, %v535_v50  ;;  %v13459_v50 = vadd.f32 %v12965_v48, %v16859_v41 }
 0x20c   : > { %v13434_v36 = vpop.f32.mrf.mxu1  ;;  %11033 = vmatmul.mubr.msk.bf16.vlgmr.msra.gmra.mxu1 %vm1565_vm2, %v13131_v19  ;;  %7688 = vmatpush1.bf16.msra.mxu0 %v2318_v59 }
 0x20d   : > { %v13440_v7 = vpop.f32.mrf.mxu0  ;;  %7731 = vmatpush1.bf16.msra.mxu1 %v2324_v63  ;;  %7705 = vmatprep.mubr.bf16.mxu0 %v16635_v0  ;;  %v2330_v63 = vand.u32 %v10906_v12, %v11510_v5  ;;  %16880 = vst [vmem:[#allocation69_spill] sm:$0xff] %v13459_v50  ;;  %v16446_v12 = vmax.f32 %v13450_v28, 0.0  ;;  %v16447_v48 = vmax.f32 %v13459_v50, 0.0 }
 0x20e   : > { %16877 = vst [vmem:[#allocation59_spill] sm:$0xff] %v13440_v7  ;;  %v13443_v29 = vpop.f32.mrf.mxu1  ;;  %7748 = vmatprep.mubr.bf16.mxu1 %v16635_v0  ;;  %7773 = vmatprep.subr.bf16.mxu0 %v2333_v1 }
 0x20f   : > { %16878 = vst [vmem:[#allocation67_spill] sm:$0xff] %v13443_v29  ;;  %v13446_v54 = vpop.f32.mrf.mxu0  ;;  %7816 = vmatprep.subr.bf16.mxu1 %v2339_v39  ;;  %v2336_v39 = vand.u32 %v10908_v47, %v11510_v5  ;;  %v13484_v47 = vadd.f32 %v12938_v60, %v16859_v41  ;;  %v13504_v60 = vadd.f32 %v12913_v55, %v16846_v49 }
 0x210   : > { %v13454_v59 = vpop.f32.mrf.mxu1  ;;  %v13510_v29 = vadd.f32 %v12932_v52, %v16846_v49 }
 0x211   : > { %v13463_v1 = vpop.f32.mrf.mxu0  ;;  %16884 = vst [vmem:[#allocation70_spill] sm:$0xff] %v13484_v47  ;;  %16888 = vst [vmem:[#allocation81_spill] sm:$0xff] %v13504_v60 }
 0x212   : > { %16881 = vst [vmem:[#allocation60_spill] sm:$0xff] %v13463_v1  ;;  %v13466_v32 = vpop.f32.mrf.mxu1  ;;  %16890 = vst [vmem:[#allocation83_spill] sm:$0xff] %v13510_v29  ;;  %v16453_v7 = vmax.f32 %v13510_v29, 0.0 }
 0x213   : > { %16882 = vst [vmem:[#allocation68_spill] sm:$0xff] %v13466_v32  ;;  %v13468_v40 = vpop.f32.mrf.mxu0  ;;  %11034 = vmatmul.mubr.msk.bf16.vlgmr.msra.gmra.mxu0 %vm1565_vm2, %v13131_v19 }
 0x214   : > { %v13473_v45 = vpop.f32.mrf.mxu1  ;;  %11035 = vmatmul.mubr.msk.bf16.vlgmr.msra.gmra.mxu1 %vm1565_vm2, %v13131_v19  ;;  %7774 = vmatpush1.bf16.msra.mxu0 %v2330_v63  ;;  %v13493_v63 = vadd.f32 %v12944_v15, %v16859_v41  ;;  %v13514_v15 = vadd.f32 %v12921_v31, %v16846_v49  ;;  %v16905_v41 = vmax.f32 %v13189_v46, %v13263_v58 }
 0x215   : > { %7817 = vmatpush1.bf16.msra.mxu1 %v2336_v39  ;;  %8863 = vmatprep.subr.mxu0 %v16446_v12  ;;  %v13480_v5 = vpop.f32.mrf.mxu0  ;;  %v13500_v12 = vadd.f32 %v12926_v25, %v16846_v49  ;;  %v16911_v46 = vmax.f32 %v13217_v34, %v13290_v11  ;;  %v16917_v34 = vmax.f32 %v13241_v14, %v13309_v27 }
 0x216   : > { %16883 = vst [vmem:[#allocation62_spill] sm:$0xff] %v13480_v5  ;;  %8940 = vmatprep.subr.mxu1 %v16447_v48  ;;  %v13488_v62 = vpop.f32.mrf.mxu1  ;;  %7791 = vmatprep.mubr.bf16.mxu0 %v16635_v0  ;;  %16886 = vst [vmem:[#allocation71_spill] sm:$0xff] %v13493_v63  ;;  %v16458_v50 = vmax.f32 %v13514_v15, 0.0  ;;  %v16894_v2 = vmax.f32 %v13493_v63, 0.0  ;;  %v16921_v27 = vmax.f32 %v13323_v4, %v13360_v20 }
 0x217   : > { %16885 = vst [vmem:[#allocation63_spill] sm:$0xff] %v13488_v62  ;;  %v13495_v39 = vpop.f32.mrf.mxu0  ;;  %7834 = vmatprep.mubr.bf16.mxu1 %v16635_v0  ;;  %16887 = vst [vmem:[#allocation80_spill] sm:$0xff] %v13500_v12  ;;  %v16450_v0 = vmax.f32 %v13484_v47, 0.0  ;;  %v16895_v31 = vmax.f32 %v13500_v12, 0.0  ;;  %v16927_v20 = vmax.f32 %v13340_v17, %v13378_v30  ;;  %v16933_v17 = vld [vmem:[#allocation56_spill] sm:$0xff] }
 0x218   : > { %v13506_v48 = vpop.f32.mrf.mxu1  ;;  %16891 = vst [vmem:[#allocation84_spill] sm:$0xff] %v13514_v15  ;;  %v16934_v30 = vld [vmem:[#allocation64_spill] sm:$0xff] }
 0x219   : > { %16889 = vst [vmem:[#allocation82_spill] sm:$0xff] %v13506_v48  ;;  %v13516_v32 = vpop.f32.mrf.mxu0 }
 0x21a   : > { %16892 = vst [vmem:[#allocation85_spill] sm:$0xff] %v13516_v32  ;;  %v13519_v25 = vpop.f32.mrf.mxu1 }
 0x21b   : > { %16893 = vst [vmem:[#allocation86_spill] sm:$0xff] %v13519_v25  ;;  %v13522_v55 = vpop.f32.mrf.mxu0  ;;  %11036 = vmatmul.mubr.msk.bf16.vlgmr.msra.gmra.mxu0 %vm1565_vm2, %v13131_v19 }
 0x21c   : > { %v13530_v1 = vpop.f32.mrf.mxu1  ;;  %11037 = vmatmul.mubr.msk.bf16.vlgmr.msra.gmra.mxu1 %vm1565_vm2, %v13131_v19  ;;  %8864 = vmatpush1.msra.mxu0 %v16450_v0  ;;  %v16898_v0 = vmax.f32 %v13504_v60, 0.0 }
 0x21d   : > { %8941 = vmatpush1.msra.mxu1 %v16894_v2  ;;  %8865 = vmatprep.subr.mxu0 %v16895_v31  ;;  %v13544_v28 = vpop.f32.mrf.mxu0  ;;  %v16903_v31 = vmax.f32 %v13175_v35, %v13245_v23  ;;  %v16909_v35 = vmax.f32 %v13211_v18, %v13283_v56  ;;  %v16915_v18 = vmax.f32 %v13238_v51, %v13304_v24 }
 0x21e   : > { %16896 = vst [vmem:[#allocation87_spill] sm:$0xff] %v13544_v28  ;;  %8942 = vmatprep.subr.mxu1 %v16453_v7  ;;  %v13548_v19 = vpop.f32.mrf.mxu1  ;;  %8866 = vmatpush1.msra.mxu0 %v16898_v0  ;;  %v16919_v24 = vmax.f32 %v13315_v33, %v13351_v22  ;;  %v16925_v22 = vmax.f32 %v13335_v16, %v13373_v21 }
 0x21f   : > { %16897 = vst [vmem:[#allocation88_spill] sm:$0xff] %v13548_v19  ;;  %8943 = vmatpush1.msra.mxu1 %v16458_v50  ;;  %v13554_v52 = vpop.f32.mrf.mxu0  ;;  %v16931_v16 = vmax.f32 %v13345_v9, %v13387_v8 }
 0x220   : > { %16899 = vst [vmem:[#allocation89_spill] sm:$0xff] %v13554_v52  ;;  %v13558_v63 = vpop.f32.mrf.mxu1 }
 0x221   : > { %16900 = vst [vmem:[#allocation90_spill] sm:$0xff] %v13558_v63  ;;  %v13562_v29 = vpop.f32.mrf.mxu0 }
 0x222   : > { %16901 = vst [vmem:[#allocation91_spill] sm:$0xff] %v13562_v29  ;;  %v13564_v7 = vpop.f32.mrf.mxu1 }
 0x223   : > { %16902 = vst [vmem:[#allocation92_spill] sm:$0xff] %v13564_v7  ;;  %v5815_v12 = vpop.f32.mrf.mxu0 }
 0x224   : > { %v5858_v60 = vpop.f32.mrf.mxu1 }
 0x225   : > { %v5817_v0 = vpop.f32.mrf.mxu0 }
 0x226   : > { %v5860_v47 = vpop.f32.mrf.mxu1 }
 0x227   : > { %v5819_v15 = vpop.f32.mrf.mxu0 }
 0x228   : > { %v5862_v50 = vpop.f32.mrf.mxu1 }
 0x229   : > { %v5821_v62 = vpop.f32.mrf.mxu0 }
 0x22a   : > { %v5864_v19 = vpop.f32.mrf.mxu1 }
 0x22b   : > { %v5901_v5 = vpop.f32.mrf.mxu0 }
 0x22c   : > { %v8185_v28 = vmax.f32 %v5815_v12, %v5901_v5  ;;  %v5944_v2 = vpop.f32.mrf.mxu1  ;;  %v16907_v12 = vmax.f32 %v13207_v42, %v13277_v38  ;;  %v16913_v42 = vmax.f32 %v13231_v3, %v13296_v43 }
 0x22d   : > { %v8187_v25 = vmax.f32 %v5858_v60, %v5944_v2  ;;  %v5903_v32 = vpop.f32.mrf.mxu0 }
 0x22e   : > { %v13569_v49 = vmax.f32 %v16903_v31, %v8185_v28  ;;  %v8186_v29 = vmax.f32 %v5817_v0, %v5903_v32  ;;  %v5946_v7 = vpop.f32.mrf.mxu1 }
 0x22f   : > { %v13574_v63 = vmax.f32 %v16905_v41, %v8187_v25  ;;  %v8188_v48 = vmax.f32 %v5860_v47, %v5946_v7  ;;  %v5905_v52 = vpop.f32.mrf.mxu0 }
 0x230   : > { %16904 = vst [vmem:[#allocation93_spill] sm:$0xff] %v13569_v49  ;;  %v13579_v5 = vmax.f32 %v16907_v12, %v8186_v29  ;;  %v8189_v60 = vmax.f32 %v5819_v15, %v5905_v52  ;;  %v5948_v2 = vpop.f32.mrf.mxu1 }
 0x231   : > { %16906 = vst [vmem:[#allocation94_spill] sm:$0xff] %v13574_v63  ;;  %v13584_v23 = vmax.f32 %v16909_v35, %v8188_v48  ;;  %v8191_v28 = vmax.f32 %v5862_v50, %v5948_v2  ;;  %v5907_v32 = vpop.f32.mrf.mxu0  ;;  %v16993_v63 = vld [vmem:[#allocation46_spill] sm:$0xff] }
 0x232   : > { %16908 = vst [vmem:[#allocation95_spill] sm:$0xff] %v13579_v5  ;;  %v13589_v58 = vmax.f32 %v16911_v46, %v8189_v60  ;;  %v8190_v41 = vmax.f32 %v5821_v62, %v5907_v32  ;;  %v5950_v7 = vpop.f32.mrf.mxu1  ;;  %v16923_v32 = vmax.f32 %v13332_v44, %v13368_v26  ;;  %v16929_v44 = vmax.f32 %v13342_v53, %v13382_v10 }
 0x233   : > { %16910 = vst [vmem:[#allocation96_spill] sm:$0xff] %v13584_v23  ;;  %v13594_v38 = vmax.f32 %v16913_v42, %v8191_v28  ;;  %v8192_v29 = vmax.f32 %v5864_v19, %v5950_v7  ;;  %v5987_v47 = vpop.f32.mrf.mxu0 }
 0x234   : > { %16912 = vst [vmem:[#allocation97_spill] sm:$0xff] %v13589_v58  ;;  %v13599_v56 = vmax.f32 %v16915_v18, %v8190_v41  ;;  %v6030_v50 = vpop.f32.mrf.mxu1  ;;  %v17007_v58 = vld [vmem:[#allocation51_spill] sm:$0xff] }
 0x235   : > { %16914 = vst [vmem:[#allocation98_spill] sm:$0xff] %v13594_v38  ;;  %v13604_v11 = vmax.f32 %v16917_v34, %v8192_v29  ;;  %v5989_v62 = vpop.f32.mrf.mxu0 }
 0x236   : > { %16916 = vst [vmem:[#allocation99_spill] sm:$0xff] %v13599_v56  ;;  %v6032_v48 = vpop.f32.mrf.mxu1  ;;  %v17013_v56 = vld [vmem:[#allocation49_spill] sm:$0xff] }
 0x237   : > { %16918 = vst [vmem:[#allocation100_spill] sm:$0xff] %v13604_v11  ;;  %v5991_v15 = vpop.f32.mrf.mxu0 }
 0x238   : > { %v6034_v25 = vpop.f32.mrf.mxu1 }
 0x239   : > { %v5993_v3 = vpop.f32.mrf.mxu0 }
 0x23a   : > { %v6036_v43 = vpop.f32.mrf.mxu1 }
 0x23b   : > { %v6073_v52 = vpop.f32.mrf.mxu0 }
 0x23c   : > { %v8225_v19 = vmax.f32 %v5987_v47, %v6073_v52  ;;  %v6116_v31 = vpop.f32.mrf.mxu1  ;;  %v13626_v47 = vpop.permute.xlu1 %8769 }
 0x23d   : > { %v8227_v0 = vmax.f32 %v6030_v50, %v6116_v31  ;;  %v6075_v12 = vpop.f32.mrf.mxu0 }
 0x23e   : > { %v13609_v51 = vmax.f32 %v16919_v24, %v8225_v19  ;;  %v8226_v60 = vmax.f32 %v5989_v62, %v6075_v12  ;;  %v6118_v14 = vpop.f32.mrf.mxu1 }
 0x23f   : > { %v13614_v2 = vmax.f32 %v16921_v27, %v8227_v0  ;;  %v8228_v35 = vmax.f32 %v6032_v48, %v6118_v14  ;;  %v6077_v28 = vpop.f32.mrf.mxu0 }
 0x240   : > { %16920 = vst [vmem:[#allocation101_spill] sm:$0xff] %v13609_v51  ;;  %v13619_v46 = vmax.f32 %v16923_v32, %v8226_v60  ;;  %v8229_v41 = vmax.f32 %v5991_v15, %v6077_v28  ;;  %v6120_v7 = vpop.f32.mrf.mxu1  ;;  %v13643_v15 = vpop.permute.xlu0 %8767 }
 0x241   : > { %16922 = vst [vmem:[#allocation102_spill] sm:$0xff] %v13614_v2  ;;  %v13624_v33 = vmax.f32 %v16925_v22, %v8228_v35  ;;  %v8231_v42 = vmax.f32 %v6034_v25, %v6120_v7  ;;  %v6079_v29 = vpop.f32.mrf.mxu0  ;;  %v16935_v25 = vmax.f32 %v16933_v17, %v16934_v30  ;;  %v16942_v35 = vmax.f32 %v13397_v13, %v13427_v6 }
 0x242   : > { %16924 = vst [vmem:[#allocation103_spill] sm:$0xff] %v13619_v46  ;;  %v13631_v4 = vmax.f32 %v16927_v20, %v8229_v41  ;;  %v8230_v18 = vmax.f32 %v5993_v3, %v6079_v29  ;;  %v6122_v26 = vpop.f32.mrf.mxu1  ;;  %v16945_v7 = vmax.f32 %v13404_v57, %v13434_v36  ;;  %v8497_v30 = vlaneseq }
 0x243   : > { %16926 = vst [vmem:[#allocation104_spill] sm:$0xff] %v13624_v33  ;;  %v13636_v50 = vmax.f32 %v16929_v44, %v8231_v42  ;;  %v8232_v34 = vmax.f32 %v6036_v43, %v6122_v26  ;;  %v6159_v21 = vpop.f32.mrf.mxu0  ;;  %v13654_v43 = vpop.permute.xlu1 %8773  ;;  %v16948_v44 = vmax.f32 %v13416_v61, %v13446_v54  ;;  %v16963_v36 = vmax.f32 %v13473_v45, %v13530_v1  ;;  %v17004_v33 = vld [vmem:[#allocation53_spill] sm:$0xff] }
 0x244   : > { %16928 = vst [vmem:[#allocation105_spill] sm:$0xff] %v13631_v4  ;;  %v13641_v62 = vmax.f32 %v16931_v16, %v8230_v18  ;;  %v6202_v48 = vpop.f32.mrf.mxu1  ;;  %v13660_v9 = vpop.permute.xlu0 %8771  ;;  %v17022_v4 = vld [vmem:[#allocation43_spill] sm:$0xff] }
 0x245   : > { %16930 = vst [vmem:[#allocation106_spill] sm:$0xff] %v13636_v50  ;;  %v13648_v3 = vmax.f32 %v16935_v25, %v8232_v34  ;;  %v13650_v52 = vpop.f32.mrf.mxu0 }
 0x246   : > { %16932 = vst [vmem:[#allocation107_spill] sm:$0xff] %v13641_v62  ;;  %16937 = vst [vmem:[#allocation64_spill] sm:$0xff] %v13650_v52  ;;  %v13652_v53 = vpop.f32.mrf.mxu1  ;;  %v16990_v52 = vld [vmem:[#allocation48_spill] sm:$0xff] }
 0x247   : > { %16936 = vst [vmem:[#allocation56_spill] sm:$0xff] %v13648_v3  ;;  %16938 = vst [vmem:[#allocation108_spill] sm:$0xff] %v13652_v53  ;;  %v6163_v10 = vpop.f32.mrf.mxu0  ;;  %v13664_v27 = vpop.permute.xlu1 %8777 }
 0x248   : > { %v6206_v19 = vpop.f32.mrf.mxu1  ;;  %v13682_v26 = vpop.permute.xlu0 %8775 }
 0x249   : > { %v13656_v31 = vpop.f32.mrf.mxu0 }
 0x24a   : > { %16939 = vst [vmem:[#allocation109_spill] sm:$0xff] %v13656_v31  ;;  %v13658_v8 = vpop.f32.mrf.mxu1 }
 0x24b   : > { %16940 = vst [vmem:[#allocation110_spill] sm:$0xff] %v13658_v8  ;;  %v6245_v0 = vpop.f32.mrf.mxu0  ;;  %v13702_v25 = vpop.permute.xlu1 %8781 }
 0x24c   : > { %v8265_v12 = vmax.f32 %v6159_v21, %v6245_v0  ;;  %v6288_v24 = vpop.f32.mrf.mxu1  ;;  %v16951_v21 = vmax.f32 %v13418_v37, %v13454_v59 }
 0x24d   : > { %v8267_v60 = vmax.f32 %v6202_v48, %v6288_v24  ;;  %v13662_v14 = vpop.f32.mrf.mxu0 }
 0x24e   : > { %16941 = vst [vmem:[#allocation111_spill] sm:$0xff] %v13662_v14  ;;  %v13669_v28 = vmax.f32 %v16942_v35, %v8265_v12  ;;  %v13673_v41 = vpop.f32.mrf.mxu1  ;;  %v13710_v12 = vand.u32 127, %v8497_v30  ;;  %v16960_v30 = vmax.f32 %v13468_v40, %v13522_v55 }
 0x24f   : > { %16944 = vst [vmem:[#allocation113_spill] sm:$0xff] %v13673_v41  ;;  %v13678_v22 = vmax.f32 %v16945_v7, %v8267_v60  ;;  %v6249_v29 = vpop.f32.mrf.mxu0  ;;  %v16973_v41 = vld [vmem:[#allocation90_spill] sm:$0xff] }
 0x250   : > { %16943 = vst [vmem:[#allocation112_spill] sm:$0xff] %v13669_v28  ;;  %v8269_v20 = vmax.f32 %v6163_v10, %v6249_v29  ;;  %v6292_v18 = vpop.f32.mrf.mxu1  ;;  %16955 = vst [vmem:[#allocation121_spill] sm:$0xff] %v13710_v12  ;;  %v13719_v29 = vadd.s32 128, %v13710_v12  ;;  %v13743_v40 = vadd.s32 384, %v13710_v12  ;;  %v8558_v48 = vand.u32 7, %v13710_v12 }
 0x251   : > { %16946 = vst [vmem:[#allocation114_spill] sm:$0xff] %v13678_v22  ;;  %v8271_v13 = vmax.f32 %v6206_v19, %v6292_v18  ;;  %v13684_v6 = vpop.f32.mrf.mxu0  ;;  %v13708_v19 = vpop.permute.xlu0 %8779  ;;  %v13747_v22 = vadd.s32 256, %v13710_v12 }
 0x252   : > { %16947 = vst [vmem:[#allocation115_spill] sm:$0xff] %v13684_v6  ;;  %v13689_v34 = vmax.f32 %v16948_v44, %v8269_v20  ;;  %v13693_v57 = vpop.f32.mrf.mxu1  ;;  %16958 = vst [vmem:[#allocation124_spill] sm:$0xff] %v13719_v29  ;;  %vm13776_vm5 = vcmp.ne.s32.totalorder %v8558_v48, 0 }
 0x253   : > { %16950 = vst [vmem:[#allocation117_spill] sm:$0xff] %v13693_v57  ;;  %v13698_v16 = vmax.f32 %v16951_v21, %v8271_v13  ;;  %v6331_v17 = vpop.f32.mrf.mxu0  ;;  %16965 = vst [vmem:[#allocation129_spill] sm:$0xff] %v13743_v40  ;;  %v16976_v57 = vmov 0 }
 0x254   : > { %16949 = vst [vmem:[#allocation116_spill] sm:$0xff] %v13689_v34  ;;  %v6374_v61 = vpop.f32.mrf.mxu1  ;;  %16966 = vst [vmem:[#allocation130_spill] sm:$0xff] %v13747_v22 }
 0x255   : > { %16952 = vst [vmem:[#allocation118_spill] sm:$0xff] %v13698_v16  ;;  %v13704_v54 = vpop.f32.mrf.mxu0 }
 0x256   : > { %16953 = vst [vmem:[#allocation119_spill] sm:$0xff] %v13704_v54  ;;  %v13706_v10 = vpop.f32.mrf.mxu1 }
 0x257   : > { %16954 = vst [vmem:[#allocation120_spill] sm:$0xff] %v13706_v10  ;;  %v6335_v0 = vpop.f32.mrf.mxu0  ;;  %v8817_v35 = vpop.permute.xlu0 %8816 }
 0x258   : > { %v6378_v37 = vpop.f32.mrf.mxu1  ;;  %v13712_v59 = vpop.permute.xlu1 %8818 }
 0x259   : > { %v13714_v24 = vpop.f32.mrf.mxu0 }
 0x25a   : > { %16956 = vst [vmem:[#allocation122_spill] sm:$0xff] %v13714_v24  ;;  %v13716_v60 = vpop.f32.mrf.mxu1 }
 0x25b   : > { %16957 = vst [vmem:[#allocation123_spill] sm:$0xff] %v13716_v60  ;;  %v6417_v7 = vpop.f32.mrf.mxu0  ;;  %v8821_v45 = vpop.permute.xlu0 %8820 }
 0x25c   : > { %v8305_v20 = vmax.f32 %v6331_v17, %v6417_v7  ;;  %v6460_v18 = vpop.f32.mrf.mxu1  ;;  %v13721_v13 = vpop.permute.xlu1 %8822 }
 0x25d   : > { %v8307_v44 = vmax.f32 %v6374_v61, %v6460_v18  ;;  %v13723_v21 = vpop.f32.mrf.mxu0  ;;  %v8565_v18 = vand.u32 7, %v13719_v29 }
 0x25e   : > { %16959 = vst [vmem:[#allocation125_spill] sm:$0xff] %v13723_v21  ;;  %v13728_v42 = vmax.f32 %v16960_v30, %v8305_v20  ;;  %v13732_v32 = vpop.f32.mrf.mxu1 }
 0x25f   : > { %16962 = vst [vmem:[#allocation127_spill] sm:$0xff] %v13732_v32  ;;  %v13737_v17 = vmax.f32 %v16963_v36, %v8307_v44  ;;  %v6421_v7 = vpop.f32.mrf.mxu0  ;;  %v16968_v44 = vld [vmem:[#allocation89_spill] sm:$0xff]  ;;  %vm13769_vm3 = vcmp.ne.s32.totalorder %v8565_v18, 0  ;;  %v16985_v18 = vld [vmem:[#allocation50_spill] sm:$0xff] }
 0x260   : > { %16961 = vst [vmem:[#allocation126_spill] sm:$0xff] %v13728_v42  ;;  %v8309_v55 = vmax.f32 %v6335_v0, %v6421_v7  ;;  %v6464_v20 = vpop.f32.mrf.mxu1  ;;  %v8825_v30 = vpop.permute.xlu1 %8824  ;;  %v16969_v61 = vmax.f32 %v13495_v39, %v16968_v44  ;;  %v16972_v7 = vld [vmem:[#allocation82_spill] sm:$0xff]  ;;  %v16977_v57 = vsel %vm13769_vm3, 4294967295, %v16976_v57  ;;  %v8579_v39 = vand.u32 7, %v13743_v40 }
 0x261   : > { %16964 = vst [vmem:[#allocation128_spill] sm:$0xff] %v13737_v17  ;;  %v8311_v1 = vmax.f32 %v6378_v37, %v6464_v20  ;;  %v13749_v36 = vpop.f32.mrf.mxu0  ;;  %v16974_v53 = vmax.f32 %v16972_v7, %v16973_v41  ;;  %16978 = vst [vmem:[#allocation90_spill] sm:$0xff] %v16977_v57  ;;  %v16979_v44 = vmov 0  ;;  %v16983_v41 = vld [vmem:[#allocation52_spill] sm:$0xff]  ;;  %v8572_v7 = vand.u32 7, %v13747_v22 }
 0x262   : > { %16967 = vst [vmem:[#allocation131_spill] sm:$0xff] %v13749_v36  ;;  %v13754_v16 = vmax.f32 %v16969_v61, %v8309_v55  ;;  %v13758_v0 = vpop.f32.mrf.mxu1  ;;  %v16980_v44 = vsel %vm13776_vm5, 4294967295, %v16979_v44  ;;  %v13795_v48 = vsel %vm8783_vm4, 0.0, %v8825_v30  ;;  %vm13823_vm6 = vcmp.ne.s32.totalorder %v8579_v39, 0 }
 0x263   : > { %16971 = vst [vmem:[#allocation132_spill] sm:$0xff] %v13758_v0  ;;  %v13763_v34 = vmax.f32 %v16974_v53, %v8311_v1  ;;  %v13767_v20 = vpop.f32.mrf.mxu0  ;;  %16981 = vst [vmem:[#allocation133_spill] sm:$0xff] %v16980_v44  ;;  %v16982_v53 = vld [vmem:[#allocation10_spill] sm:$0xff]  ;;  %vm13838_vm7 = vcmp.ne.s32.totalorder %v8572_v7, 0  ;;  %v17001_v39 = vmov 0 }
 0x264   : > { %16970 = vst [vmem:[#allocation89_spill] sm:$0xff] %v13754_v16  ;;  %v13774_v61 = vpop.f32.mrf.mxu1  ;;  %v8827_v55 = vpop.permute.xlu1 %8826  ;;  %v13782_v1 = vadd.f32 %v16983_v41, %v16982_v53  ;;  %v13787_v37 = vadd.f32 %v16985_v18, %v16982_v53  ;;  %16988 = vst [vmem:[#allocation134_spill] sm:$0xff] %v13795_v48  ;;  %v16989_v41 = vld [vmem:[#allocation18_spill] sm:$0xff]  ;;  %v17002_v39 = vsel %vm13838_vm7, 4294967295, %v17001_v39  ;;  %v13844_v5 = vadd.f32 %v17004_v33, %v16982_v53 }
 0x265   : > { %16975 = vst [vmem:[#allocation82_spill] sm:$0xff] %v13763_v34  ;;  %v13789_v28 = vpop.f32.mrf.mxu0  ;;  %v13792_v8 = vsel %vm8783_vm4, %v8825_v30, %v8827_v55  ;;  %v13804_v6 = vadd.f32 %v16990_v52, %v16989_v41  ;;  %v16992_v18 = vld [vmem:[#allocation38_spill] sm:$0xff]  ;;  %v13812_v23 = vadd.f32 %v16993_v63, %v16989_v41  ;;  %v8829_v30 = vpop.permute.xlu0 %8828  ;;  %v16996_v52 = vmov 0  ;;  %17003 = vst [vmem:[#allocation135_spill] sm:$0xff] %v17002_v39 }
 0x266   : > { %16984 = vst [vmem:[#allocation10_spill] sm:$0xff] %v13782_v1  ;;  %16986 = vst [vmem:[#allocation52_spill] sm:$0xff] %v13787_v37  ;;  %v13797_v14 = vpop.f32.mrf.mxu1  ;;  %11038 = vmatprep.subr.msk.mxu0 %vm13769_vm3, %v13792_v8  ;;  %v13808_v31 = vadd.f32 %v16989_v41, %v16992_v18  ;;  %v16997_v52 = vsel %vm13823_vm6, 4294967295, %v16996_v52  ;;  %v16999_v18 = vld [vmem:[#allocation44_spill] sm:$0xff]  ;;  %v13830_v63 = vsel %vm8783_vm4, 0.0, %v8817_v35  ;;  %v13851_v3 = vadd.f32 %v17007_v58, %v16982_v53 }
 0x267   : > { %16987 = vst [vmem:[#allocation50_spill] sm:$0xff] %v13792_v8  ;;  %16991 = vst [vmem:[#allocation18_spill] sm:$0xff] %v13804_v6  ;;  %v13814_v38 = vpop.f32.mrf.mxu0  ;;  %11039 = vmatpush1.msk.msra.mxu0 %vm13776_vm5, %v13795_v48  ;;  %v13821_v8 = vsel %vm8783_vm4, %v8817_v35, %v13712_v59  ;;  %v7886_v11 = vadd.f32 %v16982_v53, %v16999_v18  ;;  %v17006_v18 = vld [vmem:[#allocation42_spill] sm:$0xff]  ;;  %v13862_v33 = vsel %vm8783_vm4, %v8827_v55, %v8829_v30  ;;  %v17012_v58 = vld [vmem:[#allocation40_spill] sm:$0xff] }
 0x268   : > { %16994 = vst [vmem:[#allocation48_spill] sm:$0xff] %v13812_v23  ;;  %16995 = vst [vmem:[#allocation38_spill] sm:$0xff] %v13821_v8  ;;  %v13832_v2 = vpop.f32.mrf.mxu1  ;;  %v8831_v49 = vpop.permute.xlu1 %8830  ;;  %11040 = vmatprep.subr.msk.mxu0 %vm13769_vm3, %v13821_v8  ;;  %v7885_v35 = vadd.f32 %v16982_v53, %v17006_v18  ;;  %v17011_v18 = vmax.f32 %v13782_v1, 0.0  ;;  %v7882_v50 = vadd.f32 %v16989_v41, %v17012_v58  ;;  %v17021_v46 = vmax.f32 %v13804_v6, 0.0 }
 0x269   : > { %16998 = vst [vmem:[#allocation46_spill] sm:$0xff] %v16997_v52  ;;  %17000 = vst [vmem:[#allocation44_spill] sm:$0xff] %v13830_v63  ;;  %v13854_v8 = vsel %vm8783_vm4, %v8829_v30, %v8831_v49  ;;  %v13856_v7 = vpop.f32.mrf.mxu0  ;;  %11041 = vmatpush1.msk.msra.mxu0 %vm13776_vm5, %v13830_v63  ;;  %v13876_v63 = vadd.f32 %v17013_v56, %v16989_v41  ;;  %v17015_v30 = vld [vmem:[#allocation47_spill] sm:$0xff]  ;;  %v17018_v49 = vmax.f32 %v13787_v37, 0.0  ;;  %v17019_v56 = vld [vmem:[#allocation45_spill] sm:$0xff] }
 0x26a   : > { %17005 = vst [vmem:[#allocation53_spill] sm:$0xff] %v13844_v5  ;;  %17008 = vst [vmem:[#allocation42_spill] sm:$0xff] %v13851_v3  ;;  %v13864_v48 = vpop.f32.mrf.mxu1  ;;  %8871 = vmatprep.subr.mxu0 %v17011_v18  ;;  %11060 = vmatprep.subr.msk.mxu1 %vm13823_vm6, %v13854_v8  ;;  %v13881_v51 = vadd.f32 %v17015_v30, %v16989_v41  ;;  %v13885_v18 = vsel %vm8783_vm4, %v8821_v45, %v13721_v13 }
 0x26b   : > { %17009 = vst [vmem:[#allocation51_spill] sm:$0xff] %v13854_v8  ;;  %17010 = vst [vmem:[#allocation136_spill] sm:$0xff] %v13862_v33  ;;  %v13887_v8 = vpop.f32.mrf.mxu0  ;;  %8872 = vmatpush1.msra.mxu0 %v17018_v49  ;;  %11061 = vmatpush1.msk.msra.mxu1 %vm13838_vm7, %v13862_v33  ;;  %v7888_v58 = vadd.f32 %v16982_v53, %v17019_v56  ;;  %v13898_v30 = vsel %vm8783_vm4, %v13712_v59, %v8821_v45  ;;  %v7894_v49 = vmax.f32 %v7886_v11, 0.0  ;;  %v17024_v45 = vld [vmem:[#allocation41_spill] sm:$0xff] }
 0x26c   : > { %17014 = vst [vmem:[#allocation40_spill] sm:$0xff] %v13876_v63  ;;  %17016 = vst [vmem:[#allocation49_spill] sm:$0xff] %v13881_v51  ;;  %v13902_v55 = vpop.f32.mrf.mxu1  ;;  %8873 = vmatprep.subr.mxu0 %v17021_v46  ;;  %11062 = vmatprep.subr.msk.mxu1 %vm13823_vm6, %v13885_v18  ;;  %v16481_v33 = vmax.f32 %v13844_v5, 0.0  ;;  %v7893_v56 = vmax.f32 %v7885_v35, 0.0  ;;  %v7887_v59 = vadd.f32 %v16982_v53, %v17022_v4  ;;  %v17023_v46 = vmax.f32 %v13812_v23, 0.0 }
 0x26d   : > { %17017 = vst [vmem:[#allocation47_spill] sm:$0xff] %v13885_v18  ;;  %17020 = vst [vmem:[#allocation45_spill] sm:$0xff] %v13898_v30  ;;  %v13915_v62 = vpop.f32.mrf.mxu0  ;;  %11063 = vmatpush1.msk.msra.mxu1 %vm13838_vm7, %v13898_v30  ;;  %v7890_v4 = vmax.f32 %v7882_v50, 0.0  ;;  %v7884_v18 = vadd.f32 %v16989_v41, %v17024_v45  ;;  %v17025_v11 = vmax.f32 %v13851_v3, 0.0  ;;  %v7896_v30 = vmax.f32 %v7888_v58, 0.0 }
 0x26e   : > { %8874 = vmatpush1.msra.mxu0 %v17023_v46  ;;  %v13924_v35 = vpop.f32.mrf.mxu1  ;;  %8948 = vmatprep.subr.mxu1 %v16481_v33  ;;  %v17026_v33 = vld [vmem:[#allocation39_spill] sm:$0xff]  ;;  %v17027_v46 = vmax.f32 %v13876_v63, 0.0  ;;  %v7895_v5 = vmax.f32 %v7887_v59, 0.0  ;;  %v8798_v58 = vsel %vm8783_vm4, 0.0, %v13643_v15  ;;  %v17054_v24 = vmax.f32 %v13767_v20, %v13887_v8 }
 0x26f   : > { %8875 = vmatprep.subr.mxu0 %v7894_v49  ;;  %v13934_v23 = vpop.f32.mrf.mxu0  ;;  %8949 = vmatpush1.msra.mxu1 %v17025_v11  ;;  %v7889_v49 = vmax.f32 %v13808_v31, 0.0  ;;  %v7883_v50 = vadd.f32 %v16989_v41, %v17026_v33  ;;  %v17028_v31 = vmax.f32 %v13881_v51, 0.0  ;;  %v8787_v33 = vsel %vm8783_vm4, %v13682_v26, %v13664_v27 }
 0x270   : > { %8876 = vmatpush1.msra.mxu0 %v7893_v56  ;;  %v13943_v45 = vpop.f32.mrf.mxu1  ;;  %8950 = vmatprep.subr.mxu1 %v17027_v46  ;;  %v7892_v46 = vmax.f32 %v7884_v18, 0.0  ;;  %v8789_v18 = vsel %vm8783_vm4, %v13708_v19, %v13702_v25  ;;  %v17057_v8 = vmax.f32 %v13797_v14, %v13924_v35 }
 0x271   : > { %8877 = vmatprep.subr.mxu0 %v7890_v4  ;;  %v13949_v11 = vpop.f32.mrf.mxu0  ;;  %8951 = vmatpush1.msra.mxu1 %v17028_v31  ;;  %v8799_v4 = vsel %vm8783_vm4, 0.0, %v13682_v26  ;;  %v8784_v26 = vsel %vm8783_vm4, %v13643_v15, %v13626_v47  ;;  %v7891_v56 = vmax.f32 %v7883_v50, 0.0  ;;  %v8786_v50 = vsel %vm8783_vm4, %v13660_v9, %v13654_v43 }
 0x272   : > { %8878 = vmatpush1.msra.mxu0 %v7889_v49  ;;  %v13960_v59 = vpop.f32.mrf.mxu1  ;;  %8952 = vmatprep.subr.mxu1 %v7896_v30  ;;  %v17059_v14 = vmax.f32 %v13856_v7, %v13949_v11 }
 0x273   : > { %11042 = vmatprep.subr.msk.mxu0 %vm13769_vm3, %v8787_v33  ;;  %v13966_v31 = vpop.f32.mrf.mxu0  ;;  %8953 = vmatpush1.msra.mxu1 %v7895_v5  ;;  %v8788_v5 = vsel %vm8783_vm4, %v13664_v27, %v13708_v19  ;;  %v17061_v7 = vmax.f32 %v13864_v48, %v13960_v59 }
 0x274   : > { %11043 = vmatpush1.msk.msra.mxu0 %vm13776_vm5, %v8799_v4  ;;  %v13975_v33 = vpop.f32.mrf.mxu1  ;;  %8954 = vmatprep.subr.mxu1 %v7892_v46 }
 0x275   : > { %11044 = vmatprep.subr.msk.mxu0 %vm13769_vm3, %v8784_v26  ;;  %v13982_v30 = vpop.f32.mrf.mxu0  ;;  %8955 = vmatpush1.msra.mxu1 %v7891_v56  ;;  %v8785_v56 = vsel %vm8783_vm4, %v13626_v47, %v13660_v9 }
 0x276   : > { %11045 = vmatpush1.msk.msra.mxu0 %vm13776_vm5, %v8798_v58  ;;  %v13989_v15 = vpop.f32.mrf.mxu1  ;;  %11064 = vmatprep.subr.msk.mxu1 %vm13823_vm6, %v8789_v18 }
 0x277   : > { %v13996_v25 = vpop.f32.mrf.mxu0  ;;  %11065 = vmatpush1.msk.msra.mxu1 %vm13838_vm7, %v8788_v5 }
 0x278   : > { %v14003_v4 = vpop.f32.mrf.mxu1  ;;  %11066 = vmatprep.subr.msk.mxu1 %vm13823_vm6, %v8786_v50 }
 0x279   : > { %v14007_v27 = vpop.f32.mrf.mxu0  ;;  %11067 = vmatpush1.msk.msra.mxu1 %vm13838_vm7, %v8785_v56 }
 0x27a   : > { %v14011_v43 = vpop.f32.mrf.mxu1 }
 0x27b   : > { %v14013_v19 = vpop.f32.mrf.mxu0 }
 0x27c   : > { %v14017_v46 = vpop.f32.mrf.mxu1 }
 0x27d   : > { %v14021_v9 = vpop.f32.mrf.mxu0 }
 0x27e   : > { %v14025_v18 = vpop.f32.mrf.mxu1 }
 0x27f   : > { %v14029_v50 = vpop.f32.mrf.mxu0 }
 0x280   : > { %v14033_v58 = vpop.f32.mrf.mxu1 }
 0x281   : > { %v14037_v49 = vpop.f32.mrf.mxu0 }
 0x282   : > { %v14041_v13 = vpop.f32.mrf.mxu1 }
 0x283   : > { %v14045_v51 = vpop.f32.mrf.mxu0 }
 0x284   : > { %v14047_v63 = vpop.f32.mrf.mxu1 }
 0x285   : > { %v14049_v56 = vpop.f32.mrf.mxu0 }
 0x286   : > { %17029 = vst [vmem:[#allocation43_spill] sm:$0xff] %v14049_v56  ;;  %v14051_v3 = vpop.f32.mrf.mxu1 }
 0x287   : > { %v14053_v6 = vpop.f32.mrf.mxu0 }
 0x288   : > { %17030 = vst [vmem:[#allocation41_spill] sm:$0xff] %v14053_v6  ;;  %v14055_v47 = vpop.f32.mrf.mxu1 }
 0x289   : > { %17031 = vst [vmem:[#allocation39_spill] sm:$0xff] %v14055_v47  ;;  %v14057_v37 = vpop.f32.mrf.mxu0  ;;  %v17055_v47 = vmax.f32 %v13774_v61, %v13902_v55 }
 0x28a   : > { %17032 = vst [vmem:[#allocation137_spill] sm:$0xff] %v14057_v37  ;;  %v14059_v26 = vpop.f32.mrf.mxu1 }
 0x28b   : > { %17033 = vst [vmem:[#allocation138_spill] sm:$0xff] %v14059_v26  ;;  %v14061_v1 = vpop.f32.mrf.mxu0 }
 0x28c   : > { %v14065_v39 = vpop.f32.mrf.mxu1 }
 0x28d   : > { %v14069_v44 = vpop.f32.mrf.mxu0 }
 0x28e   : > { %17034 = vst [vmem:[#allocation139_spill] sm:$0xff] %v14069_v44  ;;  %v14073_v22 = vpop.f32.mrf.mxu1 }
 0x28f   : > { %v14077_v12 = vpop.f32.mrf.mxu0 }
 0x290   : > { %17035 = vst [vmem:[#allocation140_spill] sm:$0xff] %v14077_v12  ;;  %v14081_v29 = vpop.f32.mrf.mxu1 }
 0x291   : > { %17036 = vst [vmem:[#allocation141_spill] sm:$0xff] %v14081_v29  ;;  %v14085_v17 = vpop.f32.mrf.mxu0 }
 0x292   : > { %17037 = vst [vmem:[#allocation142_spill] sm:$0xff] %v14085_v17  ;;  %v14089_v32 = vpop.f32.mrf.mxu1 }
 0x293   : > { %17038 = vst [vmem:[#allocation143_spill] sm:$0xff] %v14089_v32  ;;  %v14093_v10 = vpop.f32.mrf.mxu0 }
 0x294   : > { %v14095_v42 = vpop.f32.mrf.mxu1 }
 0x295   : > { %17039 = vst [vmem:[#allocation144_spill] sm:$0xff] %v14095_v42  ;;  %v14097_v5 = vpop.f32.mrf.mxu0  ;;  %v17056_v42 = vmax.f32 %v13789_v28, %v13915_v62 }
 0x296   : > { %17040 = vst [vmem:[#allocation145_spill] sm:$0xff] %v14097_v5  ;;  %v14099_v21 = vpop.f32.mrf.mxu1 }
 0x297   : > { %17041 = vst [vmem:[#allocation146_spill] sm:$0xff] %v14099_v21  ;;  %v14101_v54 = vpop.f32.mrf.mxu0 }
 0x298   : > { %17042 = vst [vmem:[#allocation147_spill] sm:$0xff] %v14101_v54  ;;  %v14103_v52 = vpop.f32.mrf.mxu1 }
 0x299   : > { %17043 = vst [vmem:[#allocation148_spill] sm:$0xff] %v14103_v52  ;;  %v14105_v34 = vpop.f32.mrf.mxu0 }
 0x29a   : > { %17044 = vst [vmem:[#allocation149_spill] sm:$0xff] %v14105_v34  ;;  %v14107_v57 = vpop.f32.mrf.mxu1 }
 0x29b   : > { %17045 = vst [vmem:[#allocation150_spill] sm:$0xff] %v14107_v57  ;;  %v14109_v0 = vpop.f32.mrf.mxu0 }
 0x29c   : > { %17046 = vst [vmem:[#allocation151_spill] sm:$0xff] %v14109_v0  ;;  %v14113_v60 = vpop.f32.mrf.mxu1 }
 0x29d   : > { %17047 = vst [vmem:[#allocation152_spill] sm:$0xff] %v14113_v60  ;;  %v14117_v36 = vpop.f32.mrf.mxu0 }
 0x29e   : > { %17048 = vst [vmem:[#allocation153_spill] sm:$0xff] %v14117_v36  ;;  %v14121_v29 = vpop.f32.mrf.mxu1 }
 0x29f   : > { %17049 = vst [vmem:[#allocation154_spill] sm:$0xff] %v14121_v29  ;;  %v14125_v44 = vpop.f32.mrf.mxu0 }
 0x2a0   : > { %17050 = vst [vmem:[#allocation155_spill] sm:$0xff] %v14125_v44  ;;  %v14129_v56 = vpop.f32.mrf.mxu1 }
 0x2a1   : > { %17051 = vst [vmem:[#allocation156_spill] sm:$0xff] %v14129_v56  ;;  %v14133_v12 = vpop.f32.mrf.mxu0 }
 0x2a2   : > { %17052 = vst [vmem:[#allocation157_spill] sm:$0xff] %v14133_v12  ;;  %v14137_v6 = vpop.f32.mrf.mxu1 }
 0x2a3   : > { %17053 = vst [vmem:[#allocation158_spill] sm:$0xff] %v14137_v6  ;;  %v7191_v32 = vpop.f32.mrf.mxu0 }
 0x2a4   : > { %v7234_v26 = vpop.f32.mrf.mxu1 }
 0x2a5   : > { %v7193_v17 = vpop.f32.mrf.mxu0 }
 0x2a6   : > { %v7236_v37 = vpop.f32.mrf.mxu1 }
 0x2a7   : > { %v7195_v40 = vpop.f32.mrf.mxu0 }
 0x2a8   : > { %v7238_v44 = vpop.f32.mrf.mxu1 }
 0x2a9   : > { %v7197_v54 = vpop.f32.mrf.mxu0 }
 0x2aa   : > { %v7240_v29 = vpop.f32.mrf.mxu1 }
 0x2ab   : > { %v7277_v21 = vpop.f32.mrf.mxu0 }
 0x2ac   : > { %v8345_v16 = vmax.f32 %v7191_v32, %v7277_v21  ;;  %v7320_v56 = vpop.f32.mrf.mxu1 }
 0x2ad   : > { %v8347_v52 = vmax.f32 %v7234_v26, %v7320_v56  ;;  %v7279_v36 = vpop.f32.mrf.mxu0 }
 0x2ae   : > { %v8353_v12 = vmax.f32 %v17054_v24, %v8345_v16  ;;  %v8346_v34 = vmax.f32 %v7193_v17, %v7279_v36  ;;  %v7322_v5 = vpop.f32.mrf.mxu1 }
 0x2af   : > { %v8355_v6 = vmax.f32 %v17055_v47, %v8347_v52  ;;  %v8348_v57 = vmax.f32 %v7236_v37, %v7322_v5  ;;  %v7281_v60 = vpop.f32.mrf.mxu0  ;;  %v17058_v37 = vmax.f32 %v13814_v38, %v13934_v23 }
 0x2b0   : > { %v8354_v0 = vmax.f32 %v17056_v42, %v8346_v34  ;;  %v8349_v32 = vmax.f32 %v7195_v40, %v7281_v60  ;;  %v7324_v21 = vpop.f32.mrf.mxu1  ;;  %v14151_v26 = vadd.f32 %v8353_v12, %v16989_v41 }
 0x2b1   : > { %v8356_v16 = vmax.f32 %v17057_v8, %v8348_v57  ;;  %v8351_v24 = vmax.f32 %v7238_v44, %v7324_v21  ;;  %v7283_v17 = vpop.f32.mrf.mxu0  ;;  %v14157_v36 = vadd.f32 %v8355_v6, %v16989_v41 }
 0x2b2   : > { %v8357_v20 = vmax.f32 %v17058_v37, %v8349_v32  ;;  %v8350_v62 = vmax.f32 %v7197_v54, %v7283_v17  ;;  %v7326_v28 = vpop.f32.mrf.mxu1  ;;  %v16553_v42 = vmax.f32 %v14151_v26, 0.0  ;;  %v14164_v34 = vadd.f32 %v8354_v0, %v16989_v41 }
 0x2b3   : > { %v7363_v12 = vpop.f32.mrf.mxu0  ;;  %v8352_v60 = vmax.f32 %v7240_v29, %v7326_v28  ;;  %v14174_v38 = vadd.f32 %v8356_v16, %v16989_v41  ;;  %v17060_v54 = vmax.f32 %v13832_v2, %v13943_v45  ;;  %v16534_v29 = vmax.f32 %v14157_v36, 0.0 }
 0x2b4   : > { %v8358_v57 = vmax.f32 %v17059_v14, %v8350_v62  ;;  %v7406_v40 = vpop.f32.mrf.mxu1  ;;  %8670 = vrot.lane.b32.xlu0 %v16553_v42, %s11405_s17  ;;  %v16554_v23 = vmax.f32 %v14164_v34, 0.0  ;;  %v14184_v44 = vadd.f32 %v8357_v20, %v16982_v53  ;;  %v17062_v17 = vmax.f32 %v13966_v31, %v14013_v19 }
 0x2b5   : > { %v7365_v6 = vpop.f32.mrf.mxu0  ;;  %v8359_v0 = vmax.f32 %v17060_v54, %v8351_v24  ;;  %v8360_v55 = vmax.f32 %v17061_v7, %v8352_v60  ;;  %v16535_v2 = vmax.f32 %v14174_v38, 0.0 }
 0x2b6   : > { %v7408_v61 = vpop.f32.mrf.mxu1  ;;  %8672 = vrot.lane.b32.xlu1 %v16554_v23, %s11405_s17  ;;  %v14194_v45 = vadd.f32 %v8358_v57, %v16982_v53  ;;  %v16555_v5 = vmax.f32 %v14184_v44, 0.0 }
 0x2b7   : > { %v7367_v52 = vpop.f32.mrf.mxu0  ;;  %v14201_v48 = vadd.f32 %v8359_v0, %v16982_v53  ;;  %v14208_v8 = vadd.f32 %v8360_v55, %v16982_v53 }
 0x2b8   : > { %v7410_v35 = vpop.f32.mrf.mxu1  ;;  %8674 = vrot.lane.b32.xlu0 %v16534_v29, %s11405_s17  ;;  %v16556_v21 = vmax.f32 %v14194_v45, 0.0 }
 0x2b9   : > { %v7369_v11 = vpop.f32.mrf.mxu0  ;;  %v16536_v28 = vmax.f32 %v14201_v48, 0.0 }
 0x2ba   : > { %v7412_v47 = vpop.f32.mrf.mxu1  ;;  %8676 = vrot.lane.b32.xlu1 %v16535_v2, %s11405_s17  ;;  %v17086_v2 = vld [vmem:[#allocation145_spill] sm:$0xff] }
 0x2bb   : > { %v7449_v59 = vpop.f32.mrf.mxu0 }
 0x2bc   : > { %v8385_v56 = vmax.f32 %v7363_v12, %v7449_v59  ;;  %v7492_v32 = vpop.f32.mrf.mxu1  ;;  %8678 = vrot.lane.b32.xlu0 %v16555_v5, %s11405_s17  ;;  %v17063_v12 = vmax.f32 %v13975_v33, %v14017_v46  ;;  %v17065_v33 = vmax.f32 %v13989_v15, %v14025_v18  ;;  %v17068_v18 = vmax.f32 %v14007_v27, %v14037_v49  ;;  %v17250_v5 = vld [vmem:[#allocation34_spill] sm:$0xff] }
 0x2bd   : > { %v8387_v16 = vmax.f32 %v7406_v40, %v7492_v32  ;;  %v7451_v24 = vpop.f32.mrf.mxu0  ;;  %v17064_v40 = vmax.f32 %v13982_v30, %v14021_v9  ;;  %v17066_v30 = vmax.f32 %v13996_v25, %v14029_v50 }
 0x2be   : > { %v8393_v37 = vmax.f32 %v17062_v17, %v8385_v56  ;;  %v8386_v20 = vmax.f32 %v7365_v6, %v7451_v24  ;;  %v7494_v62 = vpop.f32.mrf.mxu1  ;;  %8680 = vrot.lane.b32.xlu1 %v16556_v21, %s11405_s17  ;;  %v16537_v6 = vmax.f32 %v14208_v8, 0.0  ;;  %v17070_v17 = vmax.f32 %v14003_v4, %v14033_v58  ;;  %v17171_v21 = vld [vmem:[#allocation129_spill] sm:$0xff] }
 0x2bf   : > { %v8395_v14 = vmax.f32 %v17063_v12, %v8387_v16  ;;  %v8388_v57 = vmax.f32 %v7408_v61, %v7494_v62  ;;  %v7453_v60 = vpop.f32.mrf.mxu0  ;;  %v17072_v62 = vmax.f32 %v14011_v43, %v14041_v13 }
 0x2c0   : > { %v8394_v54 = vmax.f32 %v17064_v40, %v8386_v20  ;;  %v8389_v31 = vmax.f32 %v7367_v52, %v7453_v60  ;;  %v7496_v19 = vpop.f32.mrf.mxu1  ;;  %8682 = vrot.lane.b32.xlu0 %v16536_v28, %s11405_s17  ;;  %v8401_v0 = vadd.f32 %v8393_v37, %v16989_v41  ;;  %v17087_v28 = vld [vmem:[#allocation153_spill] sm:$0xff] }
 0x2c1   : > { %v8396_v46 = vmax.f32 %v17065_v33, %v8388_v57  ;;  %v8391_v61 = vmax.f32 %v7410_v35, %v7496_v19  ;;  %v7455_v7 = vpop.f32.mrf.mxu0  ;;  %v8403_v55 = vadd.f32 %v8395_v14, %v16989_v41 }
 0x2c2   : > { %v8397_v9 = vmax.f32 %v17066_v30, %v8389_v31  ;;  %v8390_v52 = vmax.f32 %v7369_v11, %v7455_v7  ;;  %v7498_v59 = vpop.f32.mrf.mxu1  ;;  %8684 = vrot.lane.b32.xlu1 %v16537_v6, %s11405_s17  ;;  %v14238_v56 = vmax.f32 %v8401_v0, 0.0  ;;  %v8402_v32 = vadd.f32 %v8394_v54, %v16989_v41 }
 0x2c3   : > { %v7535_v15 = vpop.f32.mrf.mxu0  ;;  %v8392_v16 = vmax.f32 %v7412_v47, %v7498_v59  ;;  %v8404_v50 = vadd.f32 %v8396_v46, %v16989_v41  ;;  %v8399_v37 = vmax.f32 %v17070_v17, %v8391_v61  ;;  %v14256_v49 = vmax.f32 %v8403_v55, 0.0 }
 0x2c4   : > { %17067 = vst [vmem:[#allocation159_spill] sm:$0xff] %v14238_v56  ;;  %v8398_v35 = vmax.f32 %v17068_v18, %v8390_v52  ;;  %v7578_v24 = vpop.f32.mrf.mxu1  ;;  %8719 = vrot.lane.b32.xlu0 %v14238_v56, %s11405_s17  ;;  %v14246_v25 = vmax.f32 %v8402_v32, 0.0  ;;  %v8405_v27 = vadd.f32 %v8397_v9, %v16982_v53  ;;  %v17076_v61 = vmax.f32 %v14045_v51, %v14061_v1 }
 0x2c5   : > { %v14249_v11 = vpop.f32.mrf.mxu0  ;;  %17071 = vst [vmem:[#allocation161_spill] sm:$0xff] %v14256_v49  ;;  %v8400_v12 = vmax.f32 %v17072_v62, %v8392_v16  ;;  %v14268_v4 = vmax.f32 %v8404_v50, 0.0  ;;  %v8407_v13 = vadd.f32 %v8399_v37, %v16982_v53  ;;  %v17078_v9 = vmax.f32 %v14047_v63, %v14065_v39 }
 0x2c6   : > { %17069 = vst [vmem:[#allocation160_spill] sm:$0xff] %v14246_v25  ;;  %v7580_v20 = vpop.f32.mrf.mxu1  ;;  %8721 = vrot.lane.b32.xlu1 %v14246_v25, %s11405_s17  ;;  %v8406_v58 = vadd.f32 %v8398_v35, %v16982_v53  ;;  %v14277_v40 = vmax.f32 %v8405_v27, 0.0  ;;  %v17080_v1 = vmax.f32 %v14051_v3, %v14073_v22 }
 0x2c7   : > { %v14259_v47 = vpop.f32.mrf.mxu0  ;;  %17073 = vst [vmem:[#allocation162_spill] sm:$0xff] %v14268_v4  ;;  %v8408_v0 = vadd.f32 %v8400_v12, %v16982_v53  ;;  %v14294_v30 = vmax.f32 %v8407_v13, 0.0  ;;  %v17081_v13 = vld [vmem:[#allocation151_spill] sm:$0xff] }
 0x2c8   : > { %v14264_v14 = vpop.f32.mrf.mxu1  ;;  %8723 = vrot.lane.b32.xlu0 %v14256_v49, %s11405_s17  ;;  %17074 = vst [vmem:[#allocation163_spill] sm:$0xff] %v14277_v40  ;;  %v14282_v19 = vmax.f32 %v8406_v58, 0.0 }
 0x2c9   : > { %v14271_v57 = vpop.f32.mrf.mxu0  ;;  %17077 = vst [vmem:[#allocation165_spill] sm:$0xff] %v14294_v30  ;;  %v14307_v51 = vmax.f32 %v8408_v0, 0.0 }
 0x2ca   : > { %v14273_v60 = vpop.f32.mrf.mxu1  ;;  %8725 = vrot.lane.b32.xlu1 %v14268_v4, %s11405_s17  ;;  %17075 = vst [vmem:[#allocation164_spill] sm:$0xff] %v14282_v19 }
 0x2cb   : > { %v7621_v43 = vpop.f32.mrf.mxu0  ;;  %17079 = vst [vmem:[#allocation166_spill] sm:$0xff] %v14307_v51 }
 0x2cc   : > { %v8425_v54 = vmax.f32 %v7535_v15, %v7621_v43  ;;  %v7664_v31 = vpop.f32.mrf.mxu1  ;;  %8727 = vrot.lane.b32.xlu0 %v14277_v40, %s11405_s17  ;;  %v17082_v43 = vmax.f32 %v14093_v10, %v17081_v13  ;;  %v17089_v10 = vld [vmem:[#allocation146_spill] sm:$0xff] }
 0x2cd   : > { %v8427_v33 = vmax.f32 %v7578_v24, %v7664_v31  ;;  %v14285_v46 = vpop.f32.mrf.mxu0 }
 0x2ce   : > { %v14290_v7 = vmax.f32 %v17076_v61, %v8425_v54  ;;  %v7666_v55 = vpop.f32.mrf.mxu1  ;;  %8729 = vrot.lane.b32.xlu1 %v14282_v19, %s11405_s17  ;;  %v17084_v61 = vld [vmem:[#allocation152_spill] sm:$0xff] }
 0x2cf   : > { %v14299_v52 = vmax.f32 %v17078_v9, %v8427_v33  ;;  %v8428_v59 = vmax.f32 %v7580_v20, %v7666_v55  ;;  %v14301_v32 = vpop.f32.mrf.mxu0  ;;  %v17083_v33 = vld [vmem:[#allocation144_spill] sm:$0xff] }
 0x2d0   : > { %v14303_v15 = vpop.f32.mrf.mxu1  ;;  %8731 = vrot.lane.b32.xlu0 %v14294_v30, %s11405_s17  ;;  %v17085_v55 = vmax.f32 %v17083_v33, %v17084_v61  ;;  %v17221_v30 = vld [vmem:[#allocation16_spill] sm:$0xff] }
 0x2d1   : > { %v14312_v18 = vmax.f32 %v17080_v1, %v8428_v59  ;;  %v14314_v35 = vpop.f32.mrf.mxu0 }
 0x2d2   : > { %v14316_v63 = vpop.f32.mrf.mxu1  ;;  %8733 = vrot.lane.b32.xlu1 %v14307_v51, %s11405_s17  ;;  %v17224_v51 = vld [vmem:[#allocation30_spill] sm:$0xff] }
 0x2d3   : > { %v7707_v39 = vpop.f32.mrf.mxu0 }
 0x2d4   : > { %v7750_v16 = vpop.f32.mrf.mxu1 }
 0x2d5   : > { %v7709_v24 = vpop.f32.mrf.mxu0 }
 0x2d6   : > { %v7752_v50 = vpop.f32.mrf.mxu1 }
 0x2d7   : > { %v7711_v17 = vpop.f32.mrf.mxu0 }
 0x2d8   : > { %v7754_v37 = vpop.f32.mrf.mxu1 }
 0x2d9   : > { %v7713_v20 = vpop.f32.mrf.mxu0 }
 0x2da   : > { %v7756_v27 = vpop.f32.mrf.mxu1 }
 0x2db   : > { %v7793_v62 = vpop.f32.mrf.mxu0 }
 0x2dc   : > { %v8465_v12 = vmax.f32 %v7707_v39, %v7793_v62  ;;  %v7836_v3 = vpop.f32.mrf.mxu1  ;;  %v17088_v39 = vmax.f32 %v17086_v2, %v17087_v28 }
 0x2dd   : > { %v8467_v22 = vmax.f32 %v7750_v16, %v7836_v3  ;;  %v7795_v58 = vpop.f32.mrf.mxu0 }
 0x2de   : > { %v8473_v54 = vmax.f32 %v17082_v43, %v8465_v12  ;;  %v8466_v31 = vmax.f32 %v7709_v24, %v7795_v58  ;;  %v7838_v0 = vpop.f32.mrf.mxu1  ;;  %v17090_v12 = vld [vmem:[#allocation154_spill] sm:$0xff] }
 0x2df   : > { %v8475_v9 = vmax.f32 %v17085_v55, %v8467_v22  ;;  %v8468_v59 = vmax.f32 %v7752_v50, %v7838_v0  ;;  %v7797_v1 = vpop.f32.mrf.mxu0  ;;  %v17091_v24 = vmax.f32 %v17089_v10, %v17090_v12  ;;  %v17093_v22 = vld [vmem:[#allocation147_spill] sm:$0xff]  ;;  %v17097_v55 = vld [vmem:[#allocation149_spill] sm:$0xff] }
 0x2e0   : > { %v8481_v29 = vadd.f32 %v8473_v54, %v16989_v41  ;;  %v8474_v62 = vmax.f32 %v17088_v39, %v8466_v31  ;;  %v8469_v16 = vmax.f32 %v7711_v17, %v7797_v1  ;;  %v7840_v3 = vpop.f32.mrf.mxu1  ;;  %v17094_v54 = vld [vmem:[#allocation155_spill] sm:$0xff] }
 0x2e1   : > { %v8483_v6 = vadd.f32 %v8475_v9, %v16989_v41  ;;  %v8476_v58 = vmax.f32 %v17091_v24, %v8468_v59  ;;  %v8471_v13 = vmax.f32 %v7754_v37, %v7840_v3  ;;  %v7799_v43 = vpop.f32.mrf.mxu0  ;;  %v17095_v0 = vmax.f32 %v17093_v22, %v17094_v54  ;;  %v17098_v9 = vld [vmem:[#allocation157_spill] sm:$0xff]  ;;  %v17105_v24 = vld [vmem:[#allocation150_spill] sm:$0xff] }
 0x2e2   : > { %v14334_v33 = vmax.f32 %v8481_v29, 0.0  ;;  %v8482_v50 = vadd.f32 %v8474_v62, %v16989_v41  ;;  %v8470_v2 = vmax.f32 %v7713_v20, %v7799_v43  ;;  %v7842_v28 = vpop.f32.mrf.mxu1  ;;  %v17099_v1 = vmax.f32 %v17097_v55, %v17098_v9  ;;  %v17101_v62 = vld [vmem:[#allocation148_spill] sm:$0xff] }
 0x2e3   : > { %v8477_v61 = vmax.f32 %v17095_v0, %v8469_v16  ;;  %v8484_v31 = vadd.f32 %v8476_v58, %v16989_v41  ;;  %v8472_v37 = vmax.f32 %v7756_v27, %v7842_v28  ;;  %v14347_v29 = vmax.f32 %v8483_v6, 0.0  ;;  %v17102_v16 = vld [vmem:[#allocation156_spill] sm:$0xff]  ;;  %v17106_v58 = vld [vmem:[#allocation158_spill] sm:$0xff]  ;;  %v14364_v6 = vld [vmem:[%s16339_s3 + $0x8] sm:$0xff] }
 0x2e4   : > { %17092 = vst [vmem:[#allocation151_spill] sm:$0xff] %v14334_v33  ;;  %v14340_v17 = vmax.f32 %v8482_v50, 0.0  ;;  %v8478_v59 = vmax.f32 %v17099_v1, %v8470_v2  ;;  %8618 = vrot.lane.b32.xlu0 %v14334_v33, %s11406_s18  ;;  %v17103_v20 = vmax.f32 %v17101_v62, %v17102_v16  ;;  %v17107_v27 = vmax.f32 %v17105_v24, %v17106_v58  ;;  %v17112_v28 = vld [vmem:[#allocation137_spill] sm:$0xff]  ;;  %v17120_v16 = vld [vmem:[#allocation140_spill] sm:$0xff] }
 0x2e5   : > { %17100 = vst [vmem:[#allocation152_spill] sm:$0xff] %v14347_v29  ;;  %v8485_v39 = vadd.f32 %v8477_v61, %v16982_v53  ;;  %v14354_v10 = vmax.f32 %v8484_v31, 0.0  ;;  %11058 = vmatprep.mubr.msk.f32.mxu0 %vm8856_vm8, %v14364_v6  ;;  %11080 = vmatprep.mubr.msk.f32.mxu1 %vm8856_vm8, %v14364_v6  ;;  %v8430_v61 = vmax.f32 %v14271_v57, %v14314_v35  ;;  %v17113_v31 = vld [vmem:[#allocation142_spill] sm:$0xff] }
 0x2e6   : > { %17096 = vst [vmem:[#allocation144_spill] sm:$0xff] %v14340_v17  ;;  %v8479_v3 = vmax.f32 %v17103_v20, %v8471_v13  ;;  %8620 = vrot.lane.b32.xlu1 %v14340_v17, %s11406_s18  ;;  %v8486_v12 = vadd.f32 %v8478_v59, %v16982_v53  ;;  %v8480_v43 = vmax.f32 %v17107_v27, %v8472_v37  ;;  %v17115_v35 = vld [vmem:[#allocation138_spill] sm:$0xff]  ;;  %v17116_v37 = vld [vmem:[#allocation143_spill] sm:$0xff] }
 0x2e7   : > { %17104 = vst [vmem:[#allocation145_spill] sm:$0xff] %v14354_v10  ;;  %v14366_v50 = vmax.f32 %v8485_v39, 0.0  ;;  %v17114_v55 = vmax.f32 %v17112_v28, %v17113_v31  ;;  %v8432_v1 = vmax.f32 %v14273_v60, %v14316_v63  ;;  %v8429_v59 = vmax.f32 %v14259_v47, %v14301_v32  ;;  %v17119_v63 = vld [vmem:[#allocation41_spill] sm:$0xff]  ;;  %v17126_v27 = vld [vmem:[#allocation39_spill] sm:$0xff] }
 0x2e8   : > { %8622 = vrot.lane.b32.xlu0 %v14347_v29, %s11406_s18  ;;  %v8487_v13 = vadd.f32 %v8479_v3, %v16982_v53  ;;  %v14374_v22 = vmax.f32 %v8486_v12, 0.0  ;;  %v8488_v54 = vadd.f32 %v8480_v43, %v16982_v53  ;;  %v8426_v57 = vmax.f32 %v14249_v11, %v14285_v46  ;;  %v17122_v11 = vld [vmem:[#allocation43_spill] sm:$0xff]  ;;  %v17127_v43 = vld [vmem:[#allocation141_spill] sm:$0xff] }
 0x2e9   : > { %17108 = vst [vmem:[#allocation153_spill] sm:$0xff] %v14366_v50  ;;  %v8438_v9 = vmax.f32 %v17114_v55, %v8430_v61  ;;  %v17117_v39 = vmax.f32 %v17115_v35, %v17116_v37  ;;  %v17121_v20 = vmax.f32 %v17119_v63, %v17120_v16  ;;  %v8431_v32 = vmax.f32 %v14264_v14, %v14303_v15  ;;  %v17123_v46 = vld [vmem:[#allocation139_spill] sm:$0xff]  ;;  %v17136_v37 = vld [vmem:[#allocation85_spill] sm:$0xff] }
 0x2ea   : > { %8624 = vrot.lane.b32.xlu1 %v14354_v10, %s11406_s18  ;;  %17109 = vst [vmem:[#allocation146_spill] sm:$0xff] %v14374_v22  ;;  %v14378_v0 = vmax.f32 %v8487_v13, 0.0  ;;  %v14383_v2 = vmax.f32 %v8488_v54, 0.0  ;;  %v17124_v3 = vmax.f32 %v17122_v11, %v17123_v46  ;;  %v17128_v13 = vmax.f32 %v17126_v27, %v17127_v43  ;;  %v17138_v63 = vld [vmem:[#allocation131_spill] sm:$0xff]  ;;  %v17142_v46 = vld [vmem:[#allocation89_spill] sm:$0xff]  ;;  %v17145_v27 = vld [vmem:[#allocation132_spill] sm:$0xff] }
 0x2eb   : > { %v8440_v62 = vmax.f32 %v17117_v39, %v8432_v1  ;;  %v14406_v60 = vadd.f32 %v8438_v9, %v16982_v53  ;;  %v8437_v47 = vmax.f32 %v17121_v20, %v8429_v59  ;;  %v14456_v1 = vadd.f32 %v14290_v7, %v16989_v41 }
 0x2ec   : > { %8626 = vrot.lane.b32.xlu0 %v14366_v50, %s11406_s18  ;;  %17110 = vst [vmem:[#allocation154_spill] sm:$0xff] %v14378_v0  ;;  %17111 = vst [vmem:[#allocation147_spill] sm:$0xff] %v14383_v2  ;;  %v8434_v12 = vmax.f32 %v17124_v3, %v8426_v57  ;;  %v8439_v54 = vmax.f32 %v17128_v13, %v8431_v32  ;;  %v14466_v57 = vadd.f32 %v14299_v52, %v16989_v41  ;;  %v17141_v32 = vld [vmem:[#allocation86_spill] sm:$0xff] }
 0x2ed   : > { %17118 = vst [vmem:[#allocation155_spill] sm:$0xff] %v14406_v60  ;;  %v16551_v24 = vmax.f32 %v14406_v60, 0.0  ;;  %v14422_v58 = vadd.f32 %v8440_v62, %v16982_v53  ;;  %v14431_v14 = vadd.f32 %v8437_v47, %v16982_v53  ;;  %17132 = vst [vmem:[#allocation150_spill] sm:$0xff] %v14456_v1  ;;  %v16548_v59 = vmax.f32 %v14456_v1, 0.0  ;;  %v17137_v62 = vld [vmem:[#allocation122_spill] sm:$0xff]  ;;  %v17140_v47 = vld [vmem:[#allocation92_spill] sm:$0xff] }
 0x2ee   : > { %8628 = vrot.lane.b32.xlu1 %v14374_v22, %s11406_s18  ;;  %v14437_v61 = vadd.f32 %v8434_v12, %v16989_v41  ;;  %v14444_v31 = vadd.f32 %v8439_v54, %v16982_v53  ;;  %17133 = vst [vmem:[#allocation158_spill] sm:$0xff] %v14466_v57  ;;  %v14473_v7 = vadd.f32 %v14312_v18, %v16989_v41  ;;  %v16539_v35 = vmax.f32 %v14466_v57, 0.0  ;;  %v17135_v18 = vld [vmem:[#allocation91_spill] sm:$0xff] }
 0x2ef   : > { %17125 = vst [vmem:[#allocation149_spill] sm:$0xff] %v14422_v58  ;;  %17129 = vst [vmem:[#allocation157_spill] sm:$0xff] %v14431_v14  ;;  %v16547_v15 = vmax.f32 %v14422_v58, 0.0  ;;  %v16550_v28 = vmax.f32 %v14431_v14, 0.0  ;;  %v8302_v39 = vmax.f32 %v17136_v37, %v17135_v18  ;;  %v17139_v16 = vmax.f32 %v17137_v62, %v17138_v63  ;;  %v17144_v12 = vld [vmem:[#allocation123_spill] sm:$0xff]  ;;  %v17149_v37 = vld [vmem:[#allocation62_spill] sm:$0xff] }
 0x2f0   : > { %8630 = vrot.lane.b32.xlu0 %v14378_v0, %s11406_s18  ;;  %17130 = vst [vmem:[#allocation148_spill] sm:$0xff] %v14437_v61  ;;  %17131 = vst [vmem:[#allocation156_spill] sm:$0xff] %v14444_v31  ;;  %v16549_v55 = vmax.f32 %v14437_v61, 0.0  ;;  %v16545_v9 = vmax.f32 %v14444_v31, 0.0  ;;  %v16543_v52 = vmax.f32 %v14473_v7, 0.0  ;;  %v8304_v11 = vmax.f32 %v17141_v32, %v17140_v47  ;;  %v17148_v18 = vld [vmem:[#allocation87_spill] sm:$0xff] }
 0x2f1   : > { %17134 = vst [vmem:[#allocation137_spill] sm:$0xff] %v14473_v7  ;;  %v8318_v20 = vmax.f32 %v8302_v39, %v17139_v16  ;;  %v14506_v3 = vadd.f32 %v17142_v46, %v16982_v53  ;;  %v17146_v43 = vmax.f32 %v17144_v12, %v17145_v27  ;;  %v8298_v39 = vmax.f32 %v17149_v37, %v17148_v18  ;;  %v17150_v63 = vld [vmem:[#allocation82_spill] sm:$0xff]  ;;  %v17152_v47 = vld [vmem:[#allocation119_spill] sm:$0xff]  ;;  %v17153_v32 = vld [vmem:[#allocation125_spill] sm:$0xff] }
 0x2f2   : > { %8632 = vrot.lane.b32.xlu1 %v14383_v2, %s11406_s18  ;;  %v14523_v16 = vadd.f32 %v17150_v63, %v16982_v53  ;;  %v17156_v27 = vld [vmem:[#allocation88_spill] sm:$0xff]  ;;  %v17158_v63 = vld [vmem:[#allocation126_spill] sm:$0xff]  ;;  %v17216_v61 = vld [vmem:[#allocation13_spill] sm:$0xff] }
 0x2f3   : > { %17143 = vst [vmem:[#allocation142_spill] sm:$0xff] %v14506_v3  ;;  %v8320_v13 = vmax.f32 %v8304_v11, %v17146_v43  ;;  %v14514_v54 = vadd.f32 %v8318_v20, %v16982_v53  ;;  %v16538_v62 = vmax.f32 %v14506_v3, 0.0  ;;  %v17154_v11 = vmax.f32 %v17152_v47, %v17153_v32  ;;  %v17157_v43 = vld [vmem:[#allocation63_spill] sm:$0xff]  ;;  %v17160_v32 = vld [vmem:[#allocation120_spill] sm:$0xff] }
 0x2f4   : > { %9065 = vrot.lane.b32.xlu0 %v14334_v33, %s11405_s17  ;;  %17151 = vst [vmem:[#allocation143_spill] sm:$0xff] %v14523_v16  ;;  %v8300_v18 = vmax.f32 %v17157_v43, %v17156_v27  ;;  %v14545_v47 = vadd.f32 %v17158_v63, %v16989_v41  ;;  %v17207_v58 = vld [vmem:[#allocation28_spill] sm:$0xff]  ;;  %v17222_v60 = vld [vmem:[#allocation11_spill] sm:$0xff] }
 0x2f5   : > { %17147 = vst [vmem:[#allocation138_spill] sm:$0xff] %v14514_v54  ;;  %v8314_v46 = vmax.f32 %v8298_v39, %v17154_v11  ;;  %v16540_v20 = vmax.f32 %v14514_v54, 0.0  ;;  %v14533_v12 = vadd.f32 %v8320_v13, %v16982_v53  ;;  %v16541_v39 = vmax.f32 %v14523_v16, 0.0  ;;  %v17161_v11 = vld [vmem:[#allocation127_spill] sm:$0xff]  ;;  %v17321_v16 = vld [vmem:[#allocation58_spill] sm:$0xff] }
 0x2f6   : > { %9067 = vrot.lane.b32.xlu1 %v14340_v17, %s11405_s17  ;;  %17159 = vst [vmem:[#allocation140_spill] sm:$0xff] %v14545_v47  ;;  %v16544_v63 = vmax.f32 %v14545_v47, 0.0  ;;  %v14838_v1 = vadd.f32 %v17207_v58, %v16989_v41 }
 0x2f7   : > { %17155 = vst [vmem:[#allocation41_spill] sm:$0xff] %v14533_v12  ;;  %v16542_v27 = vmax.f32 %v14533_v12, 0.0  ;;  %v14557_v43 = vadd.f32 %v8314_v46, %v16989_v41 }
 0x2f8   : > { %9073 = vrot.lane.b32.xlu0 %v14366_v50, %s11405_s17  ;;  %17208 = vst [vmem:[#allocation123_spill] sm:$0xff] %v14838_v1 }
 0x2f9   : > { %17163 = vst [vmem:[#allocation43_spill] sm:$0xff] %v14557_v43  ;;  %v16546_v46 = vmax.f32 %v14557_v43, 0.0  ;;  %v17191_v43 = vld [vmem:[#allocation77_spill] sm:$0xff] }
 0x2fa   : > { %9071 = vrot.lane.b32.xlu1 %v14354_v10, %s11405_s17  ;;  %v8087_v3 = vadd.f32 %v17191_v43, %v16982_v53 }
 0x2fc   : > { %9077 = vrot.lane.b32.xlu0 %v14378_v0, %s11405_s17 }
 0x2fe   : > { %9035 = vrot.lane.b32.xlu1 %v16551_v24, %s11405_s17 }
 0x300   : > { %9069 = vrot.lane.b32.xlu0 %v14347_v29, %s11405_s17 }
 0x302   : > { %9039 = vrot.lane.b32.xlu1 %v16547_v15, %s11405_s17 }
 0x304   : > { %9033 = vrot.lane.b32.xlu0 %v16550_v28, %s11405_s17 }
 0x306   : > { %9027 = vrot.lane.b32.xlu1 %v16549_v55, %s11405_s17  ;;  %v17167_v55 = vld [vmem:[#allocation124_spill] sm:$0xff] }
 0x307   : > { %v8513_v28 = vand.u32 63, %v17167_v55 }
 0x308   : > { %9037 = vrot.lane.b32.xlu0 %v16545_v9, %s11405_s17 }
 0x309   : > { %vm14592_vm9 = vcmp.ge.s32.totalorder %v8513_v28, 8 }
 0x30a   : > { %9075 = vrot.lane.b32.xlu1 %v14374_v22, %s11405_s17  ;;  %vm8651_vm14 = vmand %vm14592_vm9, %vm13769_vm3 }
 0x30c   : > { %9025 = vrot.lane.b32.xlu0 %v16548_v59, %s11405_s17 }
 0x30e   : > { %9079 = vrot.lane.b32.xlu1 %v14383_v2, %s11405_s17 }
 0x310   : > { %9029 = vrot.lane.b32.xlu0 %v16539_v35, %s11405_s17 }
 0x312   : > { %9031 = vrot.lane.b32.xlu1 %v16543_v52, %s11405_s17  ;;  %s11408_s17 = smov [#allocation3]  }
 0x313   : > { %s11344_s18 = sshll.u32 %s11408_s17, 4  ;;  %s11345_s18 = int_to_ptr.vmem [resolvable:$false] %s11344_s18 }
 0x314   : > { %9323 = vrot.lane.b32.xlu0 %v14366_v50, %s11404_s14  ;;  %s11346_s28 = scalar_lea.vmem %s11345_s18, 256  ;;  %p11347_p0 = scmp.lt.s32.totalorder %s10588_s8, %s11345_s18 }
 0x315   : > { %p11348_p1 = scmp.lt.s32.totalorder %s11346_s28, %s11340_s16 }
 0x316   : > { %9317 = vrot.lane.b32.xlu1 %v14340_v17, %s11404_s14 }
 0x317   : > { %p11349_p2 = por %p11348_p1, %p11347_p0 }
 0x318   : > { %9327 = vrot.lane.b32.xlu0 %v14378_v0, %s11404_s14 }
 0x319   : > { %p11350_p3 = pnand %p11349_p2, %p11343_p13 }
 0x31a   : > { %9321 = vrot.lane.b32.xlu1 %v14354_v10, %s11404_s14 }
 0x31c   : > { %9315 = vrot.lane.b32.xlu0 %v14334_v33, %s11404_s14 }
 0x31e   : > { %9325 = vrot.lane.b32.xlu1 %v14374_v22, %s11404_s14 }
 0x320   : > { %9319 = vrot.lane.b32.xlu0 %v14347_v29, %s11404_s14  ;;  %v8527_v29 = vand.u32 63, %v17171_v21  ;;  %v17255_v21 = vmax.f32 %v14194_v45, 0.0  ;;  %v17261_v45 = vmax.f32 %v14151_v26, 0.0  ;;  %v17264_v26 = vmax.f32 %v14208_v8, 0.0 }
 0x322   : > { %9329 = vrot.lane.b32.xlu1 %v14383_v2, %s11404_s14  ;;  %vm14617_vm12 = vcmp.ge.s32.totalorder %v8527_v29, 8  ;;  %v17259_v2 = vmax.f32 %v14164_v34, 0.0 }
 0x323   : > { %vm8653_vm0 = vmand %vm14617_vm12, %vm13823_vm6 }
 0x324   : > { %9283 = vrot.lane.b32.xlu0 %v16538_v62, %s11404_s14  ;;  %v17162_v62 = vmax.f32 %v17160_v32, %v17161_v11 }
 0x326   : > { %v14537_v37 = vpop.permute.xlu0 %8670  ;;  %9285 = vrot.lane.b32.xlu1 %v16540_v20, %s11404_s14  ;;  %v8316_v13 = vmax.f32 %v8300_v18, %v17162_v62  ;;  %v17164_v62 = vld [vmem:[#allocation128_spill] sm:$0xff] }
 0x327   : > { %v14567_v18 = vadd.f32 %v17164_v62, %v16989_v41 }
 0x328   : > { %v14550_v35 = vpop.permute.xlu1 %8672  ;;  %9287 = vrot.lane.b32.xlu0 %v16541_v39, %s11404_s14  ;;  %v14574_v11 = vadd.f32 %v8316_v13, %v16989_v41 }
 0x329   : > { %17165 = vst [vmem:[#allocation139_spill] sm:$0xff] %v14567_v18 }
 0x32a   : > { %v14559_v20 = vpop.permute.xlu0 %8674  ;;  %9289 = vrot.lane.b32.xlu1 %v16542_v27, %s11404_s14  ;;  %17166 = vst [vmem:[#allocation39_spill] sm:$0xff] %v14574_v11  ;;  %v16552_v27 = vmax.f32 %v14567_v18, 0.0  ;;  %v16559_v62 = vmax.f32 %v14574_v11, 0.0  ;;  %v17185_v11 = vld [vmem:[#allocation79_spill] sm:$0xff] }
 0x32c   : > { %v8677_v32 = vpop.permute.xlu1 %8676  ;;  %9275 = vrot.lane.b32.xlu0 %v16544_v63, %s11404_s14  ;;  %v9679_v63 = vld [vmem:[%s16340_s4] sm:$0xff] }
 0x32e   : > { %v8679_v39 = vpop.permute.xlu0 %8678  ;;  %9277 = vrot.lane.b32.xlu1 %v16546_v46, %s11404_s14 }
 0x330   : > { %v8681_v52 = vpop.permute.xlu1 %8680  ;;  %9279 = vrot.lane.b32.xlu0 %v16552_v27, %s11404_s14  ;;  %v17168_v27 = vld [vmem:[#allocation121_spill] sm:$0xff] }
 0x331   : > { %v8506_v42 = vand.u32 63, %v17168_v27  ;;  %v8690_v29 = vsel %vm8686_vm10, %v8679_v39, %v8681_v52 }
 0x332   : > { %v8683_v13 = vpop.permute.xlu0 %8682  ;;  %9281 = vrot.lane.b32.xlu1 %v16559_v62, %s11404_s14  ;;  %v17252_v62 = vld [vmem:[#allocation29_spill] sm:$0xff]  ;;  %s10585_s14 = scalar_lea.hbm %s16343_s7, %s11144_s23 }
 0x333   : > { %vm14597_vm11 = vcmp.ge.s32.totalorder %v8506_v42, 8 }
 0x334   : > { %v8685_v9 = vpop.permute.xlu1 %8684  ;;  %9683 = vperm.xlu0 %11333, %v9679_v63   ;;  %v17174_v63 = vld [vmem:[#allocation130_spill] sm:$0xff]  ;;  %vm8650_vm15 = vmand %vm14597_vm11, %vm13776_vm5 }
 0x335   : > { %v8520_v0 = vand.u32 63, %v17174_v63 }
 0x336   : > { %v8720_v46 = vpop.permute.xlu0 %8719 }
 0x337   : > { %v14622_v63 = vsel %vm8686_vm10, 0.0, %v8720_v46  ;;  %vm14627_vm13 = vcmp.ge.s32.totalorder %v8520_v0, 8 }
 0x338   : > { %v8722_v15 = vpop.permute.xlu1 %8721  ;;  %vm8652_vm1 = vmand %vm14627_vm13, %vm13838_vm7 }
 0x339   : > { %v14615_v42 = vsel %vm8686_vm10, %v8720_v46, %v8722_v15  ;;  %v8702_v46 = vsel %vm8686_vm10, 0.0, %v8679_v39  ;;  %v8701_v39 = vsel %vm8686_vm10, 0.0, %v14537_v37 }
 0x33a   : > { %v8724_v59 = vpop.permute.xlu0 %8723 }
 0x33c   : > { %v8726_v24 = vpop.permute.xlu1 %8725 }
 0x33d   : > { %v14648_v0 = vsel %vm8686_vm10, %v8724_v59, %v8726_v24  ;;  %v8692_v24 = vsel %vm8686_vm10, %v8683_v13, %v8685_v9  ;;  %v8688_v9 = vsel %vm8686_vm10, %v14550_v35, %v14559_v20 }
 0x33e   : > { %v8728_v23 = vpop.permute.xlu0 %8727 }
 0x33f   : > { %v14606_v27 = vsel %vm8686_vm10, 0.0, %v8728_v23 }
 0x340   : > { %v8730_v10 = vpop.permute.xlu1 %8729 }
 0x341   : > { %v14603_v55 = vsel %vm8686_vm10, %v8728_v23, %v8730_v10 }
 0x342   : > { %11046 = vmatprep.subr.msk.mxu0 %vm14592_vm9, %v14603_v55  ;;  %v8732_v28 = vpop.permute.xlu0 %8731 }
 0x343   : > { %11047 = vmatpush1.msk.msra.mxu0 %vm14597_vm11, %v14606_v27  ;;  %v14640_v17 = vsel %vm8686_vm10, %v8730_v10, %v8732_v28  ;;  %v8687_v10 = vsel %vm8686_vm10, %v14537_v37, %v14550_v35  ;;  %v8691_v37 = vsel %vm8686_vm10, %v8681_v52, %v8683_v13 }
 0x344   : > { %11048 = vmatprep.subr.msk.mxu0 %vm14592_vm9, %v14615_v42  ;;  %v8734_v23 = vpop.permute.xlu1 %8733 }
 0x345   : > { %v14632_v33 = vsel %vm8686_vm10, %v8732_v28, %v8734_v23  ;;  %11049 = vmatpush1.msk.msra.mxu0 %vm14597_vm11, %v14622_v63  ;;  %v14661_v28 = vsel %vm8686_vm10, %v8722_v15, %v8724_v59  ;;  %v8689_v15 = vsel %vm8686_vm10, %v14559_v20, %v8677_v32  ;;  %v17180_v32 = vld [vmem:[#allocation78_spill] sm:$0xff]  ;;  %v17309_v20 = vld [vmem:[#allocation159_spill] sm:$0xff] }
 0x346   : > { %11050 = vmatprep.subr.msk.mxu0 %vm14592_vm9, %v8690_v29  ;;  %11068 = vmatprep.subr.msk.mxu1 %vm14617_vm12, %v14632_v33 }
 0x347   : > { %11051 = vmatpush1.msk.msra.mxu0 %vm14597_vm11, %v8702_v46  ;;  %11069 = vmatpush1.msk.msra.mxu1 %vm14627_vm13, %v14640_v17  ;;  %v17306_v46 = vld [vmem:[#allocation136_spill] sm:$0xff] }
 0x348   : > { %11052 = vmatprep.subr.msk.mxu0 %vm14592_vm9, %v8687_v10  ;;  %11070 = vmatprep.subr.msk.mxu1 %vm14617_vm12, %v14648_v0  ;;  %v8086_v10 = vadd.f32 %v17180_v32, %v16982_v53  ;;  %v17184_v32 = vld [vmem:[#allocation72_spill] sm:$0xff] }
 0x349   : > { %11053 = vmatpush1.msk.msra.mxu0 %vm14597_vm11, %v8701_v39  ;;  %11071 = vmatpush1.msk.msra.mxu1 %vm14627_vm13, %v14661_v28  ;;  %v17182_v39 = vld [vmem:[#allocation76_spill] sm:$0xff]  ;;  %v8081_v18 = vadd.f32 %v17184_v32, %v16989_v41 }
 0x34a   : > { %11072 = vmatprep.subr.msk.mxu1 %vm14617_vm12, %v8692_v24  ;;  %v8085_v24 = vadd.f32 %v17182_v39, %v16982_v53  ;;  %v8088_v39 = vadd.f32 %v17185_v11, %v16982_v53 }
 0x34b   : > { %11073 = vmatpush1.msk.msra.mxu1 %vm14627_vm13, %v8691_v37 }
 0x34c   : > { %11074 = vmatprep.subr.msk.mxu1 %vm14617_vm12, %v8689_v15  ;;  %v17183_v15 = vld [vmem:[#allocation74_spill] sm:$0xff] }
 0x34d   : > { %11075 = vmatpush1.msk.msra.mxu1 %vm14627_vm13, %v8688_v9  ;;  %v8082_v9 = vadd.f32 %v17183_v15, %v16989_v41  ;;  %v17315_v15 = vld [vmem:[#allocation157_spill] sm:$0xff] }
 0x34f   : > { %v14751_v54 = vmax.f32 %v8082_v9, 0.0  ;;  %v14768_v9 = vmax.f32 %v8081_v18, 0.0 }
 0x356   : > { %v8619_v59 = vpop.permute.xlu0 %8618 }
 0x357   : > { %v8648_v32 = vsel %vm1565_vm2, 0.0, %v8619_v59 }
 0x358   : > { %v8621_v52 = vpop.permute.xlu1 %8620 }
 0x35a   : > { %v8623_v13 = vpop.permute.xlu0 %8622 }
 0x35c   : > { %v8625_v23 = vpop.permute.xlu1 %8624 }
 0x35e   : > { %v8627_v29 = vpop.permute.xlu0 %8626 }
 0x35f   : > { %v8649_v50 = vsel %vm1565_vm2, 0.0, %v8627_v29 }
 0x360   : > { %v8629_v35 = vpop.permute.xlu1 %8628 }
 0x361   : > { %v8637_v37 = vsel %vm1565_vm2, %v8627_v29, %v8629_v35  ;;  %v8634_v29 = vsel %vm1565_vm2, %v8619_v59, %v8621_v52  ;;  %v14741_v59 = vmax.f32 %v8085_v24, 0.0 }
 0x362   : > { %v8631_v22 = vpop.permute.xlu0 %8630  ;;  %11054 = vmatprep.subr.msk.mxu0 %vm8651_vm14, %v8637_v37  ;;  %v14723_v37 = vmax.f32 %v8086_v10, 0.0  ;;  %v17190_v10 = vld [vmem:[#allocation73_spill] sm:$0xff] }
 0x363   : > { %11055 = vmatpush1.msk.msra.mxu0 %vm8650_vm15, %v8649_v50  ;;  %v17188_v50 = vld [vmem:[#allocation32_spill] sm:$0xff]  ;;  %v8083_v47 = vadd.f32 %v17190_v10, %v16989_v41  ;;  %v8638_v7 = vsel %vm1565_vm2, %v8629_v35, %v8631_v22 }
 0x364   : > { %11056 = vmatprep.subr.msk.mxu0 %vm8651_vm14, %v8634_v29  ;;  %v8633_v11 = vpop.permute.xlu1 %8632  ;;  %v14737_v12 = vadd.f32 %v17188_v50, %v16982_v53  ;;  %v17192_v50 = vld [vmem:[#allocation75_spill] sm:$0xff]  ;;  %v17193_v10 = vld [vmem:[#allocation24_spill] sm:$0xff] }
 0x365   : > { %v8639_v29 = vsel %vm1565_vm2, %v8631_v22, %v8633_v11  ;;  %11057 = vmatpush1.msk.msra.mxu0 %vm8650_vm15, %v8648_v32  ;;  %v8084_v57 = vadd.f32 %v17192_v50, %v16989_v41  ;;  %v14757_v24 = vadd.f32 %v17193_v10, %v16982_v53  ;;  %v14770_v32 = vmax.f32 %v8088_v39, 0.0  ;;  %v17195_v22 = vld [vmem:[#allocation31_spill] sm:$0xff]  ;;  %v14800_v50 = vld [vmem:[%s16339_s3] sm:$0xff] }
 0x366   : > { %17189 = vst [vmem:[#allocation141_spill] sm:$0xff] %v14737_v12  ;;  %v14760_v43 = vpop.permute.xlu0 %9065  ;;  %8923 = vmatprep.subr.mxu0 %v14723_v37  ;;  %11076 = vmatprep.subr.msk.mxu1 %vm8653_vm0, %v8639_v29  ;;  %v8636_v11 = vsel %vm1565_vm2, %v8623_v13, %v8625_v23  ;;  %v14781_v35 = vadd.f32 %v17195_v22, %v16989_v41  ;;  %v17197_v29 = vld [vmem:[#allocation23_spill] sm:$0xff]  ;;  %v14826_v31 = vmax.f32 %v8083_v47, 0.0 }
 0x367   : > { %17194 = vst [vmem:[#allocation91_spill] sm:$0xff] %v14757_v24  ;;  %8924 = vmatpush2.msra.mxu0 %v14741_v59  ;;  %11077 = vmatpush1.msk.msra.mxu1 %vm8652_vm1, %v8638_v7  ;;  %v14785_v18 = vadd.f32 %v17197_v29, %v16989_v41  ;;  %v8635_v39 = vsel %vm1565_vm2, %v8621_v52, %v8623_v13  ;;  %v17199_v10 = vld [vmem:[#allocation35_spill] sm:$0xff]  ;;  %v14806_v13 = vmax.f32 %v8087_v3, 0.0  ;;  %v17203_v3 = vmax.f32 %v14737_v12, 0.0 }
 0x368   : > { %17196 = vst [vmem:[#allocation85_spill] sm:$0xff] %v14781_v35  ;;  %8925 = vmatprep.subr.mxu0 %v14751_v54  ;;  %11078 = vmatprep.subr.msk.mxu1 %vm8653_vm0, %v8636_v11  ;;  %v14794_v23 = vpop.permute.xlu1 %9067  ;;  %v14804_v52 = vadd.f32 %v17199_v10, %v16982_v53  ;;  %v14814_v11 = vmax.f32 %v8084_v57, 0.0  ;;  %v17201_v29 = vld [vmem:[#allocation27_spill] sm:$0xff]  ;;  %17204 = vst [vmem:[#allocation86_spill] sm:$0xff] %v14826_v31  ;;  %v16580_v57 = vmax.f32 %v14781_v35, 0.0  ;;  %vm9707_vm2 = vcmask 516096  }
 0x369   : > { %17198 = vst [vmem:[#allocation122_spill] sm:$0xff] %v14785_v18  ;;  %8926 = vmatpush2.msra.mxu0 %v14768_v9  ;;  %11079 = vmatpush1.msk.msra.mxu1 %vm8652_vm1, %v8635_v39  ;;  %v14819_v7 = vadd.f32 %v17201_v29, %v16982_v53  ;;  %v17205_v39 = vld [vmem:[#allocation36_spill] sm:$0xff]  ;;  %v16583_v29 = vmax.f32 %v14785_v18, 0.0 }
 0x36a   : > { %17200 = vst [vmem:[#allocation131_spill] sm:$0xff] %v14804_v52  ;;  %v14821_v10 = vpop.permute.xlu0 %9073  ;;  %9000 = vmatprep.subr.mxu1 %v14770_v32  ;;  %9105 = vmatprep.subr.mxu0 %v17203_v3  ;;  %v14833_v22 = vadd.f32 %v17205_v39, %v16989_v41  ;;  %v17209_v3 = vmax.f32 %v14757_v24, 0.0  ;;  %v16582_v12 = vmax.f32 %v14804_v52, 0.0  ;;  %v17211_v52 = vld [vmem:[#allocation8_spill] sm:$0xff] }
 0x36b   : > { %17202 = vst [vmem:[#allocation92_spill] sm:$0xff] %v14819_v7  ;;  %8928 = vmatmul.mubr.f32.vlgmr.msra.gmra.mxu0 %v14800_v50  ;;  %9001 = vmatpush2.msra.mxu1 %v14806_v13  ;;  %v16587_v39 = vmax.f32 %v14819_v7, 0.0  ;;  %v7965_v35 = vadd.f32 %v17211_v52, %v16982_v53  ;;  %v17217_v52 = vmax.f32 %v17216_v61, 0.0  ;;  %v17223_v61 = vmax.f32 %v17222_v60, 0.0 }
 0x36c   : > { %17206 = vst [vmem:[#allocation89_spill] sm:$0xff] %v14833_v22  ;;  %9106 = vmatpush1.msra.mxu0 %v17209_v3  ;;  %9002 = vmatprep.subr.mxu1 %v14814_v11  ;;  %v14843_v47 = vpop.permute.xlu1 %9071  ;;  %v16589_v3 = vmax.f32 %v14833_v22, 0.0 }
 0x36d   : > { %9107 = vmatprep.subr.mxu0 %v16580_v57  ;;  %9003 = vmatpush2.msra.mxu1 %v14826_v31  ;;  %v16595_v57 = vmax.f32 %v14838_v1, 0.0 }
 0x36e   : > { %9108 = vmatpush1.msra.mxu0 %v16583_v29  ;;  %v14852_v58 = vpop.permute.xlu0 %9077  ;;  %9182 = vmatprep.subr.mxu1 %v16582_v12  ;;  %v17210_v12 = vld [vmem:[#allocation9_spill] sm:$0xff] }
 0x36f   : > { %9109 = vmatprep.subr.mxu0 %v14723_v37  ;;  %9005 = vmatmul.mubr.f32.vlgmr.msra.gmra.mxu1 %v14800_v50  ;;  %v7966_v29 = vadd.f32 %v17210_v12, %v16982_v53  ;;  %v17215_v12 = vld [vmem:[#allocation6_spill] sm:$0xff] }
 0x370   : > { %9110 = vmatpush1.msra.mxu0 %v14741_v59  ;;  %9183 = vmatpush1.msra.mxu1 %v16587_v39  ;;  %v14863_v18 = vpop.permute.xlu1 %9035  ;;  %v17212_v39 = vld [vmem:[#allocation21_spill] sm:$0xff]  ;;  %v7961_v49 = vadd.f32 %v17215_v12, %v16989_v41  ;;  %v7967_v12 = vadd.f32 %v17221_v30, %v16982_v53  ;;  %v17228_v30 = vld [vmem:[#allocation22_spill] sm:$0xff] }
 0x371   : > { %9111 = vmatprep.subr.mxu0 %v14751_v54  ;;  %9184 = vmatprep.subr.mxu1 %v16589_v3  ;;  %v17213_v24 = vmax.f32 %v17212_v39, 0.0  ;;  %v17214_v3 = vld [vmem:[#allocation7_spill] sm:$0xff]  ;;  %v17220_v39 = vld [vmem:[#allocation17_spill] sm:$0xff]  ;;  %v17229_v40 = vmax.f32 %v17228_v30, 0.0 }
 0x372   : > { %9112 = vmatpush1.msra.mxu0 %v14768_v9  ;;  %9185 = vmatpush1.msra.mxu1 %v16595_v57  ;;  %v14875_v7 = vpop.permute.xlu0 %9069  ;;  %v7962_v22 = vadd.f32 %v17214_v3, %v16989_v41  ;;  %v17218_v57 = vld [vmem:[#allocation19_spill] sm:$0xff]  ;;  %v7968_v14 = vadd.f32 %v17220_v39, %v16982_v53  ;;  %v7973_v3 = vmax.f32 %v7965_v35, 0.0  ;;  %v7969_v25 = vmax.f32 %v7961_v49, 0.0  ;;  %v17227_v35 = vld [vmem:[#allocation14_spill] sm:$0xff] }
 0x373   : > { %9113 = vmatprep.subr.mxu0 %v17213_v24  ;;  %9186 = vmatprep.subr.mxu1 %v14770_v32  ;;  %v17219_v4 = vmax.f32 %v17218_v57, 0.0  ;;  %v7974_v24 = vmax.f32 %v7966_v29, 0.0  ;;  %v17225_v57 = vmax.f32 %v17224_v51, 0.0  ;;  %v17226_v29 = vld [vmem:[#allocation15_spill] sm:$0xff]  ;;  %v7963_v39 = vadd.f32 %v17227_v35, %v16989_v41 }
 0x374   : > { %9114 = vmatpush1.msra.mxu0 %v17217_v52  ;;  %9187 = vmatpush1.msra.mxu1 %v14806_v13  ;;  %v14887_v1 = vpop.permute.xlu1 %9039  ;;  %v7964_v56 = vadd.f32 %v17226_v29, %v16989_v41  ;;  %v7976_v51 = vmax.f32 %v7968_v14, 0.0  ;;  %v17234_v29 = vld [vmem:[#allocation10_spill] sm:$0xff] }
 0x375   : > { %9115 = vmatprep.subr.mxu0 %v17219_v4  ;;  %9188 = vmatprep.subr.mxu1 %v14814_v11  ;;  %v7970_v4 = vmax.f32 %v7962_v22, 0.0  ;;  %v17232_v22 = vld [vmem:[#allocation12_spill] sm:$0xff]  ;;  %v7971_v35 = vmax.f32 %v7963_v39, 0.0 }
 0x376   : > { %9116 = vmatpush1.msra.mxu0 %v17223_v61  ;;  %9189 = vmatpush1.msra.mxu1 %v14826_v31  ;;  %v9034_v52 = vpop.permute.xlu0 %9033  ;;  %v17230_v61 = vld [vmem:[#allocation20_spill] sm:$0xff]  ;;  %v17233_v19 = vmax.f32 %v17232_v22, 0.0  ;;  %v17235_v31 = vmax.f32 %v17234_v29, 0.0 }
 0x377   : > { %9117 = vmatprep.subr.mxu0 %v7974_v24  ;;  %9190 = vmatprep.subr.mxu1 %v17225_v57  ;;  %v17231_v24 = vmax.f32 %v17230_v61, 0.0  ;;  %v7975_v57 = vmax.f32 %v7967_v12, 0.0  ;;  %v17238_v61 = vld [vmem:[#allocation18_spill] sm:$0xff]  ;;  %v17242_v12 = vld [vmem:[#allocation53_spill] sm:$0xff] }
 0x378   : > { %9118 = vmatpush1.msra.mxu0 %v7973_v3  ;;  %9191 = vmatpush1.msra.mxu1 %v17229_v40  ;;  %v14907_v60 = vpop.permute.xlu1 %9027  ;;  %v7972_v3 = vmax.f32 %v7964_v56, 0.0  ;;  %v17236_v40 = vld [vmem:[#allocation52_spill] sm:$0xff]  ;;  %v9096_v56 = vsel %vm8686_vm10, 0.0, %v14821_v10  ;;  %v17243_v39 = vmax.f32 %v17242_v12, 0.0 }
 0x379   : > { %9119 = vmatprep.subr.mxu0 %v7970_v4  ;;  %9192 = vmatprep.subr.mxu1 %v17231_v24  ;;  %v17237_v30 = vmax.f32 %v17236_v40, 0.0  ;;  %v17239_v24 = vmax.f32 %v17238_v61, 0.0  ;;  %v17248_v61 = vld [vmem:[#allocation49_spill] sm:$0xff] }
 0x37a   : > { %9120 = vmatpush1.msra.mxu0 %v7969_v25  ;;  %9193 = vmatpush1.msra.mxu1 %v17233_v19  ;;  %v9038_v49 = vpop.permute.xlu0 %9037  ;;  %v17240_v19 = vld [vmem:[#allocation48_spill] sm:$0xff] }
 0x37b   : > { %9121 = vmatprep.subr.mxu0 %v17235_v31  ;;  %9194 = vmatprep.subr.mxu1 %v7976_v51  ;;  %v17241_v14 = vmax.f32 %v17240_v19, 0.0  ;;  %v9081_v51 = vsel %vm8686_vm10, %v14760_v43, %v14794_v23 }
 0x37c   : > { %9122 = vmatpush1.msra.mxu0 %v17237_v30  ;;  %9195 = vmatpush1.msra.mxu1 %v7975_v57  ;;  %v9076_v4 = vpop.permute.xlu1 %9075  ;;  %v17244_v57 = vld [vmem:[#allocation42_spill] sm:$0xff]  ;;  %v9044_v30 = vsel %vm8686_vm10, %v9034_v52, %v14863_v18 }
 0x37d   : > { %9123 = vmatprep.subr.mxu0 %v17239_v24  ;;  %9196 = vmatprep.subr.mxu1 %v7972_v3  ;;  %v9084_v25 = vsel %vm8686_vm10, %v14821_v10, %v9076_v4  ;;  %v17245_v22 = vmax.f32 %v17244_v57, 0.0  ;;  %v9095_v10 = vsel %vm8686_vm10, 0.0, %v14760_v43  ;;  %v17246_v3 = vld [vmem:[#allocation40_spill] sm:$0xff]  ;;  %v17249_v24 = vmax.f32 %v17248_v61, 0.0  ;;  %v17258_v57 = vld [vmem:[#allocation37_spill] sm:$0xff] }
 0x37e   : > { %9124 = vmatpush1.msra.mxu0 %v17241_v14  ;;  %9197 = vmatpush1.msra.mxu1 %v7971_v35  ;;  %v9026_v31 = vpop.permute.xlu0 %9025  ;;  %v17247_v35 = vmax.f32 %v17246_v3, 0.0  ;;  %v9056_v43 = vsel %vm8686_vm10, 0.0, %v9034_v52  ;;  %v9085_v19 = vsel %vm8686_vm10, %v9076_v4, %v14852_v58  ;;  %v9083_v14 = vsel %vm8686_vm10, %v14875_v7, %v14843_v47  ;;  %v17263_v3 = vld [vmem:[#allocation105_spill] sm:$0xff] }
 0x37f   : > { %11082 = vmatprep.subr.msk.mxu0 %vm14592_vm9, %v9084_v25  ;;  %9198 = vmatprep.subr.mxu1 %v17243_v39  ;;  %v9082_v52 = vsel %vm8686_vm10, %v14794_v23, %v14875_v7  ;;  %v9055_v4 = vsel %vm8686_vm10, 0.0, %v9026_v31  ;;  %v9046_v47 = vsel %vm8686_vm10, %v9038_v49, %v14887_v1  ;;  %v9045_v23 = vsel %vm8686_vm10, %v14863_v18, %v9038_v49  ;;  %v14990_v1 = vld [vmem:[%s16339_s3 + $0x18] sm:$0xff]  ;;  %v17256_v39 = vld [vmem:[#allocation26_spill] sm:$0xff] }
 0x380   : > { %11083 = vmatpush1.msk.msra.mxu0 %vm14597_vm11, %v9096_v56  ;;  %9199 = vmatpush1.msra.mxu1 %v17245_v22  ;;  %v9080_v29 = vpop.permute.xlu1 %9079  ;;  %v9041_v56 = vsel %vm8686_vm10, %v9026_v31, %v14907_v60  ;;  %v17253_v31 = vld [vmem:[#allocation25_spill] sm:$0xff] }
 0x381   : > { %11084 = vmatprep.subr.msk.mxu0 %vm14592_vm9, %v9081_v51  ;;  %9200 = vmatprep.subr.mxu1 %v17247_v35  ;;  %v9086_v40 = vsel %vm8686_vm10, %v14852_v58, %v9080_v29  ;;  %v17257_v51 = vmax.f32 %v14184_v44, 0.0  ;;  %v17260_v29 = vld [vmem:[#allocation33_spill] sm:$0xff]  ;;  %v15071_v35 = vadd.f32 %v17263_v3, %v16982_v53  ;;  %v17275_v3 = vld [vmem:[#allocation104_spill] sm:$0xff] }
 0x382   : > { %11085 = vmatpush1.msk.msra.mxu0 %vm14597_vm11, %v9095_v10  ;;  %9201 = vmatpush1.msra.mxu1 %v17249_v24  ;;  %v9030_v25 = vpop.permute.xlu0 %9029  ;;  %v17262_v10 = vld [vmem:[#allocation107_spill] sm:$0xff]  ;;  %v17265_v24 = vmax.f32 %v14201_v48, 0.0 }
 0x383   : > { %11086 = vmatprep.subr.msk.mxu0 %vm14592_vm9, %v9044_v30  ;;  %11096 = vmatprep.subr.msk.mxu1 %vm14617_vm12, %v9086_v40  ;;  %v15065_v34 = vadd.f32 %v17262_v10, %v16982_v53 }
 0x384   : > { %11087 = vmatpush1.msk.msra.mxu0 %vm14597_vm11, %v9056_v43  ;;  %11097 = vmatpush1.msk.msra.mxu1 %vm14627_vm13, %v9085_v19  ;;  %v9032_v58 = vpop.permute.xlu1 %9031  ;;  %v17267_v19 = vld [vmem:[#allocation101_spill] sm:$0xff] }
 0x385   : > { %11088 = vmatprep.subr.msk.mxu0 %vm14592_vm9, %v9041_v56  ;;  %11098 = vmatprep.subr.msk.mxu1 %vm14617_vm12, %v9083_v14  ;;  %v9043_v7 = vsel %vm8686_vm10, %v9030_v25, %v9032_v58  ;;  %v15092_v14 = vadd.f32 %v17267_v19, %v16989_v41  ;;  %v17268_v56 = vmax.f32 %v14174_v38, 0.0  ;;  %v8254_v48 = vmax.f32 %v15065_v34, 0.0  ;;  %v17271_v38 = vld [vmem:[#allocation97_spill] sm:$0xff] }
 0x386   : > { %11089 = vmatpush1.msk.msra.mxu0 %vm14597_vm11, %v9055_v4  ;;  %11099 = vmatpush1.msk.msra.mxu1 %vm14627_vm13, %v9082_v52  ;;  %v9324_v12 = vpop.permute.xlu0 %9323  ;;  %v17269_v4 = vld [vmem:[#allocation99_spill] sm:$0xff]  ;;  %v17371_v34 = vld [vmem:[#allocation141_spill] sm:$0xff] }
 0x387   : > { %11090 = vmatprep.subr.msk.mxu0 %vm14592_vm9, %v14603_v55  ;;  %11100 = vmatprep.subr.msk.mxu1 %vm14617_vm12, %v9046_v47  ;;  %v15003_v55 = vld [vmem:[%s16339_s3 + $0x10] sm:$0xff]  ;;  %v9346_v40 = vsel %vm8783_vm4, 0.0, %v9324_v12  ;;  %v8206_v47 = vadd.f32 %v17269_v4, %v16982_v53 }
 0x388   : > { %11091 = vmatpush1.msk.msra.mxu0 %vm14597_vm11, %v14606_v27  ;;  %11101 = vmatpush1.msk.msra.mxu1 %vm14627_vm13, %v9045_v23  ;;  %v14998_v18 = vpop.permute.xlu1 %9317  ;;  %v9042_v27 = vsel %vm8686_vm10, %v14907_v60, %v9030_v25  ;;  %v17251_v60 = vld [vmem:[#allocation54_spill] sm:$0xff]  ;;  %v17266_v25 = vld [vmem:[#allocation103_spill] sm:$0xff] }
 0x389   : > { %11092 = vmatprep.subr.msk.mxu0 %vm14592_vm9, %v14615_v42  ;;  %11102 = vmatprep.subr.msk.mxu1 %vm14617_vm12, %v9043_v7  ;;  %v15088_v43 = vadd.f32 %v17266_v25, %v16989_v41  ;;  %v8205_v7 = vadd.f32 %v17271_v38, %v16982_v53  ;;  %v8214_v19 = vmax.f32 %v8206_v47, 0.0  ;;  %v17279_v4 = vld [vmem:[#allocation98_spill] sm:$0xff] }
 0x38a   : > { %11059 = vmatprep.mubr.msk.f32.mxu0 %vm8856_vm8, %v14990_v1  ;;  %11093 = vmatpush1.msk.msra.mxu0 %vm14597_vm11, %v14622_v63  ;;  %v9328_v49 = vpop.permute.xlu0 %9327 }
 0x38b   : > { %11103 = vmatpush1.msk.msra.mxu1 %vm14627_vm13, %v9042_v27  ;;  %8934 = vmatmul.mubr.f32.gmra.mxu0 %v15003_v55  ;;  %v8253_v27 = vmax.f32 %v15071_v35, 0.0  ;;  %v17373_v35 = vld [vmem:[#allocation91_spill] sm:$0xff] }
 0x38c   : > { %9165 = vmatprep.subr.mxu0 %v17250_v5  ;;  %11104 = vmatprep.subr.msk.mxu1 %vm14617_vm12, %v14632_v33  ;;  %v15024_v42 = vpop.permute.xlu1 %9321 }
 0x38d   : > { %9166 = vmatpush2.msra.mxu0 %v17251_v60  ;;  %11105 = vmatpush1.msk.msra.mxu1 %vm14627_vm13, %v14640_v17  ;;  %v17254_v17 = vld [vmem:[#allocation55_spill] sm:$0xff] }
 0x38e   : > { %9167 = vmatprep.subr.mxu0 %v17252_v62  ;;  %11106 = vmatprep.subr.msk.mxu1 %vm14617_vm12, %v14648_v0  ;;  %v9316_v63 = vpop.permute.xlu0 %9315 }
 0x38f   : > { %11081 = vmatprep.mubr.msk.f32.mxu1 %vm8856_vm8, %v14990_v1  ;;  %9168 = vmatpush2.msra.mxu0 %v17253_v31  ;;  %v9331_v61 = vsel %vm8783_vm4, %v9316_v63, %v14998_v18  ;;  %v9345_v8 = vsel %vm8783_vm4, 0.0, %v9316_v63  ;;  %v17272_v63 = vld [vmem:[#allocation106_spill] sm:$0xff] }
 0x390   : > { %11094 = vmatprep.mubr.msk.f32.mxu0 %vm8856_vm8, %v14364_v6  ;;  %11107 = vmatpush1.msk.msra.mxu1 %vm14627_vm13, %v14661_v28  ;;  %v9326_v33 = vpop.permute.xlu1 %9325 }
 0x391   : > { %9011 = vmatmul.mubr.f32.gmra.mxu1 %v15003_v55  ;;  %9170 = vmatmul.mubr.f32.vlgmr.msra.gmra.mxu0 %v14800_v50  ;;  %v9334_v22 = vsel %vm8783_vm4, %v9324_v12, %v9326_v33  ;;  %v17270_v12 = vld [vmem:[#allocation56_spill] sm:$0xff] }
 0x392   : > { %9242 = vmatprep.subr.mxu1 %v17254_v17  ;;  %9355 = vmatprep.subr.mxu0 %v17255_v21  ;;  %v9320_v0 = vpop.permute.xlu0 %9319  ;;  %v15111_v23 = vadd.f32 %v17270_v12, %v16982_v53  ;;  %v15118_v21 = vadd.f32 %v17272_v63, %v16982_v53  ;;  %v8207_v12 = vadd.f32 %v17279_v4, %v16982_v53  ;;  %v17280_v63 = vld [vmem:[#allocation96_spill] sm:$0xff] }
 0x393   : > { %9243 = vmatpush2.msra.mxu1 %v17256_v39  ;;  %9356 = vmatpush1.msra.mxu0 %v17257_v51  ;;  %v17273_v51 = vmax.f32 %v14157_v36, 0.0  ;;  %v15133_v36 = vadd.f32 %v17275_v3, %v16989_v41  ;;  %v9332_v25 = vsel %vm8783_vm4, %v14998_v18, %v9320_v0 }
 0x394   : > { %9244 = vmatprep.subr.mxu1 %v17258_v57  ;;  %9357 = vmatprep.subr.mxu0 %v17259_v2  ;;  %v9330_v28 = vpop.permute.xlu1 %9329  ;;  %v8255_v38 = vmax.f32 %v15118_v21, 0.0 }
 0x395   : > { %11095 = vmatprep.mubr.msk.f32.mxu0 %vm8856_vm8, %v14990_v1  ;;  %9245 = vmatpush2.msra.mxu1 %v17260_v29  ;;  %v9336_v58 = vsel %vm8783_vm4, %v9328_v49, %v9330_v28  ;;  %v9335_v28 = vsel %vm8783_vm4, %v9326_v33, %v9328_v49  ;;  %v17277_v49 = vld [vmem:[#allocation102_spill] sm:$0xff]  ;;  %v8252_v47 = vmax.f32 %v15133_v36, 0.0  ;;  %v17393_v36 = vld [vmem:[#allocation145_spill] sm:$0xff] }
 0x396   : > { %11108 = vmatprep.mubr.msk.f32.mxu1 %vm8856_vm8, %v14364_v6  ;;  %9358 = vmatpush1.msra.mxu0 %v17261_v45  ;;  %v15061_v44 = vpop.permute.xlu0 %9283  ;;  %v17274_v45 = vld [vmem:[#allocation95_spill] sm:$0xff]  ;;  %v15140_v33 = vadd.f32 %v17277_v49, %v16989_v41  ;;  %v8215_v49 = vmax.f32 %v8207_v12, 0.0 }
 0x397   : > { %9176 = vmatmul.mubr.f32.gmra.mxu0 %v15003_v55  ;;  %9247 = vmatmul.mubr.f32.vlgmr.msra.gmra.mxu1 %v14800_v50  ;;  %v8202_v10 = vadd.f32 %v17274_v45, %v16989_v41  ;;  %v17281_v45 = vld [vmem:[#allocation94_spill] sm:$0xff] }
 0x398   : > { %11110 = vmatprep.subr.msk.mxu0 %vm13769_vm3, %v9334_v22  ;;  %9432 = vmatprep.subr.mxu1 %v17264_v26  ;;  %v15078_v30 = vpop.permute.xlu1 %9285  ;;  %v8250_v22 = vmax.f32 %v15088_v43, 0.0  ;;  %v8203_v3 = vadd.f32 %v17281_v45, %v16989_v41  ;;  %v17375_v43 = vld [vmem:[#allocation85_spill] sm:$0xff] }
 0x399   : > { %11111 = vmatpush1.msk.msra.mxu0 %vm13776_vm5, %v9346_v40  ;;  %9433 = vmatpush1.msra.mxu1 %v17265_v24  ;;  %v17276_v40 = vld [vmem:[#allocation93_spill] sm:$0xff]  ;;  %v9333_v24 = vsel %vm8783_vm4, %v9320_v0, %v15024_v42  ;;  %v17278_v42 = vld [vmem:[#allocation100_spill] sm:$0xff]  ;;  %v8210_v0 = vmax.f32 %v8202_v10, 0.0 }
 0x39a   : > { %11112 = vmatprep.subr.msk.mxu0 %vm13769_vm3, %v9331_v61  ;;  %9434 = vmatprep.subr.mxu1 %v17268_v56  ;;  %v15105_v52 = vpop.permute.xlu0 %9287  ;;  %v8201_v26 = vadd.f32 %v17276_v40, %v16989_v41  ;;  %v8249_v61 = vmax.f32 %v15092_v14, 0.0  ;;  %v8208_v56 = vadd.f32 %v17278_v42, %v16982_v53  ;;  %v8251_v40 = vmax.f32 %v15140_v33, 0.0  ;;  %v17377_v14 = vld [vmem:[#allocation122_spill] sm:$0xff] }
 0x39b   : > { %11109 = vmatprep.mubr.msk.f32.mxu1 %vm8856_vm8, %v14990_v1  ;;  %11113 = vmatpush1.msk.msra.mxu0 %vm13776_vm5, %v9345_v8  ;;  %v8256_v8 = vmax.f32 %v15111_v23, 0.0 }
 0x39c   : > { %9435 = vmatpush1.msra.mxu1 %v17273_v51  ;;  %9363 = vmatprep.subr.mxu0 %v8254_v48  ;;  %v9290_v2 = vpop.permute.xlu1 %9289  ;;  %v8204_v51 = vadd.f32 %v17280_v63, %v16989_v41  ;;  %v8216_v10 = vmax.f32 %v8208_v56, 0.0  ;;  %v8211_v56 = vmax.f32 %v8203_v3, 0.0  ;;  %v17290_v3 = vld [vmem:[#allocation86_spill] sm:$0xff] }
 0x39d   : > { %9253 = vmatmul.mubr.f32.gmra.mxu1 %v15003_v55  ;;  %11124 = vmatprep.subr.msk.mxu1 %vm13823_vm6, %v9336_v58  ;;  %v8213_v58 = vmax.f32 %v8205_v7, 0.0 }
 0x39e   : > { %9364 = vmatpush1.msra.mxu0 %v8253_v27  ;;  %11125 = vmatpush1.msk.msra.mxu1 %vm13838_vm7, %v9335_v28  ;;  %v9276_v7 = vpop.permute.xlu0 %9275  ;;  %v8209_v28 = vmax.f32 %v8201_v26, 0.0 }
 0x39f   : > { %9365 = vmatprep.subr.mxu0 %v8250_v22  ;;  %11126 = vmatprep.subr.msk.mxu1 %vm13823_vm6, %v9333_v24  ;;  %v9294_v24 = vsel %vm8783_vm4, %v15061_v44, %v15078_v30 }
 0x3a0   : > { %9366 = vmatpush1.msra.mxu0 %v8249_v61  ;;  %11127 = vmatpush1.msk.msra.mxu1 %vm13838_vm7, %v9332_v25  ;;  %v9278_v18 = vpop.permute.xlu1 %9277  ;;  %v9306_v25 = vsel %vm8783_vm4, 0.0, %v15061_v44  ;;  %v9296_v44 = vsel %vm8783_vm4, %v15105_v52, %v9290_v2 }
 0x3a1   : > { %9367 = vmatprep.subr.mxu0 %v8214_v19  ;;  %9440 = vmatprep.subr.mxu1 %v8256_v8  ;;  %v9291_v26 = vsel %vm8783_vm4, %v9276_v7, %v9278_v18  ;;  %v8212_v19 = vmax.f32 %v8204_v51, 0.0 }
 0x3a2   : > { %9368 = vmatpush1.msra.mxu0 %v8213_v58  ;;  %9441 = vmatpush1.msra.mxu1 %v8255_v38  ;;  %v9305_v58 = vsel %vm8783_vm4, 0.0, %v9276_v7  ;;  %v9280_v4 = vpop.permute.xlu0 %9279  ;;  %v17284_v7 = vld [vmem:[#allocation70_spill] sm:$0xff] }
 0x3a3   : > { %9369 = vmatprep.subr.mxu0 %v8210_v0  ;;  %9442 = vmatprep.subr.mxu1 %v8252_v47  ;;  %v9295_v0 = vsel %vm8783_vm4, %v15078_v30, %v15105_v52  ;;  %v9292_v2 = vsel %vm8783_vm4, %v9278_v18, %v9280_v4  ;;  %v17282_v30 = vld [vmem:[#allocation61_spill] sm:$0xff]  ;;  %v17285_v63 = vmax.f32 %v17284_v7, 0.0  ;;  %v17286_v18 = vld [vmem:[#allocation80_spill] sm:$0xff]  ;;  %v17308_v7 = vld [vmem:[#allocation47_spill] sm:$0xff] }
 0x3a4   : > { %9370 = vmatpush1.msra.mxu0 %v8209_v28  ;;  %9443 = vmatpush1.msra.mxu1 %v8251_v40  ;;  %v9282_v42 = vpop.permute.xlu1 %9281  ;;  %v17283_v52 = vmax.f32 %v17282_v30, 0.0  ;;  %v17287_v51 = vmax.f32 %v17286_v18, 0.0  ;;  %v17288_v28 = vld [vmem:[#allocation81_spill] sm:$0xff]  ;;  %v17305_v30 = vld [vmem:[#allocation163_spill] sm:$0xff]  ;;  %v17311_v18 = vld [vmem:[#allocation166_spill] sm:$0xff] }
 0x3a5   : > { %11114 = vmatprep.subr.msk.mxu0 %vm13769_vm3, %v9294_v24  ;;  %9444 = vmatprep.subr.mxu1 %v8216_v10  ;;  %v9293_v12 = vsel %vm8783_vm4, %v9280_v4, %v9282_v42  ;;  %v17289_v45 = vmax.f32 %v17288_v28, 0.0  ;;  %v17291_v10 = vld [vmem:[#allocation50_spill] sm:$0xff]  ;;  %v17300_v4 = vld [vmem:[#allocation44_spill] sm:$0xff] }
 0x3a6   : > { %11115 = vmatpush1.msk.msra.mxu0 %vm13776_vm5, %v9306_v25  ;;  %9445 = vmatpush1.msra.mxu1 %v8215_v49  ;;  %v17292_v49 = vld [vmem:[#allocation69_spill] sm:$0xff]  ;;  %v17295_v25 = vld [vmem:[#allocation71_spill] sm:$0xff]  ;;  %v17297_v42 = vld [vmem:[#allocation38_spill] sm:$0xff] }
 0x3a7   : > { %9446 = vmatprep.subr.mxu1 %v8212_v19  ;;  %11116 = vmatprep.subr.msk.mxu0 %vm13769_vm3, %v9291_v26  ;;  %v17293_v24 = vmax.f32 %v17292_v49, 0.0  ;;  %v17294_v26 = vld [vmem:[#allocation134_spill] sm:$0xff]  ;;  %v17296_v19 = vmax.f32 %v17295_v25, 0.0  ;;  %v17320_v25 = vld [vmem:[#allocation60_spill] sm:$0xff] }
 0x3a8   : > { %9447 = vmatpush1.msra.mxu1 %v8211_v56  ;;  %11117 = vmatpush1.msk.msra.mxu0 %vm13776_vm5, %v9305_v58  ;;  %v17298_v56 = vld [vmem:[#allocation83_spill] sm:$0xff]  ;;  %v17317_v49 = vld [vmem:[#allocation162_spill] sm:$0xff] }
 0x3a9   : > { %11128 = vmatprep.subr.msk.mxu1 %vm13823_vm6, %v9296_v44  ;;  %9375 = vmatprep.subr.mxu0 %v14723_v37  ;;  %v17299_v58 = vmax.f32 %v17298_v56, 0.0  ;;  %v17301_v44 = vld [vmem:[#allocation84_spill] sm:$0xff]  ;;  %v17323_v56 = vld [vmem:[#allocation150_spill] sm:$0xff] }
 0x3aa   : > { %11129 = vmatpush1.msk.msra.mxu1 %vm13838_vm7, %v9295_v0  ;;  %9376 = vmatpush1.msra.mxu0 %v14741_v59  ;;  %v17303_v0 = vld [vmem:[#allocation164_spill] sm:$0xff] }
 0x3ab   : > { %9377 = vmatprep.subr.mxu0 %v14751_v54  ;;  %11130 = vmatprep.subr.msk.mxu1 %vm13823_vm6, %v9293_v12  ;;  %v17302_v12 = vmax.f32 %v17301_v44, 0.0  ;;  %v17326_v44 = vld [vmem:[#allocation57_spill] sm:$0xff] }
 0x3ac   : > { %9378 = vmatpush1.msra.mxu0 %v14768_v9  ;;  %11131 = vmatpush1.msk.msra.mxu1 %vm13838_vm7, %v9292_v2  ;;  %v17304_v2 = vld [vmem:[#allocation51_spill] sm:$0xff] }
 0x3ad   : > { %9379 = vmatprep.subr.mxu0 %v17283_v52  ;;  %9452 = vmatprep.subr.mxu1 %v14770_v32  ;;  %v17307_v52 = vld [vmem:[#allocation160_spill] sm:$0xff] }
 0x3ae   : > { %9380 = vmatpush1.msra.mxu0 %v17285_v63  ;;  %9453 = vmatpush1.msra.mxu1 %v14806_v13  ;;  %v17310_v63 = vld [vmem:[#allocation45_spill] sm:$0xff] }
 0x3af   : > { %9381 = vmatprep.subr.mxu0 %v17287_v51  ;;  %9454 = vmatprep.subr.mxu1 %v14814_v11  ;;  %v17312_v51 = vld [vmem:[#allocation155_spill] sm:$0xff] }
 0x3b0   : > { %9382 = vmatpush1.msra.mxu0 %v17289_v45  ;;  %9455 = vmatpush1.msra.mxu1 %v17290_v3  ;;  %v17313_v28 = vmax.f32 %v17312_v51, 0.0  ;;  %v17314_v45 = vld [vmem:[#allocation165_spill] sm:$0xff] }
 0x3b1   : > { %11118 = vmatprep.subr.msk.mxu0 %vm13769_vm3, %v17291_v10  ;;  %9456 = vmatprep.subr.mxu1 %v17293_v24  ;;  %v17316_v10 = vmax.f32 %v17315_v15, 0.0  ;;  %v17318_v24 = vld [vmem:[#allocation148_spill] sm:$0xff]  ;;  %v17330_v51 = vld [vmem:[#allocation149_spill] sm:$0xff]  ;;  %v17333_v15 = vld [vmem:[#allocation66_spill] sm:$0xff] }
 0x3b2   : > { %11119 = vmatpush1.msk.msra.mxu0 %vm13776_vm5, %v17294_v26  ;;  %9457 = vmatpush1.msra.mxu1 %v17296_v19  ;;  %v17319_v26 = vmax.f32 %v17318_v24, 0.0  ;;  %v8262_v19 = vmax.f32 %v17321_v16, %v17320_v25  ;;  %v17334_v24 = vld [vmem:[#allocation64_spill] sm:$0xff] }
 0x3b3   : > { %11120 = vmatprep.subr.msk.mxu0 %vm13769_vm3, %v17297_v42  ;;  %9458 = vmatprep.subr.mxu1 %v17299_v58  ;;  %v17322_v42 = vld [vmem:[#allocation161_spill] sm:$0xff]  ;;  %v17324_v58 = vmax.f32 %v17323_v56, 0.0  ;;  %v17337_v56 = vld [vmem:[#allocation156_spill] sm:$0xff]  ;;  %vm9714_vm3 = vcmask 1040896  }
 0x3b4   : > { %11121 = vmatpush1.msk.msra.mxu0 %vm13776_vm5, %v17300_v4  ;;  %9459 = vmatpush1.msra.mxu1 %v17302_v12  ;;  %v17325_v4 = vld [vmem:[#allocation59_spill] sm:$0xff] }
 0x3b5   : > { %9415 = vmatprep.subr.mxu0 %v17303_v0  ;;  %11132 = vmatprep.subr.msk.mxu1 %vm13823_vm6, %v17304_v2  ;;  %v8258_v12 = vmax.f32 %v17326_v44, %v17325_v4  ;;  %v17327_v2 = vld [vmem:[#allocation109_spill] sm:$0xff] }
 0x3b6   : > { %9416 = vmatpush2.msra.mxu0 %v17305_v30  ;;  %11133 = vmatpush1.msk.msra.mxu1 %vm13838_vm7, %v17306_v46  ;;  %v17328_v46 = vld [vmem:[#allocation115_spill] sm:$0xff]  ;;  %v17342_v44 = vld [vmem:[#allocation65_spill] sm:$0xff] }
 0x3b7   : > { %9417 = vmatprep.subr.mxu0 %v17307_v52  ;;  %11134 = vmatprep.subr.msk.mxu1 %vm13823_vm6, %v17308_v7  ;;  %v17329_v7 = vmax.f32 %v17327_v2, %v17328_v46  ;;  %v17343_v46 = vld [vmem:[#allocation110_spill] sm:$0xff] }
 0x3b8   : > { %9418 = vmatpush2.msra.mxu0 %v17309_v20  ;;  %11122 = vmatprep.mubr.msk.f32.mxu0 %vm8856_vm8, %v14364_v6 }
 0x3b9   : > { %11135 = vmatpush1.msk.msra.mxu1 %vm13838_vm7, %v17310_v63  ;;  %9420 = vmatmul.mubr.f32.vlgmr.msra.gmra.mxu0 %v14800_v50  ;;  %v8278_v63 = vmax.f32 %v8262_v19, %v17329_v7  ;;  %v17338_v19 = vmax.f32 %v17337_v56, 0.0  ;;  %v17344_v7 = vld [vmem:[#allocation117_spill] sm:$0xff] }
 0x3ba   : > { %9492 = vmatprep.subr.mxu1 %v17311_v18  ;;  %9517 = vmatprep.subr.mxu0 %v17313_v28  ;;  %v17331_v28 = vmax.f32 %v17330_v51, 0.0  ;;  %v17345_v51 = vmax.f32 %v17343_v46, %v17344_v7  ;;  %v17352_v56 = vld [vmem:[#allocation113_spill] sm:$0xff] }
 0x3bb   : > { %9493 = vmatpush2.msra.mxu1 %v17314_v45  ;;  %9518 = vmatpush1.msra.mxu0 %v17316_v10 }
 0x3bc   : > { %9494 = vmatprep.subr.mxu1 %v17317_v49  ;;  %9519 = vmatprep.subr.mxu0 %v17319_v26  ;;  %v17335_v26 = vld [vmem:[#allocation111_spill] sm:$0xff] }
 0x3bd   : > { %11123 = vmatprep.mubr.msk.f32.mxu0 %vm8856_vm8, %v14990_v1  ;;  %9495 = vmatpush2.msra.mxu1 %v17322_v42  ;;  %v17336_v25 = vmax.f32 %v17334_v24, %v17335_v26  ;;  %v17349_v24 = vld [vmem:[#allocation138_spill] sm:$0xff] }
 0x3be   : > { %11136 = vmatprep.mubr.msk.f32.mxu1 %vm8856_vm8, %v14364_v6  ;;  %9520 = vmatpush1.msra.mxu0 %v17324_v58  ;;  %v17332_v6 = vld [vmem:[#allocation68_spill] sm:$0xff]  ;;  %v17339_v58 = vld [vmem:[#allocation137_spill] sm:$0xff]  ;;  %v17350_v26 = vmax.f32 %v17349_v24, 0.0 }
 0x3bf   : > { %9426 = vmatmul.mubr.f32.gmra.mxu0 %v15003_v55  ;;  %9497 = vmatmul.mubr.f32.vlgmr.msra.gmra.mxu1 %v14800_v50  ;;  %v8264_v10 = vmax.f32 %v17333_v15, %v17332_v6  ;;  %v8274_v16 = vmax.f32 %v8258_v12, %v17336_v25  ;;  %v17340_v4 = vmax.f32 %v17339_v58, 0.0  ;;  %v17346_v12 = vld [vmem:[#allocation116_spill] sm:$0xff]  ;;  %v17347_v6 = vld [vmem:[#allocation158_spill] sm:$0xff] }
 0x3c0   : > { %9521 = vmatprep.subr.mxu0 %v17303_v0  ;;  %9594 = vmatprep.subr.mxu1 %v17331_v28  ;;  %v17341_v0 = vld [vmem:[#allocation67_spill] sm:$0xff]  ;;  %v17348_v15 = vmax.f32 %v17347_v6, 0.0  ;;  %v17351_v25 = vld [vmem:[#allocation108_spill] sm:$0xff] }
 0x3c1   : > { %9522 = vmatpush1.msra.mxu0 %v17305_v30  ;;  %9595 = vmatpush1.msra.mxu1 %v17338_v19  ;;  %v8260_v2 = vmax.f32 %v17342_v44, %v17341_v0  ;;  %v8280_v28 = vmax.f32 %v8264_v10, %v17345_v51  ;;  %v8286_v30 = vadd.f32 %v8278_v63, %v16982_v53  ;;  %v17354_v63 = vld [vmem:[#allocation112_spill] sm:$0xff]  ;;  %v17357_v44 = vld [vmem:[#allocation43_spill] sm:$0xff] }
 0x3c2   : > { %9523 = vmatprep.subr.mxu0 %v17307_v52  ;;  %9596 = vmatprep.subr.mxu1 %v17340_v4  ;;  %v8285_v52 = vadd.f32 %v17346_v12, %v16982_v53  ;;  %v17353_v19 = vmax.f32 %v17351_v25, %v17352_v56  ;;  %v8281_v58 = vadd.f32 %v17354_v63, %v16989_v41  ;;  %v17355_v4 = vld [vmem:[#allocation142_spill] sm:$0xff]  ;;  %v17358_v46 = vmax.f32 %v17357_v44, 0.0  ;;  %v17360_v12 = vld [vmem:[#allocation140_spill] sm:$0xff]  ;;  %v17369_v63 = vld [vmem:[#allocation139_spill] sm:$0xff] }
 0x3c3   : > { %11137 = vmatprep.mubr.msk.f32.mxu1 %vm8856_vm8, %v14990_v1  ;;  %9524 = vmatpush1.msra.mxu0 %v17309_v20  ;;  %v8282_v20 = vadd.f32 %v8274_v16, %v16989_v41  ;;  %v17356_v0 = vmax.f32 %v17355_v4, 0.0  ;;  %v8288_v7 = vadd.f32 %v8280_v28, %v16982_v53  ;;  %v17361_v6 = vmax.f32 %v17360_v12, 0.0 }
 0x3c4   : > { %9597 = vmatpush1.msra.mxu1 %v17348_v15  ;;  %9525 = vmatprep.subr.mxu0 %v17350_v26  ;;  %v8276_v10 = vmax.f32 %v8260_v2, %v17353_v19  ;;  %v8294_v2 = vmax.f32 %v8286_v30, 0.0  ;;  %v8293_v51 = vmax.f32 %v8285_v52, 0.0  ;;  %v17362_v15 = vld [vmem:[#allocation41_spill] sm:$0xff]  ;;  %v17364_v30 = vld [vmem:[#allocation114_spill] sm:$0xff]  ;;  %v17365_v52 = vld [vmem:[#allocation143_spill] sm:$0xff]  ;;  %v17370_v4 = vmax.f32 %v17369_v63, 0.0 }
 0x3c5   : > { %9503 = vmatmul.mubr.f32.gmra.mxu1 %v15003_v55  ;;  %9598 = vmatprep.subr.mxu1 %v17311_v18  ;;  %v17359_v18 = vld [vmem:[#allocation118_spill] sm:$0xff]  ;;  %v8290_v24 = vmax.f32 %v8282_v20, 0.0  ;;  %v8283_v28 = vadd.f32 %v17364_v30, %v16989_v41  ;;  %v17366_v25 = vmax.f32 %v17365_v52, 0.0 }
 0x3c6   : > { %9526 = vmatpush1.msra.mxu0 %v17356_v0  ;;  %9599 = vmatpush1.msra.mxu1 %v17314_v45  ;;  %v8287_v16 = vadd.f32 %v17359_v18, %v16982_v53  ;;  %v17363_v45 = vmax.f32 %v17362_v15, 0.0  ;;  %v8284_v26 = vadd.f32 %v8276_v10, %v16989_v41  ;;  %v17367_v53 = vld [vmem:[#allocation39_spill] sm:$0xff] }
 0x3c7   : > { %9527 = vmatprep.subr.mxu0 %v17358_v46  ;;  %9600 = vmatprep.subr.mxu1 %v17317_v49  ;;  %v8289_v49 = vmax.f32 %v8281_v58, 0.0  ;;  %v17368_v56 = vmax.f32 %v17367_v53, 0.0  ;;  %v8291_v41 = vmax.f32 %v8283_v28, 0.0  ;;  %v9684_v53 = vpop.permute.xlu0 %9683 }
 0x3c8   : > { %9528 = vmatpush1.msra.mxu0 %v17361_v6  ;;  %9601 = vmatpush1.msra.mxu1 %v17322_v42  ;;  %v8296_v42 = vmax.f32 %v8288_v7, 0.0  ;;  %v8295_v19 = vmax.f32 %v8287_v16, 0.0  ;;  %v8292_v10 = vmax.f32 %v8284_v26, 0.0 }
 0x3c9   : > { %9529 = vmatprep.subr.mxu0 %v8294_v2  ;;  %9602 = vmatprep.subr.mxu1 %v17363_v45 }
 0x3ca   : > { %9530 = vmatpush1.msra.mxu0 %v8293_v51  ;;  %9603 = vmatpush1.msra.mxu1 %v17366_v25 }
 0x3cb   : > { %9531 = vmatprep.subr.mxu0 %v8290_v24  ;;  %9604 = vmatprep.subr.mxu1 %v17368_v56 }
 0x3cc   : > { %9532 = vmatpush1.msra.mxu0 %v8289_v49  ;;  %9605 = vmatpush1.msra.mxu1 %v17370_v4 }
 0x3cd   : > { %9533 = vmatprep.subr.mxu0 %v8254_v48  ;;  %9606 = vmatprep.subr.mxu1 %v8296_v42  ;;  %v17379_v48 = vld [vmem:[#allocation131_spill] sm:$0xff] }
 0x3ce   : > { %9534 = vmatpush1.msra.mxu0 %v8253_v27  ;;  %9607 = vmatpush1.msra.mxu1 %v8295_v19  ;;  %v17380_v23 = vmax.f32 %v17379_v48, 0.0 }
 0x3cf   : > { %9535 = vmatprep.subr.mxu0 %v8250_v22  ;;  %9608 = vmatprep.subr.mxu1 %v8292_v10 }
 0x3d0   : > { %9536 = vmatpush1.msra.mxu0 %v8249_v61  ;;  %9609 = vmatpush1.msra.mxu1 %v8291_v41  ;;  %v17394_v61 = vld [vmem:[#allocation152_spill] sm:$0xff] }
 0x3d1   : > { %9537 = vmatprep.subr.mxu0 %v17250_v5  ;;  %9610 = vmatprep.subr.mxu1 %v8256_v8  ;;  %v17372_v5 = vmax.f32 %v17371_v34, 0.0 }
 0x3d2   : > { %9538 = vmatpush1.msra.mxu0 %v17251_v60  ;;  %9611 = vmatpush1.msra.mxu1 %v8255_v38  ;;  %v17374_v60 = vmax.f32 %v17373_v35, 0.0 }
 0x3d3   : > { %9539 = vmatprep.subr.mxu0 %v17252_v62  ;;  %9612 = vmatprep.subr.mxu1 %v8252_v47  ;;  %v17376_v62 = vmax.f32 %v17375_v43, 0.0 }
 0x3d4   : > { %9540 = vmatpush1.msra.mxu0 %v17253_v31  ;;  %9613 = vmatpush1.msra.mxu1 %v8251_v40  ;;  %v17378_v31 = vmax.f32 %v17377_v14, 0.0 }
 0x3d5   : > { %9541 = vmatprep.subr.mxu0 %v17372_v5  ;;  %9614 = vmatprep.subr.mxu1 %v17254_v17  ;;  %v17381_v17 = vld [vmem:[#allocation92_spill] sm:$0xff] }
 0x3d6   : > { %9542 = vmatpush1.msra.mxu0 %v17374_v60  ;;  %9615 = vmatpush1.msra.mxu1 %v17256_v39  ;;  %v17382_v27 = vmax.f32 %v17381_v17, 0.0  ;;  %v17383_v39 = vld [vmem:[#allocation89_spill] sm:$0xff] }
 0x3d7   : > { %9543 = vmatprep.subr.mxu0 %v17376_v62  ;;  %9616 = vmatprep.subr.mxu1 %v17258_v57  ;;  %v17384_v21 = vmax.f32 %v17383_v39, 0.0  ;;  %v17385_v57 = vld [vmem:[#allocation123_spill] sm:$0xff] }
 0x3d8   : > { %9544 = vmatpush1.msra.mxu0 %v17378_v31  ;;  %9617 = vmatpush1.msra.mxu1 %v17260_v29  ;;  %v17386_v22 = vmax.f32 %v17385_v57, 0.0  ;;  %v17387_v29 = vld [vmem:[#allocation146_spill] sm:$0xff] }
 0x3d9   : > { %9545 = vmatprep.subr.mxu0 %v14723_v37  ;;  %9618 = vmatprep.subr.mxu1 %v17380_v23  ;;  %v17388_v37 = vld [vmem:[#allocation153_spill] sm:$0xff] }
 0x3da   : > { %9546 = vmatpush1.msra.mxu0 %v14741_v59  ;;  %9619 = vmatpush1.msra.mxu1 %v17382_v27  ;;  %v17389_v59 = vld [vmem:[#allocation144_spill] sm:$0xff] }
 0x3db   : > { %9547 = vmatprep.subr.mxu0 %v14751_v54  ;;  %9620 = vmatprep.subr.mxu1 %v17384_v21  ;;  %v17390_v54 = vld [vmem:[#allocation151_spill] sm:$0xff] }
 0x3dc   : > { %9548 = vmatpush1.msra.mxu0 %v14768_v9  ;;  %9621 = vmatpush1.msra.mxu1 %v17386_v22  ;;  %v11339_v9 = vld [vmem:[%s16339_s3 + $0x8] sm:$0xff] }
 0x3dd   : > { %9577 = vmatprep.subr.mxu0 %v17387_v29  ;;  %9622 = vmatprep.subr.mxu1 %v14770_v32  ;;  %v9680_v32 = vld [vmem:[%s16340_s4 + $0x8] sm:$0xff] }
 0x3de   : > { %9578 = vmatpush2.msra.mxu0 %v17388_v37  ;;  %9623 = vmatpush1.msra.mxu1 %v14806_v13  ;;  %v17391_v13 = vld [vmem:[#allocation147_spill] sm:$0xff] }
 0x3df   : > { %9579 = vmatprep.subr.mxu0 %v17389_v59  ;;  %9624 = vmatprep.subr.mxu1 %v14814_v11  ;;  %v17392_v11 = vld [vmem:[#allocation154_spill] sm:$0xff] }
 0x3e0   : > { %9580 = vmatpush2.msra.mxu0 %v17390_v54  ;;  %11138 = vmatprep.mubr.msk.f32.mxu0 %vm8856_vm8, %v11339_v9 }
 0x3e1   : > { %9625 = vmatpush1.msra.mxu1 %v17290_v3  ;;  %9582 = vmatmul.mubr.f32.vlgmr.msra.gmra.mxu0 %v14800_v50 }
 0x3e2   : > { %9654 = vmatprep.subr.mxu1 %v17391_v13  ;;  %11139 = vmatprep.mubr.msk.f32.mxu0 %vm8856_vm8, %v14990_v1 }
 0x3e3   : > { %9655 = vmatpush2.msra.mxu1 %v17392_v11  ;;  %11140 = vmatprep.mubr.msk.f32.mxu1 %vm8856_vm8, %v11339_v9 }
 0x3e4   : > { %9656 = vmatprep.subr.mxu1 %v17393_v36  ;;  %9688 = vperm.xlu1 %11334, %v9680_v32  }
 0x3e5   : > { %9657 = vmatpush2.msra.mxu1 %v17394_v61  ;;  %9588 = vmatmul.mubr.f32.gmra.mxu0 %v15003_v55 }
 0x3e6   : > { %9659 = vmatmul.mubr.f32.vlgmr.msra.gmra.mxu1 %v14800_v50 }
 0x3e7   : > { %11141 = vmatprep.mubr.msk.f32.mxu1 %vm8856_vm8, %v14990_v1 }
 0x3ea   : > { %9665 = vmatmul.mubr.f32.gmra.mxu1 %v15003_v55 }
 0x42b   : > { %v8929_v33 = vpop.f32.mrf.mxu0 }
 0x42d   : > { %v8931_v8 = vpop.f32.mrf.mxu0 }
 0x42f   : > { %v9006_v38 = vpop.f32.mrf.mxu1 }
 0x431   : > { %v9008_v40 = vpop.f32.mrf.mxu1 }
 0x44b   : > { %v8935_v47 = vpop.f32.mrf.mxu0 }
 0x44d   : > { %v8937_v3 = vpop.f32.mrf.mxu0 }
 0x451   : > { %v9012_v20 = vpop.f32.mrf.mxu1  ;;  %v9171_v58 = vpop.f32.mrf.mxu0 }
 0x452   : > { %v9259_v15 = vmax.f32 %v8929_v33, %v9171_v58 }
 0x453   : > { %v15420_v0 = vpop.f32.mrf.mxu1  ;;  %v9173_v44 = vpop.f32.mrf.mxu0 }
 0x454   : > { %v9260_v24 = vmax.f32 %v8931_v8, %v9173_v44 }
 0x457   : > { %v9248_v46 = vpop.f32.mrf.mxu1  ;;  %v9177_v2 = vpop.f32.mrf.mxu0 }
 0x458   : > { %v9263_v28 = vmax.f32 %v8935_v47, %v9177_v2  ;;  %v9261_v56 = vmax.f32 %v9006_v38, %v9248_v46 }
 0x459   : > { %v9250_v7 = vpop.f32.mrf.mxu1  ;;  %v9179_v50 = vpop.f32.mrf.mxu0 }
 0x45a   : > { %v9264_v19 = vmax.f32 %v8937_v3, %v9179_v50  ;;  %v9262_v34 = vmax.f32 %v9008_v40, %v9250_v7 }
 0x45d   : > { %v9254_v51 = vpop.f32.mrf.mxu1 }
 0x45e   : > { %v9265_v23 = vmax.f32 %v9012_v20, %v9254_v51 }
 0x45f   : > { %v9256_v1 = vpop.f32.mrf.mxu1  ;;  %v9689_v60 = vpop.permute.xlu1 %9688 }
 0x460   : > { %v9266_v17 = vmax.f32 %v15420_v0, %v9256_v1 }
 0x479   : > { %v9421_v18 = vpop.f32.mrf.mxu0 }
 0x47a   : > { %v9509_v26 = vmax.f32 %v9259_v15, %v9421_v18 }
 0x47b   : > { %v9423_v16 = vpop.f32.mrf.mxu0 }
 0x47c   : > { %v9510_v52 = vmax.f32 %v9260_v24, %v9423_v16 }
 0x47f   : > { %v9498_v55 = vpop.f32.mrf.mxu1  ;;  %v9427_v12 = vpop.f32.mrf.mxu0 }
 0x480   : > { %v9513_v63 = vmax.f32 %v9263_v28, %v9427_v12  ;;  %v9511_v5 = vmax.f32 %v9261_v56, %v9498_v55 }
 0x481   : > { %v9500_v6 = vpop.f32.mrf.mxu1  ;;  %v9429_v45 = vpop.f32.mrf.mxu0 }
 0x482   : > { %v9514_v43 = vmax.f32 %v9264_v19, %v9429_v45  ;;  %v9512_v27 = vmax.f32 %v9262_v34, %v9500_v6  ;;  %v10172_v34 = vld [vmem:[%s16341_s5 + $0x78] sm:$0xff] }
 0x485   : > { %v9504_v49 = vpop.f32.mrf.mxu1 }
 0x486   : > { %v9515_v54 = vmax.f32 %v9265_v23, %v9504_v49  ;;  %v10169_v23 = vld [vmem:[%s16341_s5 + $0x60] sm:$0xff] }
 0x487   : > { %v9506_v4 = vpop.f32.mrf.mxu1 }
 0x488   : > { %v9516_v8 = vmax.f32 %v9266_v17, %v9506_v4  ;;  %v10184_v17 = vld [vmem:[%s16341_s5 + $0xd8] sm:$0xff] }
 0x4a1   : > { %v9583_v30 = vpop.f32.mrf.mxu0 }
 0x4a2   : > { %v9671_v25 = vmax.f32 %v9509_v26, %v9583_v30 }
 0x4a3   : > { %v9585_v42 = vpop.f32.mrf.mxu0 }
 0x4a4   : > { %v9691_v10 = vadd.f32 %v9684_v53, %v9671_v25  ;;  %v9672_v41 = vmax.f32 %v9510_v52, %v9585_v42 }
 0x4a5   : > { %v9589_v35 = vpop.f32.mrf.mxu0 }
 0x4a6   : > { %v15422_v62 = vmax.f32 %v9691_v10, 0.0  ;;  %v9692_v14 = vadd.f32 %v9684_v53, %v9672_v41  ;;  %v9675_v31 = vmax.f32 %v9513_v63, %v9589_v35  ;;  %v9660_v48 = vpop.f32.mrf.mxu1  ;;  %v10188_v41 = vld [vmem:[%s16341_s5 + $0xf8] sm:$0xff]  ;;  %v10187_v35 = vld [vmem:[%s16341_s5 + $0xf0] sm:$0xff] }
 0x4a7   : > { %v9673_v39 = vmax.f32 %v9511_v5, %v9660_v48  ;;  %v9591_v21 = vpop.f32.mrf.mxu0  ;;  %11148 = vmatprep.subr.mxu0 %v10188_v41  ;;  %v10185_v48 = vld [vmem:[%s16341_s5 + $0xe0] sm:$0xff] }
 0x4a8   : > { %v15425_v57 = vmax.f32 %v9692_v14, 0.0  ;;  %v9676_v22 = vmax.f32 %v9514_v43, %v9591_v21  ;;  %v9662_v29 = vpop.f32.mrf.mxu1  ;;  %v9695_v37 = vadd.f32 %v9689_v60, %v9675_v31  ;;  %9771 = vrot.lane.b32.xlu1 %v15422_v62, %s11407_s19  ;;  %v9716_v59 = vrot.slane %v15422_v62, 2  ;;  %9708 = vst.msk [vmem:[#allocation2] sm:$0x1] %vm9707_vm2, %v15422_v62  ;;  %11149 = vmatpush3.msra.mxu0 %v10172_v34  ;;  %v10186_v43 = vld [vmem:[%s16341_s5 + $0xe8] sm:$0xff]  ;;  %v10199_v34 = vld [vmem:[%s16341_s5 + $0x150] sm:$0xff] }
 0x4a9   : > { %v9693_v9 = vadd.f32 %v9684_v53, %v9673_v39  ;;  %v9674_v32 = vmax.f32 %v9512_v27, %v9662_v29  ;;  %v9732_v13 = vrot.slane %v15422_v62, 6  ;;  %v9724_v33 = vrot.slane %v15422_v62, 4  ;;  %11150 = vmatprep.subr.mxu0 %v10187_v35  ;;  %v10170_v14 = vld [vmem:[%s16341_s5 + $0x68] sm:$0xff]  ;;  %v10168_v27 = vld [vmem:[%s16341_s5 + $0x58] sm:$0xff] }
 0x4aa   : > { %v9696_v11 = vadd.f32 %v9689_v60, %v9676_v22  ;;  %v15433_v36 = vmax.f32 %v9695_v37, 0.0  ;;  %v9666_v61 = vpop.f32.mrf.mxu1  ;;  %9777 = vrot.lane.b32.xlu0 %v9716_v59, %s11407_s19  ;;  %9718 = vst.msk [vmem:[#allocation2 + $0x8] sm:$0x1] %vm9707_vm2, %v9716_v59  ;;  %9819 = vst.msk [vmem:[#allocation2 + $0x2] sm:$0x1] %vm9707_vm2, %v15425_v57  ;;  %v9826_v58 = vrot.slane %v15425_v57, 2 }
 0x4ab   : > { %v15440_v38 = vmax.f32 %v9693_v9, 0.0  ;;  %v9694_v47 = vadd.f32 %v9684_v53, %v9674_v32  ;;  %v9677_v40 = vmax.f32 %v9515_v54, %v9666_v61  ;;  %9734 = vst.msk [vmem:[#allocation2 + $0x18] sm:$0x1] %vm9707_vm2, %v9732_v13  ;;  %v9842_v0 = vrot.slane %v15425_v57, 6  ;;  %9726 = vst.msk [vmem:[#allocation2 + $0x10] sm:$0x1] %vm9707_vm2, %v9724_v33 }
 0x4ac   : > { %v15445_v3 = vmax.f32 %v9696_v11, 0.0  ;;  %v9668_v20 = vpop.f32.mrf.mxu1  ;;  %9740 = vst.msk [vmem:[#allocation2 + $0x20] sm:$0x1] %vm9707_vm2, %v15433_v36  ;;  %9828 = vst.msk [vmem:[#allocation2 + $0xa] sm:$0x1] %vm9707_vm2, %v9826_v58  ;;  %v9719_v6 = vrot.slane %v15422_v62, 3 }
 0x4ad   : > { %v15454_v44 = vmax.f32 %v9694_v47, 0.0  ;;  %v9697_v46 = vadd.f32 %v9689_v60, %v9677_v40  ;;  %v9678_v2 = vmax.f32 %v9516_v8, %v9668_v20  ;;  %9991 = vrot.lane.b32.xlu1 %v15440_v38, %s11407_s19  ;;  %v9936_v7 = vrot.slane %v15440_v38, 2  ;;  %9929 = vst.msk [vmem:[#allocation2 + $0x4] sm:$0x1] %vm9707_vm2, %v15440_v38  ;;  %9844 = vst.msk [vmem:[#allocation2 + $0x1a] sm:$0x1] %vm9707_vm2, %v9842_v0 }
 0x4ae   : > { %v9952_v50 = vrot.slane %v15440_v38, 6  ;;  %v9944_v51 = vrot.slane %v15440_v38, 4  ;;  %9850 = vst.msk [vmem:[#allocation2 + $0x22] sm:$0x1] %vm9707_vm2, %v15445_v3  ;;  %v9834_v15 = vrot.slane %v15425_v57, 4  ;;  %v9747_v24 = vrot.slane %v15433_v36, 2 }
 0x4af   : > { %v15471_v18 = vmax.f32 %v9697_v46, 0.0  ;;  %v9698_v1 = vadd.f32 %v9689_v60, %v9678_v2  ;;  %9997 = vrot.lane.b32.xlu0 %v9936_v7, %s11407_s19  ;;  %v10046_v16 = vrot.slane %v15454_v44, 2  ;;  %9938 = vst.msk [vmem:[#allocation2 + $0xc] sm:$0x1] %vm9707_vm2, %v9936_v7  ;;  %10039 = vst.msk [vmem:[#allocation2 + $0x6] sm:$0x1] %vm9707_vm2, %v15454_v44 }
 0x4b0   : > { %v10062_v55 = vrot.slane %v15454_v44, 6  ;;  %9946 = vst.msk [vmem:[#allocation2 + $0x14] sm:$0x1] %vm9707_vm2, %v9944_v51  ;;  %9954 = vst.msk [vmem:[#allocation2 + $0x1c] sm:$0x1] %vm9707_vm2, %v9952_v50  ;;  %v10054_v45 = vrot.slane %v15454_v44, 4 }
 0x4b1   : > { %v15483_v12 = vmax.f32 %v9698_v1, 0.0  ;;  %9881 = vrot.lane.b32.xlu1 %v15425_v57, %s11407_s19  ;;  %9960 = vst.msk [vmem:[#allocation2 + $0x24] sm:$0x1] %vm9707_vm2, %v15471_v18  ;;  %10048 = vst.msk [vmem:[#allocation2 + $0xe] sm:$0x1] %vm9707_vm2, %v10046_v16  ;;  %v9967_v26 = vrot.slane %v15471_v18, 2 }
 0x4b2   : > { %10064 = vst.msk [vmem:[#allocation2 + $0x1e] sm:$0x1] %vm9707_vm2, %v10062_v55  ;;  %9836 = vst.msk [vmem:[#allocation2 + $0x12] sm:$0x1] %vm9707_vm2, %v9834_v15  ;;  %v9763_v49 = vrot.slane %v15433_v36, 6  ;;  %v9983_v30 = vrot.slane %v15471_v18, 6 }
 0x4b3   : > { %9720 = vrot.lane.b32.xlu0 %v9719_v6, %s11407_s19  ;;  %10056 = vst.msk [vmem:[#allocation2 + $0x16] sm:$0x1] %vm9707_vm2, %v10054_v45  ;;  %10070 = vst.msk [vmem:[#allocation2 + $0x26] sm:$0x1] %vm9707_vm2, %v15483_v12  ;;  %v9939_v28 = vrot.slane %v15440_v38, 3  ;;  %v9755_v52 = vrot.slane %v15433_v36, 4 }
 0x4b4   : > { %v9975_v25 = vrot.slane %v15471_v18, 4  ;;  %9749 = vst.msk [vmem:[#allocation2 + $0x28] sm:$0x1] %vm9707_vm2, %v9747_v24  ;;  %9969 = vst.msk [vmem:[#allocation2 + $0x2c] sm:$0x1] %vm9707_vm2, %v9967_v26  ;;  %v9857_v53 = vrot.slane %v15445_v3, 2 }
 0x4b5   : > { %10101 = vrot.lane.b32.xlu1 %v15454_v44, %s11407_s19  ;;  %v10077_v56 = vrot.slane %v15483_v12, 2  ;;  %9765 = vst.msk [vmem:[#allocation2 + $0x38] sm:$0x1] %vm9707_vm2, %v9763_v49  ;;  %9985 = vst.msk [vmem:[#allocation2 + $0x3c] sm:$0x1] %vm9707_vm2, %v9983_v30  ;;  %v9873_v42 = vrot.slane %v15445_v3, 6 }
 0x4b6   : > { %v10093_v19 = vrot.slane %v15483_v12, 6  ;;  %9757 = vst.msk [vmem:[#allocation2 + $0x30] sm:$0x1] %vm9707_vm2, %v9755_v52  ;;  %9977 = vst.msk [vmem:[#allocation2 + $0x34] sm:$0x1] %vm9707_vm2, %v9975_v25  ;;  %v9865_v63 = vrot.slane %v15445_v3, 4 }
 0x4b7   : > { %9940 = vrot.lane.b32.xlu0 %v9939_v28, %s11407_s19  ;;  %9859 = vst.msk [vmem:[#allocation2 + $0x2a] sm:$0x1] %vm9707_vm2, %v9857_v53  ;;  %10079 = vst.msk [vmem:[#allocation2 + $0x2e] sm:$0x1] %vm9707_vm2, %v10077_v56  ;;  %v10085_v4 = vrot.slane %v15483_v12, 4  ;;  %v9710_v10 = vrot.slane %v15422_v62, 1 }
 0x4b8   : > { %9875 = vst.msk [vmem:[#allocation2 + $0x3a] sm:$0x1] %vm9707_vm2, %v9873_v42  ;;  %10095 = vst.msk [vmem:[#allocation2 + $0x3e] sm:$0x1] %vm9707_vm2, %v10093_v19  ;;  %v9931_v5 = vrot.slane %v15440_v38, 1  ;;  %v10171_v60 = vld [vmem:[%s16341_s5 + $0x70] sm:$0xff] }
 0x4b9   : > { %9789 = vrot.lane.b32.xlu1 %v9732_v13, %s11407_s19  ;;  %9867 = vst.msk [vmem:[#allocation2 + $0x32] sm:$0x1] %vm9707_vm2, %v9865_v63  ;;  %10087 = vst.msk [vmem:[#allocation2 + $0x36] sm:$0x1] %vm9707_vm2, %v10085_v4  ;;  %11151 = vmatpush3.msra.mxu0 %v10171_v60  ;;  %v9735_v31 = vrot.slane %v15422_v62, 7  ;;  %v10220_v39 = vld [vmem:[%s16341_s5 + $0x1f8] sm:$0xff] }
 0x4ba   : > { %11152 = vmatprep.subr.mxu0 %v10186_v43  ;;  %11183 = vmatprep.subr.mxu1 %v10220_v39  ;;  %v9955_v21 = vrot.slane %v15440_v38, 7  ;;  %v10183_v22 = vld [vmem:[%s16341_s5 + $0xd0] sm:$0xff]  ;;  %v10204_v29 = vld [vmem:[%s16341_s5 + $0x178] sm:$0xff]  ;;  %v10182_v54 = vld [vmem:[%s16341_s5 + $0xc8] sm:$0xff]  ;;  %v9727_v11 = vrot.slane %v15422_v62, 5  ;;  %v9947_v46 = vrot.slane %v15440_v38, 5 }
 0x4bb   : > { %9711 = vrot.lane.b32.xlu0 %v9710_v10, %s11407_s19  ;;  %11153 = vmatpush3.msra.mxu0 %v10170_v14  ;;  %v10167_v37 = vld [vmem:[%s16341_s5 + $0x50] sm:$0xff]  ;;  %v10166_v32 = vld [vmem:[%s16341_s5 + $0x48] sm:$0xff]  ;;  %v10181_v61 = vld [vmem:[%s16341_s5 + $0xc0] sm:$0xff]  ;;  %v9829_v41 = vrot.slane %v15425_v57, 3 }
 0x4bc   : > { %11154 = vmatprep.subr.mxu0 %v10185_v48  ;;  %11184 = vmatpush3.msra.mxu1 %v10204_v29  ;;  %v10219_v59 = vld [vmem:[%s16341_s5 + $0x1f0] sm:$0xff]  ;;  %v10218_v13 = vld [vmem:[%s16341_s5 + $0x1e8] sm:$0xff]  ;;  %v10165_v8 = vld [vmem:[%s16341_s5 + $0x40] sm:$0xff]  ;;  %v10049_v48 = vrot.slane %v15454_v44, 3  ;;  %v9821_v29 = vrot.slane %v15425_v57, 1 }
 0x4bd   : > { %10009 = vrot.lane.b32.xlu1 %v9952_v50, %s11407_s19  ;;  %11155 = vmatpush3.msra.mxu0 %v10169_v23  ;;  %v10203_v9 = vld [vmem:[%s16341_s5 + $0x170] sm:$0xff]  ;;  %v10217_v47 = vld [vmem:[%s16341_s5 + $0x1e0] sm:$0xff]  ;;  %v10180_v40 = vld [vmem:[%s16341_s5 + $0xb8] sm:$0xff] }
 0x4be   : > { %11156 = vmatprep.subr.mxu0 %v10184_v17  ;;  %11185 = vmatprep.subr.mxu1 %v10219_v59  ;;  %v10201_v20 = vld [vmem:[%s16341_s5 + $0x160] sm:$0xff]  ;;  %v10216_v2 = vld [vmem:[%s16341_s5 + $0x1d8] sm:$0xff]  ;;  %v10179_v7 = vld [vmem:[%s16341_s5 + $0xb0] sm:$0xff] }
 0x4bf   : > { %9932 = vrot.lane.b32.xlu0 %v9931_v5, %s11407_s19  ;;  %11157 = vmatpush3.msra.mxu0 %v10168_v27  ;;  %v10200_v50 = vld [vmem:[%s16341_s5 + $0x158] sm:$0xff]  ;;  %v10215_v1 = vld [vmem:[%s16341_s5 + $0x1d0] sm:$0xff]  ;;  %v10162_v35 = vld [vmem:[%s16341_s5 + $0x28] sm:$0xff] }
 0x4c0   : > { %11158 = vmatprep.subr.mxu0 %v10183_v22  ;;  %11186 = vmatpush3.msra.mxu1 %v10203_v9  ;;  %v10214_v60 = vld [vmem:[%s16341_s5 + $0x1c8] sm:$0xff]  ;;  %v10161_v14 = vld [vmem:[%s16341_s5 + $0x20] sm:$0xff]  ;;  %v10176_v17 = vld [vmem:[%s16341_s5 + $0x98] sm:$0xff] }
 0x4c1   : > { %9783 = vrot.lane.b32.xlu1 %v9724_v33, %s11407_s19  ;;  %11159 = vmatpush3.msra.mxu0 %v10167_v37  ;;  %v10202_v33 = vld [vmem:[%s16341_s5 + $0x168] sm:$0xff]  ;;  %v10213_v23 = vld [vmem:[%s16341_s5 + $0x1c0] sm:$0xff]  ;;  %v10212_v39 = vld [vmem:[%s16341_s5 + $0x1b8] sm:$0xff] }
 0x4c2   : > { %11160 = vmatprep.subr.mxu0 %v10182_v54  ;;  %11187 = vmatprep.subr.mxu1 %v10218_v13  ;;  %v10198_v43 = vld [vmem:[%s16341_s5 + $0x148] sm:$0xff]  ;;  %v10197_v27 = vld [vmem:[%s16341_s5 + $0x140] sm:$0xff]  ;;  %v10175_v22 = vld [vmem:[%s16341_s5 + $0x90] sm:$0xff]  ;;  %v10041_v13 = vrot.slane %v15454_v44, 1 }
 0x4c3   : > { %9736 = vrot.lane.b32.xlu0 %v9735_v31, %s11407_s19  ;;  %11161 = vmatpush3.msra.mxu0 %v10166_v32  ;;  %v10196_v37 = vld [vmem:[%s16341_s5 + $0x138] sm:$0xff]  ;;  %v10159_v59 = vld [vmem:[%s16341_s5 + $0x10] sm:$0xff]  ;;  %v10158_v32 = vld [vmem:[%s16341_s5 + $0x8] sm:$0xff] }
 0x4c4   : > { %11162 = vmatprep.subr.mxu0 %v10181_v61  ;;  %11188 = vmatpush3.msra.mxu1 %v10202_v33  ;;  %v10211_v54 = vld [vmem:[%s16341_s5 + $0x1b0] sm:$0xff]  ;;  %v10210_v61 = vld [vmem:[%s16341_s5 + $0x1a8] sm:$0xff]  ;;  %v10173_v33 = vld [vmem:[%s16341_s5 + $0x80] sm:$0xff] }
 0x4c5   : > { %10003 = vrot.lane.b32.xlu1 %v9944_v51, %s11407_s19  ;;  %11163 = vmatpush3.msra.mxu0 %v10165_v8  ;;  %v10163_v51 = vld [vmem:[%s16341_s5 + $0x30] sm:$0xff]  ;;  %v10194_v8 = vld [vmem:[%s16341_s5 + $0x128] sm:$0xff] }
 0x4c6   : > { %11189 = vmatprep.subr.mxu1 %v10217_v47  ;;  %11164 = vmatprep.subr.mxu0 %v10180_v40  ;;  %v10195_v9 = vld [vmem:[%s16341_s5 + $0x130] sm:$0xff]  ;;  %v10157_v47 = vld [vmem:[%s16341_s5] sm:$0xff] }
 0x4c7   : > { %9956 = vrot.lane.b32.xlu0 %v9955_v21, %s11407_s19  ;;  %11190 = vmatpush3.msra.mxu1 %v10201_v20  ;;  %v10209_v40 = vld [vmem:[%s16341_s5 + $0x1a0] sm:$0xff] }
 0x4c8   : > { %11191 = vmatprep.subr.mxu1 %v10216_v2  ;;  %v10193_v20 = vld [vmem:[%s16341_s5 + $0x120] sm:$0xff]  ;;  %v10208_v2 = vld [vmem:[%s16341_s5 + $0x198] sm:$0xff] }
 0x4c9   : > { %9887 = vrot.lane.b32.xlu1 %v9826_v58, %s11407_s19  ;;  %v10164_v58 = vld [vmem:[%s16341_s5 + $0x38] sm:$0xff]  ;;  %11192 = vmatpush3.msra.mxu1 %v10200_v50  ;;  %v10057_v50 = vrot.slane %v15454_v44, 5 }
 0x4ca   : > { %11165 = vmatpush3.msra.mxu0 %v10164_v58  ;;  %11193 = vmatprep.subr.mxu1 %v10215_v1  ;;  %v9845_v58 = vrot.slane %v15425_v57, 7  ;;  %v10191_v1 = vld [vmem:[%s16341_s5 + $0x110] sm:$0xff] }
 0x4cb   : > { %9728 = vrot.lane.b32.xlu0 %v9727_v11, %s11407_s19  ;;  %11166 = vmatprep.subr.mxu0 %v10179_v7  ;;  %v10192_v7 = vld [vmem:[%s16341_s5 + $0x118] sm:$0xff] }
 0x4cc   : > { %11167 = vmatpush3.msra.mxu0 %v10163_v51  ;;  %11194 = vmatpush3.msra.mxu1 %v10199_v34  ;;  %v10207_v51 = vld [vmem:[%s16341_s5 + $0x190] sm:$0xff]  ;;  %v10206_v34 = vld [vmem:[%s16341_s5 + $0x188] sm:$0xff] }
 0x4cd   : > { %10107 = vrot.lane.b32.xlu1 %v10046_v16, %s11407_s19  ;;  %v10178_v16 = vld [vmem:[%s16341_s5 + $0xa8] sm:$0xff]  ;;  %11195 = vmatprep.subr.mxu1 %v10214_v60  ;;  %v10205_v60 = vld [vmem:[%s16341_s5 + $0x180] sm:$0xff] }
 0x4ce   : > { %11168 = vmatprep.subr.mxu0 %v10178_v16  ;;  %11196 = vmatpush3.msra.mxu1 %v10198_v43  ;;  %v10065_v16 = vrot.slane %v15454_v44, 7  ;;  %v9750_v43 = vrot.slane %v15433_v36, 3  ;;  %v10236_v44 = vld [vmem:[%s16341_s5 + $0x278] sm:$0xff] }
 0x4cf   : > { %9948 = vrot.lane.b32.xlu0 %v9947_v46, %s11407_s19  ;;  %11169 = vmatpush3.msra.mxu0 %v10162_v35  ;;  %v10190_v35 = vld [vmem:[%s16341_s5 + $0x108] sm:$0xff] }
 0x4d0   : > { %11197 = vmatprep.subr.mxu1 %v10213_v23  ;;  %v9962_v23 = vrot.slane %v15471_v18, 1 }
 0x4d1   : > { %9899 = vrot.lane.b32.xlu1 %v9842_v0, %s11407_s19  ;;  %v10177_v0 = vld [vmem:[%s16341_s5 + $0xa0] sm:$0xff]  ;;  %11198 = vmatpush3.msra.mxu1 %v10197_v27 }
 0x4d2   : > { %11170 = vmatprep.subr.mxu0 %v10177_v0  ;;  %11199 = vmatprep.subr.mxu1 %v10212_v39  ;;  %v10189_v0 = vld [vmem:[%s16341_s5 + $0x100] sm:$0xff] }
 0x4d3   : > { %9830 = vrot.lane.b32.xlu0 %v9829_v41, %s11407_s19  ;;  %11171 = vmatpush3.msra.mxu0 %v10161_v14  ;;  %v10252_v14 = vld [vmem:[%s16341_s5 + $0x2f8] sm:$0xff] }
 0x4d4   : > { %11172 = vmatprep.subr.mxu0 %v10176_v17  ;;  %11200 = vmatpush3.msra.mxu1 %v10196_v37  ;;  %v10284_v17 = vld [vmem:[%s16341_s5 + $0x3f8] sm:$0xff] }
 0x4d5   : > { %10119 = vrot.lane.b32.xlu1 %v10062_v55, %s11407_s19  ;;  %v10160_v55 = vld [vmem:[%s16341_s5 + $0x18] sm:$0xff]  ;;  %11201 = vmatprep.subr.mxu1 %v10211_v54 }
 0x4d6   : > { %11173 = vmatpush3.msra.mxu0 %v10160_v55  ;;  %11202 = vmatpush3.msra.mxu1 %v10195_v9 }
 0x4d7   : > { %10050 = vrot.lane.b32.xlu0 %v10049_v48, %s11407_s19  ;;  %11174 = vmatprep.subr.mxu0 %v10175_v22 }
 0x4d8   : > { %11175 = vmatpush3.msra.mxu0 %v10159_v59  ;;  %11203 = vmatprep.subr.mxu1 %v10210_v61 }
 0x4d9   : > { %9893 = vrot.lane.b32.xlu1 %v9834_v15, %s11407_s19  ;;  %v10174_v15 = vld [vmem:[%s16341_s5 + $0x88] sm:$0xff]  ;;  %11204 = vmatpush3.msra.mxu1 %v10194_v8 }
 0x4da   : > { %11176 = vmatprep.subr.mxu0 %v10174_v15  ;;  %11205 = vmatprep.subr.mxu1 %v10209_v40 }
 0x4db   : > { %9822 = vrot.lane.b32.xlu0 %v9821_v29, %s11407_s19  ;;  %11177 = vmatpush3.msra.mxu0 %v10158_v32 }
 0x4dc   : > { %11178 = vmatprep.subr.mxu0 %v10173_v33  ;;  %11206 = vmatpush3.msra.mxu1 %v10193_v20 }
 0x4dd   : > { %10113 = vrot.lane.b32.xlu1 %v10054_v45, %s11407_s19  ;;  %v9837_v45 = vrot.slane %v15425_v57, 5  ;;  %11179 = vmatpush3.msra.mxu0 %v10157_v47 }
 0x4de   : > { %11207 = vmatprep.subr.mxu1 %v10208_v2  ;;  %11218 = vmatprep.subr.mxu0 %v10252_v14  ;;  %v10233_v14 = vld [vmem:[%s16341_s5 + $0x260] sm:$0xff] }
 0x4df   : > { %10042 = vrot.lane.b32.xlu0 %v10041_v13, %s11407_s19  ;;  %11208 = vmatpush3.msra.mxu1 %v10192_v7 }
 0x4e0   : > { %11209 = vmatprep.subr.mxu1 %v10207_v51  ;;  %v10251_v51 = vld [vmem:[%s16341_s5 + $0x2f0] sm:$0xff] }
 0x4e1   : > { %9838 = vrot.lane.b32.xlu1 %v9837_v45, %s11407_s19  ;;  %11210 = vmatpush3.msra.mxu1 %v10191_v1  ;;  %v10235_v1 = vld [vmem:[%s16341_s5 + $0x270] sm:$0xff] }
 0x4e2   : > { %11211 = vmatprep.subr.mxu1 %v10206_v34  ;;  %v10250_v34 = vld [vmem:[%s16341_s5 + $0x2e8] sm:$0xff] }
 0x4e3   : > { %9846 = vrot.lane.b32.xlu0 %v9845_v58, %s11407_s19  ;;  %11212 = vmatpush3.msra.mxu1 %v10190_v35  ;;  %v10234_v35 = vld [vmem:[%s16341_s5 + $0x268] sm:$0xff] }
 0x4e4   : > { %11213 = vmatprep.subr.mxu1 %v10205_v60 }
 0x4e5   : > { %10058 = vrot.lane.b32.xlu1 %v10057_v50, %s11407_s19  ;;  %11214 = vmatpush3.msra.mxu1 %v10189_v0  ;;  %v10249_v0 = vld [vmem:[%s16341_s5 + $0x2e0] sm:$0xff] }
 0x4e6   : > { %11253 = vmatprep.subr.mxu1 %v10284_v17 }
 0x4e7   : > { %10066 = vrot.lane.b32.xlu0 %v10065_v16, %s11407_s19 }
 0x4e9   : > { %9795 = vrot.lane.b32.xlu1 %v15433_v36, %s11407_s19 }
 0x4eb   : > { %9801 = vrot.lane.b32.xlu0 %v9747_v24, %s11407_s19  ;;  %v9970_v24 = vrot.slane %v15471_v18, 3 }
 0x4ed   : > { %10015 = vrot.lane.b32.xlu1 %v15471_v18, %s11407_s19 }
 0x4ef   : > { %10021 = vrot.lane.b32.xlu0 %v9967_v26, %s11407_s19  ;;  %v9742_v26 = vrot.slane %v15433_v36, 1 }
 0x4f1   : > { %9905 = vrot.lane.b32.xlu1 %v15445_v3, %s11407_s19 }
 0x4f3   : > { %9751 = vrot.lane.b32.xlu0 %v9750_v43, %s11407_s19 }
 0x4f5   : > { %10125 = vrot.lane.b32.xlu1 %v15483_v12, %s11407_s19 }
 0x4f7   : > { %9971 = vrot.lane.b32.xlu0 %v9970_v24, %s11407_s19 }
 0x4f9   : > { %9813 = vrot.lane.b32.xlu1 %v9763_v49, %s11407_s19  ;;  %v9766_v49 = vrot.slane %v15433_v36, 7 }
 0x4fb   : > { %9743 = vrot.lane.b32.xlu0 %v9742_v26, %s11407_s19 }
 0x4fd   : > { %10033 = vrot.lane.b32.xlu1 %v9983_v30, %s11407_s19  ;;  %v9986_v30 = vrot.slane %v15471_v18, 7 }
 0x4ff   : > { %9963 = vrot.lane.b32.xlu0 %v9962_v23, %s11407_s19 }
 0x501   : > { %9807 = vrot.lane.b32.xlu1 %v9755_v52, %s11407_s19  ;;  %v9758_v52 = vrot.slane %v15433_v36, 5  ;;  %v10221_v36 = vld [vmem:[%s16341_s5 + $0x200] sm:$0xff] }
 0x503   : > { %9767 = vrot.lane.b32.xlu0 %v9766_v49, %s11407_s19 }
 0x505   : > { %10027 = vrot.lane.b32.xlu1 %v9975_v25, %s11407_s19  ;;  %v9860_v25 = vrot.slane %v15445_v3, 3 }
 0x507   : > { %9987 = vrot.lane.b32.xlu0 %v9986_v30, %s11407_s19 }
 0x509   : > { %9911 = vrot.lane.b32.xlu1 %v9857_v53, %s11407_s19  ;;  %v10080_v53 = vrot.slane %v15483_v12, 3 }
 0x50b   : > { %9759 = vrot.lane.b32.xlu0 %v9758_v52, %s11407_s19 }
 0x50d   : > { %10131 = vrot.lane.b32.xlu1 %v10077_v56, %s11407_s19  ;;  %v9852_v56 = vrot.slane %v15445_v3, 1 }
 0x50f   : > { %9861 = vrot.lane.b32.xlu0 %v9860_v25, %s11407_s19 }
 0x511   : > { %9923 = vrot.lane.b32.xlu1 %v9873_v42, %s11407_s19  ;;  %v10072_v42 = vrot.slane %v15483_v12, 1 }
 0x513   : > { %10081 = vrot.lane.b32.xlu0 %v10080_v53, %s11407_s19 }
 0x515   : > { %10143 = vrot.lane.b32.xlu1 %v10093_v19, %s11407_s19 }
 0x517   : > { %9853 = vrot.lane.b32.xlu0 %v9852_v56, %s11407_s19 }
 0x519   : > { %9917 = vrot.lane.b32.xlu1 %v9865_v63, %s11407_s19  ;;  %v9876_v63 = vrot.slane %v15445_v3, 7 }
 0x51a   : > { %v9772_v27 = vpop.permute.xlu1 %9771 }
 0x51b   : > { %10073 = vrot.lane.b32.xlu0 %v10072_v42, %s11407_s19  ;;  %9774 = vst.msk [vmem:[#allocation2 + $0x1] sm:$0x1] %vm9707_vm2, %v9772_v27  ;;  %v10232_v27 = vld [vmem:[%s16341_s5 + $0x258] sm:$0xff] }
 0x51c   : > { %9776 = vst.msk [vmem:[#allocation2 + $0x1] sm:$0x1] %vm9714_vm3, %v9710_v10  ;;  %v9778_v19 = vpop.permute.xlu0 %9777  ;;  %v9868_v10 = vrot.slane %v15445_v3, 5 }
 0x51d   : > { %9780 = vst.msk [vmem:[#allocation2 + $0x9] sm:$0x1] %vm9707_vm2, %v9778_v19  ;;  %10137 = vrot.lane.b32.xlu1 %v10085_v4, %s11407_s19 }
 0x51e   : > { %9782 = vst.msk [vmem:[#allocation2 + $0x9] sm:$0x1] %vm9714_vm3, %v9719_v6  ;;  %v10096_v6 = vrot.slane %v15483_v12, 7 }
 0x51f   : > { %9877 = vrot.lane.b32.xlu0 %v9876_v63, %s11407_s19  ;;  %v9992_v55 = vpop.permute.xlu1 %9991 }
 0x520   : > { %9994 = vst.msk [vmem:[#allocation2 + $0x5] sm:$0x1] %vm9707_vm2, %v9992_v55 }
 0x521   : > { %9996 = vst.msk [vmem:[#allocation2 + $0x5] sm:$0x1] %vm9714_vm3, %v9931_v5  ;;  %v9998_v4 = vpop.permute.xlu0 %9997  ;;  %9869 = vrot.lane.b32.xlu1 %v9868_v10, %s11407_s19  ;;  %v10088_v5 = vrot.slane %v15483_v12, 5 }
 0x522   : > { %10000 = vst.msk [vmem:[#allocation2 + $0xd] sm:$0x1] %vm9707_vm2, %v9998_v4  ;;  %v10268_v4 = vld [vmem:[%s16341_s5 + $0x378] sm:$0xff] }
 0x523   : > { %10002 = vst.msk [vmem:[#allocation2 + $0xd] sm:$0x1] %vm9714_vm3, %v9939_v28  ;;  %10097 = vrot.lane.b32.xlu0 %v10096_v6, %s11407_s19  ;;  %v9882_v39 = vpop.permute.xlu1 %9881  ;;  %v9978_v28 = vrot.slane %v15471_v18, 5  ;;  %v10255_v18 = vld [vmem:[%s16341_s5 + $0x310] sm:$0xff] }
 0x524   : > { %9884 = vst.msk [vmem:[#allocation2 + $0x3] sm:$0x1] %vm9707_vm2, %v9882_v39 }
 0x525   : > { %9886 = vst.msk [vmem:[#allocation2 + $0x3] sm:$0x1] %vm9714_vm3, %v9821_v29  ;;  %v9721_v22 = vpop.permute.xlu0 %9720  ;;  %10089 = vrot.lane.b32.xlu1 %v10088_v5, %s11407_s19 }
 0x526   : > { %9723 = vst.msk [vmem:[#allocation2 + $0x8] sm:$0x1] %vm9714_vm3, %v9721_v22  ;;  %v10283_v22 = vld [vmem:[%s16341_s5 + $0x3f0] sm:$0xff] }
 0x527   : > { %9979 = vrot.lane.b32.xlu0 %v9978_v28, %s11407_s19  ;;  %v10102_v37 = vpop.permute.xlu1 %10101 }
 0x528   : > { %10104 = vst.msk [vmem:[#allocation2 + $0x7] sm:$0x1] %vm9707_vm2, %v10102_v37 }
 0x529   : > { %10106 = vst.msk [vmem:[#allocation2 + $0x7] sm:$0x1] %vm9714_vm3, %v10041_v13  ;;  %v9941_v29 = vpop.permute.xlu0 %9940 }
 0x52a   : > { %9943 = vst.msk [vmem:[#allocation2 + $0xc] sm:$0x1] %vm9714_vm3, %v9941_v29  ;;  %v10246_v29 = vld [vmem:[%s16341_s5 + $0x2c8] sm:$0xff] }
 0x52b   : > { %v9790_v59 = vpop.permute.xlu1 %9789 }
 0x52c   : > { %9792 = vst.msk [vmem:[#allocation2 + $0x19] sm:$0x1] %vm9707_vm2, %v9790_v59  ;;  %v10267_v59 = vld [vmem:[%s16341_s5 + $0x370] sm:$0xff] }
 0x52d   : > { %9794 = vst.msk [vmem:[#allocation2 + $0x19] sm:$0x1] %vm9714_vm3, %v9735_v31  ;;  %v9712_v54 = vpop.permute.xlu0 %9711 }
 0x52e   : > { %9715 = vst.msk [vmem:[#allocation2] sm:$0x1] %vm9714_vm3, %v9712_v54  ;;  %v10230_v54 = vld [vmem:[%s16341_s5 + $0x248] sm:$0xff] }
 0x52f   : > { %v10010_v15 = vpop.permute.xlu1 %10009 }
 0x530   : > { %10012 = vst.msk [vmem:[#allocation2 + $0x1d] sm:$0x1] %vm9707_vm2, %v10010_v15 }
 0x531   : > { %10014 = vst.msk [vmem:[#allocation2 + $0x1d] sm:$0x1] %vm9714_vm3, %v9955_v21  ;;  %v9933_v9 = vpop.permute.xlu0 %9932 }
 0x532   : > { %9935 = vst.msk [vmem:[#allocation2 + $0x4] sm:$0x1] %vm9714_vm3, %v9933_v9  ;;  %v10245_v9 = vld [vmem:[%s16341_s5 + $0x2c0] sm:$0xff] }
 0x533   : > { %v9784_v32 = vpop.permute.xlu1 %9783 }
 0x534   : > { %9786 = vst.msk [vmem:[#allocation2 + $0x11] sm:$0x1] %vm9707_vm2, %v9784_v32  ;;  %v10266_v32 = vld [vmem:[%s16341_s5 + $0x368] sm:$0xff] }
 0x535   : > { %9788 = vst.msk [vmem:[#allocation2 + $0x11] sm:$0x1] %vm9714_vm3, %v9727_v11  ;;  %v9737_v31 = vpop.permute.xlu0 %9736 }
 0x536   : > { %9739 = vst.msk [vmem:[#allocation2 + $0x18] sm:$0x1] %vm9714_vm3, %v9737_v31  ;;  %v10229_v31 = vld [vmem:[%s16341_s5 + $0x240] sm:$0xff] }
 0x537   : > { %v10004_v13 = vpop.permute.xlu1 %10003 }
 0x538   : > { %10006 = vst.msk [vmem:[#allocation2 + $0x15] sm:$0x1] %vm9707_vm2, %v10004_v13 }
 0x539   : > { %10008 = vst.msk [vmem:[#allocation2 + $0x15] sm:$0x1] %vm9714_vm3, %v9947_v46  ;;  %v9957_v21 = vpop.permute.xlu0 %9956 }
 0x53a   : > { %9959 = vst.msk [vmem:[#allocation2 + $0x1c] sm:$0x1] %vm9714_vm3, %v9957_v21  ;;  %v10244_v21 = vld [vmem:[%s16341_s5 + $0x2b8] sm:$0xff] }
 0x53b   : > { %v9888_v61 = vpop.permute.xlu1 %9887 }
 0x53c   : > { %9890 = vst.msk [vmem:[#allocation2 + $0xb] sm:$0x1] %vm9707_vm2, %v9888_v61  ;;  %v10265_v61 = vld [vmem:[%s16341_s5 + $0x360] sm:$0xff] }
 0x53d   : > { %9892 = vst.msk [vmem:[#allocation2 + $0xb] sm:$0x1] %vm9714_vm3, %v9829_v41  ;;  %v9729_v62 = vpop.permute.xlu0 %9728 }
 0x53e   : > { %9731 = vst.msk [vmem:[#allocation2 + $0x10] sm:$0x1] %vm9714_vm3, %v9729_v62  ;;  %v10228_v62 = vld [vmem:[%s16341_s5 + $0x238] sm:$0xff] }
 0x53f   : > { %v10108_v11 = vpop.permute.xlu1 %10107 }
 0x540   : > { %10110 = vst.msk [vmem:[#allocation2 + $0xf] sm:$0x1] %vm9707_vm2, %v10108_v11  ;;  %v10280_v11 = vld [vmem:[%s16341_s5 + $0x3d8] sm:$0xff] }
 0x541   : > { %10112 = vst.msk [vmem:[#allocation2 + $0xf] sm:$0x1] %vm9714_vm3, %v10049_v48  ;;  %v9949_v38 = vpop.permute.xlu0 %9948 }
 0x542   : > { %9951 = vst.msk [vmem:[#allocation2 + $0x14] sm:$0x1] %vm9714_vm3, %v9949_v38 }
 0x543   : > { %v9900_v46 = vpop.permute.xlu1 %9899 }
 0x544   : > { %9902 = vst.msk [vmem:[#allocation2 + $0x1b] sm:$0x1] %vm9707_vm2, %v9900_v46  ;;  %v10243_v46 = vld [vmem:[%s16341_s5 + $0x2b0] sm:$0xff] }
 0x545   : > { %9904 = vst.msk [vmem:[#allocation2 + $0x1b] sm:$0x1] %vm9714_vm3, %v9845_v58  ;;  %v9831_v41 = vpop.permute.xlu0 %9830 }
 0x546   : > { %9833 = vst.msk [vmem:[#allocation2 + $0xa] sm:$0x1] %vm9714_vm3, %v9831_v41  ;;  %v10264_v41 = vld [vmem:[%s16341_s5 + $0x358] sm:$0xff] }
 0x547   : > { %v10120_v33 = vpop.permute.xlu1 %10119 }
 0x548   : > { %10122 = vst.msk [vmem:[#allocation2 + $0x1f] sm:$0x1] %vm9707_vm2, %v10120_v33  ;;  %v10227_v33 = vld [vmem:[%s16341_s5 + $0x230] sm:$0xff] }
 0x549   : > { %10124 = vst.msk [vmem:[#allocation2 + $0x1f] sm:$0x1] %vm9714_vm3, %v10065_v16  ;;  %v10051_v48 = vpop.permute.xlu0 %10050 }
 0x54a   : > { %10053 = vst.msk [vmem:[#allocation2 + $0xe] sm:$0x1] %vm9714_vm3, %v10051_v48 }
 0x54b   : > { %v9894_v8 = vpop.permute.xlu1 %9893 }
 0x54c   : > { %9896 = vst.msk [vmem:[#allocation2 + $0x13] sm:$0x1] %vm9707_vm2, %v9894_v8  ;;  %v10242_v8 = vld [vmem:[%s16341_s5 + $0x2a8] sm:$0xff] }
 0x54d   : > { %9898 = vst.msk [vmem:[#allocation2 + $0x13] sm:$0x1] %vm9714_vm3, %v9837_v45  ;;  %v9823_v47 = vpop.permute.xlu0 %9822 }
 0x54e   : > { %9825 = vst.msk [vmem:[#allocation2 + $0x2] sm:$0x1] %vm9714_vm3, %v9823_v47  ;;  %v10263_v47 = vld [vmem:[%s16341_s5 + $0x350] sm:$0xff] }
 0x54f   : > { %v10114_v40 = vpop.permute.xlu1 %10113 }
 0x550   : > { %10116 = vst.msk [vmem:[#allocation2 + $0x17] sm:$0x1] %vm9707_vm2, %v10114_v40  ;;  %v10226_v40 = vld [vmem:[%s16341_s5 + $0x228] sm:$0xff] }
 0x551   : > { %10118 = vst.msk [vmem:[#allocation2 + $0x17] sm:$0x1] %vm9714_vm3, %v10057_v50  ;;  %v10043_v20 = vpop.permute.xlu0 %10042  ;;  %v10150_v58 = vld [vmem:[#allocation2 + $0x8] sm:$0xff] }
 0x552   : > { %10045 = vst.msk [vmem:[#allocation2 + $0x6] sm:$0x1] %vm9714_vm3, %v10043_v20  ;;  %10356 = vmatprep.mubr.f32.mxu0 %v10150_v58  ;;  %v10278_v20 = vld [vmem:[%s16341_s5 + $0x3c8] sm:$0xff] }
 0x553   : > { %v9839_v2 = vpop.permute.xlu1 %9838 }
 0x554   : > { %9841 = vst.msk [vmem:[#allocation2 + $0x12] sm:$0x1] %vm9714_vm3, %v9839_v2  ;;  %v10241_v2 = vld [vmem:[%s16341_s5 + $0x2a0] sm:$0xff] }
 0x555   : > { %v9847_v57 = vpop.permute.xlu0 %9846 }
 0x556   : > { %9849 = vst.msk [vmem:[#allocation2 + $0x1a] sm:$0x1] %vm9714_vm3, %v9847_v57  ;;  %v10262_v57 = vld [vmem:[%s16341_s5 + $0x348] sm:$0xff] }
 0x557   : > { %v10059_v45 = vpop.permute.xlu1 %10058 }
 0x558   : > { %10061 = vst.msk [vmem:[#allocation2 + $0x16] sm:$0x1] %vm9714_vm3, %v10059_v45  ;;  %v10225_v45 = vld [vmem:[%s16341_s5 + $0x220] sm:$0xff] }
 0x559   : > { %v10067_v7 = vpop.permute.xlu0 %10066  ;;  %v10149_v50 = vld [vmem:[#allocation2] sm:$0xff] }
 0x55a   : > { %10069 = vst.msk [vmem:[#allocation2 + $0x1e] sm:$0x1] %vm9714_vm3, %v10067_v7  ;;  %10357 = vmatmul.mubr.f32.vlgmr.msra.gmra.mxu0 %v10149_v50  ;;  %v10240_v7 = vld [vmem:[%s16341_s5 + $0x298] sm:$0xff]  ;;  %v10261_v50 = vld [vmem:[%s16341_s5 + $0x340] sm:$0xff] }
 0x55b   : > { %v9796_v16 = vpop.permute.xlu1 %9795  ;;  %11219 = vmatpush3.msra.mxu0 %v10236_v44 }
 0x55c   : > { %9798 = vst.msk [vmem:[#allocation2 + $0x21] sm:$0x1] %vm9707_vm2, %v9796_v16  ;;  %11220 = vmatprep.subr.mxu0 %v10251_v51  ;;  %v10224_v51 = vld [vmem:[%s16341_s5 + $0x218] sm:$0xff] }
 0x55d   : > { %9800 = vst.msk [vmem:[#allocation2 + $0x21] sm:$0x1] %vm9714_vm3, %v9742_v26  ;;  %v9802_v60 = vpop.permute.xlu0 %9801  ;;  %11221 = vmatpush3.msra.mxu0 %v10235_v1  ;;  %v10248_v26 = vld [vmem:[%s16341_s5 + $0x2d8] sm:$0xff] }
 0x55e   : > { %9804 = vst.msk [vmem:[#allocation2 + $0x29] sm:$0x1] %vm9707_vm2, %v9802_v60  ;;  %11222 = vmatprep.subr.mxu0 %v10250_v34  ;;  %v10276_v1 = vld [vmem:[%s16341_s5 + $0x3b8] sm:$0xff]  ;;  %v10239_v34 = vld [vmem:[%s16341_s5 + $0x290] sm:$0xff] }
 0x55f   : > { %9806 = vst.msk [vmem:[#allocation2 + $0x29] sm:$0x1] %vm9714_vm3, %v9750_v43  ;;  %v10016_v17 = vpop.permute.xlu1 %10015  ;;  %11223 = vmatpush3.msra.mxu0 %v10234_v35  ;;  %v10247_v43 = vld [vmem:[%s16341_s5 + $0x2d0] sm:$0xff]  ;;  %v10260_v35 = vld [vmem:[%s16341_s5 + $0x338] sm:$0xff] }
 0x560   : > { %10018 = vst.msk [vmem:[#allocation2 + $0x25] sm:$0x1] %vm9707_vm2, %v10016_v17  ;;  %11224 = vmatprep.subr.mxu0 %v10249_v0  ;;  %v10151_v39 = vld [vmem:[#allocation2 + $0x10] sm:$0xff] }
 0x561   : > { %10020 = vst.msk [vmem:[#allocation2 + $0x25] sm:$0x1] %vm9714_vm3, %v9962_v23  ;;  %v10022_v19 = vpop.permute.xlu0 %10021  ;;  %v10152_v55 = vld [vmem:[#allocation2 + $0x18] sm:$0xff]  ;;  %11225 = vmatpush3.msra.mxu0 %v10233_v14  ;;  %v10231_v23 = vld [vmem:[%s16341_s5 + $0x250] sm:$0xff]  ;;  %v10238_v14 = vld [vmem:[%s16341_s5 + $0x288] sm:$0xff] }
 0x562   : > { %10024 = vst.msk [vmem:[#allocation2 + $0x2d] sm:$0x1] %vm9707_vm2, %v10022_v19  ;;  %10426 = vmatprep.mubr.f32.mxu1 %v10152_v55  ;;  %11226 = vmatprep.subr.mxu0 %v10248_v26  ;;  %v10223_v60 = vld [vmem:[%s16341_s5 + $0x210] sm:$0xff]  ;;  %v10222_v26 = vld [vmem:[%s16341_s5 + $0x208] sm:$0xff]  ;;  %v10237_v55 = vld [vmem:[%s16341_s5 + $0x280] sm:$0xff] }
 0x563   : > { %10026 = vst.msk [vmem:[#allocation2 + $0x2d] sm:$0x1] %vm9714_vm3, %v9970_v24  ;;  %10427 = vmatmul.mubr.f32.vlgmr.msra.gmra.mxu1 %v10151_v39  ;;  %v9906_v37 = vpop.permute.xlu1 %9905  ;;  %11227 = vmatpush3.msra.mxu0 %v10232_v27  ;;  %v10282_v24 = vld [vmem:[%s16341_s5 + $0x3e8] sm:$0xff]  ;;  %v10259_v17 = vld [vmem:[%s16341_s5 + $0x330] sm:$0xff]  ;;  %v10257_v39 = vld [vmem:[%s16341_s5 + $0x320] sm:$0xff] }
 0x564   : > { %9908 = vst.msk [vmem:[#allocation2 + $0x23] sm:$0x1] %vm9707_vm2, %v9906_v37  ;;  %11228 = vmatprep.subr.mxu0 %v10247_v43  ;;  %11254 = vmatpush3.msra.mxu1 %v10268_v4  ;;  %v10274_v27 = vld [vmem:[%s16341_s5 + $0x3a8] sm:$0xff]  ;;  %v10256_v37 = vld [vmem:[%s16341_s5 + $0x318] sm:$0xff] }
 0x565   : > { %9910 = vst.msk [vmem:[#allocation2 + $0x23] sm:$0x1] %vm9714_vm3, %v9852_v56  ;;  %v9752_v15 = vpop.permute.xlu0 %9751  ;;  %11229 = vmatpush3.msra.mxu0 %v10231_v23  ;;  %11255 = vmatprep.subr.mxu1 %v10283_v22  ;;  %v10281_v56 = vld [vmem:[%s16341_s5 + $0x3e0] sm:$0xff]  ;;  %v10258_v43 = vld [vmem:[%s16341_s5 + $0x328] sm:$0xff]  ;;  %v10272_v23 = vld [vmem:[%s16341_s5 + $0x398] sm:$0xff] }
 0x566   : > { %9754 = vst.msk [vmem:[#allocation2 + $0x28] sm:$0x1] %vm9714_vm3, %v9752_v15  ;;  %11230 = vmatprep.subr.mxu0 %v10246_v29  ;;  %11256 = vmatpush3.msra.mxu1 %v10267_v59  ;;  %v10271_v29 = vld [vmem:[%s16341_s5 + $0x390] sm:$0xff]  ;;  %v10269_v15 = vld [vmem:[%s16341_s5 + $0x380] sm:$0xff] }
 0x567   : > { %v10126_v13 = vpop.permute.xlu1 %10125  ;;  %11231 = vmatpush3.msra.mxu0 %v10230_v54  ;;  %11257 = vmatprep.subr.mxu1 %v10282_v24  ;;  %v10254_v24 = vld [vmem:[%s16341_s5 + $0x308] sm:$0xff] }
 0x568   : > { %10128 = vst.msk [vmem:[#allocation2 + $0x27] sm:$0x1] %vm9707_vm2, %v10126_v13  ;;  %11232 = vmatprep.subr.mxu0 %v10245_v9  ;;  %11258 = vmatpush3.msra.mxu1 %v10266_v32  ;;  %v10253_v32 = vld [vmem:[%s16341_s5 + $0x300] sm:$0xff] }
 0x569   : > { %10130 = vst.msk [vmem:[#allocation2 + $0x27] sm:$0x1] %vm9714_vm3, %v10072_v42  ;;  %v9972_v38 = vpop.permute.xlu0 %9971  ;;  %11233 = vmatpush3.msra.mxu0 %v10229_v31  ;;  %11259 = vmatprep.subr.mxu1 %v10281_v56  ;;  %v10279_v42 = vld [vmem:[%s16341_s5 + $0x3d0] sm:$0xff] }
 0x56a   : > { %9974 = vst.msk [vmem:[#allocation2 + $0x2c] sm:$0x1] %vm9714_vm3, %v9972_v38  ;;  %11234 = vmatprep.subr.mxu0 %v10244_v21  ;;  %11260 = vmatpush3.msra.mxu1 %v10265_v61 }
 0x56b   : > { %v9814_v48 = vpop.permute.xlu1 %9813  ;;  %11235 = vmatpush3.msra.mxu0 %v10228_v62  ;;  %11261 = vmatprep.subr.mxu1 %v10280_v11 }
 0x56c   : > { %9816 = vst.msk [vmem:[#allocation2 + $0x39] sm:$0x1] %vm9707_vm2, %v9814_v48  ;;  %11236 = vmatprep.subr.mxu0 %v10243_v46  ;;  %11262 = vmatpush3.msra.mxu1 %v10264_v41 }
 0x56d   : > { %9818 = vst.msk [vmem:[#allocation2 + $0x39] sm:$0x1] %vm9714_vm3, %v9766_v49  ;;  %v9744_v58 = vpop.permute.xlu0 %9743  ;;  %11237 = vmatpush3.msra.mxu0 %v10227_v33  ;;  %11263 = vmatprep.subr.mxu1 %v10279_v42  ;;  %v10277_v49 = vld [vmem:[%s16341_s5 + $0x3c0] sm:$0xff] }
 0x56e   : > { %9746 = vst.msk [vmem:[#allocation2 + $0x20] sm:$0x1] %vm9714_vm3, %v9744_v58  ;;  %11238 = vmatprep.subr.mxu0 %v10242_v8  ;;  %11264 = vmatpush3.msra.mxu1 %v10263_v47 }
 0x56f   : > { %v10034_v44 = vpop.permute.xlu1 %10033  ;;  %11239 = vmatpush3.msra.mxu0 %v10226_v40  ;;  %11265 = vmatprep.subr.mxu1 %v10278_v20  ;;  %v11142_v40 = vld [vmem:[%s16342_s6] ss:$0 sm:$0xff] }
 0x570   : > { %10036 = vst.msk [vmem:[#allocation2 + $0x3d] sm:$0x1] %vm9707_vm2, %v10034_v44  ;;  %11240 = vmatprep.subr.mxu0 %v10241_v2  ;;  %11266 = vmatpush3.msra.mxu1 %v10262_v57 }
 0x571   : > { %10038 = vst.msk [vmem:[#allocation2 + $0x3d] sm:$0x1] %vm9714_vm3, %v9986_v30  ;;  %v9964_v16 = vpop.permute.xlu0 %9963  ;;  %11241 = vmatpush3.msra.mxu0 %v10225_v45  ;;  %11267 = vmatprep.subr.mxu1 %v10277_v49  ;;  %v10275_v30 = vld [vmem:[%s16341_s5 + $0x3b0] sm:$0xff] }
 0x572   : > { %9966 = vst.msk [vmem:[#allocation2 + $0x24] sm:$0x1] %vm9714_vm3, %v9964_v16  ;;  %11242 = vmatprep.subr.mxu0 %v10240_v7  ;;  %11268 = vmatpush3.msra.mxu1 %v10261_v50 }
 0x573   : > { %v9808_v0 = vpop.permute.xlu1 %9807  ;;  %11243 = vmatpush3.msra.mxu0 %v10224_v51  ;;  %11269 = vmatprep.subr.mxu1 %v10276_v1 }
 0x574   : > { %9810 = vst.msk [vmem:[#allocation2 + $0x31] sm:$0x1] %vm9707_vm2, %v9808_v0  ;;  %11244 = vmatprep.subr.mxu0 %v10239_v34  ;;  %11270 = vmatpush3.msra.mxu1 %v10260_v35 }
 0x575   : > { %9812 = vst.msk [vmem:[#allocation2 + $0x31] sm:$0x1] %vm9714_vm3, %v9758_v52  ;;  %v9768_v19 = vpop.permute.xlu0 %9767  ;;  %11245 = vmatpush3.msra.mxu0 %v10223_v60  ;;  %11271 = vmatprep.subr.mxu1 %v10275_v30  ;;  %v10273_v52 = vld [vmem:[%s16341_s5 + $0x3a0] sm:$0xff] }
 0x576   : > { %9770 = vst.msk [vmem:[#allocation2 + $0x38] sm:$0x1] %vm9714_vm3, %v9768_v19  ;;  %11246 = vmatprep.subr.mxu0 %v10238_v14  ;;  %11272 = vmatpush3.msra.mxu1 %v10259_v17 }
 0x577   : > { %v10028_v4 = vpop.permute.xlu1 %10027  ;;  %11247 = vmatpush3.msra.mxu0 %v10222_v26  ;;  %11273 = vmatprep.subr.mxu1 %v10274_v27 }
 0x578   : > { %10030 = vst.msk [vmem:[#allocation2 + $0x35] sm:$0x1] %vm9707_vm2, %v10028_v4  ;;  %11248 = vmatprep.subr.mxu0 %v10237_v55  ;;  %11274 = vmatpush3.msra.mxu1 %v10258_v43 }
 0x579   : > { %10032 = vst.msk [vmem:[#allocation2 + $0x35] sm:$0x1] %vm9714_vm3, %v9978_v28  ;;  %v9988_v22 = vpop.permute.xlu0 %9987  ;;  %11249 = vmatpush3.msra.mxu0 %v10221_v36  ;;  %11275 = vmatprep.subr.mxu1 %v10273_v52  ;;  %v10270_v28 = vld [vmem:[%s16341_s5 + $0x388] sm:$0xff] }
 0x57a   : > { %9990 = vst.msk [vmem:[#allocation2 + $0x3c] sm:$0x1] %vm9714_vm3, %v9988_v22  ;;  %11276 = vmatpush3.msra.mxu1 %v10257_v39 }
 0x57b   : > { %v9912_v59 = vpop.permute.xlu1 %9911  ;;  %11277 = vmatprep.subr.mxu1 %v10272_v23 }
 0x57c   : > { %9914 = vst.msk [vmem:[#allocation2 + $0x2b] sm:$0x1] %vm9707_vm2, %v9912_v59  ;;  %11278 = vmatpush3.msra.mxu1 %v10256_v37 }
 0x57d   : > { %9916 = vst.msk [vmem:[#allocation2 + $0x2b] sm:$0x1] %vm9714_vm3, %v9860_v25  ;;  %v9760_v54 = vpop.permute.xlu0 %9759  ;;  %11279 = vmatprep.subr.mxu1 %v10271_v29 }
 0x57e   : > { %9762 = vst.msk [vmem:[#allocation2 + $0x30] sm:$0x1] %vm9714_vm3, %v9760_v54  ;;  %11280 = vmatpush3.msra.mxu1 %v10255_v18 }
 0x57f   : > { %v10132_v9 = vpop.permute.xlu1 %10131  ;;  %11281 = vmatprep.subr.mxu1 %v10270_v28 }
 0x580   : > { %10134 = vst.msk [vmem:[#allocation2 + $0x2f] sm:$0x1] %vm9707_vm2, %v10132_v9  ;;  %11282 = vmatpush3.msra.mxu1 %v10254_v24 }
 0x581   : > { %10136 = vst.msk [vmem:[#allocation2 + $0x2f] sm:$0x1] %vm9714_vm3, %v10080_v53  ;;  %v9862_v25 = vpop.permute.xlu0 %9861  ;;  %11283 = vmatprep.subr.mxu1 %v10269_v15 }
 0x582   : > { %9864 = vst.msk [vmem:[#allocation2 + $0x2a] sm:$0x1] %vm9714_vm3, %v9862_v25  ;;  %11284 = vmatpush3.msra.mxu1 %v10253_v32 }
 0x583   : > { %v9924_v31 = vpop.permute.xlu1 %9923 }
 0x584   : > { %9926 = vst.msk [vmem:[#allocation2 + $0x3b] sm:$0x1] %vm9707_vm2, %v9924_v31 }
 0x585   : > { %9928 = vst.msk [vmem:[#allocation2 + $0x3b] sm:$0x1] %vm9714_vm3, %v9876_v63  ;;  %v10082_v56 = vpop.permute.xlu0 %10081 }
 0x586   : > { %10084 = vst.msk [vmem:[#allocation2 + $0x2e] sm:$0x1] %vm9714_vm3, %v10082_v56 }
 0x587   : > { %v10144_v13 = vpop.permute.xlu1 %10143 }
 0x588   : > { %10146 = vst.msk [vmem:[#allocation2 + $0x3f] sm:$0x1] %vm9707_vm2, %v10144_v13 }
 0x589   : > { %10148 = vst.msk [vmem:[#allocation2 + $0x3f] sm:$0x1] %vm9714_vm3, %v10096_v6  ;;  %v9854_v53 = vpop.permute.xlu0 %9853 }
 0x58a   : > { %9856 = vst.msk [vmem:[#allocation2 + $0x22] sm:$0x1] %vm9714_vm3, %v9854_v53 }
 0x58b   : > { %v9918_v21 = vpop.permute.xlu1 %9917 }
 0x58c   : > { %9920 = vst.msk [vmem:[#allocation2 + $0x33] sm:$0x1] %vm9707_vm2, %v9918_v21 }
 0x58d   : > { %9922 = vst.msk [vmem:[#allocation2 + $0x33] sm:$0x1] %vm9714_vm3, %v9868_v10  ;;  %v10074_v63 = vpop.permute.xlu0 %10073  ;;  %v10154_v61 = vld [vmem:[#allocation2 + $0x28] sm:$0xff] }
 0x58e   : > { %10076 = vst.msk [vmem:[#allocation2 + $0x26] sm:$0x1] %vm9714_vm3, %v10074_v63  ;;  %10496 = vmatprep.mubr.f32.mxu0 %v10154_v61 }
 0x58f   : > { %v10138_v62 = vpop.permute.xlu1 %10137 }
 0x590   : > { %10140 = vst.msk [vmem:[#allocation2 + $0x37] sm:$0x1] %vm9707_vm2, %v10138_v62 }
 0x591   : > { %10142 = vst.msk [vmem:[#allocation2 + $0x37] sm:$0x1] %vm9714_vm3, %v10088_v5  ;;  %v9878_v6 = vpop.permute.xlu0 %9877 }
 0x592   : > { %9880 = vst.msk [vmem:[#allocation2 + $0x3a] sm:$0x1] %vm9714_vm3, %v9878_v6 }
 0x593   : > { %v9870_v11 = vpop.permute.xlu1 %9869 }
 0x594   : > { %9872 = vst.msk [vmem:[#allocation2 + $0x32] sm:$0x1] %vm9714_vm3, %v9870_v11 }
 0x595   : > { %v10098_v3 = vpop.permute.xlu0 %10097  ;;  %v10153_v10 = vld [vmem:[#allocation2 + $0x20] sm:$0xff] }
 0x596   : > { %10100 = vst.msk [vmem:[#allocation2 + $0x3e] sm:$0x1] %vm9714_vm3, %v10098_v3  ;;  %10497 = vmatmul.mubr.f32.vlgmr.msra.gmra.mxu0 %v10153_v10 }
 0x597   : > { %v10090_v38 = vpop.permute.xlu1 %10089 }
 0x598   : > { %10092 = vst.msk [vmem:[#allocation2 + $0x36] sm:$0x1] %vm9714_vm3, %v10090_v38 }
 0x599   : > { %v9980_v46 = vpop.permute.xlu0 %9979 }
 0x59a   : > { %9982 = vst.msk [vmem:[#allocation2 + $0x34] sm:$0x1] %vm9714_vm3, %v9980_v46 }
 0x59d   : > { %v10156_v12 = vld [vmem:[#allocation2 + $0x38] sm:$0xff] }
 0x59e   : > { %10566 = vmatprep.mubr.f32.mxu1 %v10156_v12 }
 0x5a1   : > { %v10155_v5 = vld [vmem:[#allocation2 + $0x30] sm:$0xff] }
 0x5a2   : > { %10567 = vmatmul.mubr.f32.vlgmr.msra.gmra.mxu1 %v10155_v5 }
 0x61a   : > { %v11180_v41 = vpop.f32.mrf.mxu0 }
 0x61c   : > { %v11181_v33 = vpop.f32.mrf.mxu0 }
 0x61d   : > { %v11182_v47 = vadd.f32 %v11181_v33, %v11180_v41 }
 0x61f   : > { %v10359_v2 = vadd.f32 %v11182_v47, %v11142_v40 }
 0x623   : > { %v11215_v42 = vpop.f32.mrf.mxu1 }
 0x625   : > { %v11216_v8 = vpop.f32.mrf.mxu1 }
 0x626   : > { %v11217_v58 = vadd.f32 %v11216_v8, %v11215_v42 }
 0x628   : > { %v10429_v49 = vadd.f32 %v11217_v58, %v10359_v2 }
 0x656   : > { %v11250_v48 = vpop.f32.mrf.mxu0 }
 0x658   : > { %v11251_v20 = vpop.f32.mrf.mxu0 }
 0x659   : > { %v11252_v57 = vadd.f32 %v11251_v20, %v11250_v48 }
 0x65b   : > { %v10499_v7 = vadd.f32 %v11252_v57, %v10429_v49 }
 0x662   : > { %v11285_v45 = vpop.f32.mrf.mxu1 }
 0x664   : > { %v11286_v44 = vpop.f32.mrf.mxu1 }
 0x665   : > { %v11287_v50 = vadd.f32 %v11286_v44, %v11285_v45 }
 0x667   : > { %v10569_v51 = vadd.f32 %v11287_v50, %v10499_v7 }
 0x669   : > { %10572 = vst [vmem:[%s271_s29] sm:$0xff] %v10569_v51 }
 0x66a   : > { %11353 = shalt.err (!%p11350_p3)
}
 0x66b   : > { %s11354_s21 = scalar_lea.hbm %s10585_s14, 128  ;;  %s11358_s22 = scalar_lea.hbm %s16343_s7, 256 }
 0x66c   : > { %p11355_p4 = scmp.ne.s32.totalorder %s10585_s14, %s11354_s21  ;;  %p11359_p9 = scmp.lt.s32.totalorder %s10585_s14, %s16343_s7 }
 0x66d   : > { %p11360_p10 = scmp.lt.s32.totalorder %s11358_s22, %s11354_s21 }
 0x66e   : > { %p11356_p7 = pnand %p11355_p4, %p11487_p5 }
 0x66f   : > { %p11361_p11 = por %p11360_p10, %p11359_p9 }
 0x670   : > { %p11357_p8 = pneg %p11356_p7 }
 0x672   : > { %p11362_p12 = pnand %p11361_p11, %p11357_p8 }
 0x674   : > { %11365 = shalt.err (!%p11362_p12)
}
 0x675   : > { %11288 = dma.vmem_to_hbm [thread:$0]  (%p11487_p5), %s10588_s8, 128, %s10585_s14, %s10574_s15  }
 0x676 PF: > { %p11294_p13 = scmp.ge.s32.totalorder %s11400_s27, 2  ;;  %s10599_s9 = sand.u32 1, %s11388_s24  }
 0x677   : > { %s10600_s13 = scalar_lea.sflag [#allocation4], %s10599_s9 }
 0x678   : > { %p11291_p0 = pnand %p11294_p13, %p11491_p6 }
 0x67a   : > { %p11292_p1 = pneg %p11291_p0 }
 0x67c   : > { %11383 = dma.done.wait (%p11292_p1), %s10600_s13, 128  }
 0x67d   : > { %11385 = vsyncadd (%p11292_p1), %s10600_s13, 4294967168  ;;  %p17_p2 = scmp.ge.s32.totalorder %s11474_s30, 4   ;;  %s17395_s24 = smov %s11392_s25 }
 0x67e   : > { %s17396_s25 = smov %s11396_s26  ;;  %s17397_s26 = smov %s11485_s10 }
 0x67f   : > { %s17398_s27 = smov %s11474_s30  ;;  %19 = sbr.rel (!%p17_p2) target bundleno = 3 (0x3), region = 83 }
 0x684   :  { %10605 = vsyncpa [#allocation4], 1 }
 0x685   :  { %10607 = vsyncpa [#allocation4 + $0x1], 1 }

</bundles_post_ra>
